<compile_context>
chip_gen: v6e
topology: v6e:2x2x1
jax: 0.10.0
libtpu: 0.0.40
codegen_flags: <defaults>
</compile_context>

<pallas_src>
import jax
import jax.numpy as jnp
import numpy as np
from jax.experimental import pallas as pl
from jax.experimental.pallas import tpu as pltpu

# ----------------------------- config ---------------------------------------
FEATURE_DIM = 32
USE_XYZ = True
LATENT_DIM = 4
N_NEURONS = 64
D_OUT = 3
D_IN = FEATURE_DIM + (3 if USE_XYZ else 0) + LATENT_DIM  # = 39

TILE_N = 4096  # points per grid step (sweep 2048/4096; cap at 4096 on v7x)


def _round_up(x, m):
    return -(-x // m) * m


# ----------------------------- Pallas kernel --------------------------------
def _color_mlp_kernel(feat_ref, xyz_ref, w1f_ref, w2_ref, w3_ref, consts_ref,
                      o_ref):
    """Fused compose + 3-layer MLP + sigmoid on one tile of points.

    feat_ref  : (T, 32) f32    raw gaussian features (cast to bf16 in-kernel)
    xyz_ref   : (T, 3)  f32    raw xyz (aabb fold lives in consts rows 0..2)
    w1f_ref   : (32, 64) bf16  layer-1 weight, feature block
    w2_ref    : (64, 64) bf16
    w3_ref    : (64, 3)  bf16
    consts_ref: (6, 64) f32    rows 0..2 = effective xyz weight (aabb-scaled),
                               row 3 = b1_eff (incl. latent + aabb shift),
                               row 4 = b2, row 5[:3] = b3
    """
    feats = feat_ref[...]                               # (T, 32) f32
    xyz = xyz_ref[...]                                  # (T, 3)  f32

    # Layer 1: single K=32 bf16 MXU dot for the feature block, f32 accumulate.
    h = jnp.dot(feats.astype(jnp.bfloat16), w1f_ref[...],
                preferred_element_type=jnp.float32)     # (T, 64) f32

    # xyz contribution on the VPU in f32 (no K=3 MXU dot, no bf16 xyz loss).
    h = (h
         + xyz[:, 0:1] * consts_ref[0:1, :]
         + xyz[:, 1:2] * consts_ref[1:2, :]
         + xyz[:, 2:3] * consts_ref[2:3, :])

    # bias + ReLU + bf16 downcast fused: inter-layer intermediate stays bf16.
    h = jnp.maximum(h + consts_ref[3:4, :], 0.0).astype(jnp.bfloat16)

    # Layer 2
    h = jnp.dot(h, w2_ref[...], preferred_element_type=jnp.float32)
    h = jnp.maximum(h + consts_ref[4:5, :], 0.0).astype(jnp.bfloat16)

    # Layer 3 + sigmoid
    out = jnp.dot(h, w3_ref[...], preferred_element_type=jnp.float32)
    out = out + consts_ref[5:6, :D_OUT]
    o_ref[...] = jax.nn.sigmoid(out).astype(o_ref.dtype)


def color_mlp_pallas(feats, xyz, latent_code, params, aabb_min, aabb_max,
                     tile_n=TILE_N):
    """Fused ColorMLP forward.

    feats       : (N, 32) f32  gaussian features (already squeezed)
    xyz         : (N, 3)  f32  raw gaussian positions
    latent_code : (1, 4)  f32  per-frame latent code (constant over points)
    params      : (w1 (39,64), b1 (1,64), w2 (64,64), b2 (1,64),
                   w3 (64,3), b3 (1,3))  f32, weights stored as (in, out)
    Returns (N, 3) f32 colors in (0, 1).
    """
    n = feats.shape[0]
    w1, b1, w2, b2, w3, b3 = params

    # Split layer-1 weight by input source; fold aabb normalization and the
    # (per-call constant) latent contribution into the weight / bias.
    #   xyz_norm = xyz * scale + shift   (sym aabb normalize)
    #   xyz_norm @ W1x = xyz @ (scale[:,None]*W1x) + shift @ W1x
    w1_feat = w1[:FEATURE_DIM]                          # (32, 64)
    w1_xyz = w1[FEATURE_DIM:FEATURE_DIM + 3]            # (3, 64)
    w1_lat = w1[FEATURE_DIM + 3:]                       # (4, 64)
    scale = 2.0 / (aabb_max - aabb_min)                 # (3,)
    shift = -2.0 * aabb_min / (aabb_max - aabb_min) - 1.0
    w1_xyz_eff = scale[:, None] * w1_xyz                # (3, 64) f32
    b1_eff = b1 + shift[None, :] @ w1_xyz + latent_code @ w1_lat  # (1, 64)

    # Pack the effective xyz weight + the three biases into one small f32
    # constant block (single resident VMEM operand).
    consts = jnp.zeros((6, N_NEURONS), jnp.float32)
    consts = consts.at[0:3].set(w1_xyz_eff)
    consts = consts.at[3].set(b1_eff[0])
    consts = consts.at[4].set(b2[0])
    consts = consts.at[5, :D_OUT].set(b3[0])

    # Only the (tiny) weights are cast in the wrapper; the big per-point arrays
    # go into the kernel untouched (cast to bf16 in-kernel).
    w1f_bf = w1_feat.astype(jnp.bfloat16)
    w2_bf = w2.astype(jnp.bfloat16)
    w3_bf = w3.astype(jnp.bfloat16)

    # Tile selection: big tiles to amortize the ~0.35 us/step overhead, shrink
    # for small N, and keep >= 2 grid steps when possible so both v7x
    # TensorCores are fed.  Tile stays a multiple of 8 (sublane rule).
    tile = min(tile_n, _round_up(n, 8))
    while tile > 1024 and -(-n // tile) < 2:
        tile //= 2
    grid = -(-n // tile)   # Pallas handles the partial last tile (masked store)

    def resident(shape):
        # full-array block, same index every grid step -> stays resident in VMEM
        return pl.BlockSpec(shape, lambda i: (0, 0))

    out = pl.pallas_call(
        _color_mlp_kernel,
        out_shape=jax.ShapeDtypeStruct((n, D_OUT), jnp.float32),
        grid=(grid,),
        in_specs=[
            pl.BlockSpec((tile, FEATURE_DIM), lambda i: (i, 0)),
            pl.BlockSpec((tile, 3), lambda i: (i, 0)),
            resident((FEATURE_DIM, N_NEURONS)),
            resident((N_NEURONS, N_NEURONS)),
            resident((N_NEURONS, D_OUT)),
            resident((6, N_NEURONS)),
        ],
        out_specs=pl.BlockSpec((tile, D_OUT), lambda i: (i, 0)),
        compiler_params=pltpu.CompilerParams(
            dimension_semantics=("parallel",),
            vmem_limit_bytes=32 * 1024 * 1024),
    )(feats, xyz, w1f_bf, w2_bf, w3_bf, consts)
    return out


# ------------------------- deterministic params ------------------------------
def init_params(key):
    """nn.Linear-style init; weights stored as (in, out) so kernel does x @ W."""
    def linear(key, fan_in, fan_out):
        kw, kb = jax.random.split(key)
        bound = 1.0 / np.sqrt(fan_in)
        w = jax.random.uniform(kw, (fan_in, fan_out), jnp.float32, -bound, bound)
        b = jax.random.uniform(kb, (1, fan_out), jnp.float32, -bound, bound)
        return w, b

    k1, k2, k3, k4 = jax.random.split(key, 4)
    w1, b1 = linear(k1, D_IN, N_NEURONS)
    w2, b2 = linear(k2, N_NEURONS, N_NEURONS)
    w3, b3 = linear(k3, N_NEURONS, D_OUT)
    # nn.Embedding(len(frame_dict), latent_dim), default init ~ N(0,1)
    latent_table = jax.random.normal(k4, (8, LATENT_DIM), jnp.float32)
    return (w1, b1, w2, b2, w3, b3), latent_table


# --------------------------- pure-JAX reference -------------------------------
def aabb_normalize_sym(xyz, aabb_min, aabb_max):
    # matches aabb.normalize(x, sym=True): map box to [-1, 1]
    return 2.0 * (xyz - aabb_min) / (aabb_max - aabb_min) - 1.0


def reference_forward(feats, xyz, latent_code, params, aabb_min, aabb_max):
    """Exact f32 semantics of ColorMLP.forward (compose + MLP + sigmoid)."""
    w1, b1, w2, b2, w3, b3 = params
    n = feats.shape[0]
    xyz_norm = aabb_normalize_sym(xyz, aabb_min, aabb_max)
    latent = jnp.broadcast_to(latent_code, (n, LATENT_DIM))
    inp = jnp.concatenate([feats, xyz_norm, latent], axis=1)
    h = jnp.maximum(inp @ w1 + b1, 0.0)
    h = jnp.maximum(h @ w2 + b2, 0.0)
    return jax.nn.sigmoid(h @ w3 + b3)


# --------------------------------- main ---------------------------------------
if __name__ == "__main__":
    key = jax.random.PRNGKey(0)
    k_feat, k_xyz, k_par = jax.random.split(key, 3)

    # Small demo sizes; deliberately NOT a multiple of the tile size / 8 to
    # exercise the partial-tile path.
    N_POINTS = 1000

    # Synthetic "gaussians": features (N, feature_dim, 1), xyz (N, 3)
    features_raw = jax.random.normal(k_feat, (N_POINTS, FEATURE_DIM, 1),
                                     jnp.float32)
    xyz = jax.random.uniform(k_xyz, (N_POINTS, 3), jnp.float32, -0.5, 1.5)
    aabb_min = jnp.array([-1.0, -1.0, -1.0], jnp.float32)
    aabb_max = jnp.array([2.0, 2.0, 2.0], jnp.float32)

    params, latent_table = init_params(k_par)
    # camera.frame_id -> frame_dict lookup happens host-side in the original
    # TODO(synk): host-side frame_dict dict lookup has no in-kernel equivalent.
    latent_idx = jnp.array([3], dtype=jnp.int32)
    latent_code = latent_table[latent_idx]              # (1, latent_dim)

    feats = jnp.squeeze(features_raw, axis=-1)          # (N, 32)

    color = color_mlp_pallas(feats, xyz, latent_code, params, aabb_min,
                             aabb_max)
    color = jax.block_until_ready(color)
    loss_reg = {}  # forward returns (color, {})

    ref = jax.block_until_ready(
        reference_forward(feats, xyz, latent_code, params, aabb_min, aabb_max))
    # Feature path streams through the MXU in bf16 (f32 accumulation); the xyz
    # path stays f32 on the VPU, so ~1e-3 agreement with the f32 model.
    np.testing.assert_allclose(np.asarray(color), np.asarray(ref),
                               rtol=1e-2, atol=1e-2)
    assert color.shape == (N_POINTS, D_OUT)

    print("KERNEL_OK")
</pallas_src>

<mosaic_0001>
module attributes {stable_mosaic.version = 11 : i64} {
  func.func @_color_mlp_kernel(%arg0: i32, %arg1: memref<1000x32xf32, #tpu.memory_space<vmem>>, %arg2: memref<1000x3xf32, #tpu.memory_space<vmem>>, %arg3: memref<32x64xbf16, #tpu.memory_space<vmem>>, %arg4: memref<64x64xbf16, #tpu.memory_space<vmem>>, %arg5: memref<64x3xbf16, #tpu.memory_space<vmem>>, %arg6: memref<6x64xf32, #tpu.memory_space<vmem>>, %arg7: memref<1000x3xf32, #tpu.memory_space<vmem>>) attributes {dimension_semantics = [#tpu.dimension_semantics<parallel>], iteration_bounds = array<i64: 1>, scalar_prefetch = 0 : i64, scratch_operands = 0 : i64, tpu.core_type = #tpu.core_type<tc>, window_params = [{transform_indices = @transform_0, window_bounds = array<i64: 1000, 32>}, {transform_indices = @transform_1, window_bounds = array<i64: 1000, 3>}, {pipeline_mode = #tpu.pipeline_mode<synchronous>, transform_indices = @transform_2, window_bounds = array<i64: 32, 64>}, {pipeline_mode = #tpu.pipeline_mode<synchronous>, transform_indices = @transform_3, window_bounds = array<i64: 64, 64>}, {pipeline_mode = #tpu.pipeline_mode<synchronous>, transform_indices = @transform_4, window_bounds = array<i64: 64, 3>}, {pipeline_mode = #tpu.pipeline_mode<synchronous>, transform_indices = @transform_5, window_bounds = array<i64: 6, 64>}, {transform_indices = @transform_6, window_bounds = array<i64: 1000, 3>}]} {
    %c0 = arith.constant 0 : index
    %c0_0 = arith.constant 0 : index
    %0 = vector.load %arg1[%c0, %c0_0] : memref<1000x32xf32, #tpu.memory_space<vmem>>, vector<1000x32xf32>
    %c0_1 = arith.constant 0 : index
    %c0_2 = arith.constant 0 : index
    %1 = vector.load %arg2[%c0_1, %c0_2] : memref<1000x3xf32, #tpu.memory_space<vmem>>, vector<1000x3xf32>
    %2 = arith.truncf %0 : vector<1000x32xf32> to vector<1000x32xbf16>
    %c0_3 = arith.constant 0 : index
    %c0_4 = arith.constant 0 : index
    %3 = vector.load %arg3[%c0_3, %c0_4] : memref<32x64xbf16, #tpu.memory_space<vmem>>, vector<32x64xbf16>
    %cst = arith.constant dense<0.000000e+00> : vector<1000x64xf32>
    %4 = tpu.matmul %2, %3, %cst {dimension_numbers = #tpu.dot_dimension_numbers<[1], [0], [0], [1], [0, 0, 1, 1], [], []>} : vector<1000x32xbf16>, vector<32x64xbf16>, vector<1000x64xf32> -> vector<1000x64xf32>
    %5 = vector.extract_strided_slice %1 {offsets = [0, 0], sizes = [1000, 1], strides = [1, 1]} : vector<1000x3xf32> to vector<1000x1xf32>
    %c0_5 = arith.constant 0 : index
    %c0_6 = arith.constant 0 : index
    %6 = vector.load %arg6[%c0_5, %c0_6] : memref<6x64xf32, #tpu.memory_space<vmem>>, vector<1x64xf32>
    %7 = vector.broadcast %5 : vector<1000x1xf32> to vector<1000x64xf32>
    %8 = vector.broadcast %6 : vector<1x64xf32> to vector<1000x64xf32>
    %9 = arith.mulf %7, %8 : vector<1000x64xf32>
    %10 = arith.addf %4, %9 : vector<1000x64xf32>
    %11 = vector.extract_strided_slice %1 {offsets = [0, 1], sizes = [1000, 1], strides = [1, 1]} : vector<1000x3xf32> to vector<1000x1xf32>
    %c1 = arith.constant 1 : index
    %c0_7 = arith.constant 0 : index
    %12 = vector.load %arg6[%c1, %c0_7] : memref<6x64xf32, #tpu.memory_space<vmem>>, vector<1x64xf32>
    %13 = vector.broadcast %11 : vector<1000x1xf32> to vector<1000x64xf32>
    %14 = vector.broadcast %12 : vector<1x64xf32> to vector<1000x64xf32>
    %15 = arith.mulf %13, %14 : vector<1000x64xf32>
    %16 = arith.addf %10, %15 : vector<1000x64xf32>
    %17 = vector.extract_strided_slice %1 {offsets = [0, 2], sizes = [1000, 1], strides = [1, 1]} : vector<1000x3xf32> to vector<1000x1xf32>
    %c2 = arith.constant 2 : index
    %c0_8 = arith.constant 0 : index
    %18 = vector.load %arg6[%c2, %c0_8] : memref<6x64xf32, #tpu.memory_space<vmem>>, vector<1x64xf32>
    %19 = vector.broadcast %17 : vector<1000x1xf32> to vector<1000x64xf32>
    %20 = vector.broadcast %18 : vector<1x64xf32> to vector<1000x64xf32>
    %21 = arith.mulf %19, %20 : vector<1000x64xf32>
    %22 = arith.addf %16, %21 : vector<1000x64xf32>
    %c3 = arith.constant 3 : index
    %c0_9 = arith.constant 0 : index
    %23 = vector.load %arg6[%c3, %c0_9] : memref<6x64xf32, #tpu.memory_space<vmem>>, vector<1x64xf32>
    %24 = vector.broadcast %23 : vector<1x64xf32> to vector<1000x64xf32>
    %25 = arith.addf %22, %24 : vector<1000x64xf32>
    %cst_10 = arith.constant 0.000000e+00 : f32
    %26 = vector.broadcast %cst_10 : f32 to vector<1000x64xf32>
    %27 = arith.maximumf %25, %26 : vector<1000x64xf32>
    %28 = arith.truncf %27 : vector<1000x64xf32> to vector<1000x64xbf16>
    %c0_11 = arith.constant 0 : index
    %c0_12 = arith.constant 0 : index
    %29 = vector.load %arg4[%c0_11, %c0_12] : memref<64x64xbf16, #tpu.memory_space<vmem>>, vector<64x64xbf16>
    %cst_13 = arith.constant dense<0.000000e+00> : vector<1000x64xf32>
    %30 = tpu.matmul %28, %29, %cst_13 {dimension_numbers = #tpu.dot_dimension_numbers<[1], [0], [0], [1], [0, 0, 1, 1], [], []>} : vector<1000x64xbf16>, vector<64x64xbf16>, vector<1000x64xf32> -> vector<1000x64xf32>
    %c4 = arith.constant 4 : index
    %c0_14 = arith.constant 0 : index
    %31 = vector.load %arg6[%c4, %c0_14] : memref<6x64xf32, #tpu.memory_space<vmem>>, vector<1x64xf32>
    %32 = vector.broadcast %31 : vector<1x64xf32> to vector<1000x64xf32>
    %33 = arith.addf %30, %32 : vector<1000x64xf32>
    %cst_15 = arith.constant 0.000000e+00 : f32
    %34 = vector.broadcast %cst_15 : f32 to vector<1000x64xf32>
    %35 = arith.maximumf %33, %34 : vector<1000x64xf32>
    %36 = arith.truncf %35 : vector<1000x64xf32> to vector<1000x64xbf16>
    %c0_16 = arith.constant 0 : index
    %c0_17 = arith.constant 0 : index
    %37 = vector.load %arg5[%c0_16, %c0_17] : memref<64x3xbf16, #tpu.memory_space<vmem>>, vector<64x3xbf16>
    %cst_18 = arith.constant dense<0.000000e+00> : vector<1000x3xf32>
    %38 = tpu.matmul %36, %37, %cst_18 {dimension_numbers = #tpu.dot_dimension_numbers<[1], [0], [0], [1], [0, 0, 1, 1], [], []>} : vector<1000x64xbf16>, vector<64x3xbf16>, vector<1000x3xf32> -> vector<1000x3xf32>
    %c5 = arith.constant 5 : index
    %c0_19 = arith.constant 0 : index
    %39 = vector.load %arg6[%c5, %c0_19] : memref<6x64xf32, #tpu.memory_space<vmem>>, vector<1x3xf32>
    %40 = vector.broadcast %39 : vector<1x3xf32> to vector<1000x3xf32>
    %41 = arith.addf %38, %40 : vector<1000x3xf32>
    %42 = arith.negf %41 : vector<1000x3xf32>
    %43 = math.exp %42 : vector<1000x3xf32>
    %cst_20 = arith.constant 1.000000e+00 : f32
    %44 = vector.broadcast %cst_20 : f32 to vector<1000x3xf32>
    %45 = arith.addf %44, %43 : vector<1000x3xf32>
    %46 = arith.divf %44, %45 : vector<1000x3xf32>
    %c0_21 = arith.constant 0 : index
    %c0_22 = arith.constant 0 : index
    %47 = vector.load %arg7[%c0_21, %c0_22] : memref<1000x3xf32, #tpu.memory_space<vmem>>, vector<1000x3xf32>
    tpu.vector_store %arg7[%c0_21, %c0_22], %46 {strides = array<i32>} : memref<1000x3xf32, #tpu.memory_space<vmem>>, vector<1000x3xf32>,
    return
  }
  func.func @transform_0(%arg0: i32) -> (i32, i32) {
    %c0_i32 = arith.constant 0 : i32
    %c0_i32_0 = arith.constant 0 : i32
    return %arg0, %c0_i32 : i32, i32
  }
  func.func @transform_1(%arg0: i32) -> (i32, i32) {
    %c0_i32 = arith.constant 0 : i32
    %c0_i32_0 = arith.constant 0 : i32
    return %arg0, %c0_i32 : i32, i32
  }
  func.func @transform_2(%arg0: i32) -> (i32, i32) {
    %c0_i32 = arith.constant 0 : i32
    %c0_i32_0 = arith.constant 0 : i32
    %c0_i32_1 = arith.constant 0 : i32
    return %c0_i32, %c0_i32_0 : i32, i32
  }
  func.func @transform_3(%arg0: i32) -> (i32, i32) {
    %c0_i32 = arith.constant 0 : i32
    %c0_i32_0 = arith.constant 0 : i32
    %c0_i32_1 = arith.constant 0 : i32
    return %c0_i32, %c0_i32_0 : i32, i32
  }
  func.func @transform_4(%arg0: i32) -> (i32, i32) {
    %c0_i32 = arith.constant 0 : i32
    %c0_i32_0 = arith.constant 0 : i32
    %c0_i32_1 = arith.constant 0 : i32
    return %c0_i32, %c0_i32_0 : i32, i32
  }
  func.func @transform_5(%arg0: i32) -> (i32, i32) {
    %c0_i32 = arith.constant 0 : i32
    %c0_i32_0 = arith.constant 0 : i32
    %c0_i32_1 = arith.constant 0 : i32
    return %c0_i32, %c0_i32_0 : i32, i32
  }
  func.func @transform_6(%arg0: i32) -> (i32, i32) {
    %c0_i32 = arith.constant 0 : i32
    %c0_i32_0 = arith.constant 0 : i32
    return %arg0, %c0_i32 : i32, i32
  }
}

</mosaic_0001>

<bundles_post_ra>
// kernel: tpu_custom_call.1
= control target key start
LH: loop header
LB: loop body
LE: loop exit
PB: predicated region body
PF: predicated region fallthrough
CT: control target
= control target key end

     0   :  { %v8410_v0 = vmov 0   ;;  %v12761_v5 = vmov 0.0   ;;  %vm8412_vm0 = vmmov 0   ;;  %vm1108_vm1 = vcmask 261120   ;;  %s12754_s1 = inlined_call_operand.vmem [shape: f32[1000,3], index: 1, kind: input, shape index: {}]   ;;  %s12755_s2 = inlined_call_operand.vmem [shape: bf16[32,64], index: 2, kind: input, shape index: {}]   ;;  %s12756_s0 = inlined_call_operand.vmem [shape: f32[1000,32], index: 0, kind: input, shape index: {}]   ;;  %s12757_s3 = inlined_call_operand.vmem [shape: bf16[64,64], index: 3, kind: input, shape index: {}]   ;;  %s12758_s5 = inlined_call_operand.vmem [shape: f32[6,64], index: 5, kind: input, shape index: {}]   ;;  %s12759_s4 = inlined_call_operand.vmem [shape: bf16[64,3], index: 4, kind: input, shape index: {}]   ;;  %s12760_s6 = inlined_call_operand.vmem [shape: f32[1000,3], index: 6, kind: output, shape index: {}]  }
   0x1   :  { %7570 = vset.pattern.permute.xlu1 %v8410_v0  ;;  %7569 = vset.pattern.permute.xlu0 %v8410_v0  ;;  %v151_v1 = vld [vmem:[%s12754_s1 + $0x10] sm:$0xff]  ;;  %v149_v2 = vld [vmem:[%s12754_s1] sm:$0xff]  ;;  %v7730_v3 = vld [vmem:[%s12755_s2 + $0x8] sm:$0xff]   ;;  %vm3699_vm2 = vcmask 523264   ;;  %vm6125_vm3 = vcmask 23552  }
   0x2   :  { %354 = vperm.xlu1 %7570, %v151_v1   ;;  %344 = vperm.xlu0 %7569, %v149_v2   ;;  %v152_v4 = vld [vmem:[%s12754_s1 + $0x18] sm:$0xff]  ;;  %v150_v6 = vld [vmem:[%s12754_s1 + $0x8] sm:$0xff]  ;;  %v7731_v7 = vld [vmem:[%s12755_s2] sm:$0xff]  }
   0x3   :  { %6784 = vmatprep.subr.bf16.mxu0 %v12761_v5  ;;  %7560 = vmatprep.subr.bf16.mxu1 %v12761_v5  ;;  %v24_v8 = vld [vmem:[%s12756_s0] sm:$0xff]  ;;  %v25_v9 = vld [vmem:[%s12756_s0 + $0x8] sm:$0xff]  ;;  %v156_v16 = vld [vmem:[%s12754_s1 + $0x38] sm:$0xff] }
   0x4   :  { %6785 = vmatpush3.bf16.msra.mxu0 %v7730_v3  ;;  %7562 = vmatpush3.bf16.msra.mxu1 %v7730_v3  ;;  %v88_v10 = vld [vmem:[%s12756_s0 + $0x200] sm:$0xff]  ;;  %v89_v11 = vld [vmem:[%s12756_s0 + $0x208] sm:$0xff]  ;;  %v274_v14 = vpack.c.bf16 %v25_v9, %v24_v8  ;;  %v155_v17 = vld [vmem:[%s12754_s1 + $0x30] sm:$0xff] }
   0x5   :  { %6786 = vmatprep.subr.bf16.mxu0 %v12761_v5  ;;  %7561 = vmatprep.subr.bf16.mxu1 %v12761_v5  ;;  %v154_v12 = vld [vmem:[%s12754_s1 + $0x28] sm:$0xff]  ;;  %v153_v13 = vld [vmem:[%s12754_s1 + $0x20] sm:$0xff]  ;;  %v306_v15 = vpack.c.bf16 %v89_v11, %v88_v10  ;;  %v26_v18 = vld [vmem:[%s12756_s0 + $0x10] sm:$0xff] }
   0x6   :  { %359 = vperm.xlu1 %7570, %v152_v4   ;;  %349 = vperm.xlu0 %7569, %v150_v6   ;;  %v27_v19 = vld [vmem:[%s12756_s0 + $0x18] sm:$0xff]  ;;  %v90_v20 = vld [vmem:[%s12756_s0 + $0x210] sm:$0xff]  ;;  %v158_v22 = vld [vmem:[%s12754_s1 + $0x48] sm:$0xff] }
   0x7   :  { %6788 = vmatprep.mubr.msk.bf16.mxu0 %vm8412_vm0, %v12761_v5  ;;  %6916 = vmatprep.mubr.msk.bf16.mxu1 %vm8412_vm0, %v12761_v5  ;;  %v91_v21 = vld [vmem:[%s12756_s0 + $0x218] sm:$0xff]  ;;  %v157_v23 = vld [vmem:[%s12754_s1 + $0x40] sm:$0xff]  ;;  %v275_v24 = vpack.c.bf16 %v27_v19, %v26_v18  ;;  %v159_v27 = vld [vmem:[%s12754_s1 + $0x50] sm:$0xff] }
   0x8   :  { %6787 = vmatpush3.bf16.msra.mxu0 %v7731_v7  ;;  %7563 = vmatpush3.bf16.msra.mxu1 %v7731_v7  ;;  %v307_v25 = vpack.c.bf16 %v91_v21, %v90_v20  ;;  %v160_v26 = vld [vmem:[%s12754_s1 + $0x58] sm:$0xff]  ;;  %v28_v28 = vld [vmem:[%s12756_s0 + $0x20] sm:$0xff]  ;;  %v29_v29 = vld [vmem:[%s12756_s0 + $0x28] sm:$0xff] }
   0x9   :  { %7040 = vmatprep.subr.bf16.mxu1 %v12761_v5  ;;  %7300 = vmatprep.subr.bf16.mxu0 %v12761_v5  ;;  %v92_v30 = vld [vmem:[%s12756_s0 + $0x220] sm:$0xff]  ;;  %v93_v31 = vld [vmem:[%s12756_s0 + $0x228] sm:$0xff]  ;;  %v276_v34 = vpack.c.bf16 %v29_v29, %v28_v28  ;;  %v164_v36 = vld [vmem:[%s12754_s1 + $0x78] sm:$0xff] }
   0xa   :  { %369 = vperm.xlu1 %7570, %v154_v12   ;;  %364 = vperm.xlu0 %7569, %v153_v13   ;;  %v162_v32 = vld [vmem:[%s12754_s1 + $0x68] sm:$0xff]  ;;  %v161_v33 = vld [vmem:[%s12754_s1 + $0x60] sm:$0xff]  ;;  %v308_v35 = vpack.c.bf16 %v93_v31, %v92_v30  ;;  %v163_v37 = vld [vmem:[%s12754_s1 + $0x70] sm:$0xff] }
   0xb   :  { %6789 = vmatmul.mubr.msk.bf16.vlgmr.msra.gmra.mxu0 %vm1108_vm1, %v274_v14  ;;  %6917 = vmatmul.mubr.msk.bf16.vlgmr.msra.gmra.mxu1 %vm1108_vm1, %v306_v15  ;;  %v30_v38 = vld [vmem:[%s12756_s0 + $0x30] sm:$0xff]  ;;  %v31_v39 = vld [vmem:[%s12756_s0 + $0x38] sm:$0xff]  ;;  %v166_v42 = vld [vmem:[%s12754_s1 + $0x88] sm:$0xff] }
   0xc   :  { %6792 = vmatprep.mubr.msk.bf16.mxu0 %vm8412_vm0, %v12761_v5  ;;  %6920 = vmatprep.mubr.msk.bf16.mxu1 %vm8412_vm0, %v12761_v5  ;;  %v94_v40 = vld [vmem:[%s12756_s0 + $0x230] sm:$0xff]  ;;  %v95_v41 = vld [vmem:[%s12756_s0 + $0x238] sm:$0xff]  ;;  %v165_v43 = vld [vmem:[%s12754_s1 + $0x80] sm:$0xff]  ;;  %v277_v44 = vpack.c.bf16 %v31_v39, %v30_v38 }
   0xd   :  { %v309_v45 = vpack.c.bf16 %v95_v41, %v94_v40  ;;  %v168_v46 = vld [vmem:[%s12754_s1 + $0x98] sm:$0xff]  ;;  %v167_v47 = vld [vmem:[%s12754_s1 + $0x90] sm:$0xff]  ;;  %v32_v48 = vld [vmem:[%s12756_s0 + $0x40] sm:$0xff] }
   0xe   :  { %379 = vperm.xlu1 %7570, %v156_v16   ;;  %374 = vperm.xlu0 %7569, %v155_v17   ;;  %v33_v49 = vld [vmem:[%s12756_s0 + $0x48] sm:$0xff]  ;;  %v96_v50 = vld [vmem:[%s12756_s0 + $0x240] sm:$0xff]  ;;  %v172_v56 = vld [vmem:[%s12754_s1 + $0xb8] sm:$0xff] }
   0xf   :  { %v97_v51 = vld [vmem:[%s12756_s0 + $0x248] sm:$0xff]  ;;  %v169_v53 = vld [vmem:[%s12754_s1 + $0xa0] sm:$0xff]  ;;  %v278_v54 = vpack.c.bf16 %v33_v49, %v32_v48  ;;  %v171_v57 = vld [vmem:[%s12754_s1 + $0xb0] sm:$0xff] }
  0x10   :  { %v170_v52 = vld [vmem:[%s12754_s1 + $0xa8] sm:$0xff]  ;;  %v310_v55 = vpack.c.bf16 %v97_v51, %v96_v50  ;;  %v34_v58 = vld [vmem:[%s12756_s0 + $0x50] sm:$0xff]  ;;  %v35_v59 = vld [vmem:[%s12756_s0 + $0x58] sm:$0xff] }
  0x11   :  { %v98_v60 = vld [vmem:[%s12756_s0 + $0x250] sm:$0xff]  ;;  %v99_v61 = vld [vmem:[%s12756_s0 + $0x258] sm:$0xff]  ;;  %v174_v62 = vld [vmem:[%s12754_s1 + $0xc8] sm:$0xff]  ;;  %v279_v0 = vpack.c.bf16 %v35_v59, %v34_v58 }
  0x12   :  { %389 = vperm.xlu1 %7570, %v158_v22   ;;  %384 = vperm.xlu0 %7569, %v157_v23   ;;  %v173_v63 = vld [vmem:[%s12754_s1 + $0xc0] sm:$0xff]  ;;  %v311_v1 = vpack.c.bf16 %v99_v61, %v98_v60  ;;  %v176_v2 = vld [vmem:[%s12754_s1 + $0xd8] sm:$0xff]  ;;  %v175_v3 = vld [vmem:[%s12754_s1 + $0xd0] sm:$0xff] }
  0x13   :  { %6793 = vmatmul.mubr.msk.bf16.gmra.mxu0 %vm1108_vm1, %v275_v24  ;;  %6921 = vmatmul.mubr.msk.bf16.gmra.mxu1 %vm1108_vm1, %v307_v25  ;;  %v36_v4 = vld [vmem:[%s12756_s0 + $0x60] sm:$0xff]  ;;  %v37_v6 = vld [vmem:[%s12756_s0 + $0x68] sm:$0xff]  ;;  %v180_v13 = vld [vmem:[%s12754_s1 + $0xf8] sm:$0xff] }
  0x14   :  { %6796 = vmatprep.mubr.msk.bf16.mxu0 %vm8412_vm0, %v12761_v5  ;;  %6924 = vmatprep.mubr.msk.bf16.mxu1 %vm8412_vm0, %v12761_v5  ;;  %v100_v7 = vld [vmem:[%s12756_s0 + $0x260] sm:$0xff]  ;;  %v101_v8 = vld [vmem:[%s12756_s0 + $0x268] sm:$0xff]  ;;  %v280_v11 = vpack.c.bf16 %v37_v6, %v36_v4  ;;  %v179_v14 = vld [vmem:[%s12754_s1 + $0xf0] sm:$0xff] }
  0x15   :  { %v178_v9 = vld [vmem:[%s12754_s1 + $0xe8] sm:$0xff]  ;;  %v177_v10 = vld [vmem:[%s12754_s1 + $0xe0] sm:$0xff]  ;;  %v312_v12 = vpack.c.bf16 %v101_v8, %v100_v7  ;;  %v38_v15 = vld [vmem:[%s12756_s0 + $0x70] sm:$0xff] }
  0x16   :  { %399 = vperm.xlu1 %7570, %v160_v26   ;;  %394 = vperm.xlu0 %7569, %v159_v27   ;;  %v39_v16 = vld [vmem:[%s12756_s0 + $0x78] sm:$0xff]  ;;  %v102_v17 = vld [vmem:[%s12756_s0 + $0x270] sm:$0xff]  ;;  %v182_v19 = vld [vmem:[%s12754_s1 + $0x108] sm:$0xff] }
  0x17   :  { %v103_v18 = vld [vmem:[%s12756_s0 + $0x278] sm:$0xff]  ;;  %v181_v20 = vld [vmem:[%s12754_s1 + $0x100] sm:$0xff]  ;;  %v281_v21 = vpack.c.bf16 %v39_v16, %v38_v15  ;;  %v183_v24 = vld [vmem:[%s12754_s1 + $0x110] sm:$0xff] }
  0x18   :  { %v313_v22 = vpack.c.bf16 %v103_v18, %v102_v17  ;;  %v184_v23 = vld [vmem:[%s12754_s1 + $0x118] sm:$0xff]  ;;  %v40_v25 = vld [vmem:[%s12756_s0 + $0x80] sm:$0xff]  ;;  %v41_v26 = vld [vmem:[%s12756_s0 + $0x88] sm:$0xff] }
  0x19   :  { %v104_v27 = vld [vmem:[%s12756_s0 + $0x280] sm:$0xff]  ;;  %v105_v28 = vld [vmem:[%s12756_s0 + $0x288] sm:$0xff]  ;;  %v282_v31 = vpack.c.bf16 %v41_v26, %v40_v25  ;;  %v107_v38 = vld [vmem:[%s12756_s0 + $0x298] sm:$0xff] }
  0x1a   :  { %409 = vperm.xlu1 %7570, %v162_v32   ;;  %404 = vperm.xlu0 %7569, %v161_v33   ;;  %v186_v29 = vld [vmem:[%s12754_s1 + $0x128] sm:$0xff]  ;;  %v185_v30 = vld [vmem:[%s12754_s1 + $0x120] sm:$0xff]  ;;  %v314_v32 = vpack.c.bf16 %v105_v28, %v104_v27  ;;  %v188_v33 = vld [vmem:[%s12754_s1 + $0x138] sm:$0xff] }
  0x1b   :  { %6797 = vmatmul.mubr.msk.bf16.gmra.mxu0 %vm1108_vm1, %v276_v34  ;;  %6925 = vmatmul.mubr.msk.bf16.gmra.mxu1 %vm1108_vm1, %v308_v35  ;;  %v187_v34 = vld [vmem:[%s12754_s1 + $0x130] sm:$0xff]  ;;  %v190_v39 = vld [vmem:[%s12754_s1 + $0x148] sm:$0xff]  ;;  %v189_v40 = vld [vmem:[%s12754_s1 + $0x140] sm:$0xff] }
  0x1c   :  { %6800 = vmatprep.mubr.msk.bf16.mxu0 %vm8412_vm0, %v12761_v5  ;;  %6928 = vmatprep.mubr.msk.bf16.mxu1 %vm8412_vm0, %v12761_v5  ;;  %v42_v35 = vld [vmem:[%s12756_s0 + $0x90] sm:$0xff]  ;;  %v109_v48 = vld [vmem:[%s12756_s0 + $0x2a8] sm:$0xff]  ;;  %v193_v50 = vld [vmem:[%s12754_s1 + $0x160] sm:$0xff] }
  0x1d   :  { %v194_v49 = vld [vmem:[%s12754_s1 + $0x168] sm:$0xff]  ;;  %v111_v58 = vld [vmem:[%s12756_s0 + $0x2b8] sm:$0xff]  ;;  %v197_v60 = vld [vmem:[%s12754_s1 + $0x180] sm:$0xff] }
  0x1e   :  { %419 = vperm.xlu1 %7570, %v164_v36   ;;  %414 = vperm.xlu0 %7569, %v163_v37   ;;  %v43_v36 = vld [vmem:[%s12756_s0 + $0x98] sm:$0xff]  ;;  %v106_v37 = vld [vmem:[%s12756_s0 + $0x290] sm:$0xff]  ;;  %v198_v59 = vld [vmem:[%s12754_s1 + $0x188] sm:$0xff] }
  0x1f   :  { %v283_v41 = vpack.c.bf16 %v43_v36, %v42_v35  ;;  %v113_v4 = vld [vmem:[%s12756_s0 + $0x2c8] sm:$0xff]  ;;  %v201_v7 = vld [vmem:[%s12754_s1 + $0x1a0] sm:$0xff]  ;;  %v115_v15 = vld [vmem:[%s12756_s0 + $0x2d8] sm:$0xff] }
  0x20   :  { %v202_v6 = vld [vmem:[%s12754_s1 + $0x1a8] sm:$0xff]  ;;  %v205_v17 = vld [vmem:[%s12754_s1 + $0x1c0] sm:$0xff]  ;;  %v119_v35 = vld [vmem:[%s12756_s0 + $0x2f8] sm:$0xff] }
  0x21   :  { %v206_v16 = vld [vmem:[%s12754_s1 + $0x1c8] sm:$0xff]  ;;  %v209_v27 = vld [vmem:[%s12754_s1 + $0x1e0] sm:$0xff] }
  0x22   :  { %429 = vperm.xlu1 %7570, %v166_v42   ;;  %424 = vperm.xlu0 %7569, %v165_v43   ;;  %v315_v42 = vpack.c.bf16 %v107_v38, %v106_v37  ;;  %v192_v43 = vld [vmem:[%s12754_s1 + $0x158] sm:$0xff]  ;;  %v117_v25 = vld [vmem:[%s12756_s0 + $0x2e8] sm:$0xff] }
  0x23   :  { %6801 = vmatmul.mubr.msk.bf16.gmra.mxu0 %vm1108_vm1, %v277_v44  ;;  %6929 = vmatmul.mubr.msk.bf16.gmra.mxu1 %vm1108_vm1, %v309_v45  ;;  %v191_v44 = vld [vmem:[%s12754_s1 + $0x150] sm:$0xff]  ;;  %v44_v45 = vld [vmem:[%s12756_s0 + $0xa0] sm:$0xff]  ;;  %v210_v26 = vld [vmem:[%s12754_s1 + $0x1e8] sm:$0xff] }
  0x24   :  { %6804 = vmatprep.mubr.msk.bf16.mxu0 %vm8412_vm0, %v12761_v5  ;;  %6932 = vmatprep.mubr.msk.bf16.mxu1 %vm8412_vm0, %v12761_v5  ;;  %v214_v38 = vld [vmem:[%s12754_s1 + $0x208] sm:$0xff] }
  0x26   :  { %439 = vperm.xlu1 %7570, %v168_v46   ;;  %434 = vperm.xlu0 %7569, %v167_v47   ;;  %v45_v46 = vld [vmem:[%s12756_s0 + $0xa8] sm:$0xff]  ;;  %v108_v47 = vld [vmem:[%s12756_s0 + $0x2a0] sm:$0xff] }
  0x27   :  { %v284_v51 = vpack.c.bf16 %v45_v46, %v44_v45  ;;  %v215_v45 = vld [vmem:[%s12754_s1 + $0x210] sm:$0xff]  ;;  %v56_v46 = vld [vmem:[%s12756_s0 + $0x100] sm:$0xff] }
  0x2a   :  { %449 = vperm.xlu1 %7570, %v170_v52   ;;  %444 = vperm.xlu0 %7569, %v169_v53   ;;  %v316_v52 = vpack.c.bf16 %v109_v48, %v108_v47  ;;  %v196_v53 = vld [vmem:[%s12754_s1 + $0x178] sm:$0xff]  ;;  %v57_v47 = vld [vmem:[%s12756_s0 + $0x108] sm:$0xff]  ;;  %v120_v48 = vld [vmem:[%s12756_s0 + $0x300] sm:$0xff] }
  0x2b   :  { %6805 = vmatmul.mubr.msk.bf16.gmra.mxu0 %vm1108_vm1, %v278_v54  ;;  %6933 = vmatmul.mubr.msk.bf16.gmra.mxu1 %vm1108_vm1, %v310_v55  ;;  %v195_v54 = vld [vmem:[%s12754_s1 + $0x170] sm:$0xff] }
  0x2c   :  { %6808 = vmatprep.mubr.msk.bf16.mxu0 %vm8412_vm0, %v12761_v5  ;;  %6936 = vmatprep.mubr.msk.bf16.mxu1 %vm8412_vm0, %v12761_v5  ;;  %v46_v55 = vld [vmem:[%s12756_s0 + $0xb0] sm:$0xff] }
  0x2e   :  { %459 = vperm.xlu1 %7570, %v172_v56   ;;  %454 = vperm.xlu0 %7569, %v171_v57   ;;  %v47_v56 = vld [vmem:[%s12756_s0 + $0xb8] sm:$0xff]  ;;  %v110_v57 = vld [vmem:[%s12756_s0 + $0x2b0] sm:$0xff] }
  0x2f   :  { %v285_v61 = vpack.c.bf16 %v47_v56, %v46_v55 }
  0x32   :  { %469 = vperm.xlu1 %7570, %v174_v62   ;;  %464 = vperm.xlu0 %7569, %v173_v63   ;;  %v317_v62 = vpack.c.bf16 %v111_v58, %v110_v57  ;;  %v200_v63 = vld [vmem:[%s12754_s1 + $0x198] sm:$0xff] }
  0x33   :  { %6809 = vmatmul.mubr.msk.bf16.gmra.mxu0 %vm1108_vm1, %v279_v0  ;;  %6937 = vmatmul.mubr.msk.bf16.gmra.mxu1 %vm1108_vm1, %v311_v1  ;;  %v199_v0 = vld [vmem:[%s12754_s1 + $0x190] sm:$0xff]  ;;  %v48_v1 = vld [vmem:[%s12756_s0 + $0xc0] sm:$0xff]  ;;  %v220_v58 = vld [vmem:[%s12754_s1 + $0x238] sm:$0xff] }
  0x34   :  { %6812 = vmatprep.mubr.msk.bf16.mxu0 %vm8412_vm0, %v12761_v5  ;;  %6940 = vmatprep.mubr.msk.bf16.mxu1 %vm8412_vm0, %v12761_v5 }
  0x36   :  { %479 = vperm.xlu1 %7570, %v176_v2   ;;  %474 = vperm.xlu0 %7569, %v175_v3   ;;  %v49_v2 = vld [vmem:[%s12756_s0 + $0xc8] sm:$0xff]  ;;  %v112_v3 = vld [vmem:[%s12756_s0 + $0x2c0] sm:$0xff] }
  0x37   :  { %v286_v8 = vpack.c.bf16 %v49_v2, %v48_v1  ;;  %v222_v2 = vld [vmem:[%s12754_s1 + $0x248] sm:$0xff] }
  0x3a   :  { %489 = vperm.xlu1 %7570, %v178_v9   ;;  %484 = vperm.xlu0 %7569, %v177_v10   ;;  %v318_v9 = vpack.c.bf16 %v113_v4, %v112_v3  ;;  %v204_v10 = vld [vmem:[%s12754_s1 + $0x1b8] sm:$0xff]  ;;  %v221_v3 = vld [vmem:[%s12754_s1 + $0x240] sm:$0xff] }
  0x3b   :  { %6813 = vmatmul.mubr.msk.bf16.gmra.mxu0 %vm1108_vm1, %v280_v11  ;;  %6941 = vmatmul.mubr.msk.bf16.gmra.mxu1 %vm1108_vm1, %v312_v12  ;;  %v203_v11 = vld [vmem:[%s12754_s1 + $0x1b0] sm:$0xff] }
  0x3c   :  { %6816 = vmatprep.mubr.msk.bf16.mxu0 %vm8412_vm0, %v12761_v5  ;;  %6944 = vmatprep.mubr.msk.bf16.mxu1 %vm8412_vm0, %v12761_v5  ;;  %v50_v12 = vld [vmem:[%s12756_s0 + $0xd0] sm:$0xff] }
  0x3e   :  { %499 = vperm.xlu1 %7570, %v180_v13   ;;  %494 = vperm.xlu0 %7569, %v179_v14   ;;  %v51_v13 = vld [vmem:[%s12756_s0 + $0xd8] sm:$0xff]  ;;  %v114_v14 = vld [vmem:[%s12756_s0 + $0x2d0] sm:$0xff] }
  0x3f   :  { %v287_v18 = vpack.c.bf16 %v51_v13, %v50_v12  ;;  %v61_v12 = vld [vmem:[%s12756_s0 + $0x128] sm:$0xff]  ;;  %v124_v13 = vld [vmem:[%s12756_s0 + $0x320] sm:$0xff] }
  0x42   :  { %509 = vperm.xlu1 %7570, %v182_v19   ;;  %504 = vperm.xlu0 %7569, %v181_v20   ;;  %v319_v19 = vpack.c.bf16 %v115_v15, %v114_v14  ;;  %v208_v20 = vld [vmem:[%s12754_s1 + $0x1d8] sm:$0xff]  ;;  %v125_v14 = vld [vmem:[%s12756_s0 + $0x328] sm:$0xff] }
  0x43   :  { %6817 = vmatmul.mubr.msk.bf16.gmra.mxu0 %vm1108_vm1, %v281_v21  ;;  %6945 = vmatmul.mubr.msk.bf16.gmra.mxu1 %vm1108_vm1, %v313_v22  ;;  %v207_v21 = vld [vmem:[%s12754_s1 + $0x1d0] sm:$0xff]  ;;  %v52_v22 = vld [vmem:[%s12756_s0 + $0xe0] sm:$0xff] }
  0x44   :  { %6820 = vmatprep.mubr.msk.bf16.mxu0 %vm8412_vm0, %v12761_v5  ;;  %6948 = vmatprep.mubr.msk.bf16.mxu1 %vm8412_vm0, %v12761_v5 }
  0x46   :  { %519 = vperm.xlu1 %7570, %v184_v23   ;;  %514 = vperm.xlu0 %7569, %v183_v24   ;;  %v53_v23 = vld [vmem:[%s12756_s0 + $0xe8] sm:$0xff]  ;;  %v116_v24 = vld [vmem:[%s12756_s0 + $0x2e0] sm:$0xff] }
  0x47   :  { %v288_v28 = vpack.c.bf16 %v53_v23, %v52_v22  ;;  %v228_v23 = vld [vmem:[%s12754_s1 + $0x278] sm:$0xff] }
  0x4a   :  { %529 = vperm.xlu1 %7570, %v186_v29   ;;  %524 = vperm.xlu0 %7569, %v185_v30   ;;  %v320_v29 = vpack.c.bf16 %v117_v25, %v116_v24  ;;  %v212_v30 = vld [vmem:[%s12754_s1 + $0x1f8] sm:$0xff]  ;;  %v227_v24 = vld [vmem:[%s12754_s1 + $0x270] sm:$0xff] }
  0x4b   :  { %6821 = vmatmul.mubr.msk.bf16.gmra.mxu0 %vm1108_vm1, %v282_v31  ;;  %6949 = vmatmul.mubr.msk.bf16.gmra.mxu1 %vm1108_vm1, %v314_v32  ;;  %v211_v31 = vld [vmem:[%s12754_s1 + $0x1f0] sm:$0xff] }
  0x4c   :  { %6824 = vmatprep.mubr.msk.bf16.mxu0 %vm8412_vm0, %v12761_v5  ;;  %6952 = vmatprep.mubr.msk.bf16.mxu1 %vm8412_vm0, %v12761_v5  ;;  %v54_v32 = vld [vmem:[%s12756_s0 + $0xf0] sm:$0xff] }
  0x4d   :  { %v62_v25 = vld [vmem:[%s12756_s0 + $0x130] sm:$0xff] }
  0x4e   :  { %539 = vperm.xlu1 %7570, %v188_v33   ;;  %534 = vperm.xlu0 %7569, %v187_v34   ;;  %v55_v33 = vld [vmem:[%s12756_s0 + $0xf8] sm:$0xff]  ;;  %v118_v34 = vld [vmem:[%s12756_s0 + $0x2f0] sm:$0xff] }
  0x52   :  { %549 = vperm.xlu1 %7570, %v190_v39   ;;  %544 = vperm.xlu0 %7569, %v189_v40   ;;  %v213_v39 = vld [vmem:[%s12754_s1 + $0x200] sm:$0xff]  ;;  %v289_v40 = vpack.c.bf16 %v55_v33, %v54_v32 }
  0x53   :  { %6825 = vmatmul.mubr.msk.bf16.gmra.mxu0 %vm1108_vm1, %v283_v41  ;;  %6953 = vmatmul.mubr.msk.bf16.gmra.mxu1 %vm1108_vm1, %v315_v42  ;;  %v321_v41 = vpack.c.bf16 %v119_v35, %v118_v34  ;;  %v229_v32 = vld [vmem:[%s12754_s1 + $0x280] sm:$0xff] }
  0x54   :  { %6828 = vmatprep.mubr.msk.bf16.mxu0 %vm8412_vm0, %v12761_v5  ;;  %6956 = vmatprep.mubr.msk.bf16.mxu1 %vm8412_vm0, %v12761_v5 }
  0x56   :  { %559 = vperm.xlu1 %7570, %v192_v43   ;;  %554 = vperm.xlu0 %7569, %v191_v44   ;;  %v216_v44 = vld [vmem:[%s12754_s1 + $0x218] sm:$0xff] }
  0x5a   :  { %569 = vperm.xlu1 %7570, %v194_v49   ;;  %564 = vperm.xlu0 %7569, %v193_v50   ;;  %v121_v49 = vld [vmem:[%s12756_s0 + $0x308] sm:$0xff] }
  0x5b   :  { %6829 = vmatmul.mubr.msk.bf16.gmra.mxu0 %vm1108_vm1, %v284_v51  ;;  %6957 = vmatmul.mubr.msk.bf16.gmra.mxu1 %vm1108_vm1, %v316_v52  ;;  %v218_v52 = vld [vmem:[%s12754_s1 + $0x228] sm:$0xff]  ;;  %v322_v55 = vpack.c.bf16 %v121_v49, %v120_v48 }
  0x5c   :  { %6832 = vmatprep.mubr.msk.bf16.mxu0 %vm8412_vm0, %v12761_v5  ;;  %6960 = vmatprep.mubr.msk.bf16.mxu1 %vm8412_vm0, %v12761_v5  ;;  %v234_v49 = vld [vmem:[%s12754_s1 + $0x2a8] sm:$0xff] }
  0x5e   :  { %579 = vperm.xlu1 %7570, %v196_v53   ;;  %574 = vperm.xlu0 %7569, %v195_v54   ;;  %v217_v53 = vld [vmem:[%s12754_s1 + $0x220] sm:$0xff]  ;;  %v290_v54 = vpack.c.bf16 %v57_v47, %v56_v46  ;;  %v129_v46 = vld [vmem:[%s12756_s0 + $0x348] sm:$0xff] }
  0x62   :  { %589 = vperm.xlu1 %7570, %v198_v59   ;;  %584 = vperm.xlu0 %7569, %v197_v60   ;;  %v219_v59 = vld [vmem:[%s12754_s1 + $0x230] sm:$0xff] }
  0x63   :  { %6833 = vmatmul.mubr.msk.bf16.gmra.mxu0 %vm1108_vm1, %v285_v61  ;;  %6961 = vmatmul.mubr.msk.bf16.gmra.mxu1 %vm1108_vm1, %v317_v62  ;;  %v58_v60 = vld [vmem:[%s12756_s0 + $0x110] sm:$0xff]  ;;  %v59_v61 = vld [vmem:[%s12756_s0 + $0x118] sm:$0xff] }
  0x64   :  { %6836 = vmatprep.mubr.msk.bf16.mxu0 %vm8412_vm0, %v12761_v5  ;;  %6964 = vmatprep.mubr.msk.bf16.mxu1 %vm8412_vm0, %v12761_v5  ;;  %v122_v62 = vld [vmem:[%s12756_s0 + $0x310] sm:$0xff]  ;;  %v291_v4 = vpack.c.bf16 %v59_v61, %v58_v60 }
  0x65   :  { %v235_v60 = vld [vmem:[%s12754_s1 + $0x2b0] sm:$0xff] }
  0x66   :  { %599 = vperm.xlu1 %7570, %v200_v63   ;;  %594 = vperm.xlu0 %7569, %v199_v0   ;;  %v123_v63 = vld [vmem:[%s12756_s0 + $0x318] sm:$0xff]  ;;  %v66_v61 = vld [vmem:[%s12756_s0 + $0x150] sm:$0xff] }
  0x6a   :  { %609 = vperm.xlu1 %7570, %v202_v6   ;;  %604 = vperm.xlu0 %7569, %v201_v7   ;;  %v323_v6 = vpack.c.bf16 %v123_v63, %v122_v62  ;;  %v67_v62 = vld [vmem:[%s12756_s0 + $0x158] sm:$0xff]  ;;  %v130_v63 = vld [vmem:[%s12756_s0 + $0x350] sm:$0xff] }
  0x6b   :  { %6837 = vmatmul.mubr.msk.bf16.gmra.mxu0 %vm1108_vm1, %v286_v8  ;;  %6965 = vmatmul.mubr.msk.bf16.gmra.mxu1 %vm1108_vm1, %v318_v9  ;;  %v224_v9 = vld [vmem:[%s12754_s1 + $0x258] sm:$0xff] }
  0x6c   :  { %6840 = vmatprep.mubr.msk.bf16.mxu0 %vm8412_vm0, %v12761_v5  ;;  %6968 = vmatprep.mubr.msk.bf16.mxu1 %vm8412_vm0, %v12761_v5 }
  0x6e   :  { %619 = vperm.xlu1 %7570, %v204_v10   ;;  %614 = vperm.xlu0 %7569, %v203_v11   ;;  %v223_v10 = vld [vmem:[%s12754_s1 + $0x250] sm:$0xff]  ;;  %v60_v11 = vld [vmem:[%s12756_s0 + $0x120] sm:$0xff] }
  0x72   :  { %629 = vperm.xlu1 %7570, %v206_v16   ;;  %624 = vperm.xlu0 %7569, %v205_v17   ;;  %v226_v17 = vld [vmem:[%s12754_s1 + $0x268] sm:$0xff] }
  0x73   :  { %6841 = vmatmul.mubr.msk.bf16.gmra.mxu0 %vm1108_vm1, %v287_v18  ;;  %6969 = vmatmul.mubr.msk.bf16.gmra.mxu1 %vm1108_vm1, %v319_v19  ;;  %v225_v18 = vld [vmem:[%s12754_s1 + $0x260] sm:$0xff]  ;;  %v292_v19 = vpack.c.bf16 %v61_v12, %v60_v11 }
  0x74   :  { %6844 = vmatprep.mubr.msk.bf16.mxu0 %vm8412_vm0, %v12761_v5  ;;  %6972 = vmatprep.mubr.msk.bf16.mxu1 %vm8412_vm0, %v12761_v5 }
  0x76   :  { %639 = vperm.xlu1 %7570, %v208_v20   ;;  %634 = vperm.xlu0 %7569, %v207_v21   ;;  %v324_v20 = vpack.c.bf16 %v125_v14, %v124_v13  ;;  %v240_v14 = vld [vmem:[%s12754_s1 + $0x2d8] sm:$0xff] }
  0x7a   :  { %649 = vperm.xlu1 %7570, %v210_v26   ;;  %644 = vperm.xlu0 %7569, %v209_v27   ;;  %v63_v26 = vld [vmem:[%s12756_s0 + $0x138] sm:$0xff]  ;;  %v126_v27 = vld [vmem:[%s12756_s0 + $0x330] sm:$0xff] }
  0x7b   :  { %6845 = vmatmul.mubr.msk.bf16.gmra.mxu0 %vm1108_vm1, %v288_v28  ;;  %6973 = vmatmul.mubr.msk.bf16.gmra.mxu1 %vm1108_vm1, %v320_v29  ;;  %v127_v28 = vld [vmem:[%s12756_s0 + $0x338] sm:$0xff]  ;;  %v293_v33 = vpack.c.bf16 %v63_v26, %v62_v25  ;;  %v242_v26 = vld [vmem:[%s12754_s1 + $0x2e8] sm:$0xff] }
  0x7c   :  { %6848 = vmatprep.mubr.msk.bf16.mxu0 %vm8412_vm0, %v12761_v5  ;;  %6976 = vmatprep.mubr.msk.bf16.mxu1 %vm8412_vm0, %v12761_v5  ;;  %v325_v34 = vpack.c.bf16 %v127_v28, %v126_v27  ;;  %v241_v27 = vld [vmem:[%s12754_s1 + $0x2e0] sm:$0xff] }
  0x7d   :  { %v8940_v36 = vpop.permute.xlu1 %354  ;;  %v8942_v37 = vpop.permute.xlu0 %344 }
  0x7e   :  { %659 = vperm.xlu1 %7570, %v212_v30   ;;  %654 = vperm.xlu0 %7569, %v211_v31   ;;  %v230_v31 = vld [vmem:[%s12754_s1 + $0x288] sm:$0xff] }
  0x81   :  { %v8950_v42 = vpop.permute.xlu1 %359  ;;  %v8952_v43 = vpop.permute.xlu0 %349 }
  0x82   :  { %669 = vperm.xlu1 %7570, %v214_v38   ;;  %664 = vperm.xlu0 %7569, %v213_v39   ;;  %v232_v39 = vld [vmem:[%s12754_s1 + $0x298] sm:$0xff] }
  0x83   :  { %6849 = vmatmul.mubr.msk.bf16.gmra.mxu0 %vm1108_vm1, %v289_v40  ;;  %6977 = vmatmul.mubr.msk.bf16.gmra.mxu1 %vm1108_vm1, %v321_v41  ;;  %v231_v40 = vld [vmem:[%s12754_s1 + $0x290] sm:$0xff]  ;;  %v64_v41 = vld [vmem:[%s12756_s0 + $0x140] sm:$0xff] }
  0x84   :  { %6852 = vmatprep.mubr.msk.bf16.mxu0 %vm8412_vm0, %v12761_v5  ;;  %6980 = vmatprep.mubr.msk.bf16.mxu1 %vm8412_vm0, %v12761_v5 }
  0x85   :  { %v8978_v50 = vpop.permute.xlu1 %369  ;;  %v8980_v51 = vpop.permute.xlu0 %364 }
  0x86   :  { %679 = vperm.xlu1 %7570, %v216_v44   ;;  %674 = vperm.xlu0 %7569, %v215_v45   ;;  %v65_v44 = vld [vmem:[%s12756_s0 + $0x148] sm:$0xff]  ;;  %v128_v45 = vld [vmem:[%s12756_s0 + $0x340] sm:$0xff] }
  0x89   :  { %v8988_v56 = vpop.permute.xlu1 %379  ;;  %v8990_v57 = vpop.permute.xlu0 %374 }
  0x8a   :  { %689 = vperm.xlu1 %7570, %v218_v52   ;;  %684 = vperm.xlu0 %7569, %v217_v53   ;;  %v233_v52 = vld [vmem:[%s12754_s1 + $0x2a0] sm:$0xff]  ;;  %v294_v53 = vpack.c.bf16 %v65_v44, %v64_v41  ;;  %v71_v41 = vld [vmem:[%s12756_s0 + $0x178] sm:$0xff]  ;;  %v134_v44 = vld [vmem:[%s12756_s0 + $0x370] sm:$0xff] }
  0x8b   :  { %6853 = vmatmul.mubr.msk.bf16.gmra.mxu0 %vm1108_vm1, %v290_v54  ;;  %6981 = vmatmul.mubr.msk.bf16.gmra.mxu1 %vm1108_vm1, %v322_v55  ;;  %v326_v54 = vpack.c.bf16 %v129_v46, %v128_v45  ;;  %v135_v45 = vld [vmem:[%s12756_s0 + $0x378] sm:$0xff] }
  0x8c   :  { %6856 = vmatprep.mubr.msk.bf16.mxu0 %vm8412_vm0, %v12761_v5  ;;  %6984 = vmatprep.mubr.msk.bf16.mxu1 %vm8412_vm0, %v12761_v5 }
  0x8d   :  { %v9016_v0 = vpop.permute.xlu1 %389  ;;  %v9018_v1 = vpop.permute.xlu0 %384 }
  0x8e   :  { %699 = vperm.xlu1 %7570, %v220_v58   ;;  %694 = vperm.xlu0 %7569, %v219_v59   ;;  %v236_v59 = vld [vmem:[%s12754_s1 + $0x2b8] sm:$0xff] }
  0x91   :  { %v9026_v7 = vpop.permute.xlu1 %399  ;;  %v9028_v8 = vpop.permute.xlu0 %394 }
  0x92   :  { %709 = vperm.xlu1 %7570, %v222_v2   ;;  %704 = vperm.xlu0 %7569, %v221_v3   ;;  %v131_v2 = vld [vmem:[%s12756_s0 + $0x358] sm:$0xff] }
  0x93   :  { %6857 = vmatmul.mubr.msk.bf16.gmra.mxu0 %vm1108_vm1, %v291_v4  ;;  %6985 = vmatmul.mubr.msk.bf16.gmra.mxu1 %vm1108_vm1, %v323_v6  ;;  %v238_v6 = vld [vmem:[%s12754_s1 + $0x2c8] sm:$0xff]  ;;  %v327_v11 = vpack.c.bf16 %v131_v2, %v130_v63  ;;  %v247_v63 = vld [vmem:[%s12754_s1 + $0x310] sm:$0xff]  ;;  %v72_v2 = vld [vmem:[%s12756_s0 + $0x180] sm:$0xff] }
  0x94   :  { %6860 = vmatprep.mubr.msk.bf16.mxu0 %vm8412_vm0, %v12761_v5  ;;  %6988 = vmatprep.mubr.msk.bf16.mxu1 %vm8412_vm0, %v12761_v5 }
  0x95   :  { %v9054_v15 = vpop.permute.xlu1 %409  ;;  %v9056_v16 = vpop.permute.xlu0 %404 }
  0x96   :  { %719 = vperm.xlu1 %7570, %v224_v9   ;;  %714 = vperm.xlu0 %7569, %v223_v10   ;;  %v237_v9 = vld [vmem:[%s12754_s1 + $0x2c0] sm:$0xff]  ;;  %v295_v10 = vpack.c.bf16 %v67_v62, %v66_v61  ;;  %v248_v62 = vld [vmem:[%s12754_s1 + $0x318] sm:$0xff] }
  0x99   :  { %v9064_v21 = vpop.permute.xlu1 %419  ;;  %v9066_v22 = vpop.permute.xlu0 %414 }
  0x9a   :  { %729 = vperm.xlu1 %7570, %v226_v17   ;;  %724 = vperm.xlu0 %7569, %v225_v18   ;;  %v239_v17 = vld [vmem:[%s12754_s1 + $0x2d0] sm:$0xff]  ;;  %v68_v18 = vld [vmem:[%s12756_s0 + $0x160] sm:$0xff] }
  0x9b   :  { %6861 = vmatmul.mubr.msk.bf16.gmra.mxu0 %vm1108_vm1, %v292_v19  ;;  %6989 = vmatmul.mubr.msk.bf16.gmra.mxu1 %vm1108_vm1, %v324_v20  ;;  %v69_v19 = vld [vmem:[%s12756_s0 + $0x168] sm:$0xff]  ;;  %v132_v20 = vld [vmem:[%s12756_s0 + $0x360] sm:$0xff] }
  0x9c   :  { %6864 = vmatprep.mubr.msk.bf16.mxu0 %vm8412_vm0, %v12761_v5  ;;  %6992 = vmatprep.mubr.msk.bf16.mxu1 %vm8412_vm0, %v12761_v5  ;;  %v296_v28 = vpack.c.bf16 %v69_v19, %v68_v18  ;;  %v249_v18 = vld [vmem:[%s12754_s1 + $0x320] sm:$0xff] }
  0x9d   :  { %v9092_v29 = vpop.permute.xlu1 %429  ;;  %v9094_v30 = vpop.permute.xlu0 %424 }
  0x9e   :  { %739 = vperm.xlu1 %7570, %v228_v23   ;;  %734 = vperm.xlu0 %7569, %v227_v24   ;;  %v133_v23 = vld [vmem:[%s12756_s0 + $0x368] sm:$0xff] }
  0xa1   :  { %v9102_v35 = vpop.permute.xlu1 %439  ;;  %v9104_v38 = vpop.permute.xlu0 %434 }
  0xa2   :  { %749 = vperm.xlu1 %7570, %v230_v31   ;;  %744 = vperm.xlu0 %7569, %v229_v32   ;;  %v328_v31 = vpack.c.bf16 %v133_v23, %v132_v20 }
  0xa3   :  { %6865 = vmatmul.mubr.msk.bf16.gmra.mxu0 %vm1108_vm1, %v293_v33  ;;  %6993 = vmatmul.mubr.msk.bf16.gmra.mxu1 %vm1108_vm1, %v325_v34  ;;  %v244_v34 = vld [vmem:[%s12754_s1 + $0x2f8] sm:$0xff] }
  0xa4   :  { %6868 = vmatprep.mubr.msk.bf16.mxu0 %vm8412_vm0, %v12761_v5  ;;  %6996 = vmatprep.mubr.msk.bf16.mxu1 %vm8412_vm0, %v12761_v5 }
  0xa5   :  { %v9130_v47 = vpop.permute.xlu1 %449  ;;  %v9132_v48 = vpop.permute.xlu0 %444 }
  0xa6   :  { %12768 = vst [vmem:[#allocation2_spill] sm:$0xff] %v9130_v47  ;;  %12769 = vst [vmem:[#allocation3_spill] sm:$0xff] %v9132_v48  ;;  %759 = vperm.xlu1 %7570, %v232_v39   ;;  %754 = vperm.xlu0 %7569, %v231_v40   ;;  %v243_v39 = vld [vmem:[%s12754_s1 + $0x2f0] sm:$0xff] }
  0xa7   :  { %v70_v40 = vld [vmem:[%s12756_s0 + $0x170] sm:$0xff] }
  0xa9   :  { %v9140_v55 = vpop.permute.xlu1 %459  ;;  %v9142_v58 = vpop.permute.xlu0 %454 }
  0xaa   :  { %12770 = vst [vmem:[#allocation4_spill] sm:$0xff] %v9140_v55  ;;  %12771 = vst [vmem:[#allocation5_spill] sm:$0xff] %v9142_v58  ;;  %769 = vperm.xlu1 %7570, %v234_v49   ;;  %764 = vperm.xlu0 %7569, %v233_v52   ;;  %v246_v52 = vld [vmem:[%s12754_s1 + $0x308] sm:$0xff] }
  0xab   :  { %6869 = vmatmul.mubr.msk.bf16.gmra.mxu0 %vm1108_vm1, %v294_v53  ;;  %6997 = vmatmul.mubr.msk.bf16.gmra.mxu1 %vm1108_vm1, %v326_v54  ;;  %v245_v53 = vld [vmem:[%s12754_s1 + $0x300] sm:$0xff]  ;;  %v297_v54 = vpack.c.bf16 %v71_v41, %v70_v40  ;;  %v75_v40 = vld [vmem:[%s12756_s0 + $0x198] sm:$0xff]  ;;  %v138_v41 = vld [vmem:[%s12756_s0 + $0x390] sm:$0xff] }
  0xac   :  { %6872 = vmatprep.mubr.msk.bf16.mxu0 %vm8412_vm0, %v12761_v5  ;;  %7000 = vmatprep.mubr.msk.bf16.mxu1 %vm8412_vm0, %v12761_v5 }
  0xad   :  { %v9168_v3 = vpop.permute.xlu1 %469  ;;  %v9170_v4 = vpop.permute.xlu0 %464 }
  0xae   :  { %12772 = vst [vmem:[#allocation6_spill] sm:$0xff] %v9168_v3  ;;  %12773 = vst [vmem:[#allocation7_spill] sm:$0xff] %v9170_v4  ;;  %779 = vperm.xlu1 %7570, %v236_v59   ;;  %774 = vperm.xlu0 %7569, %v235_v60   ;;  %v329_v59 = vpack.c.bf16 %v135_v45, %v134_v44  ;;  %v139_v44 = vld [vmem:[%s12756_s0 + $0x398] sm:$0xff] }
  0xb1   :  { %v9178_v12 = vpop.permute.xlu1 %479  ;;  %v9180_v13 = vpop.permute.xlu0 %474 }
  0xb2   :  { %12774 = vst [vmem:[#allocation8_spill] sm:$0xff] %v9178_v12  ;;  %12775 = vst [vmem:[#allocation9_spill] sm:$0xff] %v9180_v13  ;;  %789 = vperm.xlu1 %7570, %v238_v6   ;;  %784 = vperm.xlu0 %7569, %v237_v9   ;;  %v73_v6 = vld [vmem:[%s12756_s0 + $0x188] sm:$0xff]  ;;  %v136_v9 = vld [vmem:[%s12756_s0 + $0x380] sm:$0xff] }
  0xb3   :  { %6873 = vmatmul.mubr.msk.bf16.gmra.mxu0 %vm1108_vm1, %v295_v10  ;;  %7001 = vmatmul.mubr.msk.bf16.gmra.mxu1 %vm1108_vm1, %v327_v11  ;;  %v137_v10 = vld [vmem:[%s12756_s0 + $0x388] sm:$0xff]  ;;  %v298_v19 = vpack.c.bf16 %v73_v6, %v72_v2  ;;  %v331_v2 = vpack.c.bf16 %v139_v44, %v138_v41  ;;  %v140_v44 = vld [vmem:[%s12756_s0 + $0x3a0] sm:$0xff] }
  0xb4   :  { %6876 = vmatprep.mubr.msk.bf16.mxu0 %vm8412_vm0, %v12761_v5  ;;  %7004 = vmatprep.mubr.msk.bf16.mxu1 %vm8412_vm0, %v12761_v5  ;;  %v330_v20 = vpack.c.bf16 %v137_v10, %v136_v9  ;;  %v77_v41 = vld [vmem:[%s12756_s0 + $0x1a8] sm:$0xff] }
  0xb5   :  { %v9206_v24 = vpop.permute.xlu1 %489  ;;  %v9208_v25 = vpop.permute.xlu0 %484  ;;  %v9763_v13 = vld [vmem:[%s12754_s1 + $0x88] sm:$0xff] }
  0xb6   :  { %12776 = vst [vmem:[#allocation10_spill] sm:$0xff] %v9206_v24  ;;  %12777 = vst [vmem:[#allocation11_spill] sm:$0xff] %v9208_v25  ;;  %799 = vperm.xlu1 %7570, %v240_v14   ;;  %794 = vperm.xlu0 %7569, %v239_v17   ;;  %v250_v17 = vld [vmem:[%s12754_s1 + $0x328] sm:$0xff] }
  0xb9   :  { %v9216_v32 = vpop.permute.xlu1 %499  ;;  %v9218_v33 = vpop.permute.xlu0 %494 }
  0xba   :  { %12778 = vst [vmem:[#allocation12_spill] sm:$0xff] %v9216_v32  ;;  %12779 = vst [vmem:[#allocation13_spill] sm:$0xff] %v9218_v33  ;;  %809 = vperm.xlu1 %7570, %v242_v26   ;;  %804 = vperm.xlu0 %7569, %v241_v27  }
  0xbb   :  { %6877 = vmatmul.mubr.msk.bf16.gmra.mxu0 %vm1108_vm1, %v296_v28  ;;  %7005 = vmatmul.mubr.msk.bf16.gmra.mxu1 %vm1108_vm1, %v328_v31  ;;  %v252_v31 = vld [vmem:[%s12754_s1 + $0x338] sm:$0xff] }
  0xbc   :  { %6880 = vmatprep.mubr.msk.bf16.mxu0 %vm8412_vm0, %v12761_v5  ;;  %7008 = vmatprep.mubr.msk.bf16.mxu1 %vm8412_vm0, %v12761_v5 }
  0xbd   :  { %v9244_v46 = vpop.permute.xlu1 %509  ;;  %v9246_v49 = vpop.permute.xlu0 %504 }
  0xbe   :  { %12780 = vst [vmem:[#allocation14_spill] sm:$0xff] %v9244_v46  ;;  %12781 = vst [vmem:[#allocation15_spill] sm:$0xff] %v9246_v49  ;;  %819 = vperm.xlu1 %7570, %v244_v34   ;;  %814 = vperm.xlu0 %7569, %v243_v39   ;;  %v251_v34 = vld [vmem:[%s12754_s1 + $0x330] sm:$0xff] }
  0xbf   :  { %v74_v39 = vld [vmem:[%s12756_s0 + $0x190] sm:$0xff] }
  0xc1   :  { %v9254_v60 = vpop.permute.xlu1 %519  ;;  %v9256_v61 = vpop.permute.xlu0 %514 }
  0xc2   :  { %12782 = vst [vmem:[#allocation16_spill] sm:$0xff] %v9254_v60  ;;  %12783 = vst [vmem:[#allocation17_spill] sm:$0xff] %v9256_v61  ;;  %829 = vperm.xlu1 %7570, %v246_v52   ;;  %824 = vperm.xlu0 %7569, %v245_v53  }
  0xc3   :  { %6881 = vmatmul.mubr.msk.bf16.gmra.mxu0 %vm1108_vm1, %v297_v54  ;;  %7009 = vmatmul.mubr.msk.bf16.gmra.mxu1 %vm1108_vm1, %v329_v59  ;;  %v254_v59 = vld [vmem:[%s12754_s1 + $0x348] sm:$0xff] }
  0xc4   :  { %6884 = vmatprep.mubr.msk.bf16.mxu0 %vm8412_vm0, %v12761_v5  ;;  %7012 = vmatprep.mubr.msk.bf16.mxu1 %vm8412_vm0, %v12761_v5 }
  0xc5   :  { %v9282_v11 = vpop.permute.xlu1 %529  ;;  %v9284_v14 = vpop.permute.xlu0 %524 }
  0xc6   :  { %12784 = vst [vmem:[#allocation18_spill] sm:$0xff] %v9282_v11  ;;  %12785 = vst [vmem:[#allocation19_spill] sm:$0xff] %v9284_v14  ;;  %839 = vperm.xlu1 %7570, %v248_v62   ;;  %834 = vperm.xlu0 %7569, %v247_v63   ;;  %v253_v62 = vld [vmem:[%s12754_s1 + $0x340] sm:$0xff]  ;;  %v299_v63 = vpack.c.bf16 %v75_v40, %v74_v39 }
  0xc9   :  { %v9292_v23 = vpop.permute.xlu1 %539  ;;  %v9294_v26 = vpop.permute.xlu0 %534 }
  0xca   :  { %12786 = vst [vmem:[#allocation20_spill] sm:$0xff] %v9292_v23  ;;  %12787 = vst [vmem:[#allocation21_spill] sm:$0xff] %v9294_v26  ;;  %849 = vperm.xlu1 %7570, %v250_v17   ;;  %844 = vperm.xlu0 %7569, %v249_v18  }
  0xcb   :  { %v9296_v27 = vpop.f32.mrf.mxu0  ;;  %6885 = vmatmul.mubr.msk.bf16.gmra.mxu0 %vm1108_vm1, %v298_v19  ;;  %v9299_v28 = vpop.f32.mrf.mxu1  ;;  %7013 = vmatmul.mubr.msk.bf16.gmra.mxu1 %vm1108_vm1, %v330_v20  ;;  %v256_v20 = vld [vmem:[%s12754_s1 + $0x358] sm:$0xff] }
  0xcc   :  { %12788 = vst [vmem:[#allocation22_spill] sm:$0xff] %v9299_v28  ;;  %6888 = vmatprep.mubr.msk.bf16.mxu0 %vm8412_vm0, %v12761_v5  ;;  %7016 = vmatprep.mubr.msk.bf16.mxu1 %vm8412_vm0, %v12761_v5 }
  0xcd   :  { %v9324_v45 = vpop.permute.xlu1 %549  ;;  %v9326_v52 = vpop.permute.xlu0 %544 }
  0xce   :  { %12789 = vst [vmem:[#allocation23_spill] sm:$0xff] %v9324_v45  ;;  %12790 = vst [vmem:[#allocation24_spill] sm:$0xff] %v9326_v52  ;;  %v6790_v53 = vpop.f32.mrf.mxu0  ;;  %v6918_v54 = vpop.f32.mrf.mxu1  ;;  %859 = vperm.xlu1 %7570, %v252_v31   ;;  %854 = vperm.xlu0 %7569, %v251_v34   ;;  %v255_v31 = vld [vmem:[%s12754_s1 + $0x350] sm:$0xff]  ;;  %v76_v34 = vld [vmem:[%s12756_s0 + $0x1a0] sm:$0xff] }
  0xcf   :  { %v141_v53 = vld [vmem:[%s12756_s0 + $0x3a8] sm:$0xff] }
  0xd0   :  { %v9334_v6 = vpop.f32.mrf.mxu0  ;;  %v9336_v9 = vpop.f32.mrf.mxu1 }
  0xd1   :  { %12791 = vst [vmem:[#allocation25_spill] sm:$0xff] %v9336_v9  ;;  %v9338_v10 = vpop.permute.xlu1 %559  ;;  %v9340_v17 = vpop.permute.xlu0 %554 }
  0xd2   :  { %12792 = vst [vmem:[#allocation26_spill] sm:$0xff] %v9338_v10  ;;  %12793 = vst [vmem:[#allocation27_spill] sm:$0xff] %v9340_v17  ;;  %v6791_v18 = vpop.f32.mrf.mxu0  ;;  %v6919_v19 = vpop.f32.mrf.mxu1  ;;  %869 = vperm.xlu1 %7570, %v254_v59   ;;  %864 = vperm.xlu0 %7569, %v253_v62  }
  0xd3   :  { %6889 = vmatmul.mubr.msk.bf16.gmra.mxu0 %vm1108_vm1, %v299_v63  ;;  %7017 = vmatmul.mubr.msk.bf16.gmra.mxu1 %vm1108_vm1, %v331_v2  ;;  %v258_v2 = vld [vmem:[%s12754_s1 + $0x368] sm:$0xff]  ;;  %v257_v18 = vld [vmem:[%s12754_s1 + $0x360] sm:$0xff]  ;;  %v300_v19 = vpack.c.bf16 %v77_v41, %v76_v34  ;;  %v260_v34 = vld [vmem:[%s12754_s1 + $0x378] sm:$0xff] }
  0xd4   :  { %v9353_v39 = vpop.f32.mrf.mxu0  ;;  %v9355_v40 = vpop.f32.mrf.mxu1  ;;  %6892 = vmatprep.mubr.msk.bf16.mxu0 %vm8412_vm0, %v12761_v5  ;;  %7020 = vmatprep.mubr.msk.bf16.mxu1 %vm8412_vm0, %v12761_v5  ;;  %v332_v5 = vpack.c.bf16 %v141_v53, %v140_v44  ;;  %v259_v41 = vld [vmem:[%s12754_s1 + $0x370] sm:$0xff] }
  0xd5   :  { %12794 = vst [vmem:[#allocation28_spill] sm:$0xff] %v9355_v40  ;;  %v9370_v54 = vpop.permute.xlu1 %569  ;;  %v9372_v59 = vpop.permute.xlu0 %564  ;;  %v78_v44 = vld [vmem:[%s12756_s0 + $0x1b0] sm:$0xff] }
  0xd6   :  { %12795 = vst [vmem:[#allocation29_spill] sm:$0xff] %v9370_v54  ;;  %12796 = vst [vmem:[#allocation30_spill] sm:$0xff] %v9372_v59  ;;  %v6794_v62 = vpop.f32.mrf.mxu0  ;;  %v6922_v63 = vpop.f32.mrf.mxu1  ;;  %879 = vperm.xlu1 %7570, %v256_v20   ;;  %874 = vperm.xlu0 %7569, %v255_v31  }
  0xd8   :  { %v9380_v40 = vpop.f32.mrf.mxu0  ;;  %v9382_v9 = vpop.f32.mrf.mxu1 }
  0xd9   :  { %12797 = vst [vmem:[#allocation31_spill] sm:$0xff] %v9382_v9  ;;  %v9384_v28 = vpop.permute.xlu1 %579  ;;  %v9386_v62 = vpop.permute.xlu0 %574 }
  0xda   :  { %12798 = vst [vmem:[#allocation32_spill] sm:$0xff] %v9384_v28  ;;  %12799 = vst [vmem:[#allocation33_spill] sm:$0xff] %v9386_v62  ;;  %v6795_v20 = vpop.f32.mrf.mxu0  ;;  %v6923_v31 = vpop.f32.mrf.mxu1  ;;  %889 = vperm.xlu1 %7570, %v258_v2   ;;  %884 = vperm.xlu0 %7569, %v257_v18   ;;  %v12801_v2 = vmov 0.0   ;;  %v142_v18 = vld [vmem:[%s12756_s0 + $0x3b0] sm:$0xff]  ;;  %v262_v28 = vld [vmem:[%s12754_s1 + $0x388] sm:$0xff] }
  0xdb   :  { %6893 = vmatmul.mubr.msk.bf16.gmra.mxu0 %vm1108_vm1, %v300_v19  ;;  %7021 = vmatmul.mubr.msk.bf16.gmra.mxu1 %vm1108_vm1, %v332_v5  ;;  %v79_v5 = vld [vmem:[%s12756_s0 + $0x1b8] sm:$0xff]  ;;  %v261_v62 = vld [vmem:[%s12754_s1 + $0x380] sm:$0xff] }
  0xdc   :  { %v9399_v53 = vpop.f32.mrf.mxu0  ;;  %v9401_v63 = vpop.f32.mrf.mxu1  ;;  %6896 = vmatprep.mubr.msk.bf16.mxu0 %vm8412_vm0, %v12801_v2  ;;  %7024 = vmatprep.mubr.msk.bf16.mxu1 %vm8412_vm0, %v12801_v2  ;;  %v143_v19 = vld [vmem:[%s12756_s0 + $0x3b8] sm:$0xff]  ;;  %v301_v54 = vpack.c.bf16 %v79_v5, %v78_v44  ;;  %v263_v44 = vld [vmem:[%s12754_s1 + $0x390] sm:$0xff]  ;;  %v80_v5 = vld [vmem:[%s12756_s0 + $0x1c0] sm:$0xff] }
  0xdd   :  { %12800 = vst [vmem:[#allocation34_spill] sm:$0xff] %v9401_v63  ;;  %v9416_v20 = vpop.permute.xlu1 %589  ;;  %v9418_v31 = vpop.permute.xlu0 %584  ;;  %v333_v59 = vpack.c.bf16 %v143_v19, %v142_v18 }
  0xde   :  { %12802 = vst [vmem:[#allocation35_spill] sm:$0xff] %v9416_v20  ;;  %12803 = vst [vmem:[#allocation36_spill] sm:$0xff] %v9418_v31  ;;  %v6798_v63 = vpop.f32.mrf.mxu0  ;;  %v6926_v9 = vpop.f32.mrf.mxu1  ;;  %899 = vperm.xlu1 %7570, %v260_v34   ;;  %894 = vperm.xlu0 %7569, %v259_v41   ;;  %v264_v41 = vld [vmem:[%s12754_s1 + $0x398] sm:$0xff] }
  0xe0   :  { %v9426_v10 = vpop.f32.mrf.mxu0  ;;  %v9428_v17 = vpop.f32.mrf.mxu1 }
  0xe1   :  { %12804 = vst [vmem:[#allocation37_spill] sm:$0xff] %v9428_v17  ;;  %v9430_v20 = vpop.permute.xlu1 %599  ;;  %v9432_v63 = vpop.permute.xlu0 %594  ;;  %v266_v17 = vld [vmem:[%s12754_s1 + $0x3a8] sm:$0xff] }
  0xe2   :  { %12805 = vst [vmem:[#allocation38_spill] sm:$0xff] %v9430_v20  ;;  %12806 = vst [vmem:[#allocation39_spill] sm:$0xff] %v9432_v63  ;;  %v6799_v9 = vpop.f32.mrf.mxu0  ;;  %v6927_v34 = vpop.f32.mrf.mxu1  ;;  %909 = vperm.xlu1 %7570, %v262_v28   ;;  %904 = vperm.xlu0 %7569, %v261_v62   ;;  %v145_v62 = vld [vmem:[%s12756_s0 + $0x3c8] sm:$0xff]  ;;  %v265_v20 = vld [vmem:[%s12754_s1 + $0x3a0] sm:$0xff] }
  0xe3   :  { %6897 = vmatmul.mubr.msk.bf16.gmra.mxu0 %vm1108_vm1, %v301_v54  ;;  %7025 = vmatmul.mubr.msk.bf16.gmra.mxu1 %vm1108_vm1, %v333_v59  ;;  %v81_v54 = vld [vmem:[%s12756_s0 + $0x1c8] sm:$0xff]  ;;  %v144_v59 = vld [vmem:[%s12756_s0 + $0x3c0] sm:$0xff] }
  0xe4   :  { %v9445_v18 = vpop.f32.mrf.mxu0  ;;  %v9447_v28 = vpop.f32.mrf.mxu1  ;;  %6900 = vmatprep.mubr.msk.bf16.mxu0 %vm8412_vm0, %v12801_v2  ;;  %7028 = vmatprep.mubr.msk.bf16.mxu1 %vm8412_vm0, %v12801_v2  ;;  %v302_v63 = vpack.c.bf16 %v81_v54, %v80_v5  ;;  %v334_v31 = vpack.c.bf16 %v145_v62, %v144_v59  ;;  %v268_v5 = vld [vmem:[%s12754_s1 + $0x3b8] sm:$0xff]  ;;  %v82_v54 = vld [vmem:[%s12756_s0 + $0x1d0] sm:$0xff] }
  0xe5   :  { %12807 = vst [vmem:[#allocation40_spill] sm:$0xff] %v9447_v28  ;;  %v9462_v19 = vpop.permute.xlu1 %609  ;;  %v9464_v9 = vpop.permute.xlu0 %604 }
  0xe6   :  { %12808 = vst [vmem:[#allocation41_spill] sm:$0xff] %v9462_v19  ;;  %12809 = vst [vmem:[#allocation42_spill] sm:$0xff] %v9464_v9  ;;  %v6802_v34 = vpop.f32.mrf.mxu0  ;;  %v6930_v28 = vpop.f32.mrf.mxu1  ;;  %919 = vperm.xlu1 %7570, %v264_v41   ;;  %914 = vperm.xlu0 %7569, %v263_v44  }
  0xe7   :  { %v267_v28 = vld [vmem:[%s12754_s1 + $0x3b0] sm:$0xff] }
  0xe8   :  { %v9472_v45 = vpop.f32.mrf.mxu0  ;;  %v9474_v52 = vpop.f32.mrf.mxu1 }
  0xe9   :  { %12810 = vst [vmem:[#allocation43_spill] sm:$0xff] %v9474_v52  ;;  %v9476_v19 = vpop.permute.xlu1 %619  ;;  %v9478_v34 = vpop.permute.xlu0 %614  ;;  %v270_v52 = vld [vmem:[%s12754_s1 + $0x3c8] sm:$0xff] }
  0xea   :  { %12811 = vst [vmem:[#allocation44_spill] sm:$0xff] %v9476_v19  ;;  %12812 = vst [vmem:[#allocation45_spill] sm:$0xff] %v9478_v34  ;;  %v6803_v41 = vpop.f32.mrf.mxu0  ;;  %v6931_v44 = vpop.f32.mrf.mxu1  ;;  %929 = vperm.xlu1 %7570, %v266_v17   ;;  %924 = vperm.xlu0 %7569, %v265_v20   ;;  %v83_v20 = vld [vmem:[%s12756_s0 + $0x1d8] sm:$0xff]  ;;  %v269_v19 = vld [vmem:[%s12754_s1 + $0x3c0] sm:$0xff] }
  0xeb   :  { %6901 = vmatmul.mubr.msk.bf16.gmra.mxu0 %vm1108_vm1, %v302_v63  ;;  %7029 = vmatmul.mubr.msk.bf16.gmra.mxu1 %vm1108_vm1, %v334_v31  ;;  %v146_v31 = vld [vmem:[%s12756_s0 + $0x3d0] sm:$0xff]  ;;  %v147_v63 = vld [vmem:[%s12756_s0 + $0x3d8] sm:$0xff]  ;;  %v303_v34 = vpack.c.bf16 %v83_v20, %v82_v54 }
  0xec   :  { %v9491_v59 = vpop.f32.mrf.mxu0  ;;  %v9493_v17 = vpop.f32.mrf.mxu1  ;;  %6904 = vmatprep.mubr.msk.bf16.mxu0 %vm8412_vm0, %v12801_v2  ;;  %7032 = vmatprep.mubr.msk.bf16.mxu1 %vm8412_vm0, %v12801_v2  ;;  %v335_v9 = vpack.c.bf16 %v147_v63, %v146_v31  ;;  %v272_v54 = vld [vmem:[%s12754_s1 + $0x3d8] sm:$0xff]  ;;  %v148_v63 = vld [vmem:[%s12756_s0 + $0x3e0] sm:$0xff] }
  0xed   :  { %12813 = vst [vmem:[#allocation46_spill] sm:$0xff] %v9493_v17  ;;  %v9508_v62 = vpop.permute.xlu1 %629  ;;  %v9510_v41 = vpop.permute.xlu0 %624 }
  0xee   :  { %12814 = vst [vmem:[#allocation47_spill] sm:$0xff] %v9508_v62  ;;  %12815 = vst [vmem:[#allocation48_spill] sm:$0xff] %v9510_v41  ;;  %v6806_v44 = vpop.f32.mrf.mxu0  ;;  %v6934_v17 = vpop.f32.mrf.mxu1  ;;  %939 = vperm.xlu1 %7570, %v268_v5   ;;  %934 = vperm.xlu0 %7569, %v267_v28  }
  0xef   :  { %v271_v17 = vld [vmem:[%s12754_s1 + $0x3d0] sm:$0xff] }
  0xf0   :  { %v9518_v23 = vpop.f32.mrf.mxu0  ;;  %v9520_v26 = vpop.f32.mrf.mxu1 }
  0xf1   :  { %12816 = vst [vmem:[#allocation49_spill] sm:$0xff] %v9520_v26  ;;  %v9522_v62 = vpop.permute.xlu1 %639  ;;  %v9524_v44 = vpop.permute.xlu0 %634 }
  0xf2   :  { %12817 = vst [vmem:[#allocation50_spill] sm:$0xff] %v9522_v62  ;;  %12818 = vst [vmem:[#allocation51_spill] sm:$0xff] %v9524_v44  ;;  %v6807_v5 = vpop.f32.mrf.mxu0  ;;  %v6935_v28 = vpop.f32.mrf.mxu1  ;;  %949 = vperm.xlu1 %7570, %v270_v52   ;;  %944 = vperm.xlu0 %7569, %v269_v19   ;;  %v84_v52 = vld [vmem:[%s12756_s0 + $0x1e0] sm:$0xff]  ;;  %v85_v19 = vld [vmem:[%s12756_s0 + $0x1e8] sm:$0xff] }
  0xf3   :  { %6905 = vmatmul.mubr.msk.bf16.gmra.mxu0 %vm1108_vm1, %v303_v34  ;;  %7033 = vmatmul.mubr.msk.bf16.gmra.mxu1 %vm1108_vm1, %v335_v9  ;;  %v304_v26 = vpack.c.bf16 %v85_v19, %v84_v52  ;;  %v8240_v52 = vld [vmem:[%s12754_s1] sm:$0xff] }
  0xf4   :  { %v9534_v20 = vpop.f32.mrf.mxu0  ;;  %v9536_v31 = vpop.f32.mrf.mxu1  ;;  %6908 = vmatprep.mubr.msk.bf16.mxu0 %vm8412_vm0, %v12801_v2  ;;  %7036 = vmatprep.mubr.msk.bf16.mxu1 %vm8412_vm0, %v12801_v2 }
  0xf5   :  { %12819 = vst [vmem:[#allocation52_spill] sm:$0xff] %v9536_v31  ;;  %v9548_v9 = vpop.permute.xlu1 %649  ;;  %v9550_v34 = vpop.permute.xlu0 %644  ;;  %v273_v31 = vld [vmem:[%s12754_s1 + $0x3e0] sm:$0xff] }
  0xf6   :  { %12820 = vst [vmem:[#allocation53_spill] sm:$0xff] %v9548_v9  ;;  %12821 = vst [vmem:[#allocation54_spill] sm:$0xff] %v9550_v34  ;;  %v6810_v5 = vpop.f32.mrf.mxu0  ;;  %v6938_v28 = vpop.f32.mrf.mxu1  ;;  %959 = vperm.xlu1 %7570, %v272_v54   ;;  %954 = vperm.xlu0 %7569, %v271_v17   ;;  %v336_v9 = vpack.c.bf16 %v148_v63, %v148_v63  ;;  %v86_v54 = vld [vmem:[%s12756_s0 + $0x1f0] sm:$0xff]  ;;  %v87_v17 = vld [vmem:[%s12756_s0 + $0x1f8] sm:$0xff] }
  0xf7   :  { %v12763_v5 = vmov 1  }
  0xf8   :  { %v9558_v62 = vpop.f32.mrf.mxu0  ;;  %v9560_v44 = vpop.f32.mrf.mxu1 }
  0xf9   :  { %12822 = vst [vmem:[#allocation55_spill] sm:$0xff] %v9560_v44  ;;  %v9562_v41 = vpop.permute.xlu1 %659  ;;  %v9564_v34 = vpop.permute.xlu0 %654  ;;  %v305_v44 = vpack.c.bf16 %v87_v17, %v86_v54  ;;  %v7734_v54 = vld [vmem:[%s12757_s3 + $0x8] sm:$0xff]  }
  0xfa   :  { %12823 = vst [vmem:[#allocation56_spill] sm:$0xff] %v9562_v41  ;;  %12824 = vst [vmem:[#allocation57_spill] sm:$0xff] %v9564_v34  ;;  %v6811_v11 = vpop.f32.mrf.mxu0  ;;  %v6939_v14 = vpop.f32.mrf.mxu1  ;;  %7571 = vset.pattern.permute.xlu1 %v12763_v5  ;;  %964 = vperm.xlu0 %7569, %v273_v31   ;;  %v12831_v41 = vmov 2  }
  0xfb   :  { %1836 = vperm.xlu1 %7571, %v8240_v52   ;;  %6909 = vmatmul.mubr.msk.bf16.gmra.mxu0 %vm1108_vm1, %v304_v26  ;;  %v7732_v11 = vld [vmem:[%s12757_s3 + $0x18] sm:$0xff]  }
  0xfc   :  { %v9580_v14 = vpop.f32.mrf.mxu0  ;;  %v9582_v31 = vpop.f32.mrf.mxu1  ;;  %7037 = vmatmul.mubr.msk.bf16.gmra.mxu1 %vm1108_vm1, %v336_v9  ;;  %6912 = vmatprep.mubr.msk.bf16.mxu0 %vm8412_vm0, %v12801_v2  ;;  %v8241_v9 = vld [vmem:[%s12754_s1 + $0x8] sm:$0xff] }
  0xfd   :  { %12825 = vst [vmem:[#allocation58_spill] sm:$0xff] %v9582_v31  ;;  %v9587_v19 = vpop.permute.xlu1 %669  ;;  %v9589_v63 = vpop.permute.xlu0 %664  ;;  %7041 = vmatpush3.bf16.msra.mxu1 %v7732_v11  ;;  %7048 = vmatprep.mubr.msk.bf16.mxu1 %vm8412_vm0, %v12801_v2  ;;  %v12765_v31 = vmov 2   ;;  %v7733_v11 = vld [vmem:[%s12757_s3 + $0x10] sm:$0xff]  }
  0xfe   :  { %12826 = vst [vmem:[#allocation59_spill] sm:$0xff] %v9587_v19  ;;  %12827 = vst [vmem:[#allocation60_spill] sm:$0xff] %v9589_v63  ;;  %v6814_v26 = vpop.f32.mrf.mxu0  ;;  %v6942_v28 = vpop.f32.mrf.mxu1  ;;  %7572 = vset.pattern.permute.xlu0 %v12763_v5  ;;  %7042 = vmatprep.subr.bf16.mxu1 %v12801_v2 }
  0xff   :  { %7573 = vset.pattern.permute.xlu1 %v12765_v31  ;;  %1840 = vperm.xlu0 %7572, %v8241_v9  }
 0x100   :  { %v9602_v19 = vpop.f32.mrf.mxu0  ;;  %v9604_v26 = vpop.f32.mrf.mxu1  ;;  %2591 = vperm.xlu1 %7573, %v8240_v52  }
 0x101   :  { %12828 = vst [vmem:[#allocation61_spill] sm:$0xff] %v9604_v26  ;;  %v9606_v28 = vpop.permute.xlu1 %679  ;;  %v9608_v5 = vpop.permute.xlu0 %674  ;;  %7043 = vmatpush3.bf16.msra.mxu1 %v7733_v11 }
 0x102   :  { %12829 = vst [vmem:[#allocation62_spill] sm:$0xff] %v9606_v28  ;;  %12830 = vst [vmem:[#allocation63_spill] sm:$0xff] %v9608_v5  ;;  %v6815_v31 = vpop.f32.mrf.mxu0  ;;  %v6943_v63 = vpop.f32.mrf.mxu1  ;;  %7044 = vmatprep.subr.bf16.mxu1 %v12801_v2  ;;  %v12836_v5 = vmov 1  }
 0x103   :  { %7575 = vset.pattern.permute.xlu0 %v12831_v41  ;;  %6913 = vmatmul.mubr.msk.bf16.gmra.mxu0 %vm1108_vm1, %v305_v44  ;;  %v8242_v31 = vld [vmem:[%s12754_s1 + $0x10] sm:$0xff] }
 0x104   :  { %v9616_v17 = vpop.f32.mrf.mxu0  ;;  %v9618_v52 = vpop.f32.mrf.mxu1  ;;  %2595 = vperm.xlu1 %7573, %v8241_v9   ;;  %2599 = vperm.xlu0 %7575, %v8242_v31   ;;  %v7735_v9 = vld [vmem:[%s12757_s3] sm:$0xff]  }
 0x105   :  { %12832 = vst [vmem:[#allocation64_spill] sm:$0xff] %v9618_v52  ;;  %v9623_v63 = vpop.permute.xlu1 %689  ;;  %v9625_v11 = vpop.permute.xlu0 %684  ;;  %7045 = vmatpush3.bf16.msra.mxu1 %v7734_v54  ;;  %7308 = vmatprep.mubr.msk.bf16.mxu0 %vm8412_vm0, %v12801_v2 }
 0x106   :  { %12833 = vst [vmem:[#allocation65_spill] sm:$0xff] %v9623_v63  ;;  %12834 = vst [vmem:[#allocation66_spill] sm:$0xff] %v9625_v11  ;;  %v6818_v44 = vpop.f32.mrf.mxu0  ;;  %v6946_v26 = vpop.f32.mrf.mxu1  ;;  %7046 = vmatprep.subr.bf16.mxu1 %v12801_v2 }
 0x107   :  { %v8243_v26 = vld [vmem:[%s12754_s1 + $0x18] sm:$0xff] }
 0x108   :  { %v9633_v52 = vpop.f32.mrf.mxu0  ;;  %v9635_v28 = vpop.f32.mrf.mxu1  ;;  %7574 = vset.pattern.permute.xlu1 %v12836_v5  ;;  %7576 = vset.pattern.permute.xlu0 %v12836_v5 }
 0x109   :  { %12835 = vst [vmem:[#allocation67_spill] sm:$0xff] %v9635_v28  ;;  %v9639_v54 = vpop.permute.xlu1 %699  ;;  %1848 = vperm.xlu1 %7574, %v8243_v26   ;;  %1844 = vperm.xlu0 %7576, %v8242_v31   ;;  %v9644_v44 = vpop.permute.xlu0 %694 }
 0x10a   :  { %12837 = vst [vmem:[#allocation68_spill] sm:$0xff] %v9639_v54  ;;  %12838 = vst [vmem:[#allocation69_spill] sm:$0xff] %v9644_v44  ;;  %v6819_v63 = vpop.f32.mrf.mxu0  ;;  %v6947_v11 = vpop.f32.mrf.mxu1  ;;  %7047 = vmatpush3.bf16.msra.mxu1 %v7735_v9  ;;  %v8244_v54 = vld [vmem:[%s12754_s1 + $0x28] sm:$0xff] }
 0x10c   :  { %v9646_v34 = vpop.f32.mrf.mxu0  ;;  %v9648_v28 = vpop.f32.mrf.mxu1 }
 0x10d   :  { %12839 = vst [vmem:[#allocation70_spill] sm:$0xff] %v9648_v28  ;;  %v9650_v60 = vpop.permute.xlu1 %709  ;;  %7577 = vset.pattern.permute.xlu1 %v12831_v41  ;;  %1856 = vperm.xlu0 %7576, %v8244_v54   ;;  %v9656_v61 = vpop.permute.xlu0 %704  ;;  %v8245_v28 = vld [vmem:[%s12754_s1 + $0x30] sm:$0xff] }
 0x10e   :  { %12840 = vst [vmem:[#allocation71_spill] sm:$0xff] %v9650_v60  ;;  %12841 = vst [vmem:[#allocation72_spill] sm:$0xff] %v9656_v61  ;;  %v6822_v31 = vpop.f32.mrf.mxu0  ;;  %v6950_v44 = vpop.f32.mrf.mxu1  ;;  %2603 = vperm.xlu1 %7577, %v8243_v26   ;;  %v8246_v26 = vld [vmem:[%s12754_s1 + $0x20] sm:$0xff] }
 0x110   :  { %v9658_v63 = vpop.f32.mrf.mxu0  ;;  %v9660_v11 = vpop.f32.mrf.mxu1 }
 0x111   :  { %12842 = vst [vmem:[#allocation73_spill] sm:$0xff] %v9660_v11  ;;  %v9662_v9 = vpop.permute.xlu1 %719  ;;  %1860 = vperm.xlu0 %7576, %v8245_v28   ;;  %v9667_v60 = vpop.permute.xlu0 %714 }
 0x112   :  { %12843 = vst [vmem:[#allocation74_spill] sm:$0xff] %v9662_v9  ;;  %12844 = vst [vmem:[#allocation75_spill] sm:$0xff] %v9667_v60  ;;  %v6823_v46 = vpop.f32.mrf.mxu0  ;;  %v6951_v49 = vpop.f32.mrf.mxu1  ;;  %7578 = vset.pattern.permute.xlu1 %v12836_v5  ;;  %v9682_v9 = vld [vmem:[%s12754_s1 + $0x48] sm:$0xff] }
 0x113   :  { %1852 = vperm.xlu1 %7578, %v8246_v26  }
 0x114   :  { %v9673_v44 = vpop.f32.mrf.mxu0  ;;  %v9675_v31 = vpop.f32.mrf.mxu1 }
 0x115   :  { %12845 = vst [vmem:[#allocation76_spill] sm:$0xff] %v9675_v31  ;;  %v9677_v11 = vpop.permute.xlu1 %729  ;;  %1872 = vperm.xlu0 %7576, %v9682_v9   ;;  %v9685_v46 = vpop.permute.xlu0 %724 }
 0x116   :  { %12846 = vst [vmem:[#allocation77_spill] sm:$0xff] %v9677_v11  ;;  %12847 = vst [vmem:[#allocation78_spill] sm:$0xff] %v9685_v46  ;;  %v6826_v49 = vpop.f32.mrf.mxu0  ;;  %v6954_v60 = vpop.f32.mrf.mxu1 }
 0x117   :  { %7579 = vset.pattern.permute.xlu1 %v12831_v41 }
 0x118   :  { %v9688_v61 = vpop.f32.mrf.mxu0  ;;  %v9690_v32 = vpop.f32.mrf.mxu1  ;;  %2607 = vperm.xlu1 %7579, %v8246_v26  }
 0x119   :  { %12848 = vst [vmem:[#allocation79_spill] sm:$0xff] %v9690_v32  ;;  %v9692_v31 = vpop.permute.xlu1 %739  ;;  %7583 = vset.pattern.permute.xlu0 %v12831_v41  ;;  %v9695_v11 = vpop.permute.xlu0 %734 }
 0x11a   :  { %12849 = vst [vmem:[#allocation80_spill] sm:$0xff] %v9692_v31  ;;  %12850 = vst [vmem:[#allocation81_spill] sm:$0xff] %v9695_v11  ;;  %v6827_v33 = vpop.f32.mrf.mxu0  ;;  %v6955_v24 = vpop.f32.mrf.mxu1  ;;  %2615 = vperm.xlu0 %7583, %v8245_v28   ;;  %v8248_v31 = vld [vmem:[%s12754_s1 + $0x50] sm:$0xff]  ;;  %v8249_v28 = vld [vmem:[%s12754_s1 + $0x38] sm:$0xff] }
 0x11c   :  { %v9697_v25 = vpop.f32.mrf.mxu0  ;;  %v9699_v49 = vpop.f32.mrf.mxu1  ;;  %2611 = vperm.xlu1 %7579, %v8244_v54  }
 0x11d   :  { %12851 = vst [vmem:[#allocation82_spill] sm:$0xff] %v9697_v25  ;;  %12852 = vst [vmem:[#allocation83_spill] sm:$0xff] %v9699_v49  ;;  %v9701_v60 = vpop.permute.xlu1 %749  ;;  %v9703_v46 = vpop.permute.xlu0 %744 }
 0x11e   :  { %12853 = vst [vmem:[#allocation84_spill] sm:$0xff] %v9701_v60  ;;  %12854 = vst [vmem:[#allocation85_spill] sm:$0xff] %v9703_v46  ;;  %v6830_v32 = vpop.f32.mrf.mxu0  ;;  %v6958_v26 = vpop.f32.mrf.mxu1  ;;  %2631 = vperm.xlu0 %7583, %v8248_v31  }
 0x120   :  { %v9708_v11 = vpop.f32.mrf.mxu0  ;;  %v9710_v24 = vpop.f32.mrf.mxu1  ;;  %7580 = vset.pattern.permute.xlu1 %v12836_v5 }
 0x121   :  { %12855 = vst [vmem:[#allocation86_spill] sm:$0xff] %v9708_v11  ;;  %12856 = vst [vmem:[#allocation87_spill] sm:$0xff] %v9710_v24  ;;  %v9713_v33 = vpop.permute.xlu1 %759  ;;  %1864 = vperm.xlu1 %7580, %v8249_v28   ;;  %v9718_v32 = vpop.permute.xlu0 %754 }
 0x122   :  { %12857 = vst [vmem:[#allocation88_spill] sm:$0xff] %v9713_v33  ;;  %12858 = vst [vmem:[#allocation89_spill] sm:$0xff] %v9718_v32  ;;  %v6831_v54 = vpop.f32.mrf.mxu0  ;;  %v6959_v26 = vpop.f32.mrf.mxu1  ;;  %7586 = vset.pattern.permute.xlu0 %v12836_v5 }
 0x123   :  { %1876 = vperm.xlu0 %7586, %v8248_v31   ;;  %v9733_v54 = vld [vmem:[%s12754_s1 + $0x68] sm:$0xff] }
 0x124   :  { %v9721_v49 = vpop.f32.mrf.mxu0  ;;  %v9723_v60 = vpop.f32.mrf.mxu1 }
 0x125   :  { %12859 = vst [vmem:[#allocation90_spill] sm:$0xff] %v9721_v49  ;;  %12860 = vst [vmem:[#allocation91_spill] sm:$0xff] %v9723_v60  ;;  %v9725_v24 = vpop.permute.xlu1 %769  ;;  %7581 = vset.pattern.permute.xlu1 %v12831_v41  ;;  %v9728_v33 = vpop.permute.xlu0 %764 }
 0x126   :  { %12861 = vst [vmem:[#allocation92_spill] sm:$0xff] %v9725_v24  ;;  %12862 = vst [vmem:[#allocation93_spill] sm:$0xff] %v9728_v33  ;;  %v6834_v46 = vpop.f32.mrf.mxu0  ;;  %v6962_v12 = vpop.f32.mrf.mxu1  ;;  %2619 = vperm.xlu1 %7581, %v8249_v28  }
 0x127   :  { %1888 = vperm.xlu0 %7586, %v9733_v54   ;;  %v8251_v12 = vld [vmem:[%s12754_s1 + $0x40] sm:$0xff]  ;;  %v8252_v46 = vld [vmem:[%s12754_s1 + $0x70] sm:$0xff] }
 0x128   :  { %v9736_v31 = vpop.f32.mrf.mxu0  ;;  %v9738_v26 = vpop.f32.mrf.mxu1 }
 0x129   :  { %12863 = vst [vmem:[#allocation94_spill] sm:$0xff] %v9736_v31  ;;  %12864 = vst [vmem:[#allocation95_spill] sm:$0xff] %v9738_v26  ;;  %v9740_v60 = vpop.permute.xlu1 %779  ;;  %v9742_v24 = vpop.permute.xlu0 %774 }
 0x12a   :  { %12865 = vst [vmem:[#allocation96_spill] sm:$0xff] %v9740_v60  ;;  %12866 = vst [vmem:[#allocation97_spill] sm:$0xff] %v9742_v24  ;;  %v6835_v32 = vpop.f32.mrf.mxu0  ;;  %v6963_v33 = vpop.f32.mrf.mxu1  ;;  %7582 = vset.pattern.permute.xlu1 %v12836_v5 }
 0x12b   :  { %1868 = vperm.xlu1 %7582, %v8251_v12   ;;  %1892 = vperm.xlu0 %7586, %v8252_v46  }
 0x12c   :  { %v9751_v28 = vpop.f32.mrf.mxu0  ;;  %v9753_v26 = vpop.f32.mrf.mxu1 }
 0x12d   :  { %12867 = vst [vmem:[#allocation98_spill] sm:$0xff] %v9751_v28  ;;  %12868 = vst [vmem:[#allocation99_spill] sm:$0xff] %v9753_v26  ;;  %v9755_v60 = vpop.permute.xlu1 %789  ;;  %v9757_v32 = vpop.permute.xlu0 %784 }
 0x12e   :  { %12869 = vst [vmem:[#allocation100_spill] sm:$0xff] %v9755_v60  ;;  %12870 = vst [vmem:[#allocation101_spill] sm:$0xff] %v9757_v32  ;;  %v6838_v33 = vpop.f32.mrf.mxu0  ;;  %v6966_v24 = vpop.f32.mrf.mxu1 }
 0x12f   :  { %7584 = vset.pattern.permute.xlu1 %v12831_v41  ;;  %1904 = vperm.xlu0 %7586, %v9763_v13  }
 0x130   :  { %v9766_v3 = vpop.f32.mrf.mxu0  ;;  %v9768_v28 = vpop.f32.mrf.mxu1  ;;  %2623 = vperm.xlu1 %7584, %v8251_v12  }
 0x131   :  { %12871 = vst [vmem:[#allocation102_spill] sm:$0xff] %v9766_v3  ;;  %12872 = vst [vmem:[#allocation103_spill] sm:$0xff] %v9768_v28  ;;  %v9770_v26 = vpop.permute.xlu1 %799  ;;  %v9772_v60 = vpop.permute.xlu0 %794 }
 0x132   :  { %12873 = vst [vmem:[#allocation104_spill] sm:$0xff] %v9770_v26  ;;  %12874 = vst [vmem:[#allocation105_spill] sm:$0xff] %v9772_v60  ;;  %v6839_v33 = vpop.f32.mrf.mxu0  ;;  %v6967_v24 = vpop.f32.mrf.mxu1 }
 0x133   :  { %7593 = vset.pattern.permute.xlu0 %v12831_v41  ;;  %v8254_v33 = vld [vmem:[%s12754_s1 + $0x90] sm:$0xff] }
 0x134   :  { %v9775_v32 = vpop.f32.mrf.mxu0  ;;  %v9777_v4 = vpop.f32.mrf.mxu1  ;;  %2627 = vperm.xlu1 %7584, %v9682_v9   ;;  %2647 = vperm.xlu0 %7593, %v8252_v46   ;;  %v8255_v9 = vld [vmem:[%s12754_s1 + $0x58] sm:$0xff] }
 0x135   :  { %12875 = vst [vmem:[#allocation106_spill] sm:$0xff] %v9775_v32  ;;  %12876 = vst [vmem:[#allocation107_spill] sm:$0xff] %v9777_v4  ;;  %v9780_v31 = vpop.permute.xlu1 %809  ;;  %v9782_v3 = vpop.permute.xlu0 %804 }
 0x136   :  { %12877 = vst [vmem:[#allocation108_spill] sm:$0xff] %v9780_v31  ;;  %12878 = vst [vmem:[#allocation109_spill] sm:$0xff] %v9782_v3  ;;  %v6842_v12 = vpop.f32.mrf.mxu0  ;;  %v6970_v28 = vpop.f32.mrf.mxu1 }
 0x138   :  { %v9784_v26 = vpop.f32.mrf.mxu0  ;;  %v9786_v60 = vpop.f32.mrf.mxu1  ;;  %7585 = vset.pattern.permute.xlu1 %v12836_v5  ;;  %2663 = vperm.xlu0 %7593, %v8254_v33  }
 0x139   :  { %12879 = vst [vmem:[#allocation110_spill] sm:$0xff] %v9784_v26  ;;  %12880 = vst [vmem:[#allocation111_spill] sm:$0xff] %v9786_v60  ;;  %v9792_v24 = vpop.permute.xlu1 %819  ;;  %1880 = vperm.xlu1 %7585, %v8255_v9   ;;  %v9797_v46 = vpop.permute.xlu0 %814 }
 0x13a   :  { %12881 = vst [vmem:[#allocation112_spill] sm:$0xff] %v9792_v24  ;;  %12882 = vst [vmem:[#allocation113_spill] sm:$0xff] %v9797_v46  ;;  %v6843_v28 = vpop.f32.mrf.mxu0  ;;  %v6971_v12 = vpop.f32.mrf.mxu1  ;;  %v9818_v46 = vld [vmem:[%s12754_s1 + $0xa8] sm:$0xff] }
 0x13c   :  { %v9799_v31 = vpop.f32.mrf.mxu0  ;;  %v9801_v3 = vpop.f32.mrf.mxu1  ;;  %7596 = vset.pattern.permute.xlu0 %v12836_v5 }
 0x13d   :  { %12883 = vst [vmem:[#allocation114_spill] sm:$0xff] %v9799_v31  ;;  %12884 = vst [vmem:[#allocation115_spill] sm:$0xff] %v9801_v3  ;;  %v9804_v60 = vpop.permute.xlu1 %829  ;;  %7587 = vset.pattern.permute.xlu1 %v12831_v41  ;;  %1908 = vperm.xlu0 %7596, %v8254_v33   ;;  %v9807_v24 = vpop.permute.xlu0 %824 }
 0x13e   :  { %12885 = vst [vmem:[#allocation116_spill] sm:$0xff] %v9804_v60  ;;  %12886 = vst [vmem:[#allocation117_spill] sm:$0xff] %v9807_v24  ;;  %v6846_v4 = vpop.f32.mrf.mxu0  ;;  %v6974_v26 = vpop.f32.mrf.mxu1  ;;  %2635 = vperm.xlu1 %7587, %v8255_v9  }
 0x13f   :  { %v8257_v4 = vld [vmem:[%s12754_s1 + $0x60] sm:$0xff] }
 0x140   :  { %v9809_v32 = vpop.f32.mrf.mxu0  ;;  %v9811_v28 = vpop.f32.mrf.mxu1 }
 0x141   :  { %12887 = vst [vmem:[#allocation118_spill] sm:$0xff] %v9809_v32  ;;  %12888 = vst [vmem:[#allocation119_spill] sm:$0xff] %v9811_v28  ;;  %v9813_v12 = vpop.permute.xlu1 %839  ;;  %1920 = vperm.xlu0 %7596, %v9818_v46   ;;  %v9821_v60 = vpop.permute.xlu0 %834  ;;  %v8258_v28 = vld [vmem:[%s12754_s1 + $0xb0] sm:$0xff] }
 0x142   :  { %12889 = vst [vmem:[#allocation120_spill] sm:$0xff] %v9813_v12  ;;  %12890 = vst [vmem:[#allocation121_spill] sm:$0xff] %v9821_v60  ;;  %v6847_v33 = vpop.f32.mrf.mxu0  ;;  %v6975_v24 = vpop.f32.mrf.mxu1  ;;  %7588 = vset.pattern.permute.xlu1 %v12836_v5 }
 0x143   :  { %1884 = vperm.xlu1 %7588, %v8257_v4  }
 0x144   :  { %v9827_v26 = vpop.f32.mrf.mxu0  ;;  %v9829_v9 = vpop.f32.mrf.mxu1 }
 0x145   :  { %12891 = vst [vmem:[#allocation122_spill] sm:$0xff] %v9827_v26  ;;  %12892 = vst [vmem:[#allocation123_spill] sm:$0xff] %v9829_v9  ;;  %v9831_v12 = vpop.permute.xlu1 %849  ;;  %1924 = vperm.xlu0 %7596, %v8258_v28   ;;  %v9836_v33 = vpop.permute.xlu0 %844 }
 0x146   :  { %12893 = vst [vmem:[#allocation124_spill] sm:$0xff] %v9831_v12  ;;  %12894 = vst [vmem:[#allocation125_spill] sm:$0xff] %v9836_v33  ;;  %v6850_v24 = vpop.f32.mrf.mxu0  ;;  %v6978_v60 = vpop.f32.mrf.mxu1  ;;  %v9848_v12 = vld [vmem:[%s12754_s1 + $0xc8] sm:$0xff] }
 0x147   :  { %7589 = vset.pattern.permute.xlu1 %v12831_v41 }
 0x148   :  { %v9839_v3 = vpop.f32.mrf.mxu0  ;;  %v9841_v32 = vpop.f32.mrf.mxu1  ;;  %2639 = vperm.xlu1 %7589, %v8257_v4  }
 0x149   :  { %12895 = vst [vmem:[#allocation126_spill] sm:$0xff] %v9839_v3  ;;  %12896 = vst [vmem:[#allocation127_spill] sm:$0xff] %v9841_v32  ;;  %v9843_v26 = vpop.permute.xlu1 %859  ;;  %1936 = vperm.xlu0 %7596, %v9848_v12   ;;  %v9851_v9 = vpop.permute.xlu0 %854 }
 0x14a   :  { %12897 = vst [vmem:[#allocation128_spill] sm:$0xff] %v9843_v26  ;;  %12898 = vst [vmem:[#allocation129_spill] sm:$0xff] %v9851_v9  ;;  %v6851_v24 = vpop.f32.mrf.mxu0  ;;  %v6979_v60 = vpop.f32.mrf.mxu1 }
 0x14c   :  { %v9853_v33 = vpop.f32.mrf.mxu0  ;;  %v9855_v31 = vpop.f32.mrf.mxu1  ;;  %2643 = vperm.xlu1 %7589, %v9733_v54   ;;  %v8260_v54 = vld [vmem:[%s12754_s1 + $0x78] sm:$0xff] }
 0x14d   :  { %12899 = vst [vmem:[#allocation130_spill] sm:$0xff] %v9853_v33  ;;  %12900 = vst [vmem:[#allocation131_spill] sm:$0xff] %v9855_v31  ;;  %v9858_v4 = vpop.permute.xlu1 %869  ;;  %7603 = vset.pattern.permute.xlu0 %v12831_v41  ;;  %v9861_v26 = vpop.permute.xlu0 %864 }
 0x14e   :  { %12901 = vst [vmem:[#allocation132_spill] sm:$0xff] %v9858_v4  ;;  %12902 = vst [vmem:[#allocation133_spill] sm:$0xff] %v9861_v26  ;;  %v6854_v32 = vpop.f32.mrf.mxu0  ;;  %v6982_v3 = vpop.f32.mrf.mxu1  ;;  %2679 = vperm.xlu0 %7603, %v8258_v28  }
 0x14f   :  { %v8261_v3 = vld [vmem:[%s12754_s1 + $0xd0] sm:$0xff] }
 0x150   :  { %v9863_v55 = vpop.f32.mrf.mxu0  ;;  %v9865_v9 = vpop.f32.mrf.mxu1  ;;  %7590 = vset.pattern.permute.xlu1 %v12836_v5 }
 0x151   :  { %12903 = vst [vmem:[#allocation134_spill] sm:$0xff] %v9863_v55  ;;  %12904 = vst [vmem:[#allocation135_spill] sm:$0xff] %v9865_v9  ;;  %v9868_v24 = vpop.permute.xlu1 %879  ;;  %1896 = vperm.xlu1 %7590, %v8260_v54   ;;  %v9873_v60 = vpop.permute.xlu0 %874 }
 0x152   :  { %12905 = vst [vmem:[#allocation136_spill] sm:$0xff] %v9868_v24  ;;  %12906 = vst [vmem:[#allocation137_spill] sm:$0xff] %v9873_v60  ;;  %v6855_v4 = vpop.f32.mrf.mxu0  ;;  %v6983_v26 = vpop.f32.mrf.mxu1  ;;  %2695 = vperm.xlu0 %7603, %v8261_v3  }
 0x154   :  { %v9878_v32 = vpop.f32.mrf.mxu0  ;;  %v9880_v28 = vpop.f32.mrf.mxu1 }
 0x155   :  { %12907 = vst [vmem:[#allocation138_spill] sm:$0xff] %v9878_v32  ;;  %12908 = vst [vmem:[#allocation139_spill] sm:$0xff] %v9880_v28  ;;  %v9882_v9 = vpop.permute.xlu1 %889  ;;  %7591 = vset.pattern.permute.xlu1 %v12831_v41  ;;  %v9885_v24 = vpop.permute.xlu0 %884 }
 0x156   :  { %12909 = vst [vmem:[#allocation140_spill] sm:$0xff] %v9882_v9  ;;  %12910 = vst [vmem:[#allocation141_spill] sm:$0xff] %v9885_v24  ;;  %v6858_v31 = vpop.f32.mrf.mxu0  ;;  %v6986_v55 = vpop.f32.mrf.mxu1  ;;  %2651 = vperm.xlu1 %7591, %v8260_v54   ;;  %7606 = vset.pattern.permute.xlu0 %v12836_v5  ;;  %v8264_v24 = vld [vmem:[%s12754_s1 + $0xf0] sm:$0xff] }
 0x157   :  { %1940 = vperm.xlu0 %7606, %v8261_v3   ;;  %v8262_v55 = vld [vmem:[%s12754_s1 + $0x80] sm:$0xff]  ;;  %v9903_v31 = vld [vmem:[%s12754_s1 + $0xe8] sm:$0xff] }
 0x158   :  { %v9888_v26 = vpop.f32.mrf.mxu0  ;;  %v9890_v4 = vpop.f32.mrf.mxu1 }
 0x159   :  { %12911 = vst [vmem:[#allocation142_spill] sm:$0xff] %v9888_v26  ;;  %12912 = vst [vmem:[#allocation143_spill] sm:$0xff] %v9890_v4  ;;  %v9892_v60 = vpop.permute.xlu1 %899  ;;  %v9894_v32 = vpop.permute.xlu0 %894 }
 0x15a   :  { %12913 = vst [vmem:[#allocation144_spill] sm:$0xff] %v9892_v60  ;;  %12914 = vst [vmem:[#allocation145_spill] sm:$0xff] %v9894_v32  ;;  %v6859_v28 = vpop.f32.mrf.mxu0  ;;  %v6987_v9 = vpop.f32.mrf.mxu1  ;;  %7592 = vset.pattern.permute.xlu1 %v12836_v5 }
 0x15b   :  { %1900 = vperm.xlu1 %7592, %v8262_v55   ;;  %1952 = vperm.xlu0 %7606, %v9903_v31  }
 0x15c   :  { %v9906_v54 = vpop.f32.mrf.mxu0  ;;  %v9908_v3 = vpop.f32.mrf.mxu1 }
 0x15d   :  { %12915 = vst [vmem:[#allocation146_spill] sm:$0xff] %v9906_v54  ;;  %12916 = vst [vmem:[#allocation147_spill] sm:$0xff] %v9908_v3  ;;  %v9910_v28 = vpop.permute.xlu1 %909  ;;  %v9912_v9 = vpop.permute.xlu0 %904 }
 0x15e   :  { %12917 = vst [vmem:[#allocation148_spill] sm:$0xff] %v9910_v28  ;;  %12918 = vst [vmem:[#allocation149_spill] sm:$0xff] %v9912_v9  ;;  %v6862_v60 = vpop.f32.mrf.mxu0  ;;  %v6990_v32 = vpop.f32.mrf.mxu1 }
 0x15f   :  { %7594 = vset.pattern.permute.xlu1 %v12831_v41  ;;  %1956 = vperm.xlu0 %7606, %v8264_v24   ;;  %v9929_v60 = vld [vmem:[%s12754_s1 + $0x108] sm:$0xff] }
 0x160   :  { %v9918_v4 = vpop.f32.mrf.mxu0  ;;  %v9920_v26 = vpop.f32.mrf.mxu1  ;;  %2655 = vperm.xlu1 %7594, %v8262_v55  }
 0x161   :  { %12919 = vst [vmem:[#allocation150_spill] sm:$0xff] %v9918_v4  ;;  %12920 = vst [vmem:[#allocation151_spill] sm:$0xff] %v9920_v26  ;;  %v9922_v54 = vpop.permute.xlu1 %919  ;;  %v9924_v3 = vpop.permute.xlu0 %914 }
 0x162   :  { %12921 = vst [vmem:[#allocation152_spill] sm:$0xff] %v9922_v54  ;;  %12922 = vst [vmem:[#allocation153_spill] sm:$0xff] %v9924_v3  ;;  %v6863_v28 = vpop.f32.mrf.mxu0  ;;  %v6991_v9 = vpop.f32.mrf.mxu1 }
 0x163   :  { %1968 = vperm.xlu0 %7606, %v9929_v60  }
 0x164   :  { %v9932_v32 = vpop.f32.mrf.mxu0  ;;  %v9934_v33 = vpop.f32.mrf.mxu1  ;;  %2659 = vperm.xlu1 %7594, %v9763_v13   ;;  %v8266_v13 = vld [vmem:[%s12754_s1 + $0x98] sm:$0xff] }
 0x165   :  { %12923 = vst [vmem:[#allocation154_spill] sm:$0xff] %v9932_v32  ;;  %12924 = vst [vmem:[#allocation155_spill] sm:$0xff] %v9934_v33  ;;  %v9937_v55 = vpop.permute.xlu1 %929  ;;  %v9939_v54 = vpop.permute.xlu0 %924 }
 0x166   :  { %12925 = vst [vmem:[#allocation156_spill] sm:$0xff] %v9937_v55  ;;  %12926 = vst [vmem:[#allocation157_spill] sm:$0xff] %v9939_v54  ;;  %v6866_v3 = vpop.f32.mrf.mxu0  ;;  %v6994_v28 = vpop.f32.mrf.mxu1 }
 0x167   :  { %7613 = vset.pattern.permute.xlu0 %v12831_v41 }
 0x168   :  { %v9942_v9 = vpop.f32.mrf.mxu0  ;;  %v9944_v26 = vpop.f32.mrf.mxu1  ;;  %7595 = vset.pattern.permute.xlu1 %v12836_v5  ;;  %2711 = vperm.xlu0 %7613, %v8264_v24  }
 0x169   :  { %12927 = vst [vmem:[#allocation158_spill] sm:$0xff] %v9942_v9  ;;  %12928 = vst [vmem:[#allocation159_spill] sm:$0xff] %v9944_v26  ;;  %v9947_v32 = vpop.permute.xlu1 %939  ;;  %1912 = vperm.xlu1 %7595, %v8266_v13   ;;  %v9952_v55 = vpop.permute.xlu0 %934  ;;  %v8267_v26 = vld [vmem:[%s12754_s1 + $0x110] sm:$0xff] }
 0x16a   :  { %12929 = vst [vmem:[#allocation160_spill] sm:$0xff] %v9947_v32  ;;  %12930 = vst [vmem:[#allocation161_spill] sm:$0xff] %v9952_v55  ;;  %v6867_v3 = vpop.f32.mrf.mxu0  ;;  %v6995_v28 = vpop.f32.mrf.mxu1 }
 0x16c   :  { %v9954_v54 = vpop.f32.mrf.mxu0  ;;  %v9956_v33 = vpop.f32.mrf.mxu1  ;;  %2727 = vperm.xlu0 %7613, %v8267_v26  }
 0x16d   :  { %12931 = vst [vmem:[#allocation162_spill] sm:$0xff] %v9954_v54  ;;  %12932 = vst [vmem:[#allocation163_spill] sm:$0xff] %v9956_v33  ;;  %v9961_v24 = vpop.permute.xlu1 %949  ;;  %7597 = vset.pattern.permute.xlu1 %v12831_v41  ;;  %v9964_v32 = vpop.permute.xlu0 %944 }
 0x16e   :  { %12933 = vst [vmem:[#allocation164_spill] sm:$0xff] %v9961_v24  ;;  %12934 = vst [vmem:[#allocation165_spill] sm:$0xff] %v9964_v32  ;;  %v6870_v9 = vpop.f32.mrf.mxu0  ;;  %v6998_v4 = vpop.f32.mrf.mxu1  ;;  %2667 = vperm.xlu1 %7597, %v8266_v13  }
 0x16f   :  { %v8268_v4 = vld [vmem:[%s12754_s1 + $0xa0] sm:$0xff] }
 0x170   :  { %v9966_v3 = vpop.f32.mrf.mxu0  ;;  %v9968_v28 = vpop.f32.mrf.mxu1  ;;  %7616 = vset.pattern.permute.xlu0 %v12836_v5 }
 0x171   :  { %12935 = vst [vmem:[#allocation166_spill] sm:$0xff] %v9966_v3  ;;  %12936 = vst [vmem:[#allocation167_spill] sm:$0xff] %v9968_v28  ;;  %v9971_v55 = vpop.permute.xlu1 %959  ;;  %1972 = vperm.xlu0 %7616, %v8267_v26   ;;  %v9973_v33 = vpop.permute.xlu0 %954  ;;  %v9991_v26 = vld [vmem:[%s12754_s1 + $0x128] sm:$0xff] }
 0x172   :  { %12937 = vst [vmem:[#allocation168_spill] sm:$0xff] %v9971_v55  ;;  %12938 = vst [vmem:[#allocation169_spill] sm:$0xff] %v9973_v33  ;;  %v6871_v54 = vpop.f32.mrf.mxu0  ;;  %v6999_v24 = vpop.f32.mrf.mxu1  ;;  %7598 = vset.pattern.permute.xlu1 %v12836_v5  ;;  %v9986_v55 = vld [vmem:[%s12758_s5] ss:$0 sm:$0xff] }
 0x173   :  { %1916 = vperm.xlu1 %7598, %v8268_v4   ;;  %v9999_v24 = vld [vmem:[%s12758_s5 + $0x1] ss:$0 sm:$0xff]  ;;  %v971_v33 = vmul.f32 %v9986_v55, %v8942_v37  ;;  %v10015_v37 = vld [vmem:[%s12758_s5 + $0x2] ss:$0 sm:$0xff] }
 0x174   :  { %v9979_v9 = vpop.f32.mrf.mxu0  ;;  %v9981_v13 = vpop.f32.mrf.mxu1 }
 0x175   :  { %12939 = vst [vmem:[#allocation170_spill] sm:$0xff] %v9979_v9  ;;  %12940 = vst [vmem:[#allocation171_spill] sm:$0xff] %v9981_v13  ;;  %1984 = vperm.xlu0 %7616, %v9991_v26   ;;  %v9994_v54 = vpop.permute.xlu0 %964 }
 0x176   :  { %12941 = vst [vmem:[#allocation172_spill] sm:$0xff] %v9994_v54  ;;  %v6874_v32 = vpop.f32.mrf.mxu0  ;;  %v7002_v13 = vpop.f32.mrf.mxu1  ;;  %v8270_v54 = vld [vmem:[%s12754_s1 + $0x130] sm:$0xff] }
 0x177   :  { %v1837_v28 = vpop.permute.xlu1 %1836  ;;  %7599 = vset.pattern.permute.xlu1 %v12831_v41  ;;  %v972_v32 = vmul.f32 %v9986_v55, %v8952_v43  ;;  %v10030_v43 = vld [vmem:[%s12754_s1 + $0x148] sm:$0xff] }
 0x178   :  { %v2339_v9 = vmul.f32 %v9999_v24, %v1837_v28  ;;  %v10005_v3 = vpop.f32.mrf.mxu0  ;;  %v10007_v49 = vpop.f32.mrf.mxu1  ;;  %2671 = vperm.xlu1 %7599, %v8268_v4   ;;  %v1333_v28 = vadd.f32 %v9296_v27, %v971_v33  ;;  %12946 = vst [vmem:[#allocation177_spill] sm:$0xff] %v10030_v43 }
 0x179   :  { %12942 = vst [vmem:[#allocation173_spill] sm:$0xff] %v10005_v3  ;;  %12943 = vst [vmem:[#allocation174_spill] sm:$0xff] %v10007_v49  ;;  %1988 = vperm.xlu0 %7616, %v8270_v54   ;;  %v1336_v27 = vadd.f32 %v9334_v6, %v972_v32 }
 0x17a   :  { %v6875_v13 = vpop.f32.mrf.mxu0  ;;  %v7003_v3 = vpop.f32.mrf.mxu1  ;;  %v2464_v4 = vadd.f32 %v2339_v9, %v1333_v28 }
 0x17b   :  { %v1841_v58 = vpop.permute.xlu0 %1840  ;;  %v2592_v49 = vpop.permute.xlu1 %2591 }
 0x17c   :  { %v2340_v11 = vmul.f32 %v9999_v24, %v1841_v58  ;;  %v3094_v47 = vmul.f32 %v10015_v37, %v2592_v49  ;;  %v10022_v25 = vpop.f32.mrf.mxu0  ;;  %v10024_v48 = vpop.f32.mrf.mxu1  ;;  %2675 = vperm.xlu1 %7599, %v9818_v46   ;;  %v10037_v49 = vld [vmem:[%s12758_s5 + $0x3] ss:$0 sm:$0xff] }
 0x17d   :  { %12944 = vst [vmem:[#allocation175_spill] sm:$0xff] %v10022_v25  ;;  %12945 = vst [vmem:[#allocation176_spill] sm:$0xff] %v10024_v48  ;;  %2000 = vperm.xlu0 %7616, %v10030_v43  }
 0x17e   :  { %v3219_v33 = vadd.f32 %v3094_v47, %v2464_v4  ;;  %v6878_v3 = vpop.f32.mrf.mxu0  ;;  %v7006_v58 = vpop.f32.mrf.mxu1  ;;  %v2465_v46 = vadd.f32 %v2340_v11, %v1336_v27  ;;  %v8272_v47 = vld [vmem:[%s12754_s1 + $0xb8] sm:$0xff]  ;;  %v973_v27 = vmul.f32 %v9986_v55, %v8940_v36 }
 0x17f   :  { %v2596_v9 = vpop.permute.xlu1 %2595  ;;  %v2600_v28 = vpop.permute.xlu0 %2599 }
 0x180   :  { %v3095_v13 = vmul.f32 %v10015_v37, %v2596_v9  ;;  %v10040_v48 = vpop.f32.mrf.mxu0  ;;  %v10042_v25 = vpop.f32.mrf.mxu1  ;;  %7600 = vset.pattern.permute.xlu1 %v12836_v5  ;;  %v3349_v6 = vadd.f32 %v10037_v49, %v3219_v33  ;;  %v3096_v33 = vmul.f32 %v10015_v37, %v2600_v28 }
 0x181   :  { %12947 = vst [vmem:[#allocation178_spill] sm:$0xff] %v10040_v48  ;;  %12948 = vst [vmem:[#allocation179_spill] sm:$0xff] %v10042_v25  ;;  %1928 = vperm.xlu1 %7600, %v8272_v47   ;;  %7623 = vset.pattern.permute.xlu0 %v12831_v41  ;;  %v974_v25 = vmul.f32 %v9986_v55, %v8950_v42  ;;  %v1341_v48 = vadd.f32 %v9353_v39, %v973_v27  ;;  %v8273_v42 = vld [vmem:[%s12754_s1 + $0x150] sm:$0xff] }
 0x182   :  { %v3220_v32 = vadd.f32 %v3095_v13, %v2465_v46  ;;  %v6879_v4 = vpop.f32.mrf.mxu0  ;;  %v7007_v11 = vpop.f32.mrf.mxu1  ;;  %2743 = vperm.xlu0 %7623, %v8270_v54   ;;  %v3474_v54 = vmax.f32 %v3349_v6, 0.0 }
 0x183   :  { %v1344_v39 = vadd.f32 %v9380_v40, %v974_v25 }
 0x184   :  { %v3350_v3 = vadd.f32 %v10037_v49, %v3220_v32  ;;  %v10053_v58 = vpop.f32.mrf.mxu0  ;;  %v10055_v9 = vpop.f32.mrf.mxu1 }
 0x185   :  { %12949 = vst [vmem:[#allocation180_spill] sm:$0xff] %v10053_v58  ;;  %12950 = vst [vmem:[#allocation181_spill] sm:$0xff] %v10055_v9  ;;  %v1849_v46 = vpop.permute.xlu1 %1848  ;;  %v1845_v13 = vpop.permute.xlu0 %1844  ;;  %7601 = vset.pattern.permute.xlu1 %v12831_v41 }
 0x186   :  { %v3475_v4 = vmax.f32 %v3350_v3, 0.0  ;;  %v2342_v36 = vmul.f32 %v9999_v24, %v1849_v46  ;;  %v2341_v32 = vmul.f32 %v9999_v24, %v1845_v13  ;;  %v6882_v11 = vpop.f32.mrf.mxu0  ;;  %v7010_v58 = vpop.f32.mrf.mxu1  ;;  %2683 = vperm.xlu1 %7601, %v8272_v47   ;;  %2759 = vperm.xlu0 %7623, %v8273_v42  }
 0x188   :  { %v3599_v28 = vpack.c.bf16 %v3475_v4, %v3474_v54  ;;  %v2466_v27 = vadd.f32 %v2341_v32, %v1341_v48  ;;  %v10068_v9 = vpop.f32.mrf.mxu0  ;;  %v10070_v6 = vpop.f32.mrf.mxu1  ;;  %v2467_v13 = vadd.f32 %v2342_v36, %v1344_v39  ;;  %v8274_v48 = vld [vmem:[%s12754_s1 + $0xc0] sm:$0xff]  ;;  %v975_v4 = vmul.f32 %v9986_v55, %v8980_v51 }
 0x189   :  { %12951 = vst [vmem:[#allocation182_spill] sm:$0xff] %v10070_v6  ;;  %v1857_v3 = vpop.permute.xlu0 %1856  ;;  %v2604_v46 = vpop.permute.xlu1 %2603 }
 0x18a   :  { %v3221_v11 = vadd.f32 %v3096_v33, %v2466_v27  ;;  %v3097_v47 = vmul.f32 %v10015_v37, %v2604_v46  ;;  %v6883_v58 = vpop.f32.mrf.mxu0  ;;  %v7011_v43 = vpop.f32.mrf.mxu1  ;;  %7602 = vset.pattern.permute.xlu1 %v12836_v5  ;;  %7626 = vset.pattern.permute.xlu0 %v12836_v5 }
 0x18b   :  { %7049 = vmatmul.mubr.msk.bf16.vlgmr.msra.gmra.mxu1 %vm3699_vm2, %v3599_v28  ;;  %1932 = vperm.xlu1 %7602, %v8274_v48  }
 0x18c   :  { %v3351_v25 = vadd.f32 %v10037_v49, %v3221_v11  ;;  %v3222_v40 = vadd.f32 %v3097_v47, %v2467_v13  ;;  %2004 = vperm.xlu0 %7626, %v8273_v42   ;;  %v10080_v33 = vpop.f32.mrf.mxu0  ;;  %v10082_v54 = vpop.f32.mrf.mxu1  ;;  %7052 = vmatprep.mubr.msk.bf16.mxu1 %vm8412_vm0, %v12801_v2  ;;  %v10094_v13 = vld [vmem:[%s12754_s1 + $0x168] sm:$0xff]  ;;  %v1349_v47 = vadd.f32 %v9399_v53, %v975_v4 }
 0x18d   :  { %12952 = vst [vmem:[#allocation183_spill] sm:$0xff] %v10082_v54  ;;  %v1861_v43 = vpop.permute.xlu0 %1860 }
 0x18e   :  { %v3352_v36 = vadd.f32 %v10037_v49, %v3222_v40  ;;  %v6886_v32 = vpop.f32.mrf.mxu0  ;;  %v7014_v39 = vpop.f32.mrf.mxu1  ;;  %v3476_v27 = vmax.f32 %v3351_v25, 0.0 }
 0x18f   :  { %v1853_v28 = vpop.permute.xlu1 %1852  ;;  %7604 = vset.pattern.permute.xlu1 %v12831_v41 }
 0x190   :  { %v3477_v42 = vmax.f32 %v3352_v36, 0.0  ;;  %v2343_v46 = vmul.f32 %v9999_v24, %v1853_v28  ;;  %2016 = vperm.xlu0 %7626, %v10094_v13   ;;  %v10097_v11 = vpop.f32.mrf.mxu0  ;;  %v10099_v51 = vpop.f32.mrf.mxu1  ;;  %2687 = vperm.xlu1 %7604, %v8274_v48   ;;  %v976_v36 = vmul.f32 %v9986_v55, %v8978_v50  ;;  %v2344_v28 = vmul.f32 %v9999_v24, %v1857_v3  ;;  %v8276_v48 = vld [vmem:[%s12754_s1 + $0x170] sm:$0xff] }
 0x191   :  { %12953 = vst [vmem:[#allocation184_spill] sm:$0xff] %v10099_v51  ;;  %v10104_v32 = vpop.permute.xlu0 %1872 }
 0x192   :  { %v3600_v58 = vpack.c.bf16 %v3477_v42, %v3476_v27  ;;  %v6887_v40 = vpop.f32.mrf.mxu0  ;;  %v7015_v25 = vpop.f32.mrf.mxu1  ;;  %v2468_v54 = vadd.f32 %v2343_v46, %v1349_v47  ;;  %v1352_v50 = vadd.f32 %v9426_v10, %v976_v36  ;;  %v977_v47 = vmul.f32 %v9986_v55, %v8990_v57  ;;  %v8278_v57 = vld [vmem:[%s12754_s1 + $0xd8] sm:$0xff] }
 0x193   :  { %v2608_v39 = vpop.permute.xlu1 %2607 }
 0x194   :  { %v3098_v6 = vmul.f32 %v10015_v37, %v2608_v39  ;;  %2020 = vperm.xlu0 %7626, %v8276_v48   ;;  %v10111_v53 = vpop.f32.mrf.mxu0  ;;  %v10113_v4 = vpop.f32.mrf.mxu1  ;;  %2691 = vperm.xlu1 %7604, %v9848_v12   ;;  %v2469_v40 = vadd.f32 %v2344_v28, %v1352_v50  ;;  %v10126_v12 = vld [vmem:[%s12754_s1 + $0x188] sm:$0xff] }
 0x195   :  { %12954 = vst [vmem:[#allocation185_spill] sm:$0xff] %v10113_v4  ;;  %7053 = vmatmul.mubr.msk.bf16.gmra.mxu1 %vm3699_vm2, %v3600_v58  ;;  %v2345_v58 = vmul.f32 %v9999_v24, %v1861_v43  ;;  %v978_v43 = vmul.f32 %v9986_v55, %v8988_v56  ;;  %v8279_v56 = vld [vmem:[%s12754_s1 + $0x190] sm:$0xff] }
 0x196   :  { %v3223_v27 = vadd.f32 %v3098_v6, %v2468_v54  ;;  %v6890_v3 = vpop.f32.mrf.mxu0  ;;  %v7018_v42 = vpop.f32.mrf.mxu1  ;;  %7056 = vmatprep.mubr.msk.bf16.mxu1 %vm8412_vm0, %v12801_v2 }
 0x197   :  { %v2612_v46 = vpop.permute.xlu1 %2611  ;;  %v2616_v54 = vpop.permute.xlu0 %2615  ;;  %v1357_v3 = vadd.f32 %v9445_v18, %v977_v47 }
 0x198   :  { %v3099_v25 = vmul.f32 %v10015_v37, %v2612_v46  ;;  %2032 = vperm.xlu0 %7626, %v10126_v12   ;;  %v10129_v10 = vpop.f32.mrf.mxu0  ;;  %v10131_v6 = vpop.f32.mrf.mxu1  ;;  %7605 = vset.pattern.permute.xlu1 %v12836_v5  ;;  %v3353_v36 = vadd.f32 %v10037_v49, %v3223_v27  ;;  %v3100_v42 = vmul.f32 %v10015_v37, %v2616_v54 }
 0x199   :  { %12955 = vst [vmem:[#allocation186_spill] sm:$0xff] %v10131_v6  ;;  %1944 = vperm.xlu1 %7605, %v8278_v57   ;;  %v2470_v27 = vadd.f32 %v2345_v58, %v1357_v3 }
 0x19a   :  { %v3224_v39 = vadd.f32 %v3099_v25, %v2469_v40  ;;  %v6891_v28 = vpop.f32.mrf.mxu0  ;;  %v7019_v50 = vpop.f32.mrf.mxu1  ;;  %v3478_v40 = vmax.f32 %v3353_v36, 0.0 }
 0x19b   :  { %v3225_v28 = vadd.f32 %v3100_v42, %v2470_v27  ;;  %v979_v27 = vmul.f32 %v9986_v55, %v9018_v1 }
 0x19c   :  { %v3354_v46 = vadd.f32 %v10037_v49, %v3224_v39  ;;  %7633 = vset.pattern.permute.xlu0 %v12831_v41  ;;  %v10143_v6 = vpop.f32.mrf.mxu0  ;;  %v10145_v4 = vpop.f32.mrf.mxu1  ;;  %v1360_v39 = vadd.f32 %v9472_v45, %v978_v43  ;;  %v8280_v45 = vld [vmem:[%s12754_s1 + $0xe0] sm:$0xff] }
 0x19d   :  { %12956 = vst [vmem:[#allocation187_spill] sm:$0xff] %v10143_v6  ;;  %12957 = vst [vmem:[#allocation188_spill] sm:$0xff] %v10145_v4  ;;  %v1865_v51 = vpop.permute.xlu1 %1864  ;;  %2775 = vperm.xlu0 %7633, %v8276_v48   ;;  %7607 = vset.pattern.permute.xlu1 %v12831_v41  ;;  %v1365_v1 = vadd.f32 %v9491_v59, %v979_v27 }
 0x19e   :  { %v3479_v18 = vmax.f32 %v3354_v46, 0.0  ;;  %v2346_v47 = vmul.f32 %v9999_v24, %v1865_v51  ;;  %v6894_v25 = vpop.f32.mrf.mxu0  ;;  %v7022_v54 = vpop.f32.mrf.mxu1  ;;  %2699 = vperm.xlu1 %7607, %v8278_v57   ;;  %v3355_v57 = vadd.f32 %v10037_v49, %v3225_v28 }
 0x19f   :  { %v2632_v25 = vpop.permute.xlu0 %2631 }
 0x1a0   :  { %v3601_v50 = vpack.c.bf16 %v3479_v18, %v3478_v40  ;;  %v10152_v4 = vpop.f32.mrf.mxu0  ;;  %v10154_v6 = vpop.f32.mrf.mxu1  ;;  %v2471_v58 = vadd.f32 %v2346_v47, %v1360_v39  ;;  %v3480_v39 = vmax.f32 %v3355_v57, 0.0  ;;  %v980_v57 = vmul.f32 %v9986_v55, %v9016_v0 }
 0x1a1   :  { %2791 = vperm.xlu0 %7633, %v8279_v56   ;;  %v2620_v48 = vpop.permute.xlu1 %2619  ;;  %v981_v0 = vmul.f32 %v9986_v55, %v9028_v8  ;;  %v8283_v8 = vld [vmem:[%s12754_s1 + $0xf8] sm:$0xff] }
 0x1a2   :  { %v3101_v51 = vmul.f32 %v10015_v37, %v2620_v48  ;;  %v6895_v36 = vpop.f32.mrf.mxu0  ;;  %v7023_v3 = vpop.f32.mrf.mxu1  ;;  %7608 = vset.pattern.permute.xlu1 %v12836_v5  ;;  %7057 = vmatmul.mubr.msk.bf16.gmra.mxu1 %vm3699_vm2, %v3601_v50 }
 0x1a3   :  { %1948 = vperm.xlu1 %7608, %v8280_v45   ;;  %7060 = vmatprep.mubr.msk.bf16.mxu1 %vm8412_vm0, %v12801_v2 }
 0x1a4   :  { %v3226_v42 = vadd.f32 %v3101_v51, %v2471_v58  ;;  %v10168_v46 = vpop.f32.mrf.mxu0  ;;  %v10170_v43 = vpop.f32.mrf.mxu1 }
 0x1a5   :  { %7636 = vset.pattern.permute.xlu0 %v12836_v5 }
 0x1a6   :  { %v3356_v40 = vadd.f32 %v10037_v49, %v3226_v42  ;;  %2036 = vperm.xlu0 %7636, %v8279_v56   ;;  %v6898_v18 = vpop.f32.mrf.mxu0  ;;  %v7026_v47 = vpop.f32.mrf.mxu1  ;;  %v10186_v56 = vld [vmem:[%s12754_s1 + $0x1a8] sm:$0xff] }
 0x1a7   :  { %v1869_v54 = vpop.permute.xlu1 %1868  ;;  %7609 = vset.pattern.permute.xlu1 %v12831_v41  ;;  %v1877_v47 = vpop.permute.xlu0 %1876 }
 0x1a8   :  { %v3481_v28 = vmax.f32 %v3356_v40, 0.0  ;;  %v2347_v50 = vmul.f32 %v9999_v24, %v1869_v54  ;;  %v10178_v48 = vpop.f32.mrf.mxu0  ;;  %v10180_v58 = vpop.f32.mrf.mxu1  ;;  %2703 = vperm.xlu1 %7609, %v8280_v45   ;;  %v2348_v40 = vmul.f32 %v9999_v24, %v10104_v32  ;;  %v1368_v32 = vadd.f32 %v9518_v23, %v980_v57 }
 0x1a9   :  { %12958 = vst [vmem:[#allocation189_spill] sm:$0xff] %v10180_v58  ;;  %v1373_v23 = vadd.f32 %v9534_v20, %v981_v0 }
 0x1aa   :  { %v3602_v51 = vpack.c.bf16 %v3481_v28, %v3480_v39  ;;  %2048 = vperm.xlu0 %7636, %v10186_v56   ;;  %v6899_v36 = vpop.f32.mrf.mxu0  ;;  %v7027_v3 = vpop.f32.mrf.mxu1  ;;  %v2472_v45 = vadd.f32 %v2347_v50, %v1365_v1  ;;  %v8282_v39 = vld [vmem:[%s12754_s1 + $0x1b0] sm:$0xff]  ;;  %v2473_v1 = vadd.f32 %v2348_v40, %v1368_v32  ;;  %v3104_v32 = vmul.f32 %v10015_v37, %v2632_v25 }
 0x1ab   :  { %v2624_v42 = vpop.permute.xlu1 %2623  ;;  %v1889_v0 = vpop.permute.xlu0 %1888 }
 0x1ac   :  { %v3102_v59 = vmul.f32 %v10015_v37, %v2624_v42  ;;  %v10194_v27 = vpop.f32.mrf.mxu0  ;;  %v10196_v18 = vpop.f32.mrf.mxu1  ;;  %2707 = vperm.xlu1 %7609, %v9903_v31   ;;  %7061 = vmatmul.mubr.msk.bf16.gmra.mxu1 %vm3699_vm2, %v3602_v51  ;;  %v2349_v51 = vmul.f32 %v9999_v24, %v1877_v47 }
 0x1ad   :  { %12959 = vst [vmem:[#allocation190_spill] sm:$0xff] %v10196_v18  ;;  %7064 = vmatprep.mubr.msk.bf16.mxu1 %vm8412_vm0, %v12801_v2 }
 0x1ae   :  { %v3227_v54 = vadd.f32 %v3102_v59, %v2472_v45  ;;  %2052 = vperm.xlu0 %7636, %v8282_v39   ;;  %v6902_v28 = vpop.f32.mrf.mxu0  ;;  %v7030_v50 = vpop.f32.mrf.mxu1  ;;  %v10223_v45 = vld [vmem:[%s12754_s1 + $0x1c8] sm:$0xff] }
 0x1af   :  { %v2628_v31 = vpop.permute.xlu1 %2627  ;;  %v2474_v28 = vadd.f32 %v2349_v51, %v1373_v23 }
 0x1b0   :  { %v3103_v36 = vmul.f32 %v10015_v37, %v2628_v31  ;;  %v10210_v3 = vpop.f32.mrf.mxu0  ;;  %v10212_v42 = vpop.f32.mrf.mxu1  ;;  %7610 = vset.pattern.permute.xlu1 %v12836_v5  ;;  %v3357_v57 = vadd.f32 %v10037_v49, %v3227_v54 }
 0x1b1   :  { %12960 = vst [vmem:[#allocation191_spill] sm:$0xff] %v10212_v42  ;;  %1960 = vperm.xlu1 %7610, %v8283_v8  }
 0x1b2   :  { %v3228_v40 = vadd.f32 %v3103_v36, %v2473_v1  ;;  %2064 = vperm.xlu0 %7636, %v10223_v45   ;;  %v6903_v59 = vpop.f32.mrf.mxu0  ;;  %v7031_v47 = vpop.f32.mrf.mxu1  ;;  %v982_v1 = vmul.f32 %v9986_v55, %v9026_v7  ;;  %v3482_v36 = vmax.f32 %v3357_v57, 0.0 }
 0x1b4   :  { %v3358_v50 = vadd.f32 %v10037_v49, %v3228_v40  ;;  %v10228_v31 = vpop.f32.mrf.mxu0  ;;  %v10230_v20 = vpop.f32.mrf.mxu1  ;;  %v1376_v23 = vadd.f32 %v9558_v62, %v982_v1  ;;  %v3229_v40 = vadd.f32 %v3104_v32, %v2474_v28  ;;  %v8285_v62 = vld [vmem:[%s12754_s1 + $0x1d0] sm:$0xff]  ;;  %v983_v1 = vmul.f32 %v9986_v55, %v9056_v16 }
 0x1b5   :  { %12961 = vst [vmem:[#allocation192_spill] sm:$0xff] %v10230_v20  ;;  %v1881_v54 = vpop.permute.xlu1 %1880  ;;  %7611 = vset.pattern.permute.xlu1 %v12831_v41 }
 0x1b6   :  { %v3483_v42 = vmax.f32 %v3358_v50, 0.0  ;;  %v2350_v59 = vmul.f32 %v9999_v24, %v1881_v54  ;;  %7643 = vset.pattern.permute.xlu0 %v12831_v41  ;;  %v6906_v25 = vpop.f32.mrf.mxu0  ;;  %v7034_v51 = vpop.f32.mrf.mxu1  ;;  %2715 = vperm.xlu1 %7611, %v8283_v8   ;;  %v1381_v16 = vadd.f32 %v9580_v14, %v983_v1 }
 0x1b7   :  { %2807 = vperm.xlu0 %7643, %v8282_v39   ;;  %v8286_v39 = vld [vmem:[%s12754_s1 + $0x100] sm:$0xff]  ;;  %v1893_v8 = vpop.permute.xlu0 %1892 }
 0x1b8   :  { %v3603_v47 = vpack.c.bf16 %v3483_v42, %v3482_v36  ;;  %v10238_v20 = vpop.f32.mrf.mxu0  ;;  %v10240_v18 = vpop.f32.mrf.mxu1  ;;  %v2475_v7 = vadd.f32 %v2350_v59, %v1376_v23  ;;  %v3359_v42 = vadd.f32 %v10037_v49, %v3229_v40 }
 0x1b9   :  { %v2636_v58 = vpop.permute.xlu1 %2635 }
 0x1ba   :  { %v3105_v57 = vmul.f32 %v10015_v37, %v2636_v58  ;;  %v6907_v50 = vpop.f32.mrf.mxu0  ;;  %v7035_v54 = vpop.f32.mrf.mxu1  ;;  %7612 = vset.pattern.permute.xlu1 %v12836_v5  ;;  %7065 = vmatmul.mubr.msk.bf16.gmra.mxu1 %vm3699_vm2, %v3603_v47  ;;  %v3484_v23 = vmax.f32 %v3359_v42, 0.0  ;;  %v2352_v42 = vmul.f32 %v9999_v24, %v1889_v0 }
 0x1bb   :  { %2823 = vperm.xlu0 %7643, %v8285_v62   ;;  %1964 = vperm.xlu1 %7612, %v8286_v39   ;;  %v10267_v50 = vpop.permute.xlu0 %1904 }
 0x1bc   :  { %v3230_v58 = vadd.f32 %v3105_v57, %v2475_v7  ;;  %v10252_v32 = vpop.f32.mrf.mxu0  ;;  %7068 = vmatprep.mubr.msk.bf16.mxu1 %vm8412_vm0, %v12801_v2  ;;  %v10256_v28 = vpop.f32.mrf.mxu1 }
 0x1bd   :  { %12962 = vst [vmem:[#allocation193_spill] sm:$0xff] %v10256_v28 }
 0x1be   :  { %v3360_v36 = vadd.f32 %v10037_v49, %v3230_v58  ;;  %v6910_v59 = vpop.f32.mrf.mxu0  ;;  %v1885_v25 = vpop.permute.xlu1 %1884 }
 0x1bf   :  { %7646 = vset.pattern.permute.xlu0 %v12836_v5  ;;  %7614 = vset.pattern.permute.xlu1 %v12831_v41  ;;  %v7038_v51 = vpop.f32.mrf.mxu1  ;;  %v2351_v47 = vmul.f32 %v9999_v24, %v1885_v25  ;;  %v984_v59 = vmul.f32 %v9986_v55, %v9054_v15 }
 0x1c0   :  { %v3485_v40 = vmax.f32 %v3360_v36, 0.0  ;;  %2068 = vperm.xlu0 %7646, %v8285_v62   ;;  %v10264_v7 = vpop.f32.mrf.mxu0  ;;  %2719 = vperm.xlu1 %7614, %v8286_v39   ;;  %v10276_v39 = vld [vmem:[%s12754_s1 + $0x1e8] sm:$0xff] }
 0x1c1   :  { %v1831_v57 = vpop.f32.mrf.mxu1  ;;  %v2476_v36 = vadd.f32 %v2351_v47, %v1381_v16  ;;  %v1384_v15 = vadd.f32 %v9602_v19, %v984_v59  ;;  %v8288_v19 = vld [vmem:[%s12754_s1 + $0x1f0] sm:$0xff]  ;;  %v8289_v16 = vld [vmem:[%s12754_s1 + $0x118] sm:$0xff] }
 0x1c2   :  { %v3604_v54 = vpack.c.bf16 %v3485_v40, %v3484_v23  ;;  %v6911_v58 = vpop.f32.mrf.mxu0  ;;  %v985_v23 = vmul.f32 %v9986_v55, %v9066_v22  ;;  %v2648_v57 = vpop.permute.xlu0 %2647  ;;  %v2353_v22 = vmul.f32 %v9999_v24, %v1893_v8  ;;  %v7737_v59 = vld [vmem:[%s12759_s4 + $0x10] sm:$0xff]   ;;  %v8290_v8 = vld [vmem:[%s12754_s1 + $0x208] sm:$0xff] }
 0x1c3   :  { %v2640_v28 = vpop.permute.xlu1 %2639  ;;  %v7039_v51 = vpop.f32.mrf.mxu1  ;;  %v2477_v40 = vadd.f32 %v2352_v42, %v1384_v15 }
 0x1c4   :  { %v3106_v62 = vmul.f32 %v10015_v37, %v2640_v28  ;;  %2080 = vperm.xlu0 %7646, %v10276_v39   ;;  %v10279_v14 = vpop.f32.mrf.mxu0  ;;  %2723 = vperm.xlu1 %7614, %v9929_v60   ;;  %v7736_v28 = vld [vmem:[%s12759_s4 + $0x18] sm:$0xff]   ;;  %v1389_v42 = vadd.f32 %v9616_v17, %v985_v23  ;;  %v7738_v23 = vld [vmem:[%s12759_s4 + $0x8] sm:$0xff]  }
 0x1c5   :  { %7069 = vmatmul.mubr.msk.bf16.gmra.mxu1 %vm3699_vm2, %v3604_v54  ;;  %7301 = vmatpush3.bf16.msra.mxu0 %v7736_v28 }
 0x1c6   :  { %v3231_v1 = vadd.f32 %v3106_v62, %v2476_v36  ;;  %v6914_v0 = vpop.f32.mrf.mxu0  ;;  %7072 = vmatprep.mubr.msk.bf16.mxu1 %vm8412_vm0, %v12801_v2  ;;  %7302 = vmatprep.subr.bf16.mxu0 %v12801_v2  ;;  %v3108_v36 = vmul.f32 %v10015_v37, %v2648_v57 }
 0x1c7   :  { %v2644_v25 = vpop.permute.xlu1 %2643  ;;  %v2478_v0 = vadd.f32 %v2353_v22, %v1389_v42 }
 0x1c8   :  { %v3107_v60 = vmul.f32 %v10015_v37, %v2644_v25  ;;  %2084 = vperm.xlu0 %7646, %v8288_v19   ;;  %v10295_v47 = vpop.f32.mrf.mxu0  ;;  %7615 = vset.pattern.permute.xlu1 %v12836_v5  ;;  %v3361_v54 = vadd.f32 %v10037_v49, %v3231_v1  ;;  %v986_v1 = vmul.f32 %v9986_v55, %v9064_v21 }
 0x1c9   :  { %1976 = vperm.xlu1 %7615, %v8289_v16   ;;  %7303 = vmatpush3.bf16.msra.mxu0 %v7737_v59  ;;  %v8292_v59 = vld [vmem:[%s12754_s1 + $0x210] sm:$0xff] }
 0x1ca   :  { %v3232_v58 = vadd.f32 %v3107_v60, %v2477_v40  ;;  %v6915_v51 = vpop.f32.mrf.mxu0  ;;  %v3486_v28 = vmax.f32 %v3361_v54, 0.0  ;;  %7304 = vmatprep.subr.bf16.mxu0 %v12801_v2  ;;  %v1392_v40 = vadd.f32 %v9633_v52, %v986_v1  ;;  %v3233_v60 = vadd.f32 %v3108_v36, %v2478_v0  ;;  %v8291_v52 = vld [vmem:[%s12754_s1 + $0x120] sm:$0xff] }
 0x1cb   :  { %v987_v51 = vmul.f32 %v9986_v55, %v9094_v30  ;;  %v988_v30 = vmul.f32 %v9986_v55, %v9092_v29 }
 0x1cc   :  { %v3362_v62 = vadd.f32 %v10037_v49, %v3232_v58  ;;  %2096 = vperm.xlu0 %7646, %v8290_v8   ;;  %v1897_v15 = vpop.permute.xlu1 %1896 }
 0x1cd   :  { %7617 = vset.pattern.permute.xlu1 %v12831_v41  ;;  %v2354_v17 = vmul.f32 %v9999_v24, %v1897_v15  ;;  %7305 = vmatpush3.bf16.msra.mxu0 %v7738_v23  ;;  %v1397_v0 = vadd.f32 %v9646_v34, %v987_v51  ;;  %v989_v34 = vmul.f32 %v9986_v55, %v9104_v38  ;;  %v8294_v38 = vld [vmem:[%s12754_s1 + $0x138] sm:$0xff] }
 0x1ce   :  { %v3487_v25 = vmax.f32 %v3362_v62, 0.0  ;;  %2731 = vperm.xlu1 %7617, %v8289_v16   ;;  %v7739_v16 = vld [vmem:[%s12759_s4] sm:$0xff]   ;;  %7306 = vmatprep.subr.bf16.mxu0 %v12801_v2  ;;  %v2664_v62 = vpop.permute.xlu0 %2663  ;;  %v1400_v29 = vadd.f32 %v9658_v63, %v988_v30 }
 0x1cf   :  { %v2479_v22 = vadd.f32 %v2354_v17, %v1392_v40  ;;  %v2356_v17 = vmul.f32 %v9999_v24, %v10267_v50  ;;  %v8293_v50 = vld [vmem:[%s12754_s1 + $0x228] sm:$0xff]  ;;  %v1405_v63 = vadd.f32 %v9673_v44, %v989_v34 }
 0x1d0   :  { %v3605_v57 = vpack.c.bf16 %v3487_v25, %v3486_v28  ;;  %7653 = vset.pattern.permute.xlu0 %v12831_v41  ;;  %v12963_v34 = vld [vmem:[#allocation3_spill] sm:$0xff] }
 0x1d1   :  { %2839 = vperm.xlu0 %7653, %v8288_v19   ;;  %v2652_v21 = vpop.permute.xlu1 %2651  ;;  %v3363_v19 = vadd.f32 %v10037_v49, %v3233_v60  ;;  %7307 = vmatpush3.bf16.msra.mxu0 %v7739_v16 }
 0x1d2   :  { %v3109_v54 = vmul.f32 %v10015_v37, %v2652_v21  ;;  %7618 = vset.pattern.permute.xlu1 %v12836_v5  ;;  %7073 = vmatmul.mubr.msk.bf16.gmra.mxu1 %vm3699_vm2, %v3605_v57  ;;  %v1909_v60 = vpop.permute.xlu0 %1908 }
 0x1d3   :  { %1980 = vperm.xlu1 %7618, %v8291_v52   ;;  %7076 = vmatprep.mubr.msk.bf16.mxu1 %vm8412_vm0, %v12801_v2  ;;  %v3488_v8 = vmax.f32 %v3363_v19, 0.0  ;;  %v8295_v19 = vld [vmem:[%s12754_s1 + $0x230] sm:$0xff] }
 0x1d4   :  { %v3234_v58 = vadd.f32 %v3109_v54, %v2479_v22  ;;  %v2481_v22 = vadd.f32 %v2356_v17, %v1400_v29  ;;  %v991_v29 = vmul.f32 %v9986_v55, %v12963_v34  ;;  %v8300_v34 = vld [vmem:[%s12754_s1 + $0x158] sm:$0xff] }
 0x1d5   :  { %2855 = vperm.xlu0 %7653, %v8292_v59  }
 0x1d6   :  { %v3364_v42 = vadd.f32 %v10037_v49, %v3234_v58  ;;  %v1901_v36 = vpop.permute.xlu1 %1900  ;;  %v3112_v58 = vmul.f32 %v10015_v37, %v2664_v62  ;;  %v1921_v62 = vpop.permute.xlu0 %1920 }
 0x1d7   :  { %7619 = vset.pattern.permute.xlu1 %v12831_v41  ;;  %v2355_v1 = vmul.f32 %v9999_v24, %v1901_v36  ;;  %v990_v36 = vmul.f32 %v9986_v55, %v9102_v35 }
 0x1d8   :  { %v3489_v15 = vmax.f32 %v3364_v42, 0.0  ;;  %2735 = vperm.xlu1 %7619, %v8291_v52  }
 0x1d9   :  { %7656 = vset.pattern.permute.xlu0 %v12836_v5  ;;  %v2480_v23 = vadd.f32 %v2355_v1, %v1397_v0  ;;  %v8296_v1 = vld [vmem:[%s12754_s1 + $0x248] sm:$0xff]  ;;  %v1408_v0 = vadd.f32 %v9688_v61, %v990_v36  ;;  %v8297_v61 = vld [vmem:[%s12754_s1 + $0x140] sm:$0xff] }
 0x1da   :  { %v3606_v28 = vpack.c.bf16 %v3489_v15, %v3488_v8  ;;  %2100 = vperm.xlu0 %7656, %v8292_v59  }
 0x1db   :  { %v2656_v25 = vpop.permute.xlu1 %2655 }
 0x1dc   :  { %v3110_v40 = vmul.f32 %v10015_v37, %v2656_v25  ;;  %2739 = vperm.xlu1 %7619, %v9991_v26   ;;  %7077 = vmatmul.mubr.msk.bf16.gmra.mxu1 %vm3699_vm2, %v3606_v28  ;;  %v2357_v26 = vmul.f32 %v9999_v24, %v1909_v60  ;;  %v1925_v60 = vpop.permute.xlu0 %1924 }
 0x1dd   :  { %7080 = vmatprep.mubr.msk.bf16.mxu1 %vm8412_vm0, %v12801_v2 }
 0x1de   :  { %v3235_v57 = vadd.f32 %v3110_v40, %v2480_v23  ;;  %2112 = vperm.xlu0 %7656, %v8293_v50   ;;  %v2482_v59 = vadd.f32 %v2357_v26, %v1405_v63 }
 0x1df   :  { %v2660_v21 = vpop.permute.xlu1 %2659 }
 0x1e0   :  { %v3111_v54 = vmul.f32 %v10015_v37, %v2660_v21  ;;  %7620 = vset.pattern.permute.xlu1 %v12836_v5  ;;  %v3365_v16 = vadd.f32 %v10037_v49, %v3235_v57  ;;  %v3237_v28 = vadd.f32 %v3112_v58, %v2482_v59  ;;  %v8298_v21 = vld [vmem:[%s12754_s1 + $0x250] sm:$0xff]  ;;  %v10403_v58 = vpop.permute.xlu0 %1936 }
 0x1e1   :  { %1992 = vperm.xlu1 %7620, %v8294_v38  }
 0x1e2   :  { %v3236_v52 = vadd.f32 %v3111_v54, %v2481_v22  ;;  %2116 = vperm.xlu0 %7656, %v8295_v19   ;;  %v3490_v44 = vmax.f32 %v3365_v16, 0.0  ;;  %v3367_v35 = vadd.f32 %v10037_v49, %v3237_v28  ;;  %v12968_v28 = vld [vmem:[#allocation5_spill] sm:$0xff] }
 0x1e4   :  { %v3366_v51 = vadd.f32 %v10037_v49, %v3236_v52  ;;  %v1913_v42 = vpop.permute.xlu1 %1912  ;;  %v3492_v22 = vmax.f32 %v3367_v35, 0.0  ;;  %v12965_v52 = vld [vmem:[#allocation2_spill] sm:$0xff]  ;;  %v2361_v35 = vmul.f32 %v9999_v24, %v1925_v60 }
 0x1e5   :  { %7621 = vset.pattern.permute.xlu1 %v12831_v41  ;;  %v2358_v15 = vmul.f32 %v9999_v24, %v1913_v42 }
 0x1e6   :  { %v3491_v8 = vmax.f32 %v3366_v51, 0.0  ;;  %2128 = vperm.xlu0 %7656, %v8296_v1   ;;  %2747 = vperm.xlu1 %7621, %v8294_v38   ;;  %v12964_v38 = vld [vmem:[#allocation82_spill] sm:$0xff]  ;;  %v2360_v51 = vmul.f32 %v9999_v24, %v1921_v62 }
 0x1e7   :  { %v2483_v17 = vadd.f32 %v2358_v15, %v1408_v0  ;;  %v1413_v63 = vadd.f32 %v12964_v38, %v991_v29  ;;  %v12969_v29 = vld [vmem:[#allocation90_spill] sm:$0xff] }
 0x1e8   :  { %v3607_v30 = vpack.c.bf16 %v3491_v8, %v3490_v44  ;;  %v12966_v44 = vld [vmem:[#allocation177_spill] sm:$0xff]  ;;  %v12967_v8 = vld [vmem:[#allocation86_spill] sm:$0xff] }
 0x1e9   :  { %v2668_v25 = vpop.permute.xlu1 %2667 }
 0x1ea   :  { %v3113_v23 = vmul.f32 %v10015_v37, %v2668_v25  ;;  %7663 = vset.pattern.permute.xlu0 %v12831_v41  ;;  %7622 = vset.pattern.permute.xlu1 %v12836_v5 }
 0x1eb   :  { %2871 = vperm.xlu0 %7663, %v8295_v19   ;;  %7081 = vmatmul.mubr.msk.bf16.gmra.mxu1 %vm3699_vm2, %v3607_v30  ;;  %v992_v19 = vmul.f32 %v9986_v55, %v12965_v52  ;;  %v993_v30 = vmul.f32 %v9986_v55, %v12968_v28 }
 0x1ec   :  { %v3238_v40 = vadd.f32 %v3113_v23, %v2483_v17  ;;  %1996 = vperm.xlu1 %7622, %v8297_v61   ;;  %7084 = vmatprep.mubr.msk.bf16.mxu1 %vm8412_vm0, %v12801_v2  ;;  %v8299_v17 = vld [vmem:[%s12754_s1 + $0x268] sm:$0xff]  ;;  %v2680_v23 = vpop.permute.xlu0 %2679 }
 0x1ed   :  { %v1416_v15 = vadd.f32 %v12967_v8, %v992_v19 }
 0x1ee   :  { %v3368_v57 = vadd.f32 %v10037_v49, %v3238_v40  ;;  %v1917_v50 = vpop.permute.xlu1 %1916 }
 0x1ef   :  { %2887 = vperm.xlu0 %7663, %v8298_v21   ;;  %v2359_v54 = vmul.f32 %v9999_v24, %v1917_v50  ;;  %v2485_v25 = vadd.f32 %v2360_v51, %v1416_v15  ;;  %v3116_v50 = vmul.f32 %v10015_v37, %v2680_v23 }
 0x1f0   :  { %v3493_v26 = vmax.f32 %v3368_v57, 0.0  ;;  %7624 = vset.pattern.permute.xlu1 %v12831_v41  ;;  %v1421_v57 = vadd.f32 %v12969_v29, %v993_v30  ;;  %v2696_v19 = vpop.permute.xlu0 %2695  ;;  %v8303_v30 = vld [vmem:[%s12754_s1 + $0x160] sm:$0xff]  ;;  %v8304_v29 = vld [vmem:[%s12754_s1 + $0x290] sm:$0xff] }
 0x1f1   :  { %2751 = vperm.xlu1 %7624, %v8297_v61   ;;  %v2484_v42 = vadd.f32 %v2359_v54, %v1413_v63 }
 0x1f2   :  { %v3608_v16 = vpack.c.bf16 %v3493_v26, %v3492_v22  ;;  %v8301_v22 = vld [vmem:[%s12754_s1 + $0x270] sm:$0xff]  ;;  %v2486_v38 = vadd.f32 %v2361_v35, %v1421_v57  ;;  %v12973_v57 = vld [vmem:[#allocation98_spill] sm:$0xff] }
 0x1f3   :  { %7666 = vset.pattern.permute.xlu0 %v12836_v5  ;;  %v2672_v59 = vpop.permute.xlu1 %2671  ;;  %v12970_v26 = vld [vmem:[#allocation4_spill] sm:$0xff] }
 0x1f4   :  { %v3114_v36 = vmul.f32 %v10015_v37, %v2672_v59  ;;  %2132 = vperm.xlu0 %7666, %v8298_v21   ;;  %7085 = vmatmul.mubr.msk.bf16.gmra.mxu1 %vm3699_vm2, %v3608_v16  ;;  %v994_v54 = vmul.f32 %v9986_v55, %v12970_v26  ;;  %v12971_v59 = vld [vmem:[#allocation94_spill] sm:$0xff] }
 0x1f5   :  { %2755 = vperm.xlu1 %7624, %v12966_v44   ;;  %7088 = vmatprep.mubr.msk.bf16.mxu1 %vm8412_vm0, %v12801_v2  ;;  %v8302_v44 = vld [vmem:[%s12754_s1 + $0x288] sm:$0xff]  ;;  %v12974_v26 = vld [vmem:[#allocation6_spill] sm:$0xff] }
 0x1f6   :  { %v3239_v1 = vadd.f32 %v3114_v36, %v2484_v42  ;;  %v1424_v51 = vadd.f32 %v12971_v59, %v994_v54  ;;  %v3241_v42 = vadd.f32 %v3116_v50, %v2486_v38  ;;  %v996_v54 = vmul.f32 %v9986_v55, %v12974_v26 }
 0x1f7   :  { %v2676_v0 = vpop.permute.xlu1 %2675  ;;  %v2364_v38 = vmul.f32 %v9999_v24, %v10403_v58 }
 0x1f8   :  { %v3115_v62 = vmul.f32 %v10015_v37, %v2676_v0  ;;  %2144 = vperm.xlu0 %7666, %v8299_v17   ;;  %v3369_v40 = vadd.f32 %v10037_v49, %v3239_v1  ;;  %v3371_v0 = vadd.f32 %v10037_v49, %v3241_v42 }
 0x1f9   :  { %7625 = vset.pattern.permute.xlu1 %v12836_v5 }
 0x1fa   :  { %v3240_v61 = vadd.f32 %v3115_v62, %v2485_v25  ;;  %2008 = vperm.xlu1 %7625, %v8300_v34   ;;  %v3494_v63 = vmax.f32 %v3369_v40, 0.0  ;;  %v1941_v25 = vpop.permute.xlu0 %1940  ;;  %v12972_v62 = vld [vmem:[#allocation7_spill] sm:$0xff]  ;;  %v3496_v40 = vmax.f32 %v3371_v0, 0.0 }
 0x1fb   :  { %v995_v17 = vmul.f32 %v9986_v55, %v12972_v62 }
 0x1fc   :  { %v3370_v21 = vadd.f32 %v10037_v49, %v3240_v61  ;;  %2148 = vperm.xlu0 %7666, %v8301_v22   ;;  %v1929_v60 = vpop.permute.xlu1 %1928 }
 0x1fd   :  { %v2362_v52 = vmul.f32 %v9999_v24, %v1929_v60  ;;  %v1429_v50 = vadd.f32 %v12973_v57, %v995_v17  ;;  %v10498_v57 = vld [vmem:[%s12758_s5 + $0x1] ss:$0 sm:$0xff] }
 0x1fe   :  { %v3495_v16 = vmax.f32 %v3370_v21, 0.0  ;;  %7627 = vset.pattern.permute.xlu1 %v12831_v41 }
 0x1ff   :  { %2763 = vperm.xlu1 %7627, %v8300_v34   ;;  %v2487_v15 = vadd.f32 %v2362_v52, %v1424_v51  ;;  %v12975_v52 = vld [vmem:[#allocation9_spill] sm:$0xff]  ;;  %v12976_v51 = vld [vmem:[#allocation102_spill] sm:$0xff] }
 0x200   :  { %v3609_v36 = vpack.c.bf16 %v3495_v16, %v3494_v63  ;;  %2160 = vperm.xlu0 %7666, %v8302_v44   ;;  %v997_v59 = vmul.f32 %v9986_v55, %v12975_v52  ;;  %v1432_v42 = vadd.f32 %v12976_v51, %v996_v54 }
 0x201   :  { %v2684_v8 = vpop.permute.xlu1 %2683 }
 0x202   :  { %v3117_v1 = vmul.f32 %v10015_v37, %v2684_v8  ;;  %7089 = vmatmul.mubr.msk.bf16.gmra.mxu1 %vm3699_vm2, %v3609_v36  ;;  %v2489_v44 = vadd.f32 %v2364_v38, %v1432_v42  ;;  %v2365_v8 = vmul.f32 %v9999_v24, %v1941_v25  ;;  %v3120_v25 = vmul.f32 %v10015_v37, %v2696_v19  ;;  %v8309_v19 = vld [vmem:[%s12754_s1 + $0x2b0] sm:$0xff] }
 0x203   :  { %7628 = vset.pattern.permute.xlu1 %v12836_v5  ;;  %7092 = vmatprep.mubr.msk.bf16.mxu1 %vm8412_vm0, %v12801_v2 }
 0x204   :  { %v3242_v28 = vadd.f32 %v3117_v1, %v2487_v15  ;;  %2012 = vperm.xlu1 %7628, %v8303_v30   ;;  %7673 = vset.pattern.permute.xlu0 %v12831_v41 }
 0x205   :  { %2903 = vperm.xlu0 %7673, %v8301_v22   ;;  %v10458_v22 = vpop.permute.xlu0 %1952 }
 0x206   :  { %v3372_v23 = vadd.f32 %v10037_v49, %v3242_v28  ;;  %v1933_v35 = vpop.permute.xlu1 %1932 }
 0x207   :  { %v2363_v34 = vmul.f32 %v9999_v24, %v1933_v35  ;;  %v8306_v24 = vld [vmem:[%s12754_s1 + $0x2a8] sm:$0xff]  ;;  %v10491_v35 = vld [vmem:[%s12758_s5] ss:$0 sm:$0xff] }
 0x208   :  { %v3497_v61 = vmax.f32 %v3372_v23, 0.0  ;;  %7629 = vset.pattern.permute.xlu1 %v12831_v41 }
 0x209   :  { %2767 = vperm.xlu1 %7629, %v8303_v30   ;;  %2919 = vperm.xlu0 %7673, %v8304_v29   ;;  %v2488_v63 = vadd.f32 %v2363_v34, %v1429_v50  ;;  %v10475_v1 = vpop.permute.xlu0 %1956  ;;  %v8305_v30 = vld [vmem:[%s12754_s1 + $0x178] sm:$0xff] }
 0x20a   :  { %v3610_v21 = vpack.c.bf16 %v3497_v61, %v3496_v40  ;;  %v12978_v40 = vld [vmem:[#allocation8_spill] sm:$0xff] }
 0x20b   :  { %v2688_v60 = vpop.permute.xlu1 %2687  ;;  %v998_v61 = vmul.f32 %v10491_v35, %v12978_v40 }
 0x20c   :  { %v3118_v16 = vmul.f32 %v10015_v37, %v2688_v60  ;;  %7093 = vmatmul.mubr.msk.bf16.gmra.mxu1 %vm3699_vm2, %v3610_v21  ;;  %v12979_v21 = vld [vmem:[#allocation110_spill] sm:$0xff] }
 0x20d   :  { %2771 = vperm.xlu1 %7629, %v10094_v13   ;;  %7676 = vset.pattern.permute.xlu0 %v12836_v5  ;;  %v12977_v13 = vld [vmem:[#allocation106_spill] sm:$0xff]  ;;  %v10505_v50 = vpop.permute.xlu0 %1968  ;;  %v1440_v60 = vadd.f32 %v12979_v21, %v998_v61  ;;  %v2368_v61 = vmul.f32 %v10498_v57, %v10458_v22 }
 0x20e   :  { %v3243_v36 = vadd.f32 %v3118_v16, %v2488_v63  ;;  %2164 = vperm.xlu0 %7676, %v8304_v29   ;;  %7096 = vmatprep.mubr.msk.bf16.mxu1 %vm8412_vm0, %v12801_v2  ;;  %v1437_v0 = vadd.f32 %v12977_v13, %v997_v59  ;;  %v10511_v16 = vld [vmem:[%s12758_s5 + $0x2] ss:$0 sm:$0xff]  ;;  %v8311_v59 = vld [vmem:[%s12754_s1 + $0x2c8] sm:$0xff] }
 0x20f   :  { %v2692_v58 = vpop.permute.xlu1 %2691 }
 0x210   :  { %v3119_v15 = vmul.f32 %v10015_v37, %v2692_v58  ;;  %v3373_v55 = vadd.f32 %v10037_v49, %v3243_v36  ;;  %v2490_v62 = vadd.f32 %v2365_v8, %v1437_v0  ;;  %v8312_v36 = vld [vmem:[%s12754_s1 + $0x180] sm:$0xff] }
 0x211   :  { %7630 = vset.pattern.permute.xlu1 %v12836_v5  ;;  %v2712_v58 = vpop.permute.xlu0 %2711 }
 0x212   :  { %v3244_v28 = vadd.f32 %v3119_v15, %v2489_v44  ;;  %2024 = vperm.xlu1 %7630, %v8305_v30   ;;  %2176 = vperm.xlu0 %7676, %v8306_v24   ;;  %v3498_v34 = vmax.f32 %v3373_v55, 0.0  ;;  %v3245_v26 = vadd.f32 %v3120_v25, %v2490_v62  ;;  %v12980_v44 = vld [vmem:[#allocation11_spill] sm:$0xff] }
 0x213   :  { %v999_v8 = vmul.f32 %v10491_v35, %v12980_v44 }
 0x214   :  { %v3374_v17 = vadd.f32 %v10037_v49, %v3244_v28  ;;  %v1945_v23 = vpop.permute.xlu1 %1944  ;;  %v3375_v51 = vadd.f32 %v10037_v49, %v3245_v26  ;;  %v12984_v26 = vld [vmem:[#allocation13_spill] sm:$0xff] }
 0x215   :  { %v2366_v37 = vmul.f32 %v10498_v57, %v1945_v23  ;;  %v10532_v62 = vpop.permute.xlu0 %2727  ;;  %v12982_v23 = vld [vmem:[#allocation10_spill] sm:$0xff] }
 0x216   :  { %v3499_v29 = vmax.f32 %v3374_v17, 0.0  ;;  %7631 = vset.pattern.permute.xlu1 %v12831_v41  ;;  %2180 = vperm.xlu0 %7676, %v8309_v19   ;;  %v3500_v0 = vmax.f32 %v3375_v51, 0.0  ;;  %v1000_v40 = vmul.f32 %v10491_v35, %v12982_v23 }
 0x217   :  { %2779 = vperm.xlu1 %7631, %v8305_v30   ;;  %v2491_v63 = vadd.f32 %v2366_v37, %v1440_v60  ;;  %v12981_v30 = vld [vmem:[#allocation114_spill] sm:$0xff] }
 0x218   :  { %v3611_v54 = vpack.c.bf16 %v3499_v29, %v3498_v34  ;;  %v1445_v24 = vadd.f32 %v12981_v30, %v999_v8  ;;  %v12983_v37 = vld [vmem:[#allocation118_spill] sm:$0xff]  ;;  %v3124_v8 = vmul.f32 %v10511_v16, %v2712_v58 }
 0x219   :  { %v2700_v38 = vpop.permute.xlu1 %2699  ;;  %v12987_v58 = vld [vmem:[#allocation126_spill] sm:$0xff] }
 0x21a   :  { %v3121_v52 = vmul.f32 %v10511_v16, %v2700_v38  ;;  %2192 = vperm.xlu0 %7676, %v8311_v59   ;;  %7097 = vmatmul.mubr.msk.bf16.gmra.mxu1 %vm3699_vm2, %v3611_v54  ;;  %v1001_v54 = vmul.f32 %v10491_v35, %v12984_v26  ;;  %v8319_v26 = vld [vmem:[%s12754_s1 + $0x308] sm:$0xff] }
 0x21b   :  { %7632 = vset.pattern.permute.xlu1 %v12836_v5  ;;  %7100 = vmatprep.mubr.msk.bf16.mxu1 %vm8412_vm0, %v12801_v2 }
 0x21c   :  { %v3246_v42 = vadd.f32 %v3121_v52, %v2491_v63  ;;  %2028 = vperm.xlu1 %7632, %v8312_v36   ;;  %v10551_v63 = vpop.permute.xlu0 %1972  ;;  %v10559_v52 = vld [vmem:[%s12758_s5 + $0x3] ss:$0 sm:$0xff] }
 0x21e   :  { %v3376_v15 = vadd.f32 %v10037_v49, %v3246_v42  ;;  %7683 = vset.pattern.permute.xlu0 %v12831_v41  ;;  %v1949_v13 = vpop.permute.xlu1 %1948  ;;  %v8313_v49 = vld [vmem:[%s12754_s1 + $0x2d0] sm:$0xff]  ;;  %v8315_v42 = vld [vmem:[%s12754_s1 + $0x198] sm:$0xff] }
 0x21f   :  { %2935 = vperm.xlu0 %7683, %v8309_v19   ;;  %v2367_v28 = vmul.f32 %v10498_v57, %v1949_v13  ;;  %v1448_v19 = vadd.f32 %v12983_v37, %v1000_v40 }
 0x220   :  { %v3501_v55 = vmax.f32 %v3376_v15, 0.0  ;;  %7634 = vset.pattern.permute.xlu1 %v12831_v41 }
 0x221   :  { %2783 = vperm.xlu1 %7634, %v8312_v36   ;;  %v2492_v34 = vadd.f32 %v2367_v28, %v1445_v24  ;;  %v2493_v22 = vadd.f32 %v2368_v61, %v1448_v19  ;;  %v12985_v36 = vld [vmem:[#allocation122_spill] sm:$0xff]  ;;  %v8317_v61 = vld [vmem:[%s12754_s1 + $0x2f0] sm:$0xff] }
 0x222   :  { %v3612_v25 = vpack.c.bf16 %v3501_v55, %v3500_v0  ;;  %v1453_v44 = vadd.f32 %v12985_v36, %v1001_v54  ;;  %v12986_v0 = vld [vmem:[#allocation12_spill] sm:$0xff] }
 0x223   :  { %2951 = vperm.xlu0 %7683, %v8313_v49   ;;  %v2704_v17 = vpop.permute.xlu1 %2703  ;;  %v1002_v55 = vmul.f32 %v10491_v35, %v12986_v0  ;;  %v12990_v0 = vld [vmem:[#allocation14_spill] sm:$0xff] }
 0x224   :  { %v3122_v29 = vmul.f32 %v10511_v16, %v2704_v17  ;;  %7101 = vmatmul.mubr.msk.bf16.gmra.mxu1 %vm3699_vm2, %v3612_v25 }
 0x225   :  { %2787 = vperm.xlu1 %7634, %v10126_v12   ;;  %7104 = vmatprep.mubr.msk.bf16.mxu1 %vm8412_vm0, %v12801_v2  ;;  %v2369_v12 = vmul.f32 %v10498_v57, %v10475_v1  ;;  %v8316_v1 = vld [vmem:[%s12754_s1 + $0x2e8] sm:$0xff]  ;;  %v1456_v17 = vadd.f32 %v12987_v58, %v1002_v55  ;;  %v1004_v55 = vmul.f32 %v10491_v35, %v12990_v0  ;;  %v12991_v58 = vld [vmem:[#allocation17_spill] sm:$0xff] }
 0x226   :  { %v3247_v21 = vadd.f32 %v3122_v29, %v2492_v34 }
 0x227   :  { %7686 = vset.pattern.permute.xlu0 %v12836_v5  ;;  %v2708_v60 = vpop.permute.xlu1 %2707  ;;  %v2494_v28 = vadd.f32 %v2369_v12, %v1453_v44  ;;  %v12989_v44 = vld [vmem:[#allocation130_spill] sm:$0xff] }
 0x228   :  { %v3123_v38 = vmul.f32 %v10511_v16, %v2708_v60  ;;  %2196 = vperm.xlu0 %7686, %v8313_v49   ;;  %v3377_v59 = vadd.f32 %v10559_v52, %v3247_v21  ;;  %v10575_v49 = vpop.permute.xlu0 %1984  ;;  %v8318_v60 = vld [vmem:[%s12754_s1 + $0x1a0] sm:$0xff] }
 0x229   :  { %7635 = vset.pattern.permute.xlu1 %v12836_v5  ;;  %v3249_v23 = vadd.f32 %v3124_v8, %v2494_v28  ;;  %v2372_v28 = vmul.f32 %v10498_v57, %v10505_v50 }
 0x22a   :  { %v3248_v51 = vadd.f32 %v3123_v38, %v2493_v22  ;;  %2040 = vperm.xlu1 %7635, %v8315_v42   ;;  %v3502_v30 = vmax.f32 %v3377_v59, 0.0  ;;  %v12988_v22 = vld [vmem:[#allocation15_spill] sm:$0xff] }
 0x22b   :  { %v3379_v19 = vadd.f32 %v10559_v52, %v3249_v23  ;;  %v1003_v38 = vmul.f32 %v10491_v35, %v12988_v22  ;;  %v12992_v23 = vld [vmem:[#allocation134_spill] sm:$0xff]  ;;  %v8321_v22 = vld [vmem:[%s12754_s1 + $0x1b8] sm:$0xff] }
 0x22c   :  { %v3378_v15 = vadd.f32 %v10559_v52, %v3248_v51  ;;  %2208 = vperm.xlu0 %7686, %v8316_v1   ;;  %v1961_v13 = vpop.permute.xlu1 %1960  ;;  %v10593_v54 = vpop.permute.xlu0 %1988 }
 0x22d   :  { %v2370_v25 = vmul.f32 %v10498_v57, %v1961_v13  ;;  %v3504_v51 = vmax.f32 %v3379_v19, 0.0  ;;  %v1461_v8 = vadd.f32 %v12989_v44, %v1003_v38  ;;  %v12993_v19 = vld [vmem:[#allocation138_spill] sm:$0xff] }
 0x22e   :  { %v3503_v24 = vmax.f32 %v3378_v15, 0.0  ;;  %7637 = vset.pattern.permute.xlu1 %v12831_v41 }
 0x22f   :  { %2795 = vperm.xlu1 %7637, %v8315_v42   ;;  %v2495_v29 = vadd.f32 %v2370_v25, %v1456_v17  ;;  %v8320_v25 = vld [vmem:[%s12754_s1 + $0x310] sm:$0xff]  ;;  %v1005_v17 = vmul.f32 %v10491_v35, %v12991_v58 }
 0x230   :  { %v3613_v40 = vpack.c.bf16 %v3503_v24, %v3502_v30  ;;  %2212 = vperm.xlu0 %7686, %v8317_v61   ;;  %v10602_v1 = vpop.permute.xlu0 %2000  ;;  %v8323_v58 = vld [vmem:[%s12754_s1 + $0x330] sm:$0xff] }
 0x231   :  { %v2716_v34 = vpop.permute.xlu1 %2715 }
 0x232   :  { %v3125_v37 = vmul.f32 %v10511_v16, %v2716_v34  ;;  %7105 = vmatmul.mubr.msk.bf16.gmra.mxu1 %vm3699_vm2, %v3613_v40  ;;  %v1464_v40 = vadd.f32 %v12992_v23, %v1004_v55 }
 0x233   :  { %7638 = vset.pattern.permute.xlu1 %v12836_v5  ;;  %7108 = vmatprep.mubr.msk.bf16.mxu1 %vm8412_vm0, %v12801_v2 }
 0x234   :  { %v3250_v21 = vadd.f32 %v3125_v37, %v2495_v29  ;;  %2044 = vperm.xlu1 %7638, %v8318_v60   ;;  %2224 = vperm.xlu0 %7686, %v8319_v26   ;;  %v2497_v34 = vadd.f32 %v2372_v28, %v1464_v40  ;;  %v2373_v29 = vmul.f32 %v10498_v57, %v10551_v63  ;;  %v10622_v37 = vpop.permute.xlu0 %2743 }
 0x235   :  { %v3128_v63 = vmul.f32 %v10511_v16, %v10532_v62  ;;  %v12995_v62 = vld [vmem:[#allocation142_spill] sm:$0xff] }
 0x236   :  { %v3380_v12 = vadd.f32 %v10559_v52, %v3250_v21  ;;  %v1965_v59 = vpop.permute.xlu1 %1964  ;;  %v1469_v21 = vadd.f32 %v12993_v19, %v1005_v17  ;;  %v10653_v17 = vld [vmem:[%s12758_s5 + $0x4] ss:$0 sm:$0xff] }
 0x237   :  { %v2371_v36 = vmul.f32 %v10498_v57, %v1965_v59 }
 0x238   :  { %v3505_v42 = vmax.f32 %v3380_v12, 0.0  ;;  %7639 = vset.pattern.permute.xlu1 %v12831_v41  ;;  %7693 = vset.pattern.permute.xlu0 %v12831_v41  ;;  %v2498_v38 = vadd.f32 %v2373_v29, %v1469_v21 }
 0x239   :  { %2799 = vperm.xlu1 %7639, %v8318_v60   ;;  %2967 = vperm.xlu0 %7693, %v8317_v61   ;;  %v2496_v30 = vadd.f32 %v2371_v36, %v1461_v8 }
 0x23a   :  { %v3614_v15 = vpack.c.bf16 %v3505_v42, %v3504_v51  ;;  %v12994_v51 = vld [vmem:[#allocation16_spill] sm:$0xff]  ;;  %v3253_v55 = vadd.f32 %v3128_v63, %v2498_v38 }
 0x23b   :  { %v2720_v13 = vpop.permute.xlu1 %2719  ;;  %v1006_v42 = vmul.f32 %v10491_v35, %v12994_v51 }
 0x23c   :  { %v3126_v24 = vmul.f32 %v10511_v16, %v2720_v13  ;;  %7109 = vmatmul.mubr.msk.bf16.gmra.mxu1 %vm3699_vm2, %v3614_v15  ;;  %v8322_v15 = vld [vmem:[%s12754_s1 + $0x328] sm:$0xff]  ;;  %v10641_v13 = vpop.permute.xlu0 %2759  ;;  %v3383_v40 = vadd.f32 %v10559_v52, %v3253_v55 }
 0x23d   :  { %2803 = vperm.xlu1 %7639, %v10186_v56   ;;  %2983 = vperm.xlu0 %7693, %v8320_v25   ;;  %v1472_v0 = vadd.f32 %v12995_v62, %v1006_v42 }
 0x23e   :  { %v3251_v61 = vadd.f32 %v3126_v24, %v2496_v30  ;;  %7112 = vmatprep.mubr.msk.bf16.mxu1 %vm8412_vm0, %v12801_v2  ;;  %v3508_v38 = vmax.f32 %v3383_v40, 0.0 }
 0x23f   :  { %v2724_v50 = vpop.permute.xlu1 %2723 }
 0x240   :  { %v3127_v56 = vmul.f32 %v10511_v16, %v2724_v50  ;;  %v3381_v60 = vadd.f32 %v10559_v52, %v3251_v61  ;;  %v8324_v50 = vld [vmem:[%s12754_s1 + $0x1c0] sm:$0xff] }
 0x241   :  { %7640 = vset.pattern.permute.xlu1 %v12836_v5  ;;  %7696 = vset.pattern.permute.xlu0 %v12836_v5 }
 0x242   :  { %v3252_v26 = vadd.f32 %v3127_v56, %v2497_v34  ;;  %2056 = vperm.xlu1 %7640, %v8321_v22   ;;  %2228 = vperm.xlu0 %7696, %v8320_v25   ;;  %v3506_v36 = vmax.f32 %v3381_v60, 0.0  ;;  %v10661_v34 = vpop.permute.xlu0 %2004  ;;  %v12996_v56 = vld [vmem:[#allocation19_spill] sm:$0xff] }
 0x243   :  { %v1007_v19 = vmul.f32 %v10491_v35, %v12996_v56 }
 0x244   :  { %v3382_v12 = vadd.f32 %v10559_v52, %v3252_v26  ;;  %v1977_v59 = vpop.permute.xlu1 %1976  ;;  %v8325_v26 = vld [vmem:[%s12754_s1 + $0x348] sm:$0xff] }
 0x245   :  { %v2374_v8 = vmul.f32 %v10498_v57, %v1977_v59 }
 0x246   :  { %v3507_v44 = vmax.f32 %v3382_v12, 0.0  ;;  %7641 = vset.pattern.permute.xlu1 %v12831_v41  ;;  %2240 = vperm.xlu0 %7696, %v8322_v15  }
 0x247   :  { %2811 = vperm.xlu1 %7641, %v8321_v22   ;;  %v2499_v24 = vadd.f32 %v2374_v8, %v1472_v0  ;;  %v12998_v0 = vld [vmem:[#allocation18_spill] sm:$0xff] }
 0x248   :  { %v3615_v28 = vpack.c.bf16 %v3507_v44, %v3506_v36  ;;  %v12997_v36 = vld [vmem:[#allocation146_spill] sm:$0xff]  ;;  %v1008_v55 = vmul.f32 %v10491_v35, %v12998_v0 }
 0x249   :  { %v2732_v30 = vpop.permute.xlu1 %2731  ;;  %v1477_v44 = vadd.f32 %v12997_v36, %v1007_v19 }
 0x24a   :  { %v3129_v25 = vmul.f32 %v10511_v16, %v2732_v30  ;;  %2244 = vperm.xlu0 %7696, %v8323_v58   ;;  %7113 = vmatmul.mubr.msk.bf16.gmra.mxu1 %vm3699_vm2, %v3615_v28  ;;  %v10677_v28 = vpop.permute.xlu0 %2016 }
 0x24b   :  { %7642 = vset.pattern.permute.xlu1 %v12836_v5  ;;  %v3923_v23 = vpop.f32.mrf.mxu1  ;;  %7116 = vmatprep.mubr.msk.bf16.mxu1 %vm8412_vm0, %v12801_v2 }
 0x24c   :  { %v3254_v61 = vadd.f32 %v3129_v25, %v2499_v24  ;;  %2060 = vperm.xlu1 %7642, %v8324_v50   ;;  %v3924_v60 = vadd.f32 %v10653_v17, %v3923_v23  ;;  %v2376_v24 = vmul.f32 %v10498_v57, %v10575_v49  ;;  %v8326_v49 = vld [vmem:[%s12754_s1 + $0x350] sm:$0xff] }
 0x24d   :  { %v7050_v29 = vpop.f32.mrf.mxu1 }
 0x24e   :  { %v3384_v21 = vadd.f32 %v10559_v52, %v3254_v61  ;;  %2256 = vperm.xlu0 %7696, %v8325_v26   ;;  %v1981_v22 = vpop.permute.xlu1 %1980  ;;  %v4425_v15 = vmax.f32 %v3924_v60, 0.0 }
 0x24f   :  { %v3926_v63 = vpop.f32.mrf.mxu1  ;;  %v2375_v59 = vmul.f32 %v10498_v57, %v1981_v22  ;;  %v10696_v22 = vpop.permute.xlu0 %2020 }
 0x250   :  { %v3509_v12 = vmax.f32 %v3384_v21, 0.0  ;;  %v3927_v51 = vadd.f32 %v10653_v17, %v3926_v63  ;;  %7644 = vset.pattern.permute.xlu1 %v12831_v41 }
 0x251   :  { %2815 = vperm.xlu1 %7644, %v8324_v50   ;;  %v7051_v42 = vpop.f32.mrf.mxu1  ;;  %v2500_v25 = vadd.f32 %v2375_v59, %v1477_v44  ;;  %v12999_v50 = vld [vmem:[#allocation150_spill] sm:$0xff] }
 0x252   :  { %v3616_v8 = vpack.c.bf16 %v3509_v12, %v3508_v38  ;;  %v4426_v62 = vmax.f32 %v3927_v51, 0.0  ;;  %7703 = vset.pattern.permute.xlu0 %v12831_v41  ;;  %v1480_v29 = vadd.f32 %v12999_v50, %v1008_v55  ;;  %v2377_v12 = vmul.f32 %v10498_v57, %v10593_v54  ;;  %v8327_v42 = vld [vmem:[%s12754_s1 + $0x1d8] sm:$0xff]  ;;  %v13002_v55 = vld [vmem:[#allocation20_spill] sm:$0xff] }
 0x253   :  { %2999 = vperm.xlu0 %7703, %v8323_v58   ;;  %v2736_v30 = vpop.permute.xlu1 %2735 }
 0x254   :  { %v4550_v23 = vpack.c.bf16 %v4426_v62, %v4425_v15  ;;  %v3130_v40 = vmul.f32 %v10511_v16, %v2736_v30  ;;  %7117 = vmatmul.mubr.msk.bf16.gmra.mxu1 %vm3699_vm2, %v3616_v8  ;;  %v2501_v60 = vadd.f32 %v2376_v24, %v1480_v29  ;;  %v13001_v8 = vld [vmem:[#allocation154_spill] sm:$0xff]  ;;  %v3132_v62 = vmul.f32 %v10511_v16, %v10622_v37  ;;  %v10716_v29 = vpop.permute.xlu0 %2032 }
 0x255   :  { %2819 = vperm.xlu1 %7644, %v10223_v45   ;;  %v3931_v61 = vpop.f32.mrf.mxu1  ;;  %7120 = vmatprep.mubr.msk.bf16.mxu1 %vm8412_vm0, %v12801_v2  ;;  %v13000_v45 = vld [vmem:[#allocation21_spill] sm:$0xff]  ;;  %v1010_v30 = vmul.f32 %v10491_v35, %v13002_v55  ;;  %v13003_v37 = vld [vmem:[#allocation158_spill] sm:$0xff] }
 0x256   :  { %v3255_v56 = vadd.f32 %v3130_v40, %v2500_v25  ;;  %7309 = vmatmul.mubr.msk.bf16.vlgmr.msra.gmra.mxu0 %vm3699_vm2, %v4550_v23  ;;  %v1009_v21 = vmul.f32 %v10491_v35, %v13000_v45  ;;  %v3932_v63 = vadd.f32 %v10653_v17, %v3931_v61  ;;  %v8328_v45 = vld [vmem:[%s12754_s1 + $0x368] sm:$0xff] }
 0x257   :  { %3015 = vperm.xlu0 %7703, %v8326_v49   ;;  %v7054_v58 = vpop.f32.mrf.mxu1  ;;  %v2740_v19 = vpop.permute.xlu1 %2739  ;;  %7312 = vmatprep.mubr.msk.bf16.mxu0 %vm8412_vm0, %v12801_v2 }
 0x258   :  { %v3131_v26 = vmul.f32 %v10511_v16, %v2740_v19  ;;  %v3385_v59 = vadd.f32 %v10559_v52, %v3255_v56  ;;  %v1485_v15 = vadd.f32 %v13001_v8, %v1009_v21  ;;  %v4427_v24 = vmax.f32 %v3932_v63, 0.0 }
 0x259   :  { %7645 = vset.pattern.permute.xlu1 %v12836_v5  ;;  %v3934_v38 = vpop.f32.mrf.mxu1  ;;  %v1488_v58 = vadd.f32 %v13003_v37, %v1010_v30  ;;  %v13005_v37 = vld [vmem:[#allocation162_spill] sm:$0xff] }
 0x25a   :  { %v3256_v51 = vadd.f32 %v3131_v26, %v2501_v60  ;;  %2072 = vperm.xlu1 %7645, %v8327_v42   ;;  %v3935_v36 = vadd.f32 %v10653_v17, %v3934_v38  ;;  %v2502_v23 = vadd.f32 %v2377_v12, %v1485_v15  ;;  %v3510_v40 = vmax.f32 %v3385_v59, 0.0  ;;  %v8329_v59 = vld [vmem:[%s12754_s1 + $0x1e0] sm:$0xff] }
 0x25b   :  { %7706 = vset.pattern.permute.xlu0 %v12836_v5  ;;  %v7055_v44 = vpop.f32.mrf.mxu1 }
 0x25c   :  { %v3386_v54 = vadd.f32 %v10559_v52, %v3256_v51  ;;  %2260 = vperm.xlu0 %7706, %v8326_v49   ;;  %v1993_v0 = vpop.permute.xlu1 %1992  ;;  %v4428_v25 = vmax.f32 %v3935_v36, 0.0  ;;  %v3257_v49 = vadd.f32 %v3132_v62, %v2502_v23  ;;  %v8330_v51 = vld [vmem:[%s12754_s1 + $0x370] sm:$0xff]  ;;  %v10737_v36 = vpop.permute.xlu0 %2775 }
 0x25d   :  { %v2378_v50 = vmul.f32 %v10498_v57, %v1993_v0  ;;  %v13004_v62 = vld [vmem:[#allocation24_spill] sm:$0xff] }
 0x25e   :  { %v3511_v61 = vmax.f32 %v3386_v54, 0.0  ;;  %7647 = vset.pattern.permute.xlu1 %v12831_v41  ;;  %v4551_v56 = vpack.c.bf16 %v4428_v25, %v4427_v24  ;;  %v3387_v38 = vadd.f32 %v10559_v52, %v3257_v49  ;;  %v1011_v54 = vmul.f32 %v10491_v35, %v13004_v62  ;;  %v8331_v25 = vld [vmem:[%s12754_s1 + $0x388] sm:$0xff] }
 0x25f   :  { %2827 = vperm.xlu1 %7647, %v8327_v42   ;;  %v2503_v60 = vadd.f32 %v2378_v50, %v1488_v58 }
 0x260   :  { %v3617_v19 = vpack.c.bf16 %v3511_v61, %v3510_v40  ;;  %2272 = vperm.xlu0 %7706, %v8328_v45   ;;  %7313 = vmatmul.mubr.msk.bf16.gmra.mxu0 %vm3699_vm2, %v4551_v56  ;;  %v3512_v30 = vmax.f32 %v3387_v38, 0.0  ;;  %v1493_v58 = vadd.f32 %v13005_v37, %v1011_v54  ;;  %v10750_v49 = vpop.permute.xlu0 %2791  ;;  %v13006_v45 = vld [vmem:[#allocation23_spill] sm:$0xff] }
 0x261   :  { %v2748_v21 = vpop.permute.xlu1 %2747  ;;  %7316 = vmatprep.mubr.msk.bf16.mxu0 %vm8412_vm0, %v12801_v2 }
 0x262   :  { %v3133_v26 = vmul.f32 %v10511_v16, %v2748_v21  ;;  %v3939_v63 = vpop.f32.mrf.mxu1  ;;  %7121 = vmatmul.mubr.msk.bf16.gmra.mxu1 %vm3699_vm2, %v3617_v19  ;;  %v1012_v21 = vmul.f32 %v10491_v35, %v13006_v45 }
 0x263   :  { %7648 = vset.pattern.permute.xlu1 %v12836_v5  ;;  %7124 = vmatprep.mubr.msk.bf16.mxu1 %vm8412_vm0, %v12801_v2  ;;  %v3940_v44 = vadd.f32 %v10653_v17, %v3939_v63  ;;  %v2380_v63 = vmul.f32 %v10498_v57, %v10602_v1 }
 0x264   :  { %v3258_v12 = vadd.f32 %v3133_v26, %v2503_v60  ;;  %2076 = vperm.xlu1 %7648, %v8329_v59   ;;  %2276 = vperm.xlu0 %7706, %v8330_v51   ;;  %v7058_v42 = vpop.f32.mrf.mxu1 }
 0x265   :  { %v4429_v40 = vmax.f32 %v3940_v44, 0.0 }
 0x266   :  { %v3388_v8 = vadd.f32 %v10559_v52, %v3258_v12  ;;  %v3942_v15 = vpop.f32.mrf.mxu1 }
 0x267   :  { %v1997_v0 = vpop.permute.xlu1 %1996  ;;  %v3943_v55 = vadd.f32 %v10653_v17, %v3942_v15 }
 0x268   :  { %v3513_v24 = vmax.f32 %v3388_v8, 0.0  ;;  %7649 = vset.pattern.permute.xlu1 %v12831_v41  ;;  %2288 = vperm.xlu0 %7706, %v8331_v25   ;;  %v7059_v23 = vpop.f32.mrf.mxu1  ;;  %v2379_v61 = vmul.f32 %v10498_v57, %v1997_v0  ;;  %v13008_v8 = vld [vmem:[#allocation166_spill] sm:$0xff] }
 0x269   :  { %v4430_v50 = vmax.f32 %v3943_v55, 0.0  ;;  %2831 = vperm.xlu1 %7649, %v8329_v59   ;;  %v13007_v59 = vld [vmem:[#allocation27_spill] sm:$0xff]  ;;  %v1496_v15 = vadd.f32 %v13008_v8, %v1012_v21  ;;  %v10771_v55 = vpop.permute.xlu0 %2036  ;;  %v13009_v23 = vld [vmem:[#allocation170_spill] sm:$0xff]  ;;  %v13011_v8 = vld [vmem:[#allocation173_spill] sm:$0xff] }
 0x26a   :  { %v3618_v56 = vpack.c.bf16 %v3513_v24, %v3512_v30  ;;  %v2504_v38 = vadd.f32 %v2379_v61, %v1493_v58  ;;  %v1013_v42 = vmul.f32 %v10491_v35, %v13007_v59  ;;  %v8332_v24 = vld [vmem:[%s12754_s1 + $0x390] sm:$0xff] }
 0x26b   :  { %v4552_v19 = vpack.c.bf16 %v4430_v50, %v4429_v40  ;;  %v2505_v0 = vadd.f32 %v2380_v63, %v1496_v15  ;;  %v13010_v63 = vld [vmem:[#allocation26_spill] sm:$0xff] }
 0x26c   :  { %v2752_v60 = vpop.permute.xlu1 %2751  ;;  %7713 = vset.pattern.permute.xlu0 %v12831_v41  ;;  %v3947_v26 = vpop.f32.mrf.mxu1  ;;  %7125 = vmatmul.mubr.msk.bf16.gmra.mxu1 %vm3699_vm2, %v3618_v56  ;;  %v1501_v40 = vadd.f32 %v13009_v23, %v1013_v42 }
 0x26d   :  { %v3134_v12 = vmul.f32 %v10511_v16, %v2752_v60  ;;  %2835 = vperm.xlu1 %7649, %v10276_v39   ;;  %3031 = vperm.xlu0 %7713, %v8330_v51   ;;  %v3948_v1 = vadd.f32 %v10653_v17, %v3947_v26  ;;  %v2381_v39 = vmul.f32 %v10498_v57, %v10661_v34  ;;  %v8333_v34 = vld [vmem:[%s12754_s1 + $0x1f8] sm:$0xff] }
 0x26e   :  { %7317 = vmatmul.mubr.msk.bf16.gmra.mxu0 %vm3699_vm2, %v4552_v19  ;;  %v7062_v44 = vpop.f32.mrf.mxu1  ;;  %7128 = vmatprep.mubr.msk.bf16.mxu1 %vm8412_vm0, %v12801_v2  ;;  %v3136_v19 = vmul.f32 %v10511_v16, %v10641_v13 }
 0x26f   :  { %v3259_v62 = vadd.f32 %v3134_v12, %v2504_v38  ;;  %7320 = vmatprep.mubr.msk.bf16.mxu0 %vm8412_vm0, %v12801_v2  ;;  %v4431_v56 = vmax.f32 %v3948_v1, 0.0  ;;  %v2506_v45 = vadd.f32 %v2381_v39, %v1501_v40  ;;  %v1014_v38 = vmul.f32 %v10491_v35, %v13010_v63  ;;  %v10791_v12 = vpop.permute.xlu0 %2048  ;;  %v8334_v39 = vld [vmem:[%s12754_s1 + $0x3a8] sm:$0xff] }
 0x270   :  { %v2756_v51 = vpop.permute.xlu1 %2755  ;;  %v3950_v54 = vpop.f32.mrf.mxu1 }
 0x271   :  { %v3135_v30 = vmul.f32 %v10511_v16, %v2756_v51  ;;  %7650 = vset.pattern.permute.xlu1 %v12836_v5  ;;  %3047 = vperm.xlu0 %7713, %v8332_v24   ;;  %v3951_v25 = vadd.f32 %v10653_v17, %v3950_v54  ;;  %v3389_v50 = vadd.f32 %v10559_v52, %v3259_v62 }
 0x272   :  { %2088 = vperm.xlu1 %7650, %v8333_v34   ;;  %v7063_v61 = vpop.f32.mrf.mxu1  ;;  %v3261_v13 = vadd.f32 %v3136_v19, %v2506_v45  ;;  %v1504_v15 = vadd.f32 %v13011_v8, %v1014_v38  ;;  %v13012_v19 = vld [vmem:[#allocation30_spill] sm:$0xff] }
 0x273   :  { %v3260_v37 = vadd.f32 %v3135_v30, %v2505_v0  ;;  %v4432_v58 = vmax.f32 %v3951_v25, 0.0  ;;  %v3514_v59 = vmax.f32 %v3389_v50, 0.0  ;;  %v10810_v23 = vpop.permute.xlu0 %2052  ;;  %v8336_v61 = vld [vmem:[%s12754_s1 + $0x3b0] sm:$0xff]  ;;  %v1015_v45 = vmul.f32 %v10491_v35, %v13012_v19 }
 0x274   :  { %v3391_v30 = vadd.f32 %v10559_v52, %v3261_v13 }
 0x275   :  { %v3390_v21 = vadd.f32 %v10559_v52, %v3260_v37  ;;  %v4553_v60 = vpack.c.bf16 %v4432_v58, %v4431_v56  ;;  %v2009_v26 = vpop.permute.xlu1 %2008  ;;  %7716 = vset.pattern.permute.xlu0 %v12836_v5 }
 0x276   :  { %7651 = vset.pattern.permute.xlu1 %v12831_v41  ;;  %2292 = vperm.xlu0 %7716, %v8332_v24   ;;  %v2382_v44 = vmul.f32 %v10498_v57, %v2009_v26  ;;  %v8335_v24 = vld [vmem:[%s12754_s1 + $0x200] sm:$0xff] }
 0x277   :  { %v3515_v42 = vmax.f32 %v3390_v21, 0.0  ;;  %2843 = vperm.xlu1 %7651, %v8333_v34   ;;  %7321 = vmatmul.mubr.msk.bf16.gmra.mxu0 %vm3699_vm2, %v4553_v60  ;;  %v3516_v21 = vmax.f32 %v3391_v30, 0.0  ;;  %v10824_v13 = vpop.permute.xlu0 %2064  ;;  %v8337_v30 = vld [vmem:[%s12754_s1 + $0x208] sm:$0xff] }
 0x278   :  { %7324 = vmatprep.mubr.msk.bf16.mxu0 %vm8412_vm0, %v12801_v2  ;;  %v2507_v54 = vadd.f32 %v2382_v44, %v1504_v15 }
 0x279   :  { %v3619_v62 = vpack.c.bf16 %v3515_v42, %v3514_v59  ;;  %v13013_v42 = vld [vmem:[#allocation175_spill] sm:$0xff] }
 0x27a   :  { %v2764_v1 = vpop.permute.xlu1 %2763  ;;  %2304 = vperm.xlu0 %7716, %v8334_v39   ;;  %v3955_v51 = vpop.f32.mrf.mxu1  ;;  %v1509_v44 = vadd.f32 %v13013_v42, %v1015_v45 }
 0x27b   :  { %v3137_v0 = vmul.f32 %v10511_v16, %v2764_v1  ;;  %7652 = vset.pattern.permute.xlu1 %v12836_v5  ;;  %7129 = vmatmul.mubr.msk.bf16.gmra.mxu1 %vm3699_vm2, %v3619_v62  ;;  %v3956_v34 = vadd.f32 %v10653_v17, %v3955_v51  ;;  %v13014_v62 = vld [vmem:[#allocation29_spill] sm:$0xff]  ;;  %v2384_v51 = vmul.f32 %v10498_v57, %v10677_v28 }
 0x27c   :  { %2092 = vperm.xlu1 %7652, %v8335_v24   ;;  %v7066_v25 = vpop.f32.mrf.mxu1  ;;  %7132 = vmatprep.mubr.msk.bf16.mxu1 %vm8412_vm0, %v12801_v2  ;;  %v1016_v1 = vmul.f32 %v10491_v35, %v13014_v62  ;;  %v3140_v62 = vmul.f32 %v10511_v16, %v10737_v36 }
 0x27d   :  { %v3262_v40 = vadd.f32 %v3137_v0, %v2507_v54  ;;  %v4433_v63 = vmax.f32 %v3956_v34, 0.0  ;;  %v13015_v25 = vld [vmem:[#allocation178_spill] sm:$0xff] }
 0x27e   :  { %2308 = vperm.xlu0 %7716, %v8336_v61   ;;  %v3958_v50 = vpop.f32.mrf.mxu1 }
 0x27f   :  { %v3392_v56 = vadd.f32 %v10559_v52, %v3262_v40  ;;  %v2013_v37 = vpop.permute.xlu1 %2012  ;;  %v3959_v58 = vadd.f32 %v10653_v17, %v3958_v50  ;;  %v1512_v40 = vadd.f32 %v13015_v25, %v1016_v1 }
 0x280   :  { %7654 = vset.pattern.permute.xlu1 %v12831_v41  ;;  %v7067_v60 = vpop.f32.mrf.mxu1  ;;  %v2383_v38 = vmul.f32 %v10498_v57, %v2013_v37 }
 0x281   :  { %v3517_v26 = vmax.f32 %v3392_v56, 0.0  ;;  %v4434_v59 = vmax.f32 %v3959_v58, 0.0  ;;  %2847 = vperm.xlu1 %7654, %v8335_v24   ;;  %v8338_v56 = vld [vmem:[%s12754_s1 + $0x3c8] sm:$0xff]  ;;  %v2509_v37 = vadd.f32 %v2384_v51, %v1512_v40  ;;  %v10846_v58 = vpop.permute.xlu0 %2807 }
 0x282   :  { %7721 = vset.pattern.permute.xlu0 %v12831_v41  ;;  %v2508_v54 = vadd.f32 %v2383_v38, %v1509_v44  ;;  %v8339_v38 = vld [vmem:[%s12754_s1 + $0x218] sm:$0xff] }
 0x283   :  { %v3620_v8 = vpack.c.bf16 %v3517_v26, %v3516_v21  ;;  %v4554_v15 = vpack.c.bf16 %v4434_v59, %v4433_v63  ;;  %3063 = vperm.xlu0 %7721, %v8336_v61   ;;  %v13016_v21 = vld [vmem:[#allocation33_spill] sm:$0xff]  ;;  %v2385_v26 = vmul.f32 %v10498_v57, %v10696_v22  ;;  %v8340_v22 = vld [vmem:[%s12754_s1 + $0x3d0] sm:$0xff] }
 0x284   :  { %v2768_v39 = vpop.permute.xlu1 %2767  ;;  %v1017_v60 = vmul.f32 %v10491_v35, %v13016_v21 }
 0x285   :  { %v3138_v0 = vmul.f32 %v10511_v16, %v2768_v39  ;;  %2851 = vperm.xlu1 %7654, %v8337_v30   ;;  %v3963_v24 = vpop.f32.mrf.mxu1  ;;  %7133 = vmatmul.mubr.msk.bf16.gmra.mxu1 %vm3699_vm2, %v3620_v8  ;;  %v13017_v8 = vld [vmem:[#allocation180_spill] sm:$0xff]  ;;  %v10869_v40 = vpop.permute.xlu0 %2823 }
 0x286   :  { %7325 = vmatmul.mubr.msk.bf16.gmra.mxu0 %vm3699_vm2, %v4554_v15  ;;  %7136 = vmatprep.mubr.msk.bf16.mxu1 %vm8412_vm0, %v12801_v2  ;;  %v3964_v61 = vadd.f32 %v10653_v17, %v3963_v24  ;;  %v1517_v15 = vadd.f32 %v13017_v8, %v1017_v60  ;;  %v13018_v24 = vld [vmem:[#allocation32_spill] sm:$0xff] }
 0x287   :  { %v3263_v34 = vadd.f32 %v3138_v0, %v2508_v54  ;;  %7724 = vset.pattern.permute.xlu0 %v12836_v5  ;;  %v7070_v28 = vpop.f32.mrf.mxu1  ;;  %7328 = vmatprep.mubr.msk.bf16.mxu0 %vm8412_vm0, %v12801_v2  ;;  %v1018_v25 = vmul.f32 %v10491_v35, %v13018_v24 }
 0x288   :  { %v2772_v50 = vpop.permute.xlu1 %2771  ;;  %2320 = vperm.xlu0 %7724, %v8338_v56   ;;  %v4435_v1 = vmax.f32 %v3964_v61, 0.0  ;;  %v2510_v0 = vadd.f32 %v2385_v26, %v1517_v15 }
 0x289   :  { %v3139_v19 = vmul.f32 %v10511_v16, %v2772_v50  ;;  %7655 = vset.pattern.permute.xlu1 %v12836_v5  ;;  %v3966_v45 = vpop.f32.mrf.mxu1  ;;  %v3393_v59 = vadd.f32 %v10559_v52, %v3263_v34  ;;  %v1520_v50 = vadd.f32 %v10068_v9, %v1018_v25  ;;  %v8341_v9 = vld [vmem:[%s12754_s1 + $0x220] sm:$0xff] }
 0x28a   :  { %v3967_v63 = vadd.f32 %v10653_v17, %v3966_v45  ;;  %2104 = vperm.xlu1 %7655, %v8339_v38   ;;  %v3265_v61 = vadd.f32 %v3140_v62, %v2510_v0 }
 0x28b   :  { %v3264_v42 = vadd.f32 %v3139_v19, %v2509_v37  ;;  %v7071_v44 = vpop.f32.mrf.mxu1  ;;  %v3518_v36 = vmax.f32 %v3393_v59, 0.0 }
 0x28c   :  { %v4436_v39 = vmax.f32 %v3967_v63, 0.0  ;;  %2324 = vperm.xlu0 %7724, %v8340_v22   ;;  %v3395_v60 = vadd.f32 %v10559_v52, %v3265_v61  ;;  %v10886_v63 = vpop.permute.xlu0 %2068 }
 0x28d   :  { %v3394_v51 = vadd.f32 %v10559_v52, %v3264_v42  ;;  %v2025_v54 = vpop.permute.xlu1 %2024  ;;  %v8342_v42 = vld [vmem:[%s12754_s1 + $0x3e0] sm:$0xff] }
 0x28e   :  { %v4555_v30 = vpack.c.bf16 %v4436_v39, %v4435_v1  ;;  %7657 = vset.pattern.permute.xlu1 %v12831_v41  ;;  %v2386_v28 = vmul.f32 %v10498_v57, %v2025_v54  ;;  %v13019_v1 = vld [vmem:[#allocation36_spill] sm:$0xff] }
 0x28f   :  { %v3519_v34 = vmax.f32 %v3394_v51, 0.0  ;;  %2859 = vperm.xlu1 %7657, %v8339_v38   ;;  %v1019_v39 = vmul.f32 %v10491_v35, %v13019_v1  ;;  %v8344_v1 = vld [vmem:[%s12754_s1 + $0x238] sm:$0xff] }
 0x290   :  { %7727 = vset.pattern.permute.xlu0 %v12831_v41  ;;  %7329 = vmatmul.mubr.msk.bf16.gmra.mxu0 %vm3699_vm2, %v4555_v30  ;;  %v2511_v45 = vadd.f32 %v2386_v28, %v1520_v50  ;;  %v13020_v28 = vld [vmem:[#allocation35_spill] sm:$0xff] }
 0x291   :  { %v3621_v56 = vpack.c.bf16 %v3519_v34, %v3518_v36  ;;  %3079 = vperm.xlu0 %7727, %v8340_v22   ;;  %7332 = vmatprep.mubr.msk.bf16.mxu0 %vm8412_vm0, %v12801_v2  ;;  %v3520_v22 = vmax.f32 %v3395_v60, 0.0  ;;  %v1525_v25 = vadd.f32 %v10080_v33, %v1019_v39  ;;  %v1020_v61 = vmul.f32 %v10491_v35, %v13020_v28 }
 0x292   :  { %v2780_v37 = vpop.permute.xlu1 %2779  ;;  %v3971_v19 = vpop.f32.mrf.mxu1 }
 0x293   :  { %v3141_v21 = vmul.f32 %v10511_v16, %v2780_v37  ;;  %7658 = vset.pattern.permute.xlu1 %v12836_v5  ;;  %7137 = vmatmul.mubr.msk.bf16.gmra.mxu1 %vm3699_vm2, %v3621_v56  ;;  %v3972_v59 = vadd.f32 %v10653_v17, %v3971_v19  ;;  %v2388_v37 = vmul.f32 %v10498_v57, %v10716_v29 }
 0x294   :  { %2108 = vperm.xlu1 %7658, %v8341_v9   ;;  %v7074_v26 = vpop.f32.mrf.mxu1  ;;  %7140 = vmatprep.mubr.msk.bf16.mxu1 %vm8412_vm0, %v12801_v2  ;;  %v1528_v60 = vadd.f32 %v10097_v11, %v1020_v61 }
 0x295   :  { %v3266_v38 = vadd.f32 %v3141_v21, %v2511_v45  ;;  %3087 = vperm.xlu0 %7727, %v8342_v42   ;;  %v4437_v0 = vmax.f32 %v3972_v59, 0.0  ;;  %v8343_v21 = vld [vmem:[%s12754_s1 + $0x228] sm:$0xff] }
 0x296   :  { %v3974_v44 = vpop.f32.mrf.mxu1  ;;  %v13021_v26 = vld [vmem:[#allocation39_spill] sm:$0xff] }
 0x297   :  { %v3396_v8 = vadd.f32 %v10559_v52, %v3266_v38  ;;  %v2029_v15 = vpop.permute.xlu1 %2028  ;;  %v3975_v62 = vadd.f32 %v10653_v17, %v3974_v44  ;;  %v1021_v38 = vmul.f32 %v10491_v35, %v13021_v26  ;;  %v2513_v44 = vadd.f32 %v2388_v37, %v1528_v60  ;;  %v8345_v60 = vld [vmem:[%s12754_s1 + $0x240] sm:$0xff] }
 0x298   :  { %7659 = vset.pattern.permute.xlu1 %v12831_v41  ;;  %v7075_v51 = vpop.f32.mrf.mxu1  ;;  %v2387_v30 = vmul.f32 %v10498_v57, %v2029_v15 }
 0x299   :  { %v3521_v54 = vmax.f32 %v3396_v8, 0.0  ;;  %v4438_v24 = vmax.f32 %v3975_v62, 0.0  ;;  %2863 = vperm.xlu1 %7659, %v8341_v9   ;;  %v2389_v8 = vmul.f32 %v10498_v57, %v10771_v55  ;;  %v1533_v62 = vadd.f32 %v10111_v53, %v1021_v38  ;;  %v13022_v53 = vld [vmem:[#allocation38_spill] sm:$0xff] }
 0x29a   :  { %v2512_v19 = vadd.f32 %v2387_v30, %v1525_v25  ;;  %v3144_v55 = vmul.f32 %v10511_v16, %v10750_v49 }
 0x29b   :  { %v3622_v36 = vpack.c.bf16 %v3521_v54, %v3520_v22  ;;  %v4556_v34 = vpack.c.bf16 %v4438_v24, %v4437_v0  ;;  %v2514_v30 = vadd.f32 %v2389_v8, %v1533_v62 }
 0x29c   :  { %v2784_v50 = vpop.permute.xlu1 %2783  ;;  %v3979_v56 = vpop.f32.mrf.mxu1 }
 0x29d   :  { %v3142_v45 = vmul.f32 %v10511_v16, %v2784_v50  ;;  %2867 = vperm.xlu1 %7659, %v8343_v21   ;;  %7141 = vmatmul.mubr.msk.bf16.gmra.mxu1 %vm3699_vm2, %v3622_v36  ;;  %v3980_v29 = vadd.f32 %v10653_v17, %v3979_v56  ;;  %v3269_v56 = vadd.f32 %v3144_v55, %v2514_v30  ;;  %v13025_v30 = vld [vmem:[#allocation41_spill] sm:$0xff] }
 0x29e   :  { %7333 = vmatmul.mubr.msk.bf16.gmra.mxu0 %vm3699_vm2, %v4556_v34  ;;  %v7078_v33 = vpop.f32.mrf.mxu1  ;;  %7144 = vmatprep.mubr.msk.bf16.mxu1 %vm8412_vm0, %v12801_v2  ;;  %v1022_v34 = vmul.f32 %v10491_v35, %v13022_v53 }
 0x29f   :  { %v3267_v9 = vadd.f32 %v3142_v45, %v2512_v19  ;;  %7336 = vmatprep.mubr.msk.bf16.mxu0 %vm8412_vm0, %v12801_v2  ;;  %v4439_v51 = vmax.f32 %v3980_v29, 0.0 }
 0x2a0   :  { %v2788_v59 = vpop.permute.xlu1 %2787  ;;  %v3982_v42 = vpop.f32.mrf.mxu1  ;;  %v1536_v49 = vadd.f32 %v10129_v10, %v1022_v34  ;;  %v3399_v10 = vadd.f32 %v10559_v52, %v3269_v56 }
 0x2a1   :  { %v3143_v15 = vmul.f32 %v10511_v16, %v2788_v59  ;;  %7660 = vset.pattern.permute.xlu1 %v12836_v5  ;;  %v3983_v11 = vadd.f32 %v10653_v17, %v3982_v42  ;;  %v3397_v22 = vadd.f32 %v10559_v52, %v3267_v9  ;;  %v13023_v42 = vld [vmem:[#allocation42_spill] sm:$0xff] }
 0x2a2   :  { %2120 = vperm.xlu1 %7660, %v8344_v1   ;;  %v7079_v39 = vpop.f32.mrf.mxu1 }
 0x2a3   :  { %v3268_v54 = vadd.f32 %v3143_v15, %v2513_v44  ;;  %v4440_v0 = vmax.f32 %v3983_v11, 0.0  ;;  %v3522_v28 = vmax.f32 %v3397_v22, 0.0  ;;  %v1023_v44 = vmul.f32 %v10491_v35, %v13023_v42  ;;  %v13024_v22 = vld [vmem:[#allocation187_spill] sm:$0xff]  ;;  %v10996_v42 = vld [vmem:[%s12758_s5 + $0x2] ss:$0 sm:$0xff] }
 0x2a4   :  { %v3524_v15 = vmax.f32 %v3399_v10, 0.0 }
 0x2a5   :  { %v3398_v24 = vadd.f32 %v10559_v52, %v3268_v54  ;;  %v4557_v25 = vpack.c.bf16 %v4440_v0, %v4439_v51  ;;  %v2041_v36 = vpop.permute.xlu1 %2040  ;;  %v1541_v51 = vadd.f32 %v13024_v22, %v1023_v44 }
 0x2a6   :  { %7661 = vset.pattern.permute.xlu1 %v12831_v41  ;;  %v2390_v50 = vmul.f32 %v10498_v57, %v2041_v36 }
 0x2a7   :  { %v3523_v61 = vmax.f32 %v3398_v24, 0.0  ;;  %2875 = vperm.xlu1 %7661, %v8344_v1   ;;  %7337 = vmatmul.mubr.msk.bf16.gmra.mxu0 %vm3699_vm2, %v4557_v25  ;;  %v1024_v24 = vmul.f32 %v10491_v35, %v13025_v30  ;;  %v2392_v25 = vmul.f32 %v10498_v57, %v10791_v12 }
 0x2a8   :  { %7340 = vmatprep.mubr.msk.bf16.mxu0 %vm8412_vm0, %v12801_v2  ;;  %v2515_v45 = vadd.f32 %v2390_v50, %v1536_v49 }
 0x2a9   :  { %v3623_v37 = vpack.c.bf16 %v3523_v61, %v3522_v28  ;;  %v8346_v61 = vld [vmem:[%s12754_s1 + $0x248] sm:$0xff]  ;;  %v1544_v35 = vadd.f32 %v10152_v4, %v1024_v24  ;;  %v10976_v4 = vld [vmem:[%s12758_s5] ss:$0 sm:$0xff] }
 0x2aa   :  { %v2796_v19 = vpop.permute.xlu1 %2795 }
 0x2ab   :  { %v3145_v21 = vmul.f32 %v10511_v16, %v2796_v19  ;;  %7662 = vset.pattern.permute.xlu1 %v12836_v5  ;;  %v3987_v33 = vpop.f32.mrf.mxu1  ;;  %7145 = vmatmul.mubr.msk.bf16.gmra.mxu1 %vm3699_vm2, %v3623_v37  ;;  %v2517_v37 = vadd.f32 %v2392_v25, %v1544_v35 }
 0x2ac   :  { %2124 = vperm.xlu1 %7662, %v8345_v60   ;;  %7148 = vmatprep.mubr.msk.bf16.mxu1 %vm8412_vm0, %v12801_v2  ;;  %v3988_v38 = vadd.f32 %v10653_v17, %v3987_v33 }
 0x2ad   :  { %v3270_v9 = vadd.f32 %v3145_v21, %v2515_v45  ;;  %v7082_v29 = vpop.f32.mrf.mxu1  ;;  %v13026_v21 = vld [vmem:[#allocation45_spill] sm:$0xff] }
 0x2ae   :  { %v4441_v0 = vmax.f32 %v3988_v38, 0.0  ;;  %v1025_v33 = vmul.f32 %v10976_v4, %v13026_v21 }
 0x2af   :  { %v3400_v26 = vadd.f32 %v10559_v52, %v3270_v9  ;;  %v2045_v59 = vpop.permute.xlu1 %2044  ;;  %v3990_v8 = vpop.f32.mrf.mxu1  ;;  %v8349_v9 = vld [vmem:[%s12754_s1 + $0x258] sm:$0xff] }
 0x2b0   :  { %7664 = vset.pattern.permute.xlu1 %v12831_v41  ;;  %v2391_v62 = vmul.f32 %v10498_v57, %v2045_v59  ;;  %v3991_v1 = vadd.f32 %v10653_v17, %v3990_v8  ;;  %v1549_v59 = vadd.f32 %v10168_v46, %v1025_v33 }
 0x2b1   :  { %v3525_v11 = vmax.f32 %v3400_v26, 0.0  ;;  %2879 = vperm.xlu1 %7664, %v8345_v60   ;;  %v7083_v39 = vpop.f32.mrf.mxu1  ;;  %v10983_v60 = vld [vmem:[%s12758_s5 + $0x1] ss:$0 sm:$0xff] }
 0x2b2   :  { %v4442_v55 = vmax.f32 %v3991_v1, 0.0  ;;  %v2516_v53 = vadd.f32 %v2391_v62, %v1541_v51  ;;  %v2393_v10 = vmul.f32 %v10983_v60, %v10810_v23  ;;  %v3148_v23 = vmul.f32 %v10996_v42, %v10846_v58  ;;  %v13027_v39 = vld [vmem:[#allocation44_spill] sm:$0xff] }
 0x2b3   :  { %v3624_v54 = vpack.c.bf16 %v3525_v11, %v3524_v15  ;;  %v1026_v46 = vmul.f32 %v10976_v4, %v13027_v39 }
 0x2b4   :  { %v2800_v36 = vpop.permute.xlu1 %2799  ;;  %v4558_v34 = vpack.c.bf16 %v4442_v55, %v4441_v0  ;;  %v3995_v50 = vpop.f32.mrf.mxu1  ;;  %v2518_v62 = vadd.f32 %v2393_v10, %v1549_v59 }
 0x2b5   :  { %v3146_v28 = vmul.f32 %v10511_v16, %v2800_v36  ;;  %2883 = vperm.xlu1 %7664, %v8346_v61   ;;  %7149 = vmatmul.mubr.msk.bf16.gmra.mxu1 %vm3699_vm2, %v3624_v54  ;;  %v3996_v12 = vadd.f32 %v10653_v17, %v3995_v50  ;;  %v1552_v58 = vadd.f32 %v10178_v48, %v1026_v46 }
 0x2b6   :  { %7152 = vmatprep.mubr.msk.bf16.mxu1 %vm8412_vm0, %v12801_v2  ;;  %7341 = vmatmul.mubr.msk.bf16.gmra.mxu0 %vm3699_vm2, %v4558_v34  ;;  %v7086_v57 = vpop.f32.mrf.mxu1  ;;  %v3273_v0 = vadd.f32 %v3148_v23, %v2518_v62  ;;  %v8351_v34 = vld [vmem:[%s12754_s1 + $0x260] sm:$0xff]  ;;  %v2396_v23 = vmul.f32 %v10983_v60, %v10824_v13  ;;  %v2397_v46 = vmul.f32 %v10983_v60, %v10886_v63 }
 0x2b7   :  { %v3271_v49 = vadd.f32 %v3146_v28, %v2516_v53  ;;  %7344 = vmatprep.mubr.msk.bf16.mxu0 %vm8412_vm0, %v12801_v2  ;;  %v4443_v44 = vmax.f32 %v3996_v12, 0.0  ;;  %v13028_v12 = vld [vmem:[#allocation48_spill] sm:$0xff]  ;;  %v11056_v63 = vld [vmem:[%s12758_s5 + $0x3] ss:$0 sm:$0xff] }
 0x2b8   :  { %v2804_v56 = vpop.permute.xlu1 %2803  ;;  %v3998_v45 = vpop.f32.mrf.mxu1  ;;  %v3403_v53 = vadd.f32 %v10559_v52, %v3273_v0 }
 0x2b9   :  { %v3147_v19 = vmul.f32 %v10511_v16, %v2804_v56  ;;  %7665 = vset.pattern.permute.xlu1 %v12836_v5  ;;  %v3999_v16 = vadd.f32 %v10653_v17, %v3998_v45  ;;  %v3401_v29 = vadd.f32 %v10559_v52, %v3271_v49  ;;  %v1027_v56 = vmul.f32 %v10976_v4, %v13028_v12 }
 0x2ba   :  { %2136 = vperm.xlu1 %7665, %v8349_v9   ;;  %v7087_v38 = vpop.f32.mrf.mxu1 }
 0x2bb   :  { %v3272_v26 = vadd.f32 %v3147_v19, %v2517_v37  ;;  %v4444_v8 = vmax.f32 %v3999_v16, 0.0  ;;  %v3526_v22 = vmax.f32 %v3401_v29, 0.0  ;;  %v3528_v37 = vmax.f32 %v3403_v53, 0.0  ;;  %v13029_v29 = vld [vmem:[#allocation47_spill] sm:$0xff] }
 0x2bc   :  { %v1557_v16 = vadd.f32 %v10194_v27, %v1027_v56 }
 0x2bd   :  { %v3402_v15 = vadd.f32 %v10559_v52, %v3272_v26  ;;  %v2057_v11 = vpop.permute.xlu1 %2056  ;;  %v4559_v1 = vpack.c.bf16 %v4444_v8, %v4443_v44  ;;  %v1028_v26 = vmul.f32 %v10976_v4, %v13029_v29 }
 0x2be   :  { %7667 = vset.pattern.permute.xlu1 %v12831_v41  ;;  %v2394_v54 = vmul.f32 %v10983_v60, %v2057_v11 }
 0x2bf   :  { %v3527_v51 = vmax.f32 %v3402_v15, 0.0  ;;  %2891 = vperm.xlu1 %7667, %v8349_v9   ;;  %7345 = vmatmul.mubr.msk.bf16.gmra.mxu0 %vm3699_vm2, %v4559_v1  ;;  %v8352_v15 = vld [vmem:[%s12754_s1 + $0x268] sm:$0xff]  ;;  %v1560_v11 = vadd.f32 %v10210_v3, %v1028_v26 }
 0x2c0   :  { %7348 = vmatprep.mubr.msk.bf16.mxu0 %vm8412_vm0, %v12801_v2  ;;  %v2519_v25 = vadd.f32 %v2394_v54, %v1552_v58  ;;  %v13030_v1 = vld [vmem:[#allocation51_spill] sm:$0xff] }
 0x2c1   :  { %v3625_v55 = vpack.c.bf16 %v3527_v51, %v3526_v22  ;;  %v1029_v39 = vmul.f32 %v10976_v4, %v13030_v1  ;;  %v2521_v54 = vadd.f32 %v2396_v23, %v1560_v11 }
 0x2c2   :  { %v2812_v30 = vpop.permute.xlu1 %2811  ;;  %v4003_v24 = vpop.f32.mrf.mxu1 }
 0x2c3   :  { %v3149_v36 = vmul.f32 %v10996_v42, %v2812_v30  ;;  %7668 = vset.pattern.permute.xlu1 %v12836_v5  ;;  %7153 = vmatmul.mubr.msk.bf16.gmra.mxu1 %vm3699_vm2, %v3625_v55  ;;  %v4004_v61 = vadd.f32 %v10653_v17, %v4003_v24  ;;  %v1565_v58 = vadd.f32 %v10228_v31, %v1029_v39  ;;  %v8353_v55 = vld [vmem:[%s12754_s1 + $0x278] sm:$0xff] }
 0x2c4   :  { %2140 = vperm.xlu1 %7668, %v8351_v34   ;;  %v7090_v48 = vpop.f32.mrf.mxu1  ;;  %7156 = vmatprep.mubr.msk.bf16.mxu1 %vm8412_vm0, %v12801_v2 }
 0x2c5   :  { %v3274_v28 = vadd.f32 %v3149_v36, %v2519_v25  ;;  %v4445_v21 = vmax.f32 %v4004_v61, 0.0  ;;  %v2522_v31 = vadd.f32 %v2397_v46, %v1565_v58 }
 0x2c6   :  { %v4006_v50 = vpop.f32.mrf.mxu1 }
 0x2c7   :  { %v3404_v35 = vadd.f32 %v10559_v52, %v3274_v28  ;;  %v2061_v49 = vpop.permute.xlu1 %2060  ;;  %v4007_v57 = vadd.f32 %v10653_v17, %v4006_v50  ;;  %v13031_v50 = vld [vmem:[#allocation50_spill] sm:$0xff] }
 0x2c8   :  { %7669 = vset.pattern.permute.xlu1 %v12831_v41  ;;  %v7091_v19 = vpop.f32.mrf.mxu1  ;;  %v2395_v33 = vmul.f32 %v10983_v60, %v2061_v49  ;;  %v2081_v49 = vpop.permute.xlu0 %2080 }
 0x2c9   :  { %v3529_v45 = vmax.f32 %v3404_v35, 0.0  ;;  %v4446_v10 = vmax.f32 %v4007_v57, 0.0  ;;  %2895 = vperm.xlu1 %7669, %v8351_v34   ;;  %v3152_v34 = vmul.f32 %v10996_v42, %v10869_v40  ;;  %v1030_v35 = vmul.f32 %v10976_v4, %v13031_v50 }
 0x2ca   :  { %v2520_v44 = vadd.f32 %v2395_v33, %v1557_v16 }
 0x2cb   :  { %v3626_v9 = vpack.c.bf16 %v3529_v45, %v3528_v37  ;;  %v4560_v52 = vpack.c.bf16 %v4446_v10, %v4445_v21  ;;  %v3277_v37 = vadd.f32 %v3152_v34, %v2522_v31  ;;  %v1568_v40 = vadd.f32 %v10238_v20, %v1030_v35  ;;  %v11106_v34 = vld [vmem:[%s12758_s5 + $0x4] ss:$0 sm:$0xff] }
 0x2cc   :  { %v2816_v38 = vpop.permute.xlu1 %2815  ;;  %v4011_v59 = vpop.f32.mrf.mxu1 }
 0x2cd   :  { %v3150_v8 = vmul.f32 %v10996_v42, %v2816_v38  ;;  %2899 = vperm.xlu1 %7669, %v8352_v15   ;;  %7157 = vmatmul.mubr.msk.bf16.gmra.mxu1 %vm3699_vm2, %v3626_v9  ;;  %v4012_v13 = vadd.f32 %v10653_v17, %v4011_v59  ;;  %v3407_v16 = vadd.f32 %v11056_v63, %v3277_v37  ;;  %v8355_v9 = vld [vmem:[%s12754_s1 + $0x280] sm:$0xff]  ;;  %v2085_v20 = vpop.permute.xlu0 %2084 }
 0x2ce   :  { %7349 = vmatmul.mubr.msk.bf16.gmra.mxu0 %vm3699_vm2, %v4560_v52  ;;  %v7094_v27 = vpop.f32.mrf.mxu1  ;;  %7160 = vmatprep.mubr.msk.bf16.mxu1 %vm8412_vm0, %v12801_v2 }
 0x2cf   :  { %v3275_v62 = vadd.f32 %v3150_v8, %v2520_v44  ;;  %7352 = vmatprep.mubr.msk.bf16.mxu0 %vm8412_vm0, %v12801_v2  ;;  %v4447_v25 = vmax.f32 %v4012_v13, 0.0  ;;  %v13032_v8 = vld [vmem:[#allocation54_spill] sm:$0xff]  ;;  %v3532_v27 = vmax.f32 %v3407_v16, 0.0 }
 0x2d0   :  { %v2820_v22 = vpop.permute.xlu1 %2819  ;;  %v4014_v51 = vpop.f32.mrf.mxu1  ;;  %v1031_v15 = vmul.f32 %v10976_v4, %v13032_v8 }
 0x2d1   :  { %v3151_v0 = vmul.f32 %v10996_v42, %v2820_v22  ;;  %7670 = vset.pattern.permute.xlu1 %v12836_v5  ;;  %v4015_v3 = vadd.f32 %v10653_v17, %v4014_v51  ;;  %v3405_v24 = vadd.f32 %v11056_v63, %v3275_v62  ;;  %v11087_v22 = vpop.permute.xlu0 %2096 }
 0x2d2   :  { %2152 = vperm.xlu1 %7670, %v8353_v55   ;;  %v7095_v30 = vpop.f32.mrf.mxu1  ;;  %v1573_v46 = vadd.f32 %v10252_v32, %v1031_v15 }
 0x2d3   :  { %v3276_v36 = vadd.f32 %v3151_v0, %v2521_v54  ;;  %v4448_v53 = vmax.f32 %v4015_v3, 0.0  ;;  %v3530_v57 = vmax.f32 %v3405_v24, 0.0 }
 0x2d5   :  { %v3406_v48 = vadd.f32 %v11056_v63, %v3276_v36  ;;  %v4561_v28 = vpack.c.bf16 %v4448_v53, %v4447_v25  ;;  %v2073_v61 = vpop.permute.xlu1 %2072  ;;  %v8356_v25 = vld [vmem:[%s12754_s1 + $0x288] sm:$0xff] }
 0x2d6   :  { %7671 = vset.pattern.permute.xlu1 %v12831_v41  ;;  %v2398_v56 = vmul.f32 %v10983_v60, %v2073_v61  ;;  %v2840_v61 = vpop.permute.xlu0 %2839 }
 0x2d7   :  { %v3531_v12 = vmax.f32 %v3406_v48, 0.0  ;;  %2907 = vperm.xlu1 %7671, %v8353_v55   ;;  %7353 = vmatmul.mubr.msk.bf16.gmra.mxu0 %vm3699_vm2, %v4561_v28  ;;  %v2400_v55 = vmul.f32 %v10983_v60, %v2081_v49 }
 0x2d8   :  { %7356 = vmatprep.mubr.msk.bf16.mxu0 %vm8412_vm0, %v12801_v2  ;;  %v2523_v33 = vadd.f32 %v2398_v56, %v1568_v40  ;;  %v8358_v56 = vld [vmem:[%s12754_s1 + $0x298] sm:$0xff] }
 0x2d9   :  { %v3627_v19 = vpack.c.bf16 %v3531_v12, %v3530_v57  ;;  %v2401_v57 = vmul.f32 %v10983_v60, %v2085_v20 }
 0x2da   :  { %v2828_v45 = vpop.permute.xlu1 %2827  ;;  %v4019_v21 = vpop.f32.mrf.mxu1 }
 0x2db   :  { %v3153_v10 = vmul.f32 %v10996_v42, %v2828_v45  ;;  %7672 = vset.pattern.permute.xlu1 %v12836_v5  ;;  %7161 = vmatmul.mubr.msk.bf16.gmra.mxu1 %vm3699_vm2, %v3627_v19  ;;  %v4020_v26 = vadd.f32 %v10653_v17, %v4019_v21  ;;  %v3156_v21 = vmul.f32 %v10996_v42, %v2840_v61 }
 0x2dc   :  { %2156 = vperm.xlu1 %7672, %v8355_v9   ;;  %v7098_v52 = vpop.f32.mrf.mxu1  ;;  %7164 = vmatprep.mubr.msk.bf16.mxu1 %vm8412_vm0, %v12801_v2 }
 0x2dd   :  { %v3278_v29 = vadd.f32 %v3153_v10, %v2523_v33  ;;  %v4449_v13 = vmax.f32 %v4020_v26, 0.0 }
 0x2de   :  { %v4022_v38 = vpop.f32.mrf.mxu1 }
 0x2df   :  { %v3408_v59 = vadd.f32 %v11056_v63, %v3278_v29  ;;  %v2077_v23 = vpop.permute.xlu1 %2076  ;;  %v4023_v44 = vadd.f32 %v10653_v17, %v4022_v38  ;;  %v13033_v17 = vld [vmem:[#allocation53_spill] sm:$0xff]  ;;  %v13035_v29 = vld [vmem:[#allocation56_spill] sm:$0xff] }
 0x2e0   :  { %7674 = vset.pattern.permute.xlu1 %v12831_v41  ;;  %v7099_v11 = vpop.f32.mrf.mxu1  ;;  %v2399_v1 = vmul.f32 %v10983_v60, %v2077_v23  ;;  %v1032_v0 = vmul.f32 %v10976_v4, %v13033_v17  ;;  %v1034_v26 = vmul.f32 %v10976_v4, %v13035_v29 }
 0x2e1   :  { %v3533_v62 = vmax.f32 %v3408_v59, 0.0  ;;  %v4450_v39 = vmax.f32 %v4023_v44, 0.0  ;;  %2911 = vperm.xlu1 %7674, %v8355_v9  }
 0x2e2   :  { %v2524_v30 = vadd.f32 %v2399_v1, %v1573_v46  ;;  %v1576_v36 = vadd.f32 %v10264_v7, %v1032_v0  ;;  %v13034_v7 = vld [vmem:[#allocation57_spill] sm:$0xff]  ;;  %v1584_v44 = vadd.f32 %v10295_v47, %v1034_v26  ;;  %v8359_v1 = vld [vmem:[%s12754_s1 + $0x2a0] sm:$0xff]  ;;  %v2856_v0 = vpop.permute.xlu0 %2855 }
 0x2e3   :  { %v3628_v51 = vpack.c.bf16 %v3533_v62, %v3532_v27  ;;  %v4562_v54 = vpack.c.bf16 %v4450_v39, %v4449_v13  ;;  %v1033_v49 = vmul.f32 %v10976_v4, %v13034_v7 }
 0x2e4   :  { %v2832_v3 = vpop.permute.xlu1 %2831  ;;  %v4027_v58 = vpop.f32.mrf.mxu1  ;;  %v2525_v28 = vadd.f32 %v2400_v55, %v1576_v36 }
 0x2e5   :  { %v3154_v24 = vmul.f32 %v10996_v42, %v2832_v3  ;;  %2915 = vperm.xlu1 %7674, %v8356_v25   ;;  %7165 = vmatmul.mubr.msk.bf16.gmra.mxu1 %vm3699_vm2, %v3628_v51  ;;  %v4028_v31 = vadd.f32 %v11106_v34, %v4027_v58  ;;  %v1581_v45 = vadd.f32 %v10279_v14, %v1033_v49 }
 0x2e6   :  { %7357 = vmatmul.mubr.msk.bf16.gmra.mxu0 %vm3699_vm2, %v4562_v54  ;;  %v7102_v32 = vpop.f32.mrf.mxu1  ;;  %7168 = vmatprep.mubr.msk.bf16.mxu1 %vm8412_vm0, %v12801_v2  ;;  %v13036_v54 = vld [vmem:[#allocation60_spill] sm:$0xff] }
 0x2e7   :  { %v3279_v53 = vadd.f32 %v3154_v24, %v2524_v30  ;;  %7360 = vmatprep.mubr.msk.bf16.mxu0 %vm8412_vm0, %v12801_v2  ;;  %v4451_v33 = vmax.f32 %v4028_v31, 0.0  ;;  %v2526_v52 = vadd.f32 %v2401_v57, %v1581_v45  ;;  %v1035_v17 = vmul.f32 %v10976_v4, %v13036_v54  ;;  %v13037_v31 = vld [vmem:[#allocation59_spill] sm:$0xff] }
 0x2e8   :  { %v2836_v48 = vpop.permute.xlu1 %2835  ;;  %v4030_v35 = vpop.f32.mrf.mxu1  ;;  %v2404_v57 = vmul.f32 %v10983_v60, %v11087_v22  ;;  %v13040_v22 = vld [vmem:[#allocation25_spill] sm:$0xff] }
 0x2e9   :  { %v3155_v50 = vmul.f32 %v10996_v42, %v2836_v48  ;;  %7675 = vset.pattern.permute.xlu1 %v12836_v5  ;;  %v4031_v12 = vadd.f32 %v11106_v34, %v4030_v35  ;;  %v3409_v37 = vadd.f32 %v11056_v63, %v3279_v53  ;;  %v3281_v14 = vadd.f32 %v3156_v21, %v2526_v52 }
 0x2ea   :  { %2168 = vperm.xlu1 %7675, %v8358_v56   ;;  %v7103_v19 = vpop.f32.mrf.mxu1  ;;  %v1036_v48 = vmul.f32 %v10976_v4, %v13037_v31 }
 0x2eb   :  { %v3280_v40 = vadd.f32 %v3155_v50, %v2525_v28  ;;  %v4452_v10 = vmax.f32 %v4031_v12, 0.0  ;;  %v3534_v38 = vmax.f32 %v3409_v37, 0.0  ;;  %v3411_v13 = vadd.f32 %v11056_v63, %v3281_v14  ;;  %v13038_v28 = vld [vmem:[#allocation22_spill] sm:$0xff]  ;;  %v2101_v12 = vpop.permute.xlu0 %2100  ;;  %v13039_v19 = vld [vmem:[#allocation63_spill] sm:$0xff]  ;;  %v8361_v14 = vld [vmem:[%s12754_s1 + $0x2b8] sm:$0xff] }
 0x2ec   :  { %v1589_v61 = vadd.f32 %v13038_v28, %v1035_v17  ;;  %v1037_v45 = vmul.f32 %v10976_v4, %v13039_v19 }
 0x2ed   :  { %v3410_v16 = vadd.f32 %v11056_v63, %v3280_v40  ;;  %v2089_v9 = vpop.permute.xlu1 %2088  ;;  %v4563_v20 = vpack.c.bf16 %v4452_v10, %v4451_v33  ;;  %v3536_v30 = vmax.f32 %v3411_v13, 0.0  ;;  %v8360_v40 = vld [vmem:[%s12754_s1 + $0x2a8] sm:$0xff]  ;;  %v1592_v33 = vadd.f32 %v13040_v22, %v1036_v48  ;;  %v8362_v48 = vld [vmem:[%s12754_s1 + $0x2c0] sm:$0xff] }
 0x2ee   :  { %7677 = vset.pattern.permute.xlu1 %v12831_v41  ;;  %v2402_v23 = vmul.f32 %v10983_v60, %v2089_v9  ;;  %v2405_v9 = vmul.f32 %v10983_v60, %v2101_v12 }
 0x2ef   :  { %v3535_v59 = vmax.f32 %v3410_v16, 0.0  ;;  %2923 = vperm.xlu1 %7677, %v8358_v56   ;;  %7361 = vmatmul.mubr.msk.bf16.gmra.mxu0 %vm3699_vm2, %v4563_v20  ;;  %v2529_v29 = vadd.f32 %v2404_v57, %v1592_v33  ;;  %v2113_v54 = vpop.permute.xlu0 %2112 }
 0x2f0   :  { %7364 = vmatprep.mubr.msk.bf16.mxu0 %vm8412_vm0, %v12801_v2  ;;  %v2527_v11 = vadd.f32 %v2402_v23, %v1584_v44 }
 0x2f1   :  { %v3629_v8 = vpack.c.bf16 %v3535_v59, %v3534_v38  ;;  %v13041_v59 = vld [vmem:[#allocation28_spill] sm:$0xff] }
 0x2f2   :  { %v2844_v15 = vpop.permute.xlu1 %2843  ;;  %v4035_v27 = vpop.f32.mrf.mxu1  ;;  %v1597_v23 = vadd.f32 %v13041_v59, %v1037_v45 }
 0x2f3   :  { %v3157_v62 = vmul.f32 %v10996_v42, %v2844_v15  ;;  %7678 = vset.pattern.permute.xlu1 %v12836_v5  ;;  %7169 = vmatmul.mubr.msk.bf16.gmra.mxu1 %vm3699_vm2, %v3629_v8  ;;  %v4036_v46 = vadd.f32 %v11106_v34, %v4035_v27 }
 0x2f4   :  { %2172 = vperm.xlu1 %7678, %v8359_v1   ;;  %v7106_v47 = vpop.f32.mrf.mxu1  ;;  %7172 = vmatprep.mubr.msk.bf16.mxu1 %vm8412_vm0, %v12801_v2  ;;  %v2530_v13 = vadd.f32 %v2405_v9, %v1597_v23  ;;  %v13046_v9 = vld [vmem:[#allocation34_spill] sm:$0xff] }
 0x2f5   :  { %v3282_v39 = vadd.f32 %v3157_v62, %v2527_v11  ;;  %v4453_v32 = vmax.f32 %v4036_v46, 0.0  ;;  %v3160_v62 = vmul.f32 %v10996_v42, %v2856_v0  ;;  %v13043_v0 = vld [vmem:[#allocation31_spill] sm:$0xff]  ;;  %v11208_v23 = vld [vmem:[%s12758_s5 + $0x5] ss:$0 sm:$0xff] }
 0x2f6   :  { %v4038_v51 = vpop.f32.mrf.mxu1 }
 0x2f7   :  { %v3412_v3 = vadd.f32 %v11056_v63, %v3282_v39  ;;  %v2093_v58 = vpop.permute.xlu1 %2092  ;;  %v4039_v55 = vadd.f32 %v11106_v34, %v4038_v51 }
 0x2f8   :  { %7679 = vset.pattern.permute.xlu1 %v12831_v41  ;;  %v7107_v24 = vpop.f32.mrf.mxu1  ;;  %v2403_v36 = vmul.f32 %v10983_v60, %v2093_v58 }
 0x2f9   :  { %v3537_v25 = vmax.f32 %v3412_v3, 0.0  ;;  %v4454_v53 = vmax.f32 %v4039_v55, 0.0  ;;  %2927 = vperm.xlu1 %7679, %v8359_v1   ;;  %v13042_v1 = vld [vmem:[#allocation62_spill] sm:$0xff]  ;;  %v3285_v55 = vadd.f32 %v3160_v62, %v2530_v13  ;;  %v13047_v62 = vld [vmem:[#allocation37_spill] sm:$0xff] }
 0x2fa   :  { %v2528_v56 = vadd.f32 %v2403_v36, %v1589_v61  ;;  %v1038_v47 = vmul.f32 %v10976_v4, %v13042_v1  ;;  %v2117_v61 = vpop.permute.xlu0 %2116 }
 0x2fb   :  { %v3630_v50 = vpack.c.bf16 %v3537_v25, %v3536_v30  ;;  %v4564_v35 = vpack.c.bf16 %v4454_v53, %v4453_v32  ;;  %v3415_v31 = vadd.f32 %v11056_v63, %v3285_v55 }
 0x2fc   :  { %v2848_v7 = vpop.permute.xlu1 %2847  ;;  %v4043_v49 = vpop.f32.mrf.mxu1  ;;  %v1600_v30 = vadd.f32 %v13043_v0, %v1038_v47 }
 0x2fd   :  { %v3158_v37 = vmul.f32 %v10996_v42, %v2848_v7  ;;  %2931 = vperm.xlu1 %7679, %v8360_v40   ;;  %7173 = vmatmul.mubr.msk.bf16.gmra.mxu1 %vm3699_vm2, %v3630_v50  ;;  %v4044_v16 = vadd.f32 %v11106_v34, %v4043_v49  ;;  %v13044_v49 = vld [vmem:[#allocation66_spill] sm:$0xff]  ;;  %v3540_v40 = vmax.f32 %v3415_v31, 0.0 }
 0x2fe   :  { %7365 = vmatmul.mubr.msk.bf16.gmra.mxu0 %vm3699_vm2, %v4564_v35  ;;  %v7110_v21 = vpop.f32.mrf.mxu1  ;;  %7176 = vmatprep.mubr.msk.bf16.mxu1 %vm8412_vm0, %v12801_v2  ;;  %v1039_v57 = vmul.f32 %v10976_v4, %v13044_v49 }
 0x2ff   :  { %v3283_v10 = vadd.f32 %v3158_v37, %v2528_v56  ;;  %7368 = vmatprep.mubr.msk.bf16.mxu0 %vm8412_vm0, %v12801_v2  ;;  %v4455_v15 = vmax.f32 %v4044_v16, 0.0 }
 0x300   :  { %v2852_v52 = vpop.permute.xlu1 %2851  ;;  %v4046_v20 = vpop.f32.mrf.mxu1 }
 0x301   :  { %v3159_v26 = vmul.f32 %v10996_v42, %v2852_v52  ;;  %7680 = vset.pattern.permute.xlu1 %v12836_v5  ;;  %v4047_v38 = vadd.f32 %v11106_v34, %v4046_v20  ;;  %v3413_v8 = vadd.f32 %v11056_v63, %v3283_v10  ;;  %v13045_v10 = vld [vmem:[#allocation65_spill] sm:$0xff]  ;;  %v1605_v52 = vadd.f32 %v13046_v9, %v1039_v57  ;;  %v11203_v20 = vpop.permute.xlu0 %2128  ;;  %v13051_v9 = vld [vmem:[#allocation43_spill] sm:$0xff] }
 0x302   :  { %2184 = vperm.xlu1 %7680, %v8361_v14   ;;  %v7111_v44 = vpop.f32.mrf.mxu1  ;;  %v1040_v16 = vmul.f32 %v10976_v4, %v13045_v10 }
 0x303   :  { %v3284_v27 = vadd.f32 %v3159_v26, %v2529_v29  ;;  %v4456_v11 = vmax.f32 %v4047_v38, 0.0  ;;  %v3538_v17 = vmax.f32 %v3413_v8, 0.0 }
 0x304   :  { %v1608_v13 = vadd.f32 %v13047_v62, %v1040_v16 }
 0x305   :  { %v3414_v39 = vadd.f32 %v11056_v63, %v3284_v27  ;;  %v4565_v46 = vpack.c.bf16 %v4456_v11, %v4455_v15  ;;  %v2105_v51 = vpop.permute.xlu1 %2104  ;;  %v8363_v15 = vld [vmem:[%s12754_s1 + $0x2c8] sm:$0xff] }
 0x306   :  { %7681 = vset.pattern.permute.xlu1 %v12831_v41  ;;  %v2406_v58 = vmul.f32 %v10983_v60, %v2105_v51 }
 0x307   :  { %v3539_v3 = vmax.f32 %v3414_v39, 0.0  ;;  %2939 = vperm.xlu1 %7681, %v8361_v14   ;;  %7369 = vmatmul.mubr.msk.bf16.gmra.mxu0 %vm3699_vm2, %v4565_v46  ;;  %v2408_v14 = vmul.f32 %v10983_v60, %v2113_v54  ;;  %v13048_v39 = vld [vmem:[#allocation69_spill] sm:$0xff] }
 0x308   :  { %7372 = vmatprep.mubr.msk.bf16.mxu0 %vm8412_vm0, %v12801_v2  ;;  %v2531_v36 = vadd.f32 %v2406_v58, %v1600_v30  ;;  %v1041_v46 = vmul.f32 %v10976_v4, %v13048_v39  ;;  %v2872_v58 = vpop.permute.xlu0 %2871 }
 0x309   :  { %v3631_v24 = vpack.c.bf16 %v3539_v3, %v3538_v17  ;;  %v2533_v3 = vadd.f32 %v2408_v14, %v1608_v13  ;;  %v8365_v13 = vld [vmem:[%s12754_s1 + $0x2e0] sm:$0xff] }
 0x30a   :  { %v2860_v25 = vpop.permute.xlu1 %2859  ;;  %v4051_v32 = vpop.f32.mrf.mxu1 }
 0x30b   :  { %v3161_v53 = vmul.f32 %v10996_v42, %v2860_v25  ;;  %7682 = vset.pattern.permute.xlu1 %v12836_v5  ;;  %7177 = vmatmul.mubr.msk.bf16.gmra.mxu1 %vm3699_vm2, %v3631_v24  ;;  %v4052_v35 = vadd.f32 %v11106_v34, %v4051_v32  ;;  %v2409_v24 = vmul.f32 %v10983_v60, %v2117_v61  ;;  %v8364_v32 = vld [vmem:[%s12754_s1 + $0x2d8] sm:$0xff] }
 0x30c   :  { %2188 = vperm.xlu1 %7682, %v8362_v48   ;;  %v7114_v28 = vpop.f32.mrf.mxu1  ;;  %7180 = vmatprep.mubr.msk.bf16.mxu1 %vm8412_vm0, %v12801_v2 }
 0x30d   :  { %v3286_v50 = vadd.f32 %v3161_v53, %v2531_v36  ;;  %v4457_v21 = vmax.f32 %v4052_v35, 0.0 }
 0x30e   :  { %v4054_v7 = vpop.f32.mrf.mxu1 }
 0x30f   :  { %v3416_v12 = vadd.f32 %v11056_v63, %v3286_v50  ;;  %v2109_v56 = vpop.permute.xlu1 %2108  ;;  %v4055_v37 = vadd.f32 %v11106_v34, %v4054_v7  ;;  %v13049_v50 = vld [vmem:[#allocation40_spill] sm:$0xff]  ;;  %v3164_v7 = vmul.f32 %v10996_v42, %v2872_v58 }
 0x310   :  { %7684 = vset.pattern.permute.xlu1 %v12831_v41  ;;  %v7115_v19 = vpop.f32.mrf.mxu1  ;;  %v2407_v22 = vmul.f32 %v10983_v60, %v2109_v56  ;;  %v1613_v35 = vadd.f32 %v13049_v50, %v1041_v46  ;;  %v11257_v46 = vpop.permute.xlu0 %2887 }
 0x311   :  { %v3541_v45 = vmax.f32 %v3416_v12, 0.0  ;;  %v4458_v33 = vmax.f32 %v4055_v37, 0.0  ;;  %2943 = vperm.xlu1 %7684, %v8362_v48   ;;  %v13050_v12 = vld [vmem:[#allocation68_spill] sm:$0xff] }
 0x312   :  { %v2532_v44 = vadd.f32 %v2407_v22, %v1605_v52  ;;  %v1042_v56 = vmul.f32 %v10976_v4, %v13050_v12 }
 0x313   :  { %v3632_v29 = vpack.c.bf16 %v3541_v45, %v3540_v40  ;;  %v4566_v26 = vpack.c.bf16 %v4458_v33, %v4457_v21  ;;  %v2534_v45 = vadd.f32 %v2409_v24, %v1613_v35  ;;  %v13053_v35 = vld [vmem:[#allocation71_spill] sm:$0xff] }
 0x314   :  { %v2864_v38 = vpop.permute.xlu1 %2863  ;;  %v4059_v59 = vpop.f32.mrf.mxu1  ;;  %v1616_v52 = vadd.f32 %v13051_v9, %v1042_v56 }
 0x315   :  { %v3162_v8 = vmul.f32 %v10996_v42, %v2864_v38  ;;  %2947 = vperm.xlu1 %7684, %v8363_v15   ;;  %7181 = vmatmul.mubr.msk.bf16.gmra.mxu1 %vm3699_vm2, %v3632_v29  ;;  %v4060_v51 = vadd.f32 %v11106_v34, %v4059_v59  ;;  %v3289_v16 = vadd.f32 %v3164_v7, %v2534_v45  ;;  %v2133_v45 = vpop.permute.xlu0 %2132 }
 0x316   :  { %v4873_v27 = vpop.f32.mrf.mxu0  ;;  %7373 = vmatmul.mubr.msk.bf16.gmra.mxu0 %vm3699_vm2, %v4566_v26  ;;  %v7118_v11 = vpop.f32.mrf.mxu1  ;;  %7184 = vmatprep.mubr.msk.bf16.mxu1 %vm8412_vm0, %v12801_v2  ;;  %v1044_v7 = vmul.f32 %v10976_v4, %v13053_v35 }
 0x317   :  { %v3287_v1 = vadd.f32 %v3162_v8, %v2532_v44  ;;  %v4874_v47 = vadd.f32 %v11208_v23, %v4873_v27  ;;  %7376 = vmatprep.mubr.msk.bf16.mxu0 %vm8412_vm0, %v12801_v2  ;;  %v4459_v61 = vmax.f32 %v4060_v51, 0.0  ;;  %v3419_v27 = vadd.f32 %v11056_v63, %v3289_v16  ;;  %v13055_v16 = vld [vmem:[#allocation75_spill] sm:$0xff] }
 0x318   :  { %v2868_v54 = vpop.permute.xlu1 %2867  ;;  %v7310_v17 = vpop.f32.mrf.mxu0  ;;  %v1045_v9 = vmul.f32 %v10976_v4, %v13055_v16 }
 0x319   :  { %v6460_v55 = vmul.f32 -1.442695, %v4874_v47  ;;  %v3163_v0 = vmul.f32 %v10996_v42, %v2868_v54  ;;  %7685 = vset.pattern.permute.xlu1 %v12836_v5  ;;  %v4062_v30 = vpop.f32.mrf.mxu1  ;;  %v3417_v53 = vadd.f32 %v11056_v63, %v3287_v1  ;;  %v13052_v17 = vld [vmem:[#allocation72_spill] sm:$0xff] }
 0x31a   :  { %v4063_v25 = vadd.f32 %v11106_v34, %v4062_v30  ;;  %2200 = vperm.xlu1 %7685, %v8364_v32   ;;  %v4876_v36 = vpop.f32.mrf.mxu0 }
 0x31b   :  { %7740 = vpow2.f32 %v6460_v55  ;;  %v3288_v31 = vadd.f32 %v3163_v0, %v2533_v3  ;;  %v4877_v48 = vadd.f32 %v11208_v23, %v4876_v36  ;;  %v7119_v28 = vpop.f32.mrf.mxu1  ;;  %v3542_v22 = vmax.f32 %v3417_v53, 0.0 }
 0x31c   :  { %v4460_v49 = vmax.f32 %v4063_v25, 0.0  ;;  %v7311_v57 = vpop.f32.mrf.mxu0  ;;  %v1043_v3 = vmul.f32 %v10976_v4, %v13052_v17  ;;  %v3544_v25 = vmax.f32 %v3419_v27, 0.0  ;;  %v2413_v27 = vmul.f32 %v10983_v60, %v2133_v45  ;;  %v13059_v45 = vld [vmem:[#allocation55_spill] sm:$0xff] }
 0x31d   :  { %v3418_v37 = vadd.f32 %v11056_v63, %v3288_v31  ;;  %v6461_v40 = vmul.f32 -1.442695, %v4877_v48  ;;  %v2121_v19 = vpop.permute.xlu1 %2120 }
 0x31e   :  { %v4567_v21 = vpack.c.bf16 %v4460_v49, %v4459_v61  ;;  %7687 = vset.pattern.permute.xlu1 %v12831_v41  ;;  %v2410_v10 = vmul.f32 %v10983_v60, %v2121_v19  ;;  %v13054_v61 = vld [vmem:[#allocation46_spill] sm:$0xff]  ;;  %v2412_v19 = vmul.f32 %v10983_v60, %v11203_v20  ;;  %v13056_v20 = vld [vmem:[#allocation49_spill] sm:$0xff] }
 0x31f   :  { %v3543_v33 = vmax.f32 %v3418_v37, 0.0  ;;  %7742 = vpow2.f32 %v6461_v40  ;;  %2955 = vperm.xlu1 %7687, %v8364_v32   ;;  %v1621_v49 = vadd.f32 %v13054_v61, %v1043_v3 }
 0x320   :  { %7377 = vmatmul.mubr.msk.bf16.gmra.mxu0 %vm3699_vm2, %v4567_v21  ;;  %v4881_v26 = vpop.f32.mrf.mxu0  ;;  %v2535_v44 = vadd.f32 %v2410_v10, %v1616_v52  ;;  %v8366_v10 = vld [vmem:[%s12754_s1 + $0x2e8] sm:$0xff] }
 0x321   :  { %v3633_v29 = vpack.c.bf16 %v3543_v33, %v3542_v22  ;;  %7380 = vmatprep.mubr.msk.bf16.mxu0 %vm8412_vm0, %v12801_v2  ;;  %v4882_v38 = vadd.f32 %v11208_v23, %v4881_v26  ;;  %v1624_v26 = vadd.f32 %v13056_v20, %v1044_v7  ;;  %v11301_v7 = vpop.permute.xlu0 %2144 }
 0x322   :  { %v2876_v59 = vpop.permute.xlu1 %2875  ;;  %v4067_v14 = vpop.f32.mrf.mxu1 }
 0x323   :  { %v3165_v8 = vmul.f32 %v10996_v42, %v2876_v59  ;;  %v7314_v15 = vpop.f32.mrf.mxu0  ;;  %7688 = vset.pattern.permute.xlu1 %v12836_v5  ;;  %7185 = vmatmul.mubr.msk.bf16.gmra.mxu1 %vm3699_vm2, %v3633_v29  ;;  %v6462_v11 = vmul.f32 -1.442695, %v4882_v38  ;;  %v4068_v62 = vadd.f32 %v11106_v34, %v4067_v14 }
 0x324   :  { %2204 = vperm.xlu1 %7688, %v8365_v13   ;;  %v7122_v1 = vpop.f32.mrf.mxu1  ;;  %7188 = vmatprep.mubr.msk.bf16.mxu1 %vm8412_vm0, %v12801_v2  ;;  %v2537_v15 = vadd.f32 %v2412_v19, %v1624_v26 }
 0x325   :  { %v3290_v47 = vadd.f32 %v3165_v8, %v2535_v44  ;;  %v4884_v39 = vpop.f32.mrf.mxu0  ;;  %7744 = vpow2.f32 %v6462_v11  ;;  %v4461_v32 = vmax.f32 %v4068_v62, 0.0  ;;  %v13057_v1 = vld [vmem:[#allocation52_spill] sm:$0xff] }
 0x326   :  { %v4885_v51 = vadd.f32 %v11208_v23, %v4884_v39  ;;  %v4070_v54 = vpop.f32.mrf.mxu1 }
 0x327   :  { %v3420_v58 = vadd.f32 %v11056_v63, %v3290_v47  ;;  %v7315_v55 = vpop.f32.mrf.mxu0  ;;  %v2125_v0 = vpop.permute.xlu1 %2124  ;;  %v4071_v30 = vadd.f32 %v11106_v34, %v4070_v54  ;;  %v1629_v47 = vadd.f32 %v13057_v1, %v1045_v9  ;;  %v13060_v1 = vld [vmem:[#allocation78_spill] sm:$0xff] }
 0x328   :  { %v7741_v24 = vpop.eup %7740  ;;  %v6463_v36 = vmul.f32 -1.442695, %v4885_v51  ;;  %7689 = vset.pattern.permute.xlu1 %v12831_v41  ;;  %v7123_v53 = vpop.f32.mrf.mxu1  ;;  %v2411_v28 = vmul.f32 %v10983_v60, %v2125_v0  ;;  %v8367_v51 = vld [vmem:[%s12754_s1 + $0x2f8] sm:$0xff] }
 0x329   :  { %v5750_v31 = vadd.f32 1.0, %v7741_v24  ;;  %v3545_v48 = vmax.f32 %v3420_v58, 0.0  ;;  %v4462_v50 = vmax.f32 %v4071_v30, 0.0  ;;  %2959 = vperm.xlu1 %7689, %v8365_v13   ;;  %v13058_v30 = vld [vmem:[#allocation74_spill] sm:$0xff] }
 0x32a   :  { %7746 = vpow2.f32 %v6463_v36  ;;  %v2536_v22 = vadd.f32 %v2411_v28, %v1621_v49  ;;  %v1046_v24 = vmul.f32 %v10976_v4, %v13058_v30 }
 0x32b   :  { %7748 = vrcp.f32 %v5750_v31  ;;  %v3634_v57 = vpack.c.bf16 %v3545_v48, %v3544_v25  ;;  %v4568_v12 = vpack.c.bf16 %v4462_v50, %v4461_v32  ;;  %v3168_v31 = vmul.f32 %v10996_v42, %v11257_v46 }
 0x32c   :  { %v7743_v56 = vpop.eup %7742  ;;  %v2880_v37 = vpop.permute.xlu1 %2879  ;;  %v2538_v48 = vadd.f32 %v2413_v27, %v1629_v47  ;;  %v1047_v47 = vmul.f32 %v10976_v4, %v13060_v1 }
 0x32d   :  { %v4075_v40 = vpop.f32.mrf.mxu1  ;;  %v5751_v21 = vadd.f32 1.0, %v7743_v56  ;;  %v3166_v33 = vmul.f32 %v10996_v42, %v2880_v37  ;;  %2963 = vperm.xlu1 %7689, %v8366_v10   ;;  %7189 = vmatmul.mubr.msk.bf16.gmra.mxu1 %vm3699_vm2, %v3634_v57 }
 0x32e   :  { %v4889_v52 = vpop.f32.mrf.mxu0  ;;  %7381 = vmatmul.mubr.msk.bf16.gmra.mxu0 %vm3699_vm2, %v4568_v12  ;;  %7192 = vmatprep.mubr.msk.bf16.mxu1 %vm8412_vm0, %v12801_v2  ;;  %v4076_v14 = vadd.f32 %v11106_v34, %v4075_v40 }
 0x32f   :  { %v7126_v29 = vpop.f32.mrf.mxu1  ;;  %7750 = vrcp.f32 %v5751_v21  ;;  %v3291_v38 = vadd.f32 %v3166_v33, %v2536_v22  ;;  %v4890_v59 = vadd.f32 %v11208_v23, %v4889_v52  ;;  %7384 = vmatprep.mubr.msk.bf16.mxu0 %vm8412_vm0, %v12801_v2  ;;  %v1632_v21 = vadd.f32 %v13059_v45, %v1046_v24  ;;  %v13063_v45 = vld [vmem:[#allocation81_spill] sm:$0xff] }
 0x330   :  { %v2884_v44 = vpop.permute.xlu1 %2883  ;;  %v7318_v8 = vpop.f32.mrf.mxu0  ;;  %v4463_v32 = vmax.f32 %v4076_v14, 0.0  ;;  %v3293_v22 = vadd.f32 %v3168_v31, %v2538_v48  ;;  %v8368_v14 = vld [vmem:[%s12754_s1 + $0x300] sm:$0xff] }
 0x331   :  { %v6464_v11 = vmul.f32 -1.442695, %v4890_v59  ;;  %v3167_v62 = vmul.f32 %v10996_v42, %v2884_v44  ;;  %7690 = vset.pattern.permute.xlu1 %v12836_v5  ;;  %v4078_v13 = vpop.f32.mrf.mxu1  ;;  %v3421_v3 = vadd.f32 %v11056_v63, %v3291_v38  ;;  %v11317_v59 = vpop.permute.xlu0 %2148  ;;  %v13062_v48 = vld [vmem:[#allocation58_spill] sm:$0xff] }
 0x332   :  { %v4079_v39 = vadd.f32 %v11106_v34, %v4078_v13  ;;  %2216 = vperm.xlu1 %7690, %v8367_v51   ;;  %v4892_v54 = vpop.f32.mrf.mxu0  ;;  %v7745_v17 = vpop.eup %7744  ;;  %v3423_v8 = vadd.f32 %v11056_v63, %v3293_v22 }
 0x333   :  { %7752 = vpow2.f32 %v6464_v11  ;;  %v3292_v58 = vadd.f32 %v3167_v62, %v2537_v15  ;;  %v4893_v55 = vadd.f32 %v11208_v23, %v4892_v54  ;;  %v7127_v0 = vpop.f32.mrf.mxu1  ;;  %v5752_v25 = vadd.f32 1.0, %v7745_v17 }
 0x334   :  { %v4464_v36 = vmax.f32 %v4079_v39, 0.0  ;;  %v7319_v53 = vpop.f32.mrf.mxu0  ;;  %v3546_v57 = vmax.f32 %v3421_v3, 0.0 }
 0x335   :  { %v3422_v28 = vadd.f32 %v11056_v63, %v3292_v58  ;;  %v6465_v50 = vmul.f32 -1.442695, %v4893_v55  ;;  %v2137_v35 = vpop.permute.xlu1 %2136  ;;  %7754 = vrcp.f32 %v5752_v25  ;;  %v3548_v58 = vmax.f32 %v3423_v8, 0.0  ;;  %v13061_v53 = vld [vmem:[#allocation77_spill] sm:$0xff] }
 0x336   :  { %v4569_v61 = vpack.c.bf16 %v4464_v36, %v4463_v32  ;;  %7691 = vset.pattern.permute.xlu1 %v12831_v41  ;;  %v2414_v56 = vmul.f32 %v10983_v60, %v2137_v35  ;;  %v1048_v31 = vmul.f32 %v10976_v4, %v13061_v53 }
 0x337   :  { %v7747_v49 = vpop.eup %7746  ;;  %v3547_v12 = vmax.f32 %v3422_v28, 0.0  ;;  %7756 = vpow2.f32 %v6465_v50  ;;  %2971 = vperm.xlu1 %7691, %v8367_v51   ;;  %v4897_v46 = vpop.f32.mrf.mxu0  ;;  %v1637_v28 = vadd.f32 %v13062_v48, %v1047_v47 }
 0x338   :  { %v7749_v37 = vpop.eup %7748  ;;  %v5753_v40 = vadd.f32 1.0, %v7747_v49  ;;  %v4898_v19 = vadd.f32 %v11208_v23, %v4897_v46  ;;  %7385 = vmatmul.mubr.msk.bf16.gmra.mxu0 %vm3699_vm2, %v4569_v61  ;;  %v2539_v52 = vadd.f32 %v2414_v56, %v1632_v21  ;;  %v11340_v50 = vpop.permute.xlu0 %2160  ;;  %v13064_v21 = vld [vmem:[#allocation61_spill] sm:$0xff] }
 0x339   :  { %6126 = vst.msk [vmem:[%s12760_s6] sm:$0xff] %vm6125_vm3, %v7749_v37  ;;  %v3635_v33 = vpack.c.bf16 %v3547_v12, %v3546_v57  ;;  %v7322_v10 = vpop.f32.mrf.mxu0  ;;  %7388 = vmatprep.mubr.msk.bf16.mxu0 %vm8412_vm0, %v12801_v2  ;;  %v2416_v12 = vmul.f32 %v10983_v60, %v11301_v7  ;;  %v8369_v37 = vld [vmem:[%s12754_s1 + $0x308] sm:$0xff]  ;;  %v1640_v22 = vadd.f32 %v13064_v21, %v1048_v31 }
 0x33a   :  { %7758 = vrcp.f32 %v5753_v40  ;;  %v6466_v16 = vmul.f32 -1.442695, %v4898_v19  ;;  %v2892_v9 = vpop.permute.xlu1 %2891  ;;  %v11356_v19 = vld [vmem:[%s12758_s5] ss:$0 sm:$0xff] }
 0x33b   :  { %v3169_v29 = vmul.f32 %v10996_v42, %v2892_v9  ;;  %7692 = vset.pattern.permute.xlu1 %v12836_v5  ;;  %v4083_v20 = vpop.f32.mrf.mxu1  ;;  %7193 = vmatmul.mubr.msk.bf16.gmra.mxu1 %vm3699_vm2, %v3635_v33  ;;  %v4900_v26 = vpop.f32.mrf.mxu0 }
 0x33c   :  { %v7751_v38 = vpop.eup %7750  ;;  %7760 = vpow2.f32 %v6466_v16  ;;  %2220 = vperm.xlu1 %7692, %v8368_v14   ;;  %v4901_v44 = vadd.f32 %v11208_v23, %v4900_v26  ;;  %7196 = vmatprep.mubr.msk.bf16.mxu1 %vm8412_vm0, %v12801_v2  ;;  %v4084_v62 = vadd.f32 %v11106_v34, %v4083_v20  ;;  %v2541_v26 = vadd.f32 %v2416_v12, %v1640_v22 }
 0x33d   :  { %6127 = vst.msk [vmem:[%s12760_s6 + $0x8] sm:$0xff] %vm6125_vm3, %v7751_v38  ;;  %v3294_v15 = vadd.f32 %v3169_v29, %v2539_v52  ;;  %v7130_v27 = vpop.f32.mrf.mxu1  ;;  %v7323_v11 = vpop.f32.mrf.mxu0 }
 0x33e   :  { %v6467_v13 = vmul.f32 -1.442695, %v4901_v44  ;;  %v4465_v25 = vmax.f32 %v4084_v62, 0.0  ;;  %v2904_v38 = vpop.permute.xlu0 %2903  ;;  %v11375_v44 = vld [vmem:[%s12758_s5 + $0x2] ss:$0 sm:$0xff]  ;;  %v13065_v27 = vld [vmem:[#allocation64_spill] sm:$0xff] }
 0x33f   :  { %v3424_v39 = vadd.f32 %v11056_v63, %v3294_v15  ;;  %v2141_v51 = vpop.permute.xlu1 %2140  ;;  %v4086_v54 = vpop.f32.mrf.mxu1  ;;  %v11383_v62 = vld [vmem:[%s12758_s5 + $0x1] ss:$0 sm:$0xff] }
 0x340   :  { %v7753_v17 = vpop.eup %7752  ;;  %7762 = vpow2.f32 %v6467_v13  ;;  %v4087_v3 = vadd.f32 %v11106_v34, %v4086_v54  ;;  %7694 = vset.pattern.permute.xlu1 %v12831_v41  ;;  %v2415_v30 = vmul.f32 %v10983_v60, %v2141_v51  ;;  %v1049_v60 = vmul.f32 %v11356_v19, %v13063_v45 }
 0x341   :  { %v5754_v55 = vadd.f32 1.0, %v7753_v17  ;;  %v3549_v0 = vmax.f32 %v3424_v39, 0.0  ;;  %2975 = vperm.xlu1 %7694, %v8368_v14   ;;  %v7131_v24 = vpop.f32.mrf.mxu1  ;;  %v2417_v13 = vmul.f32 %v11383_v62, %v11317_v59  ;;  %v8373_v39 = vld [vmem:[%s12754_s1 + $0x318] sm:$0xff] }
 0x342   :  { %v4466_v32 = vmax.f32 %v4087_v3, 0.0  ;;  %v7755_v36 = vpop.eup %7754  ;;  %v2540_v46 = vadd.f32 %v2415_v30, %v1637_v28  ;;  %v1645_v11 = vadd.f32 %v13065_v27, %v1049_v60 }
 0x343   :  { %7764 = vrcp.f32 %v5754_v55  ;;  %v3636_v35 = vpack.c.bf16 %v3549_v0, %v3548_v58  ;;  %6128 = vst.msk [vmem:[%s12760_s6 + $0x10] sm:$0xff] %vm6125_vm3, %v7755_v36  ;;  %v3172_v55 = vmul.f32 %v11375_v44, %v2904_v38 }
 0x344   :  { %v7757_v61 = vpop.eup %7756  ;;  %v4570_v49 = vpack.c.bf16 %v4466_v32, %v4465_v25  ;;  %v2896_v57 = vpop.permute.xlu1 %2895  ;;  %v13066_v25 = vld [vmem:[#allocation80_spill] sm:$0xff]  ;;  %v2542_v48 = vadd.f32 %v2417_v13, %v1645_v11 }
 0x345   :  { %v5755_v56 = vadd.f32 1.0, %v7757_v61  ;;  %v3170_v4 = vmul.f32 %v10996_v42, %v2896_v57  ;;  %2979 = vperm.xlu1 %7694, %v8369_v37   ;;  %v4091_v40 = vpop.f32.mrf.mxu1  ;;  %7197 = vmatmul.mubr.msk.bf16.gmra.mxu1 %vm3699_vm2, %v3636_v35  ;;  %v1050_v32 = vmul.f32 %v11356_v19, %v13066_v25 }
 0x346   :  { %v4905_v7 = vpop.f32.mrf.mxu0  ;;  %7389 = vmatmul.mubr.msk.bf16.gmra.mxu0 %vm3699_vm2, %v4570_v49  ;;  %7200 = vmatprep.mubr.msk.bf16.mxu1 %vm8412_vm0, %v12801_v2  ;;  %v4092_v9 = vadd.f32 %v11106_v34, %v4091_v40 }
 0x347   :  { %v7759_v42 = vpop.eup %7758  ;;  %7766 = vrcp.f32 %v5755_v56  ;;  %v3295_v33 = vadd.f32 %v3170_v4, %v2540_v46  ;;  %v4906_v10 = vadd.f32 %v11208_v23, %v4905_v7  ;;  %v7134_v16 = vpop.f32.mrf.mxu1  ;;  %7392 = vmatprep.mubr.msk.bf16.mxu0 %vm8412_vm0, %v12801_v2  ;;  %v3297_v56 = vadd.f32 %v3172_v55, %v2542_v48  ;;  %v13067_v4 = vld [vmem:[#allocation67_spill] sm:$0xff] }
 0x348   :  { %6129 = vst.msk [vmem:[%s12760_s6 + $0x18] sm:$0xff] %vm6125_vm3, %v7759_v42  ;;  %v2900_v52 = vpop.permute.xlu1 %2899  ;;  %v7326_v29 = vpop.f32.mrf.mxu0  ;;  %v4467_v59 = vmax.f32 %v4092_v9, 0.0  ;;  %v1648_v37 = vadd.f32 %v13067_v4, %v1050_v32  ;;  %v8374_v9 = vld [vmem:[%s12754_s1 + $0x320] sm:$0xff]  ;;  %v13071_v4 = vld [vmem:[#allocation89_spill] sm:$0xff] }
 0x349   :  { %v7761_v20 = vpop.eup %7760  ;;  %v6468_v14 = vmul.f32 -1.442695, %v4906_v10  ;;  %v3171_v8 = vmul.f32 %v11375_v44, %v2900_v52  ;;  %7695 = vset.pattern.permute.xlu1 %v12836_v5  ;;  %v4094_v15 = vpop.f32.mrf.mxu1  ;;  %v3425_v54 = vadd.f32 %v11056_v63, %v3295_v33  ;;  %v3427_v16 = vadd.f32 %v11056_v63, %v3297_v56  ;;  %v13070_v32 = vld [vmem:[#allocation70_spill] sm:$0xff]  ;;  %v8376_v56 = vld [vmem:[%s12754_s1 + $0x328] sm:$0xff] }
 0x34a   :  { %v5756_v1 = vadd.f32 1.0, %v7761_v20  ;;  %v4095_v47 = vadd.f32 %v11106_v34, %v4094_v15  ;;  %2232 = vperm.xlu1 %7695, %v8373_v39   ;;  %v4908_v51 = vpop.f32.mrf.mxu0  ;;  %v11428_v15 = vld [vmem:[%s12758_s5 + $0x3] ss:$0 sm:$0xff] }
 0x34b   :  { %7768 = vpow2.f32 %v6468_v14  ;;  %v3296_v17 = vadd.f32 %v3171_v8, %v2541_v26  ;;  %v4909_v3 = vadd.f32 %v11208_v23, %v4908_v51  ;;  %v7135_v58 = vpop.f32.mrf.mxu1  ;;  %v3550_v61 = vmax.f32 %v3425_v54, 0.0  ;;  %v13068_v14 = vld [vmem:[#allocation85_spill] sm:$0xff]  ;;  %v11431_v51 = vpop.permute.xlu0 %2919 }
 0x34c   :  { %7770 = vrcp.f32 %v5756_v1  ;;  %v4468_v0 = vmax.f32 %v4095_v47, 0.0  ;;  %v7327_v30 = vpop.f32.mrf.mxu0  ;;  %v1051_v8 = vmul.f32 %v11356_v19, %v13068_v14 }
 0x34d   :  { %v7763_v24 = vpop.eup %7762  ;;  %v3426_v36 = vadd.f32 %v11056_v63, %v3296_v17  ;;  %v6469_v53 = vmul.f32 -1.442695, %v4909_v3  ;;  %v2153_v31 = vpop.permute.xlu1 %2152 }
 0x34e   :  { %v5757_v28 = vadd.f32 1.0, %v7763_v24  ;;  %v4571_v35 = vpack.c.bf16 %v4468_v0, %v4467_v59  ;;  %7697 = vset.pattern.permute.xlu1 %v12831_v41  ;;  %v2418_v57 = vmul.f32 %v11383_v62, %v2153_v31  ;;  %v13069_v24 = vld [vmem:[#allocation84_spill] sm:$0xff] }
 0x34f   :  { %v3551_v49 = vmax.f32 %v3426_v36, 0.0  ;;  %7772 = vpow2.f32 %v6469_v53  ;;  %2987 = vperm.xlu1 %7697, %v8373_v39   ;;  %v3552_v39 = vmax.f32 %v3427_v16, 0.0  ;;  %v1052_v25 = vmul.f32 %v11356_v19, %v13069_v24 }
 0x350   :  { %v7765_v12 = vpop.eup %7764  ;;  %7774 = vrcp.f32 %v5757_v28  ;;  %v4913_v46 = vpop.f32.mrf.mxu0  ;;  %7393 = vmatmul.mubr.msk.bf16.gmra.mxu0 %vm3699_vm2, %v4571_v35  ;;  %v2543_v42 = vadd.f32 %v2418_v57, %v1648_v37  ;;  %v1653_v36 = vadd.f32 %v13070_v32, %v1051_v8  ;;  %v1053_v37 = vmul.f32 %v11356_v19, %v13071_v4  ;;  %v8377_v8 = vld [vmem:[%s12754_s1 + $0x338] sm:$0xff] }
 0x351   :  { %6130 = vst.msk [vmem:[%s12760_s6 + $0x20] sm:$0xff] %vm6125_vm3, %v7765_v12  ;;  %v3637_v40 = vpack.c.bf16 %v3551_v49, %v3550_v61  ;;  %v4914_v45 = vadd.f32 %v11208_v23, %v4913_v46  ;;  %7396 = vmatprep.mubr.msk.bf16.mxu0 %vm8412_vm0, %v12801_v2  ;;  %v2420_v61 = vmul.f32 %v11383_v62, %v11340_v50 }
 0x352   :  { %v2908_v60 = vpop.permute.xlu1 %2907  ;;  %v7330_v7 = vpop.f32.mrf.mxu0 }
 0x353   :  { %v6470_v21 = vmul.f32 -1.442695, %v4914_v45  ;;  %v3173_v22 = vmul.f32 %v11375_v44, %v2908_v60  ;;  %7698 = vset.pattern.permute.xlu1 %v12836_v5  ;;  %v4099_v33 = vpop.f32.mrf.mxu1  ;;  %7201 = vmatmul.mubr.msk.bf16.gmra.mxu1 %vm3699_vm2, %v3637_v40  ;;  %v2165_v40 = vpop.permute.xlu0 %2164  ;;  %v13072_v45 = vld [vmem:[#allocation73_spill] sm:$0xff] }
 0x354   :  { %v7767_v10 = vpop.eup %7766  ;;  %2236 = vperm.xlu1 %7698, %v8374_v9   ;;  %v4916_v52 = vpop.f32.mrf.mxu0  ;;  %7204 = vmatprep.mubr.msk.bf16.mxu1 %vm8412_vm0, %v12801_v2  ;;  %v4100_v63 = vadd.f32 %v11106_v34, %v4099_v33  ;;  %v1656_v60 = vadd.f32 %v13072_v45, %v1052_v25 }
 0x355   :  { %6131 = vst.msk [vmem:[%s12760_s6 + $0x28] sm:$0xff] %vm6125_vm3, %v7767_v10  ;;  %7776 = vpow2.f32 %v6470_v21  ;;  %v3298_v29 = vadd.f32 %v3173_v22, %v2543_v42  ;;  %v4917_v20 = vadd.f32 %v11208_v23, %v4916_v52  ;;  %v7138_v26 = vpop.f32.mrf.mxu1 }
 0x356   :  { %v7331_v38 = vpop.f32.mrf.mxu0  ;;  %v4469_v0 = vmax.f32 %v4100_v63, 0.0  ;;  %v2545_v16 = vadd.f32 %v2420_v61, %v1656_v60  ;;  %v13073_v63 = vld [vmem:[#allocation76_spill] sm:$0xff] }
 0x357   :  { %v3428_v27 = vadd.f32 %v11428_v15, %v3298_v29  ;;  %v6471_v11 = vmul.f32 -1.442695, %v4917_v20  ;;  %v2157_v13 = vpop.permute.xlu1 %2156  ;;  %v4102_v1 = vpop.f32.mrf.mxu1  ;;  %v1661_v38 = vadd.f32 %v13073_v63, %v1053_v37 }
 0x358   :  { %v7769_v47 = vpop.eup %7768  ;;  %v4103_v54 = vadd.f32 %v11106_v34, %v4102_v1  ;;  %7699 = vset.pattern.permute.xlu1 %v12831_v41  ;;  %v2419_v55 = vmul.f32 %v11383_v62, %v2157_v13  ;;  %v2177_v61 = vpop.permute.xlu0 %2176 }
 0x359   :  { %v7771_v17 = vpop.eup %7770  ;;  %v5758_v3 = vadd.f32 1.0, %v7769_v47  ;;  %v3553_v58 = vmax.f32 %v3428_v27, 0.0  ;;  %7778 = vpow2.f32 %v6471_v11  ;;  %2991 = vperm.xlu1 %7699, %v8374_v9   ;;  %v7139_v59 = vpop.f32.mrf.mxu1  ;;  %v2421_v9 = vmul.f32 %v11383_v62, %v2165_v40 }
 0x35a   :  { %6132 = vst.msk [vmem:[%s12760_s6 + $0x30] sm:$0xff] %vm6125_vm3, %v7771_v17  ;;  %v4470_v30 = vmax.f32 %v4103_v54, 0.0  ;;  %v2544_v57 = vadd.f32 %v2419_v55, %v1653_v36  ;;  %v3176_v55 = vmul.f32 %v11375_v44, %v11431_v51 }
 0x35b   :  { %7780 = vrcp.f32 %v5758_v3  ;;  %v3638_v53 = vpack.c.bf16 %v3553_v58, %v3552_v39  ;;  %v13074_v39 = vld [vmem:[#allocation88_spill] sm:$0xff]  ;;  %v2546_v59 = vadd.f32 %v2421_v9, %v1661_v38 }
 0x35c   :  { %v7773_v31 = vpop.eup %7772  ;;  %v4572_v48 = vpack.c.bf16 %v4470_v30, %v4469_v0  ;;  %v2912_v28 = vpop.permute.xlu1 %2911  ;;  %v1054_v54 = vmul.f32 %v11356_v19, %v13074_v39 }
 0x35d   :  { %v7775_v35 = vpop.eup %7774  ;;  %v5759_v49 = vadd.f32 1.0, %v7773_v31  ;;  %v3174_v12 = vmul.f32 %v11375_v44, %v2912_v28  ;;  %2995 = vperm.xlu1 %7699, %v8376_v56   ;;  %v4107_v46 = vpop.f32.mrf.mxu1  ;;  %7205 = vmatmul.mubr.msk.bf16.gmra.mxu1 %vm3699_vm2, %v3638_v53 }
 0x35e   :  { %6133 = vst.msk [vmem:[%s12760_s6 + $0x38] sm:$0xff] %vm6125_vm3, %v7775_v35  ;;  %v4921_v50 = vpop.f32.mrf.mxu0  ;;  %7397 = vmatmul.mubr.msk.bf16.gmra.mxu0 %vm3699_vm2, %v4572_v48  ;;  %7208 = vmatprep.mubr.msk.bf16.mxu1 %vm8412_vm0, %v12801_v2  ;;  %v4108_v22 = vadd.f32 %v11106_v34, %v4107_v46  ;;  %v11504_v9 = vpop.permute.xlu0 %2180 }
 0x35f   :  { %7782 = vrcp.f32 %v5759_v49  ;;  %v3299_v7 = vadd.f32 %v3174_v12, %v2544_v57  ;;  %v4922_v42 = vadd.f32 %v11208_v23, %v4921_v50  ;;  %v7142_v21 = vpop.f32.mrf.mxu1  ;;  %7400 = vmatprep.mubr.msk.bf16.mxu0 %vm8412_vm0, %v12801_v2  ;;  %v13075_v49 = vld [vmem:[#allocation79_spill] sm:$0xff]  ;;  %v3301_v12 = vadd.f32 %v3176_v55, %v2546_v59 }
 0x360   :  { %v2916_v33 = vpop.permute.xlu1 %2915  ;;  %v7334_v10 = vpop.f32.mrf.mxu0  ;;  %v4471_v17 = vmax.f32 %v4108_v22, 0.0  ;;  %v1664_v57 = vadd.f32 %v13075_v49, %v1054_v54  ;;  %v13078_v59 = vld [vmem:[#allocation83_spill] sm:$0xff] }
 0x361   :  { %v6472_v52 = vmul.f32 -1.442695, %v4922_v42  ;;  %v3175_v29 = vmul.f32 %v11375_v44, %v2916_v33  ;;  %7700 = vset.pattern.permute.xlu1 %v12836_v5  ;;  %v4110_v20 = vpop.f32.mrf.mxu1  ;;  %v3429_v13 = vadd.f32 %v11428_v15, %v3299_v7  ;;  %v8378_v42 = vld [vmem:[%s12754_s1 + $0x340] sm:$0xff]  ;;  %v3431_v22 = vadd.f32 %v11428_v15, %v3301_v12 }
 0x362   :  { %v7777_v26 = vpop.eup %7776  ;;  %v4111_v14 = vadd.f32 %v11106_v34, %v4110_v20  ;;  %2248 = vperm.xlu1 %7700, %v8377_v8   ;;  %v4924_v27 = vpop.f32.mrf.mxu0 }
 0x363   :  { %v5760_v11 = vadd.f32 1.0, %v7777_v26  ;;  %7784 = vpow2.f32 %v6472_v52  ;;  %v3300_v1 = vadd.f32 %v3175_v29, %v2545_v16  ;;  %v7143_v47 = vpop.f32.mrf.mxu1  ;;  %v4925_v58 = vadd.f32 %v11208_v23, %v4924_v27  ;;  %v11509_v52 = vld [vmem:[%s12758_s5 + $0x4] ss:$0 sm:$0xff]  ;;  %v13076_v26 = vld [vmem:[#allocation93_spill] sm:$0xff] }
 0x364   :  { %v4472_v3 = vmax.f32 %v4111_v14, 0.0  ;;  %v7335_v34 = vpop.f32.mrf.mxu0  ;;  %v3554_v53 = vmax.f32 %v3429_v13, 0.0  ;;  %v1055_v63 = vmul.f32 %v11356_v19, %v13076_v26  ;;  %v3556_v13 = vmax.f32 %v3431_v22, 0.0  ;;  %v13081_v26 = vld [vmem:[#allocation96_spill] sm:$0xff] }
 0x365   :  { %7786 = vrcp.f32 %v5760_v11  ;;  %v3430_v0 = vadd.f32 %v11428_v15, %v3300_v1  ;;  %v2169_v30 = vpop.permute.xlu1 %2168  ;;  %v6473_v32 = vmul.f32 -1.442695, %v4925_v58  ;;  %v13077_v34 = vld [vmem:[#allocation92_spill] sm:$0xff] }
 0x366   :  { %v7779_v24 = vpop.eup %7778  ;;  %v4573_v25 = vpack.c.bf16 %v4472_v3, %v4471_v17  ;;  %7701 = vset.pattern.permute.xlu1 %v12831_v41  ;;  %v2422_v48 = vmul.f32 %v11383_v62, %v2169_v30  ;;  %v1056_v55 = vmul.f32 %v11356_v19, %v13077_v34 }
 0x367   :  { %v5761_v36 = vadd.f32 1.0, %v7779_v24  ;;  %v3555_v31 = vmax.f32 %v3430_v0, 0.0  ;;  %3003 = vperm.xlu1 %7701, %v8377_v8   ;;  %v4929_v28 = vpop.f32.mrf.mxu0  ;;  %7788 = vpow2.f32 %v6473_v32  ;;  %v1669_v0 = vadd.f32 %v13078_v59, %v1055_v63  ;;  %v11525_v24 = vpop.permute.xlu0 %2192 }
 0x368   :  { %v7781_v35 = vpop.eup %7780  ;;  %v4930_v51 = vadd.f32 %v11208_v23, %v4929_v28  ;;  %7401 = vmatmul.mubr.msk.bf16.gmra.mxu0 %vm3699_vm2, %v4573_v25  ;;  %v2547_v40 = vadd.f32 %v2422_v48, %v1664_v57  ;;  %v8380_v28 = vld [vmem:[%s12754_s1 + $0x348] sm:$0xff]  ;;  %v1058_v63 = vmul.f32 %v11356_v19, %v13081_v26 }
 0x369   :  { %6134 = vst.msk [vmem:[%s12760_s6 + $0x40] sm:$0xff] %vm6125_vm3, %v7781_v35  ;;  %7790 = vrcp.f32 %v5761_v36  ;;  %v3639_v56 = vpack.c.bf16 %v3555_v31, %v3554_v53  ;;  %v7338_v46 = vpop.f32.mrf.mxu0  ;;  %7404 = vmatprep.mubr.msk.bf16.mxu0 %vm8412_vm0, %v12801_v2  ;;  %v2424_v53 = vmul.f32 %v11383_v62, %v2177_v61  ;;  %v13079_v57 = vld [vmem:[#allocation87_spill] sm:$0xff] }
 0x36a   :  { %v6474_v4 = vmul.f32 -1.442695, %v4930_v51  ;;  %v2924_v37 = vpop.permute.xlu1 %2923  ;;  %v1672_v61 = vadd.f32 %v13079_v57, %v1056_v55 }
 0x36b   :  { %v3177_v50 = vmul.f32 %v11375_v44, %v2924_v37  ;;  %7702 = vset.pattern.permute.xlu1 %v12836_v5  ;;  %v4115_v45 = vpop.f32.mrf.mxu1  ;;  %7209 = vmatmul.mubr.msk.bf16.gmra.mxu1 %vm3699_vm2, %v3639_v56  ;;  %v4932_v60 = vpop.f32.mrf.mxu0 }
 0x36c   :  { %v7783_v7 = vpop.eup %7782  ;;  %7792 = vpow2.f32 %v6474_v4  ;;  %2252 = vperm.xlu1 %7702, %v8378_v42   ;;  %v4933_v21 = vadd.f32 %v11208_v23, %v4932_v60  ;;  %7212 = vmatprep.mubr.msk.bf16.mxu1 %vm8412_vm0, %v12801_v2  ;;  %v4116_v29 = vadd.f32 %v11509_v52, %v4115_v45  ;;  %v13080_v45 = vld [vmem:[#allocation97_spill] sm:$0xff] }
 0x36d   :  { %6135 = vst.msk [vmem:[%s12760_s6 + $0x48] sm:$0xff] %vm6125_vm3, %v7783_v7  ;;  %v3302_v33 = vadd.f32 %v3177_v50, %v2547_v40  ;;  %v7146_v10 = vpop.f32.mrf.mxu1  ;;  %v7339_v16 = vpop.f32.mrf.mxu0  ;;  %v1057_v60 = vmul.f32 %v11356_v19, %v13080_v45  ;;  %v2549_v7 = vadd.f32 %v2424_v53, %v1672_v61  ;;  %v13083_v53 = vld [vmem:[#allocation95_spill] sm:$0xff] }
 0x36e   :  { %v6475_v20 = vmul.f32 -1.442695, %v4933_v21  ;;  %v4473_v3 = vmax.f32 %v4116_v29, 0.0 }
 0x36f   :  { %v3432_v38 = vadd.f32 %v11428_v15, %v3302_v33  ;;  %v2173_v14 = vpop.permute.xlu1 %2172  ;;  %v4118_v8 = vpop.f32.mrf.mxu1 }
 0x370   :  { %v7785_v27 = vpop.eup %7784  ;;  %7794 = vpow2.f32 %v6475_v20  ;;  %v4119_v11 = vadd.f32 %v11509_v52, %v4118_v8  ;;  %7704 = vset.pattern.permute.xlu1 %v12831_v41  ;;  %v2423_v39 = vmul.f32 %v11383_v62, %v2173_v14  ;;  %v2936_v33 = vpop.permute.xlu0 %2935  ;;  %v8381_v20 = vld [vmem:[%s12754_s1 + $0x358] sm:$0xff] }
 0x371   :  { %v5762_v1 = vadd.f32 1.0, %v7785_v27  ;;  %v3557_v47 = vmax.f32 %v3432_v38, 0.0  ;;  %3007 = vperm.xlu1 %7704, %v8378_v42   ;;  %v7147_v54 = vpop.f32.mrf.mxu1  ;;  %v2425_v38 = vmul.f32 %v11383_v62, %v11504_v9 }
 0x372   :  { %v7787_v17 = vpop.eup %7786  ;;  %v4474_v58 = vmax.f32 %v4119_v11, 0.0  ;;  %v2548_v31 = vadd.f32 %v2423_v39, %v1669_v0  ;;  %v13082_v54 = vld [vmem:[#allocation91_spill] sm:$0xff] }
 0x373   :  { %6136 = vst.msk [vmem:[%s12760_s6 + $0x50] sm:$0xff] %vm6125_vm3, %v7787_v17  ;;  %7796 = vrcp.f32 %v5762_v1  ;;  %v3640_v30 = vpack.c.bf16 %v3557_v47, %v3556_v13  ;;  %v1677_v17 = vadd.f32 %v13082_v54, %v1057_v60 }
 0x374   :  { %v4574_v25 = vpack.c.bf16 %v4474_v58, %v4473_v3  ;;  %v2928_v32 = vpop.permute.xlu1 %2927  ;;  %v7789_v36 = vpop.eup %7788  ;;  %v3180_v3 = vmul.f32 %v11375_v44, %v2936_v33  ;;  %v13084_v33 = vld [vmem:[#allocation101_spill] sm:$0xff] }
 0x375   :  { %v3178_v48 = vmul.f32 %v11375_v44, %v2928_v32  ;;  %3011 = vperm.xlu1 %7704, %v8380_v28   ;;  %v4123_v35 = vpop.f32.mrf.mxu1  ;;  %7213 = vmatmul.mubr.msk.bf16.gmra.mxu1 %vm3699_vm2, %v3640_v30  ;;  %v5763_v49 = vadd.f32 1.0, %v7789_v36  ;;  %v2550_v30 = vadd.f32 %v2425_v38, %v1677_v17 }
 0x376   :  { %v7791_v51 = vpop.eup %7790  ;;  %7405 = vmatmul.mubr.msk.bf16.gmra.mxu0 %vm3699_vm2, %v4574_v25  ;;  %7216 = vmatprep.mubr.msk.bf16.mxu1 %vm8412_vm0, %v12801_v2  ;;  %v4937_v56 = vpop.f32.mrf.mxu0  ;;  %v4124_v4 = vadd.f32 %v11509_v52, %v4123_v35 }
 0x377   :  { %6137 = vst.msk [vmem:[%s12760_s6 + $0x58] sm:$0xff] %vm6125_vm3, %v7791_v51  ;;  %v3303_v12 = vadd.f32 %v3178_v48, %v2548_v31  ;;  %v7150_v46 = vpop.f32.mrf.mxu1  ;;  %7408 = vmatprep.mubr.msk.bf16.mxu0 %vm8412_vm0, %v12801_v2  ;;  %7798 = vrcp.f32 %v5763_v49  ;;  %v4938_v37 = vadd.f32 %v11208_v23, %v4937_v56  ;;  %v1680_v31 = vadd.f32 %v13083_v53, %v1058_v63  ;;  %v11573_v51 = vld [vmem:[%s12758_s5 + $0x5] ss:$0 sm:$0xff]  ;;  %v11596_v63 = vpop.permute.xlu0 %2951 }
 0x378   :  { %v2932_v40 = vpop.permute.xlu1 %2931  ;;  %v7342_v21 = vpop.f32.mrf.mxu0  ;;  %v4475_v13 = vmax.f32 %v4124_v4, 0.0  ;;  %v3305_v28 = vadd.f32 %v3180_v3, %v2550_v30  ;;  %v13086_v3 = vld [vmem:[#allocation99_spill] sm:$0xff] }
 0x379   :  { %v7793_v50 = vpop.eup %7792  ;;  %v3179_v42 = vmul.f32 %v11375_v44, %v2932_v40  ;;  %7705 = vset.pattern.permute.xlu1 %v12836_v5  ;;  %v4126_v22 = vpop.f32.mrf.mxu1  ;;  %v6476_v16 = vmul.f32 -1.442695, %v4938_v37  ;;  %v3433_v14 = vadd.f32 %v11428_v15, %v3303_v12  ;;  %v8383_v37 = vld [vmem:[%s12754_s1 + $0x360] sm:$0xff] }
 0x37a   :  { %v5764_v10 = vadd.f32 1.0, %v7793_v50  ;;  %v4127_v29 = vadd.f32 %v11509_v52, %v4126_v22  ;;  %2264 = vperm.xlu1 %7705, %v8381_v20   ;;  %v4940_v27 = vpop.f32.mrf.mxu0  ;;  %v3435_v45 = vadd.f32 %v11428_v15, %v3305_v28  ;;  %v13088_v28 = vld [vmem:[#allocation105_spill] sm:$0xff] }
 0x37b   :  { %v3304_v8 = vadd.f32 %v3179_v42, %v2549_v7  ;;  %v7151_v11 = vpop.f32.mrf.mxu1  ;;  %v4941_v47 = vadd.f32 %v11208_v23, %v4940_v27  ;;  %v3558_v25 = vmax.f32 %v3433_v14, 0.0 }
 0x37c   :  { %7800 = vrcp.f32 %v5764_v10  ;;  %v4476_v1 = vmax.f32 %v4127_v29, 0.0  ;;  %v7343_v34 = vpop.f32.mrf.mxu0  ;;  %v1059_v10 = vmul.f32 %v11356_v19, %v13084_v33 }
 0x37d   :  { %v7795_v39 = vpop.eup %7794  ;;  %7802 = vpow2.f32 %v6476_v16  ;;  %v3434_v58 = vadd.f32 %v11428_v15, %v3304_v8  ;;  %v2185_v9 = vpop.permute.xlu1 %2184  ;;  %v6477_v0 = vmul.f32 -1.442695, %v4941_v47  ;;  %v3560_v8 = vmax.f32 %v3435_v45, 0.0  ;;  %v13085_v47 = vld [vmem:[#allocation100_spill] sm:$0xff] }
 0x37e   :  { %v5765_v55 = vadd.f32 1.0, %v7795_v39  ;;  %v4575_v59 = vpack.c.bf16 %v4476_v1, %v4475_v13  ;;  %7707 = vset.pattern.permute.xlu1 %v12831_v41  ;;  %v2426_v23 = vmul.f32 %v11383_v62, %v2185_v9  ;;  %v1060_v39 = vmul.f32 %v11356_v19, %v13085_v47 }
 0x37f   :  { %v3559_v32 = vmax.f32 %v3434_v58, 0.0  ;;  %3019 = vperm.xlu1 %7707, %v8381_v20   ;;  %v4945_v48 = vpop.f32.mrf.mxu0  ;;  %v1685_v58 = vadd.f32 %v13086_v3, %v1059_v10  ;;  %v8385_v10 = vld [vmem:[%s12754_s1 + $0x378] sm:$0xff] }
 0x380   :  { %v7797_v36 = vpop.eup %7796  ;;  %7804 = vrcp.f32 %v5765_v55  ;;  %7409 = vmatmul.mubr.msk.bf16.gmra.mxu0 %vm3699_vm2, %v4575_v59  ;;  %v4946_v49 = vadd.f32 %v11573_v51, %v4945_v48  ;;  %v2551_v12 = vadd.f32 %v2426_v23, %v1680_v31  ;;  %v2428_v55 = vmul.f32 %v11383_v62, %v11525_v24  ;;  %v8384_v23 = vld [vmem:[%s12754_s1 + $0x368] sm:$0xff] }
 0x381   :  { %6138 = vst.msk [vmem:[%s12760_s6 + $0x60] sm:$0xff] %vm6125_vm3, %v7797_v36  ;;  %v3641_v35 = vpack.c.bf16 %v3559_v32, %v3558_v25  ;;  %7806 = vpow2.f32 %v6477_v0  ;;  %7412 = vmatprep.mubr.msk.bf16.mxu0 %vm8412_vm0, %v12801_v2  ;;  %v7346_v61 = vpop.f32.mrf.mxu0  ;;  %v13087_v31 = vld [vmem:[#allocation103_spill] sm:$0xff]  ;;  %v1061_v24 = vmul.f32 %v11356_v19, %v13088_v28 }
 0x382   :  { %v2940_v57 = vpop.permute.xlu1 %2939  ;;  %v6478_v56 = vmul.f32 -1.442695, %v4946_v49  ;;  %v1688_v48 = vadd.f32 %v13087_v31, %v1060_v39 }
 0x383   :  { %v3181_v46 = vmul.f32 %v11375_v44, %v2940_v57  ;;  %7708 = vset.pattern.permute.xlu1 %v12836_v5  ;;  %v4131_v4 = vpop.f32.mrf.mxu1  ;;  %7217 = vmatmul.mubr.msk.bf16.gmra.mxu1 %vm3699_vm2, %v3641_v35  ;;  %v4948_v40 = vpop.f32.mrf.mxu0 }
 0x384   :  { %2268 = vperm.xlu1 %7708, %v8383_v37   ;;  %7220 = vmatprep.mubr.msk.bf16.mxu1 %vm8412_vm0, %v12801_v2  ;;  %v7799_v50 = vpop.eup %7798  ;;  %7808 = vpow2.f32 %v6478_v56  ;;  %v4949_v7 = vadd.f32 %v11573_v51, %v4948_v40  ;;  %v4132_v21 = vadd.f32 %v11509_v52, %v4131_v4  ;;  %v2197_v35 = vpop.permute.xlu0 %2196 }
 0x385   :  { %v3306_v60 = vadd.f32 %v3181_v46, %v2551_v12  ;;  %v7154_v42 = vpop.f32.mrf.mxu1  ;;  %6139 = vst.msk [vmem:[%s12760_s6 + $0x68] sm:$0xff] %vm6125_vm3, %v7799_v50  ;;  %v7347_v22 = vpop.f32.mrf.mxu0  ;;  %v2553_v46 = vadd.f32 %v2428_v55, %v1688_v48  ;;  %v2429_v50 = vmul.f32 %v11383_v62, %v2197_v35 }
 0x386   :  { %v6479_v29 = vmul.f32 -1.442695, %v4949_v7  ;;  %v4477_v54 = vmax.f32 %v4132_v21, 0.0  ;;  %v13089_v21 = vld [vmem:[#allocation107_spill] sm:$0xff] }
 0x387   :  { %v3436_v16 = vadd.f32 %v11428_v15, %v3306_v60  ;;  %v2189_v20 = vpop.permute.xlu1 %2188  ;;  %v4134_v26 = vpop.f32.mrf.mxu1  ;;  %v1693_v22 = vadd.f32 %v13089_v21, %v1061_v24 }
 0x388   :  { %v4135_v38 = vadd.f32 %v11509_v52, %v4134_v26  ;;  %7709 = vset.pattern.permute.xlu1 %v12831_v41  ;;  %7810 = vpow2.f32 %v6479_v29  ;;  %v2427_v11 = vmul.f32 %v11383_v62, %v2189_v20 }
 0x389   :  { %v7801_v14 = vpop.eup %7800  ;;  %v3561_v27 = vmax.f32 %v3436_v16, 0.0  ;;  %3023 = vperm.xlu1 %7709, %v8383_v37   ;;  %v7155_v13 = vpop.f32.mrf.mxu1 }
 0x38a   :  { %v7803_v1 = vpop.eup %7802  ;;  %6140 = vst.msk [vmem:[%s12760_s6 + $0x70] sm:$0xff] %vm6125_vm3, %v7801_v14  ;;  %v4478_v17 = vmax.f32 %v4135_v38, 0.0  ;;  %v2552_v25 = vadd.f32 %v2427_v11, %v1685_v58  ;;  %v3184_v13 = vmul.f32 %v11375_v44, %v11596_v63  ;;  %v11644_v58 = vpop.permute.xlu0 %2208 }
 0x38b   :  { %v5766_v34 = vadd.f32 1.0, %v7803_v1  ;;  %v3642_v9 = vpack.c.bf16 %v3561_v27, %v3560_v8  ;;  %v2554_v1 = vadd.f32 %v2429_v50, %v1693_v22 }
 0x38c   :  { %v4576_v59 = vpack.c.bf16 %v4478_v17, %v4477_v54  ;;  %v2944_v0 = vpop.permute.xlu1 %2943  ;;  %v13090_v17 = vld [vmem:[#allocation104_spill] sm:$0xff] }
 0x38d   :  { %v7805_v30 = vpop.eup %7804  ;;  %7812 = vrcp.f32 %v5766_v34  ;;  %v3182_v32 = vmul.f32 %v11375_v44, %v2944_v0  ;;  %3027 = vperm.xlu1 %7709, %v8384_v23   ;;  %v4139_v36 = vpop.f32.mrf.mxu1  ;;  %7221 = vmatmul.mubr.msk.bf16.gmra.mxu1 %vm3699_vm2, %v3642_v9  ;;  %v1062_v3 = vmul.f32 %v11356_v19, %v13090_v17  ;;  %v13094_v17 = vld [vmem:[#allocation108_spill] sm:$0xff] }
 0x38e   :  { %v7807_v53 = vpop.eup %7806  ;;  %6141 = vst.msk [vmem:[%s12760_s6 + $0x78] sm:$0xff] %vm6125_vm3, %v7805_v30  ;;  %v4953_v49 = vpop.f32.mrf.mxu0  ;;  %7413 = vmatmul.mubr.msk.bf16.gmra.mxu0 %vm3699_vm2, %v4576_v59  ;;  %7224 = vmatprep.mubr.msk.bf16.mxu1 %vm8412_vm0, %v12801_v2  ;;  %v4140_v4 = vadd.f32 %v11509_v52, %v4139_v36  ;;  %v3309_v36 = vadd.f32 %v3184_v13, %v2554_v1  ;;  %v13093_v1 = vld [vmem:[#allocation115_spill] sm:$0xff] }
 0x38f   :  { %v5767_v57 = vadd.f32 1.0, %v7807_v53  ;;  %v3307_v61 = vadd.f32 %v3182_v32, %v2552_v25  ;;  %v4954_v12 = vadd.f32 %v11573_v51, %v4953_v49  ;;  %v7158_v56 = vpop.f32.mrf.mxu1  ;;  %7416 = vmatprep.mubr.msk.bf16.mxu0 %vm8412_vm0, %v12801_v2  ;;  %v13091_v32 = vld [vmem:[#allocation111_spill] sm:$0xff] }
 0x390   :  { %v2948_v37 = vpop.permute.xlu1 %2947  ;;  %v7350_v40 = vpop.f32.mrf.mxu0  ;;  %v4479_v14 = vmax.f32 %v4140_v4, 0.0  ;;  %v1696_v23 = vadd.f32 %v13091_v32, %v1062_v3  ;;  %v8386_v56 = vld [vmem:[%s12754_s1 + $0x380] sm:$0xff]  ;;  %v3439_v4 = vadd.f32 %v11428_v15, %v3309_v36  ;;  %v1064_v3 = vmul.f32 %v11356_v19, %v13094_v17 }
 0x391   :  { %7814 = vrcp.f32 %v5767_v57  ;;  %v6480_v45 = vmul.f32 -1.442695, %v4954_v12  ;;  %v3183_v60 = vmul.f32 %v11375_v44, %v2948_v37  ;;  %7710 = vset.pattern.permute.xlu1 %v12836_v5  ;;  %v4142_v7 = vpop.f32.mrf.mxu1  ;;  %v7809_v42 = vpop.eup %7808  ;;  %v3437_v20 = vadd.f32 %v11428_v15, %v3307_v61 }
 0x392   :  { %v4143_v33 = vadd.f32 %v11509_v52, %v4142_v7  ;;  %2280 = vperm.xlu1 %7710, %v8385_v10   ;;  %v4956_v16 = vpop.f32.mrf.mxu0  ;;  %v5768_v29 = vadd.f32 1.0, %v7809_v42  ;;  %v11660_v12 = vpop.permute.xlu0 %2212  ;;  %v13092_v42 = vld [vmem:[#allocation109_spill] sm:$0xff] }
 0x393   :  { %7816 = vpow2.f32 %v6480_v45  ;;  %v3308_v26 = vadd.f32 %v3183_v60, %v2553_v46  ;;  %v7159_v38 = vpop.f32.mrf.mxu1  ;;  %v4957_v27 = vadd.f32 %v11573_v51, %v4956_v16  ;;  %v3562_v59 = vmax.f32 %v3437_v20, 0.0 }
 0x394   :  { %v4480_v8 = vmax.f32 %v4143_v33, 0.0  ;;  %v7351_v11 = vpop.f32.mrf.mxu0  ;;  %7818 = vrcp.f32 %v5768_v29  ;;  %v1063_v21 = vmul.f32 %v11356_v19, %v13092_v42  ;;  %v3564_v20 = vmax.f32 %v3439_v4, 0.0 }
 0x395   :  { %v3438_v47 = vadd.f32 %v11428_v15, %v3308_v26  ;;  %v2201_v39 = vpop.permute.xlu1 %2200  ;;  %v7811_v54 = vpop.eup %7810  ;;  %v6481_v9 = vmul.f32 -1.442695, %v4957_v27 }
 0x396   :  { %v4577_v34 = vpack.c.bf16 %v4480_v8, %v4479_v14  ;;  %7711 = vset.pattern.permute.xlu1 %v12831_v41  ;;  %v5769_v55 = vadd.f32 1.0, %v7811_v54  ;;  %v2430_v63 = vmul.f32 %v11383_v62, %v2201_v39  ;;  %v11681_v39 = vpop.permute.xlu0 %2224 }
 0x397   :  { %v3563_v0 = vmax.f32 %v3438_v47, 0.0  ;;  %3035 = vperm.xlu1 %7711, %v8385_v10   ;;  %v4961_v30 = vpop.f32.mrf.mxu0  ;;  %7820 = vpow2.f32 %v6481_v9  ;;  %v1701_v47 = vadd.f32 %v13093_v1, %v1063_v21  ;;  %v13098_v1 = vld [vmem:[#allocation112_spill] sm:$0xff] }
 0x398   :  { %v4962_v25 = vadd.f32 %v11573_v51, %v4961_v30  ;;  %7417 = vmatmul.mubr.msk.bf16.gmra.mxu0 %vm3699_vm2, %v4577_v34  ;;  %7822 = vrcp.f32 %v5769_v55  ;;  %v2555_v35 = vadd.f32 %v2430_v63, %v1696_v23  ;;  %v8387_v30 = vld [vmem:[%s12754_s1 + $0x388] sm:$0xff]  ;;  %v13095_v23 = vld [vmem:[#allocation113_spill] sm:$0xff] }
 0x399   :  { %v3643_v53 = vpack.c.bf16 %v3563_v0, %v3562_v59  ;;  %v7354_v31 = vpop.f32.mrf.mxu0  ;;  %7420 = vmatprep.mubr.msk.bf16.mxu0 %vm8412_vm0, %v12801_v2  ;;  %v2432_v59 = vmul.f32 %v11383_v62, %v11644_v58  ;;  %v1065_v36 = vmul.f32 %v11356_v19, %v13095_v23  ;;  %v13096_v58 = vld [vmem:[#allocation119_spill] sm:$0xff] }
 0x39a   :  { %v7813_v48 = vpop.eup %7812  ;;  %v6482_v28 = vmul.f32 -1.442695, %v4962_v25  ;;  %v2956_v24 = vpop.permute.xlu1 %2955 }
 0x39b   :  { %6142 = vst.msk [vmem:[%s12760_s6 + $0x80] sm:$0xff] %vm6125_vm3, %v7813_v48  ;;  %v3185_v49 = vmul.f32 %v11375_v44, %v2956_v24  ;;  %7712 = vset.pattern.permute.xlu1 %v12836_v5  ;;  %v4147_v57 = vpop.f32.mrf.mxu1  ;;  %7225 = vmatmul.mubr.msk.bf16.gmra.mxu1 %vm3699_vm2, %v3643_v53  ;;  %v4964_v61 = vpop.f32.mrf.mxu0  ;;  %v1704_v48 = vadd.f32 %v13096_v58, %v1064_v3 }
 0x39c   :  { %7824 = vpow2.f32 %v6482_v28  ;;  %2284 = vperm.xlu1 %7712, %v8386_v56   ;;  %v4965_v46 = vadd.f32 %v11573_v51, %v4964_v61  ;;  %7228 = vmatprep.mubr.msk.bf16.mxu1 %vm8412_vm0, %v12801_v2  ;;  %v4148_v60 = vadd.f32 %v11509_v52, %v4147_v57  ;;  %v2968_v4 = vpop.permute.xlu0 %2967 }
 0x39d   :  { %v3310_v37 = vadd.f32 %v3185_v49, %v2555_v35  ;;  %v7162_v40 = vpop.f32.mrf.mxu1  ;;  %v7355_v50 = vpop.f32.mrf.mxu0 }
 0x39e   :  { %v7815_v45 = vpop.eup %7814  ;;  %v6483_v7 = vmul.f32 -1.442695, %v4965_v46  ;;  %v4481_v11 = vmax.f32 %v4148_v60, 0.0  ;;  %v2557_v46 = vadd.f32 %v2432_v59, %v1704_v48 }
 0x39f   :  { %6143 = vst.msk [vmem:[%s12760_s6 + $0x88] sm:$0xff] %vm6125_vm3, %v7815_v45  ;;  %v3440_v22 = vadd.f32 %v11428_v15, %v3310_v37  ;;  %v2205_v33 = vpop.permute.xlu1 %2204  ;;  %v4150_v10 = vpop.f32.mrf.mxu1  ;;  %v13097_v45 = vld [vmem:[#allocation123_spill] sm:$0xff] }
 0x3a0   :  { %v7817_v16 = vpop.eup %7816  ;;  %7826 = vpow2.f32 %v6483_v7  ;;  %v4151_v29 = vadd.f32 %v11509_v52, %v4150_v10  ;;  %7714 = vset.pattern.permute.xlu1 %v12831_v41  ;;  %v2431_v14 = vmul.f32 %v11383_v62, %v2205_v33  ;;  %v1709_v60 = vadd.f32 %v13097_v45, %v1065_v36 }
 0x3a1   :  { %v5770_v26 = vadd.f32 1.0, %v7817_v16  ;;  %v3565_v38 = vmax.f32 %v3440_v22, 0.0  ;;  %3039 = vperm.xlu1 %7714, %v8386_v56   ;;  %v7163_v8 = vpop.f32.mrf.mxu1  ;;  %v7819_v27 = vpop.eup %7818  ;;  %v2433_v7 = vmul.f32 %v11383_v62, %v11660_v12  ;;  %v8388_v22 = vld [vmem:[%s12754_s1 + $0x398] sm:$0xff] }
 0x3a2   :  { %v4482_v13 = vmax.f32 %v4151_v29, 0.0  ;;  %6144 = vst.msk [vmem:[%s12760_s6 + $0x90] sm:$0xff] %vm6125_vm3, %v7819_v27  ;;  %v2556_v0 = vadd.f32 %v2431_v14, %v1701_v47  ;;  %v1066_v47 = vmul.f32 %v11356_v19, %v13098_v1 }
 0x3a3   :  { %7828 = vrcp.f32 %v5770_v26  ;;  %v3644_v54 = vpack.c.bf16 %v3565_v38, %v3564_v20  ;;  %v3188_v26 = vmul.f32 %v11375_v44, %v2968_v4  ;;  %v11759_v4 = vld [vmem:[%s12758_s5] ss:$0 sm:$0xff] }
 0x3a4   :  { %v4578_v34 = vpack.c.bf16 %v4482_v13, %v4481_v11  ;;  %v2960_v9 = vpop.permute.xlu1 %2959  ;;  %v7821_v55 = vpop.eup %7820 }
 0x3a5   :  { %v3186_v63 = vmul.f32 %v11375_v44, %v2960_v9  ;;  %3043 = vperm.xlu1 %7714, %v8387_v30   ;;  %v4155_v25 = vpop.f32.mrf.mxu1  ;;  %7229 = vmatmul.mubr.msk.bf16.gmra.mxu1 %vm3699_vm2, %v3644_v54  ;;  %v7823_v32 = vpop.eup %7822  ;;  %v5771_v53 = vadd.f32 1.0, %v7821_v55  ;;  %v2558_v54 = vadd.f32 %v2433_v7, %v1709_v60 }
 0x3a6   :  { %v4969_v31 = vpop.f32.mrf.mxu0  ;;  %7421 = vmatmul.mubr.msk.bf16.gmra.mxu0 %vm3699_vm2, %v4578_v34  ;;  %7232 = vmatprep.mubr.msk.bf16.mxu1 %vm8412_vm0, %v12801_v2  ;;  %6145 = vst.msk [vmem:[%s12760_s6 + $0x98] sm:$0xff] %vm6125_vm3, %v7823_v32  ;;  %v4156_v49 = vadd.f32 %v11509_v52, %v4155_v25 }
 0x3a7   :  { %v3311_v28 = vadd.f32 %v3186_v63, %v2556_v0  ;;  %v4970_v24 = vadd.f32 %v11573_v51, %v4969_v31  ;;  %v7166_v35 = vpop.f32.mrf.mxu1  ;;  %7424 = vmatprep.mubr.msk.bf16.mxu0 %vm8412_vm0, %v12801_v2  ;;  %7830 = vrcp.f32 %v5771_v53  ;;  %v3313_v59 = vadd.f32 %v3188_v26, %v2558_v54  ;;  %v13099_v63 = vld [vmem:[#allocation127_spill] sm:$0xff]  ;;  %v11739_v53 = vld [vmem:[%s12758_s5 + $0x2] ss:$0 sm:$0xff] }
 0x3a8   :  { %v2964_v57 = vpop.permute.xlu1 %2963  ;;  %v7358_v61 = vpop.f32.mrf.mxu0  ;;  %v4483_v12 = vmax.f32 %v4156_v49, 0.0  ;;  %v1712_v30 = vadd.f32 %v13099_v63, %v1066_v47 }
 0x3a9   :  { %v7825_v56 = vpop.eup %7824  ;;  %v6484_v37 = vmul.f32 -1.442695, %v4970_v24  ;;  %v3187_v40 = vmul.f32 %v11375_v44, %v2964_v57  ;;  %7715 = vset.pattern.permute.xlu1 %v12836_v5  ;;  %v4158_v50 = vpop.f32.mrf.mxu1  ;;  %v3441_v10 = vadd.f32 %v11428_v15, %v3311_v28  ;;  %v3443_v48 = vadd.f32 %v11428_v15, %v3313_v59  ;;  %v8390_v28 = vld [vmem:[%s12754_s1 + $0x3a0] sm:$0xff] }
 0x3aa   :  { %v5772_v42 = vadd.f32 1.0, %v7825_v56  ;;  %v4159_v21 = vadd.f32 %v11509_v52, %v4158_v50  ;;  %2296 = vperm.xlu1 %7715, %v8388_v22   ;;  %v4972_v33 = vpop.f32.mrf.mxu0 }
 0x3ab   :  { %7832 = vpow2.f32 %v6484_v37  ;;  %v3312_v16 = vadd.f32 %v3187_v40, %v2557_v46  ;;  %v4973_v29 = vadd.f32 %v11573_v51, %v4972_v33  ;;  %v7167_v20 = vpop.f32.mrf.mxu1  ;;  %v3566_v34 = vmax.f32 %v3441_v10, 0.0  ;;  %v13100_v37 = vld [vmem:[#allocation117_spill] sm:$0xff] }
 0x3ac   :  { %7834 = vrcp.f32 %v5772_v42  ;;  %v4484_v38 = vmax.f32 %v4159_v21, 0.0  ;;  %v7359_v14 = vpop.f32.mrf.mxu0  ;;  %v1067_v40 = vmul.f32 %v11759_v4, %v13100_v37  ;;  %v3568_v21 = vmax.f32 %v3443_v48, 0.0  ;;  %v11771_v20 = vld [vmem:[%s12758_s5 + $0x1] ss:$0 sm:$0xff]  ;;  %v8394_v37 = vld [vmem:[%s12754_s1 + $0x3b8] sm:$0xff] }
 0x3ad   :  { %v7827_v8 = vpop.eup %7826  ;;  %v3442_v27 = vadd.f32 %v11428_v15, %v3312_v16  ;;  %v6485_v11 = vmul.f32 -1.442695, %v4973_v29  ;;  %v2217_v13 = vpop.permute.xlu1 %2216  ;;  %v13101_v14 = vld [vmem:[#allocation131_spill] sm:$0xff] }
 0x3ae   :  { %v5773_v17 = vadd.f32 1.0, %v7827_v8  ;;  %v4579_v3 = vpack.c.bf16 %v4484_v38, %v4483_v12  ;;  %7717 = vset.pattern.permute.xlu1 %v12831_v41  ;;  %v2434_v44 = vmul.f32 %v11383_v62, %v2217_v13  ;;  %v1717_v8 = vadd.f32 %v13101_v14, %v1067_v40  ;;  %v13102_v13 = vld [vmem:[#allocation116_spill] sm:$0xff] }
 0x3af   :  { %v3567_v9 = vmax.f32 %v3442_v27, 0.0  ;;  %7836 = vpow2.f32 %v6485_v11  ;;  %3051 = vperm.xlu1 %7717, %v8388_v22   ;;  %v4977_v0 = vpop.f32.mrf.mxu0  ;;  %v11764_v22 = vpop.permute.xlu0 %2983  ;;  %v1068_v1 = vmul.f32 %v11759_v4, %v13102_v13  ;;  %v13106_v14 = vld [vmem:[#allocation120_spill] sm:$0xff] }
 0x3b0   :  { %v7829_v55 = vpop.eup %7828  ;;  %7838 = vrcp.f32 %v5773_v17  ;;  %7425 = vmatmul.mubr.msk.bf16.gmra.mxu0 %vm3699_vm2, %v4579_v3  ;;  %v4978_v25 = vadd.f32 %v11573_v51, %v4977_v0  ;;  %v2559_v23 = vadd.f32 %v2434_v44, %v1712_v30  ;;  %v2436_v3 = vmul.f32 %v11771_v20, %v11681_v39  ;;  %v13103_v0 = vld [vmem:[#allocation121_spill] sm:$0xff] }
 0x3b1   :  { %6146 = vst.msk [vmem:[%s12760_s6 + $0xa0] sm:$0xff] %vm6125_vm3, %v7829_v55  ;;  %v3645_v19 = vpack.c.bf16 %v3567_v9, %v3566_v34  ;;  %7428 = vmatprep.mubr.msk.bf16.mxu0 %vm8412_vm0, %v12801_v2  ;;  %v7362_v32 = vpop.f32.mrf.mxu0  ;;  %v8393_v55 = vld [vmem:[%s12754_s1 + $0x3a8] sm:$0xff]  ;;  %v1069_v63 = vmul.f32 %v11759_v4, %v13103_v0 }
 0x3b2   :  { %v2972_v62 = vpop.permute.xlu1 %2971  ;;  %v6486_v36 = vmul.f32 -1.442695, %v4978_v25 }
 0x3b3   :  { %v3189_v31 = vmul.f32 %v11739_v53, %v2972_v62  ;;  %7718 = vset.pattern.permute.xlu1 %v12836_v5  ;;  %v4163_v58 = vpop.f32.mrf.mxu1  ;;  %7233 = vmatmul.mubr.msk.bf16.gmra.mxu1 %vm3699_vm2, %v3645_v19  ;;  %v4980_v24 = vpop.f32.mrf.mxu0  ;;  %v13104_v19 = vld [vmem:[#allocation135_spill] sm:$0xff] }
 0x3b4   :  { %2300 = vperm.xlu1 %7718, %v8390_v28   ;;  %7236 = vmatprep.mubr.msk.bf16.mxu1 %vm8412_vm0, %v12801_v2  ;;  %v7831_v35 = vpop.eup %7830  ;;  %7840 = vpow2.f32 %v6486_v36  ;;  %v4981_v57 = vadd.f32 %v11573_v51, %v4980_v24  ;;  %v4164_v56 = vadd.f32 %v11509_v52, %v4163_v58  ;;  %v2229_v30 = vpop.permute.xlu0 %2228  ;;  %v1720_v25 = vadd.f32 %v13104_v19, %v1068_v1 }
 0x3b5   :  { %v3314_v49 = vadd.f32 %v3189_v31, %v2559_v23  ;;  %v7170_v61 = vpop.f32.mrf.mxu1  ;;  %6147 = vst.msk [vmem:[%s12760_s6 + $0xa8] sm:$0xff] %vm6125_vm3, %v7831_v35  ;;  %v7363_v46 = vpop.f32.mrf.mxu0 }
 0x3b6   :  { %v6487_v45 = vmul.f32 -1.442695, %v4981_v57  ;;  %v4485_v12 = vmax.f32 %v4164_v56, 0.0  ;;  %v2561_v48 = vadd.f32 %v2436_v3, %v1720_v25  ;;  %v13105_v61 = vld [vmem:[#allocation139_spill] sm:$0xff] }
 0x3b7   :  { %v3444_v50 = vadd.f32 %v11428_v15, %v3314_v49  ;;  %v2221_v60 = vpop.permute.xlu1 %2220  ;;  %v4166_v7 = vpop.f32.mrf.mxu1  ;;  %v1725_v56 = vadd.f32 %v13105_v61, %v1069_v63 }
 0x3b8   :  { %v7833_v42 = vpop.eup %7832  ;;  %v4167_v33 = vadd.f32 %v11509_v52, %v4166_v7  ;;  %7719 = vset.pattern.permute.xlu1 %v12831_v41  ;;  %7842 = vpow2.f32 %v6487_v45  ;;  %v2435_v15 = vmul.f32 %v11771_v20, %v2221_v60  ;;  %v11813_v45 = vld [vmem:[%s12758_s5 + $0x3] ss:$0 sm:$0xff] }
 0x3b9   :  { %v7835_v10 = vpop.eup %7834  ;;  %v5774_v16 = vadd.f32 1.0, %v7833_v42  ;;  %v3569_v29 = vmax.f32 %v3444_v50, 0.0  ;;  %3055 = vperm.xlu1 %7719, %v8390_v28   ;;  %v7171_v26 = vpop.f32.mrf.mxu1  ;;  %v2437_v28 = vmul.f32 %v11771_v20, %v2229_v30 }
 0x3ba   :  { %6148 = vst.msk [vmem:[%s12760_s6 + $0xb0] sm:$0xff] %vm6125_vm3, %v7835_v10  ;;  %v4486_v38 = vmax.f32 %v4167_v33, 0.0  ;;  %v2560_v9 = vadd.f32 %v2435_v15, %v1717_v8  ;;  %v1070_v8 = vmul.f32 %v11759_v4, %v13106_v14 }
 0x3bb   :  { %7844 = vrcp.f32 %v5774_v16  ;;  %v3646_v27 = vpack.c.bf16 %v3569_v29, %v3568_v21  ;;  %v3192_v29 = vmul.f32 %v11739_v53, %v11764_v22  ;;  %v2562_v15 = vadd.f32 %v2437_v28, %v1725_v56 }
 0x3bc   :  { %v7837_v11 = vpop.eup %7836  ;;  %v4580_v47 = vpack.c.bf16 %v4486_v38, %v4485_v12  ;;  %v2976_v54 = vpop.permute.xlu1 %2975 }
 0x3bd   :  { %v7839_v17 = vpop.eup %7838  ;;  %v5775_v34 = vadd.f32 1.0, %v7837_v11  ;;  %v3190_v44 = vmul.f32 %v11739_v53, %v2976_v54  ;;  %3059 = vperm.xlu1 %7719, %v8393_v55   ;;  %v4171_v59 = vpop.f32.mrf.mxu1  ;;  %7237 = vmatmul.mubr.msk.bf16.gmra.mxu1 %vm3699_vm2, %v3646_v27  ;;  %v3317_v55 = vadd.f32 %v3192_v29, %v2562_v15  ;;  %v13109_v15 = vld [vmem:[#allocation147_spill] sm:$0xff] }
 0x3be   :  { %6149 = vst.msk [vmem:[%s12760_s6 + $0xb8] sm:$0xff] %vm6125_vm3, %v7839_v17  ;;  %v4985_v39 = vpop.f32.mrf.mxu0  ;;  %7429 = vmatmul.mubr.msk.bf16.gmra.mxu0 %vm3699_vm2, %v4580_v47  ;;  %7240 = vmatprep.mubr.msk.bf16.mxu1 %vm8412_vm0, %v12801_v2  ;;  %v4172_v36 = vadd.f32 %v11509_v52, %v4171_v59  ;;  %v11822_v27 = vpop.permute.xlu0 %2240 }
 0x3bf   :  { %7846 = vrcp.f32 %v5775_v34  ;;  %v3315_v62 = vadd.f32 %v3190_v44, %v2560_v9  ;;  %v4986_v32 = vadd.f32 %v11573_v51, %v4985_v39  ;;  %v7174_v23 = vpop.f32.mrf.mxu1  ;;  %7432 = vmatprep.mubr.msk.bf16.mxu0 %vm8412_vm0, %v12801_v2  ;;  %v13107_v9 = vld [vmem:[#allocation143_spill] sm:$0xff] }
 0x3c0   :  { %v2980_v31 = vpop.permute.xlu1 %2979  ;;  %v7366_v58 = vpop.f32.mrf.mxu0  ;;  %v4487_v21 = vmax.f32 %v4172_v36, 0.0  ;;  %v1728_v44 = vadd.f32 %v13107_v9, %v1070_v8  ;;  %v8396_v36 = vld [vmem:[%s12754_s1 + $0x3c0] sm:$0xff] }
 0x3c1   :  { %v6488_v24 = vmul.f32 -1.442695, %v4986_v32  ;;  %v3191_v35 = vmul.f32 %v11739_v53, %v2980_v31  ;;  %7720 = vset.pattern.permute.xlu1 %v12836_v5  ;;  %v4174_v49 = vpop.f32.mrf.mxu1  ;;  %v7841_v57 = vpop.eup %7840  ;;  %v3445_v60 = vadd.f32 %v11813_v45, %v3315_v62  ;;  %v3447_v58 = vadd.f32 %v11813_v45, %v3317_v55 }
 0x3c2   :  { %v4175_v46 = vadd.f32 %v11509_v52, %v4174_v49  ;;  %2312 = vperm.xlu1 %7720, %v8394_v37   ;;  %v4988_v40 = vpop.f32.mrf.mxu0  ;;  %v5776_v50 = vadd.f32 1.0, %v7841_v57  ;;  %v11838_v23 = vpop.permute.xlu0 %2244  ;;  %v13108_v57 = vld [vmem:[#allocation125_spill] sm:$0xff] }
 0x3c3   :  { %7848 = vpow2.f32 %v6488_v24  ;;  %v3316_v7 = vadd.f32 %v3191_v35, %v2561_v48  ;;  %v7175_v42 = vpop.f32.mrf.mxu1  ;;  %v4989_v10 = vadd.f32 %v11573_v51, %v4988_v40  ;;  %v3570_v47 = vmax.f32 %v3445_v60, 0.0 }
 0x3c4   :  { %v4488_v33 = vmax.f32 %v4175_v46, 0.0  ;;  %v7367_v16 = vpop.f32.mrf.mxu0  ;;  %7850 = vrcp.f32 %v5776_v50  ;;  %v1071_v61 = vmul.f32 %v11759_v4, %v13108_v57  ;;  %v3572_v60 = vmax.f32 %v3447_v58, 0.0 }
 0x3c5   :  { %v3446_v26 = vadd.f32 %v11813_v45, %v3316_v7  ;;  %v2233_v12 = vpop.permute.xlu1 %2232  ;;  %v7843_v38 = vpop.eup %7842  ;;  %v6489_v13 = vmul.f32 -1.442695, %v4989_v10 }
 0x3c6   :  { %v4581_v11 = vpack.c.bf16 %v4488_v33, %v4487_v21  ;;  %7722 = vset.pattern.permute.xlu1 %v12831_v41  ;;  %v5777_v1 = vadd.f32 1.0, %v7843_v38  ;;  %v2438_v22 = vmul.f32 %v11771_v20, %v2233_v12  ;;  %v11859_v12 = vpop.permute.xlu0 %2256  ;;  %v13110_v38 = vld [vmem:[#allocation124_spill] sm:$0xff] }
 0x3c7   :  { %v3571_v54 = vmax.f32 %v3446_v26, 0.0  ;;  %3067 = vperm.xlu1 %7722, %v8394_v37   ;;  %v4993_v17 = vpop.f32.mrf.mxu0  ;;  %7852 = vpow2.f32 %v6489_v13  ;;  %v1733_v26 = vadd.f32 %v13109_v15, %v1071_v61  ;;  %v1072_v14 = vmul.f32 %v11759_v4, %v13110_v38  ;;  %v13114_v15 = vld [vmem:[#allocation128_spill] sm:$0xff] }
 0x3c8   :  { %v7845_v3 = vpop.eup %7844  ;;  %v4994_v34 = vadd.f32 %v11573_v51, %v4993_v17  ;;  %7433 = vmatmul.mubr.msk.bf16.gmra.mxu0 %vm3699_vm2, %v4581_v11  ;;  %7854 = vrcp.f32 %v5777_v1  ;;  %v2563_v39 = vadd.f32 %v2438_v22, %v1728_v44  ;;  %v2440_v1 = vmul.f32 %v11771_v20, %v11822_v27  ;;  %v8397_v22 = vld [vmem:[%s12754_s1 + $0x3c8] sm:$0xff] }
 0x3c9   :  { %6150 = vst.msk [vmem:[%s12760_s6 + $0xc0] sm:$0xff] %vm6125_vm3, %v7845_v3  ;;  %v3647_v59 = vpack.c.bf16 %v3571_v54, %v3570_v47  ;;  %v7370_v0 = vpop.f32.mrf.mxu0  ;;  %7436 = vmatprep.mubr.msk.bf16.mxu0 %vm8412_vm0, %v12801_v2  ;;  %v13112_v27 = vld [vmem:[#allocation151_spill] sm:$0xff] }
 0x3ca   :  { %v6490_v63 = vmul.f32 -1.442695, %v4994_v34  ;;  %v2988_v30 = vpop.permute.xlu1 %2987  ;;  %v13111_v34 = vld [vmem:[#allocation129_spill] sm:$0xff] }
 0x3cb   :  { %v3193_v19 = vmul.f32 %v11739_v53, %v2988_v30  ;;  %7723 = vset.pattern.permute.xlu1 %v12836_v5  ;;  %v4179_v25 = vpop.f32.mrf.mxu1  ;;  %7241 = vmatmul.mubr.msk.bf16.gmra.mxu1 %vm3699_vm2, %v3647_v59  ;;  %v4996_v62 = vpop.f32.mrf.mxu0  ;;  %v1073_v9 = vmul.f32 %v11759_v4, %v13111_v34  ;;  %v1736_v59 = vadd.f32 %v13112_v27, %v1072_v14 }
 0x3cc   :  { %v7847_v32 = vpop.eup %7846  ;;  %7856 = vpow2.f32 %v6490_v63  ;;  %2316 = vperm.xlu1 %7723, %v8396_v36   ;;  %v4997_v31 = vadd.f32 %v11573_v51, %v4996_v62  ;;  %7244 = vmatprep.mubr.msk.bf16.mxu1 %vm8412_vm0, %v12801_v2  ;;  %v4180_v35 = vadd.f32 %v11509_v52, %v4179_v25 }
 0x3cd   :  { %6151 = vst.msk [vmem:[%s12760_s6 + $0xc8] sm:$0xff] %vm6125_vm3, %v7847_v32  ;;  %v3318_v48 = vadd.f32 %v3193_v19, %v2563_v39  ;;  %v7178_v28 = vpop.f32.mrf.mxu1  ;;  %v7371_v24 = vpop.f32.mrf.mxu0  ;;  %v11890_v39 = vld [vmem:[%s12758_s5 + $0x4] ss:$0 sm:$0xff] }
 0x3ce   :  { %v6491_v49 = vmul.f32 -1.442695, %v4997_v31  ;;  %v4489_v16 = vmax.f32 %v4180_v35, 0.0  ;;  %v3000_v31 = vpop.permute.xlu0 %2999  ;;  %v13113_v24 = vld [vmem:[#allocation155_spill] sm:$0xff] }
 0x3cf   :  { %v3448_v56 = vadd.f32 %v11813_v45, %v3318_v48  ;;  %v2237_v46 = vpop.permute.xlu1 %2236  ;;  %v4182_v37 = vpop.f32.mrf.mxu1  ;;  %v1741_v35 = vadd.f32 %v13113_v24, %v1073_v9 }
 0x3d0   :  { %v7849_v40 = vpop.eup %7848  ;;  %7858 = vpow2.f32 %v6491_v49  ;;  %v4183_v50 = vadd.f32 %v11509_v52, %v4182_v37  ;;  %7725 = vset.pattern.permute.xlu1 %v12831_v41  ;;  %v2439_v21 = vmul.f32 %v11771_v20, %v2237_v46  ;;  %v2441_v49 = vmul.f32 %v11771_v20, %v11838_v23 }
 0x3d1   :  { %v5778_v7 = vadd.f32 1.0, %v7849_v40  ;;  %v3573_v42 = vmax.f32 %v3448_v56, 0.0  ;;  %3071 = vperm.xlu1 %7725, %v8396_v36   ;;  %v7179_v33 = vpop.f32.mrf.mxu1  ;;  %v7851_v10 = vpop.eup %7850  ;;  %v2565_v36 = vadd.f32 %v2440_v1, %v1736_v59  ;;  %v8399_v56 = vld [vmem:[%s12754_s1 + $0x3d8] sm:$0xff] }
 0x3d2   :  { %v4490_v29 = vmax.f32 %v4183_v50, 0.0  ;;  %6152 = vst.msk [vmem:[%s12760_s6 + $0xd0] sm:$0xff] %vm6125_vm3, %v7851_v10  ;;  %v2564_v47 = vadd.f32 %v2439_v21, %v1733_v26  ;;  %v1074_v26 = vmul.f32 %v11759_v4, %v13114_v15 }
 0x3d3   :  { %7860 = vrcp.f32 %v5778_v7  ;;  %v3648_v52 = vpack.c.bf16 %v3573_v42, %v3572_v60  ;;  %v3196_v7 = vmul.f32 %v11739_v53, %v3000_v31 }
 0x3d4   :  { %v4582_v8 = vpack.c.bf16 %v4490_v29, %v4489_v16  ;;  %v2992_v11 = vpop.permute.xlu1 %2991  ;;  %v7853_v13 = vpop.eup %7852 }
 0x3d5   :  { %v3194_v54 = vmul.f32 %v11739_v53, %v2992_v11  ;;  %3075 = vperm.xlu1 %7725, %v8397_v22   ;;  %v4187_v17 = vpop.f32.mrf.mxu1  ;;  %7245 = vmatmul.mubr.msk.bf16.gmra.mxu1 %vm3699_vm2, %v3648_v52  ;;  %v7855_v3 = vpop.eup %7854  ;;  %v5779_v44 = vadd.f32 1.0, %v7853_v13  ;;  %v2566_v52 = vadd.f32 %v2441_v49, %v1741_v35  ;;  %v13115_v22 = vld [vmem:[#allocation159_spill] sm:$0xff] }
 0x3d6   :  { %v5001_v55 = vpop.f32.mrf.mxu0  ;;  %7437 = vmatmul.mubr.msk.bf16.gmra.mxu0 %vm3699_vm2, %v4582_v8  ;;  %7248 = vmatprep.mubr.msk.bf16.mxu1 %vm8412_vm0, %v12801_v2  ;;  %6153 = vst.msk [vmem:[%s12760_s6 + $0xd8] sm:$0xff] %vm6125_vm3, %v7855_v3  ;;  %v4188_v19 = vadd.f32 %v11890_v39, %v4187_v17  ;;  %v1744_v17 = vadd.f32 %v13115_v22, %v1074_v26 }
 0x3d7   :  { %v3319_v0 = vadd.f32 %v3194_v54, %v2564_v47  ;;  %v5002_v63 = vadd.f32 %v11573_v51, %v5001_v55  ;;  %v7182_v30 = vpop.f32.mrf.mxu1  ;;  %7440 = vmatprep.mubr.msk.bf16.mxu0 %vm8412_vm0, %v12801_v2  ;;  %7862 = vrcp.f32 %v5779_v44  ;;  %v3321_v47 = vadd.f32 %v3196_v7, %v2566_v52 }
 0x3d8   :  { %v2996_v25 = vpop.permute.xlu1 %2995  ;;  %v7374_v62 = vpop.f32.mrf.mxu0  ;;  %v4491_v23 = vmax.f32 %v4188_v19, 0.0  ;;  %v2444_v52 = vmul.f32 %v11771_v20, %v11859_v12  ;;  %v13120_v12 = vld [vmem:[#allocation167_spill] sm:$0xff] }
 0x3d9   :  { %v7857_v32 = vpop.eup %7856  ;;  %v6492_v58 = vmul.f32 -1.442695, %v5002_v63  ;;  %v3195_v48 = vmul.f32 %v11739_v53, %v2996_v25  ;;  %7726 = vset.pattern.permute.xlu1 %v12836_v5  ;;  %v4190_v28 = vpop.f32.mrf.mxu1  ;;  %v3449_v37 = vadd.f32 %v11813_v45, %v3319_v0  ;;  %v3451_v0 = vadd.f32 %v11813_v45, %v3321_v47  ;;  %v8400_v63 = vld [vmem:[%s12754_s1 + $0x3e0] sm:$0xff] }
 0x3da   :  { %v5780_v57 = vadd.f32 1.0, %v7857_v32  ;;  %v4191_v61 = vadd.f32 %v11890_v39, %v4190_v28  ;;  %2328 = vperm.xlu1 %7726, %v8399_v56   ;;  %v5004_v46 = vpop.f32.mrf.mxu0  ;;  %v3016_v32 = vpop.permute.xlu0 %3015 }
 0x3db   :  { %7864 = vpow2.f32 %v6492_v58  ;;  %v3320_v40 = vadd.f32 %v3195_v48, %v2565_v36  ;;  %v5005_v50 = vadd.f32 %v11573_v51, %v5004_v46  ;;  %v7183_v60 = vpop.f32.mrf.mxu1  ;;  %v3574_v8 = vmax.f32 %v3449_v37, 0.0  ;;  %v13116_v58 = vld [vmem:[#allocation133_spill] sm:$0xff] }
 0x3dc   :  { %7866 = vrcp.f32 %v5780_v57  ;;  %v4492_v42 = vmax.f32 %v4191_v61, 0.0  ;;  %v7375_v21 = vpop.f32.mrf.mxu0  ;;  %v1075_v48 = vmul.f32 %v11759_v4, %v13116_v58 }
 0x3dd   :  { %v7859_v33 = vpop.eup %7858  ;;  %v3450_v10 = vadd.f32 %v11813_v45, %v3320_v40  ;;  %v6493_v16 = vmul.f32 -1.442695, %v5005_v50  ;;  %v2249_v29 = vpop.permute.xlu1 %2248 }
 0x3de   :  { %v5781_v38 = vadd.f32 1.0, %v7859_v33  ;;  %v4583_v14 = vpack.c.bf16 %v4492_v42, %v4491_v23  ;;  %7728 = vset.pattern.permute.xlu1 %v12831_v41  ;;  %v2442_v13 = vmul.f32 %v11771_v20, %v2249_v29  ;;  %v13117_v23 = vld [vmem:[#allocation163_spill] sm:$0xff] }
 0x3df   :  { %v3575_v11 = vmax.f32 %v3450_v10, 0.0  ;;  %7868 = vpow2.f32 %v6493_v16  ;;  %3083 = vperm.xlu1 %7728, %v8399_v56   ;;  %v1749_v42 = vadd.f32 %v13117_v23, %v1075_v48  ;;  %v13118_v10 = vld [vmem:[#allocation132_spill] sm:$0xff] }
 0x3e0   :  { %v7861_v1 = vpop.eup %7860  ;;  %7870 = vrcp.f32 %v5781_v38  ;;  %v5009_v54 = vpop.f32.mrf.mxu0  ;;  %7441 = vmatmul.mubr.msk.bf16.gmra.mxu0 %vm3699_vm2, %v4583_v14  ;;  %v2567_v44 = vadd.f32 %v2442_v13, %v1744_v17  ;;  %v1076_v16 = vmul.f32 %v11759_v4, %v13118_v10 }
 0x3e1   :  { %6154 = vst.msk [vmem:[%s12760_s6 + $0xe0] sm:$0xff] %vm6125_vm3, %v7861_v1  ;;  %v3649_v41 = vpack.c.bf16 %v3575_v11, %v3574_v8  ;;  %v5010_v3 = vadd.f32 %v11573_v51, %v5009_v54  ;;  %7444 = vmatprep.mubr.msk.bf16.mxu0 %vm8412_vm0, %v12801_v2  ;;  %v2261_v38 = vpop.permute.xlu0 %2260  ;;  %v13119_v1 = vld [vmem:[#allocation137_spill] sm:$0xff] }
 0x3e2   :  { %v3004_v34 = vpop.permute.xlu1 %3003  ;;  %v7378_v9 = vpop.f32.mrf.mxu0  ;;  %v1077_v47 = vmul.f32 %v11759_v4, %v13119_v1  ;;  %v1752_v22 = vadd.f32 %v13120_v12, %v1076_v16 }
 0x3e3   :  { %v6494_v55 = vmul.f32 -1.442695, %v5010_v3  ;;  %v3197_v27 = vmul.f32 %v11739_v53, %v3004_v34  ;;  %7729 = vset.pattern.permute.xlu1 %v12836_v5  ;;  %v4195_v59 = vpop.f32.mrf.mxu1  ;;  %7249 = vmatmul.mubr.msk.bf16.gmra.mxu1 %vm3699_vm2, %v3649_v41  ;;  %v11963_v41 = vld [vmem:[%s12758_s5 + $0x5] ss:$0 sm:$0xff]  ;;  %v2445_v9 = vmul.f32 %v11771_v20, %v2261_v38 }
 0x3e4   :  { %2332 = vperm.xlu1 %7729, %v8400_v63   ;;  %v5012_v30 = vpop.f32.mrf.mxu0  ;;  %7252 = vmatprep.mubr.msk.bf16.mxu1 %vm8412_vm0, %v12801_v2  ;;  %v7863_v19 = vpop.eup %7862  ;;  %v4196_v36 = vadd.f32 %v11890_v39, %v4195_v59  ;;  %v2569_v59 = vadd.f32 %v2444_v52, %v1752_v22 }
 0x3e5   :  { %7872 = vpow2.f32 %v6494_v55  ;;  %v3322_v25 = vadd.f32 %v3197_v27, %v2567_v44  ;;  %v5013_v62 = vadd.f32 %v11573_v51, %v5012_v30  ;;  %v7186_v5 = vpop.f32.mrf.mxu1  ;;  %6155 = vst.msk [vmem:[%s12760_s6 + $0xe8] sm:$0xff] %vm6125_vm3, %v7863_v19  ;;  %v3576_v51 = vmax.f32 %v3451_v0, 0.0 }
 0x3e6   :  { %v7379_v31 = vpop.f32.mrf.mxu0  ;;  %v4493_v60 = vmax.f32 %v4196_v36, 0.0  ;;  %v3200_v5 = vmul.f32 %v11739_v53, %v3016_v32 }
 0x3e7   :  { %v3452_v28 = vadd.f32 %v11813_v45, %v3322_v25  ;;  %v6495_v24 = vmul.f32 -1.442695, %v5013_v62  ;;  %v2253_v35 = vpop.permute.xlu1 %2252  ;;  %v4198_v49 = vpop.f32.mrf.mxu1  ;;  %v13121_v25 = vld [vmem:[#allocation171_spill] sm:$0xff] }
 0x3e8   :  { %v7865_v57 = vpop.eup %7864  ;;  %v4199_v61 = vadd.f32 %v11890_v39, %v4198_v49  ;;  %v2443_v40 = vmul.f32 %v11771_v20, %v2253_v35  ;;  %v1757_v62 = vadd.f32 %v13121_v25, %v1077_v47 }
 0x3e9   :  { %v7867_v56 = vpop.eup %7866  ;;  %v5782_v46 = vadd.f32 1.0, %v7865_v57  ;;  %v3577_v37 = vmax.f32 %v3452_v28, 0.0  ;;  %7874 = vpow2.f32 %v6495_v24  ;;  %v7187_v50 = vpop.f32.mrf.mxu1 }
 0x3ea   :  { %6156 = vst.msk [vmem:[%s12760_s6 + $0xf0] sm:$0xff] %vm6125_vm3, %v7867_v56  ;;  %v4494_v7 = vmax.f32 %v4199_v61, 0.0  ;;  %v2568_v8 = vadd.f32 %v2443_v40, %v1749_v42  ;;  %v2570_v35 = vadd.f32 %v2445_v9, %v1757_v62 }
 0x3eb   :  { %7876 = vrcp.f32 %v5782_v46  ;;  %v3650_v21 = vpack.c.bf16 %v3577_v37, %v3576_v51  ;;  %v13122_v37 = vld [vmem:[#allocation136_spill] sm:$0xff] }
 0x3ec   :  { %v7869_v33 = vpop.eup %7868  ;;  %v4584_v29 = vpack.c.bf16 %v4494_v7, %v4493_v60  ;;  %v3008_v15 = vpop.permute.xlu1 %3007  ;;  %v1078_v40 = vmul.f32 %v11759_v4, %v13122_v37  ;;  %v3325_v16 = vadd.f32 %v3200_v5, %v2570_v35  ;;  %v13126_v37 = vld [vmem:[#allocation140_spill] sm:$0xff] }
 0x3ed   :  { %v7871_v26 = vpop.eup %7870  ;;  %v5783_v14 = vadd.f32 1.0, %v7869_v33  ;;  %v3198_v11 = vmul.f32 %v11739_v53, %v3008_v15  ;;  %v4203_v13 = vpop.f32.mrf.mxu1  ;;  %7253 = vmatmul.mubr.msk.bf16.gmra.mxu1 %vm3699_vm2, %v3650_v21  ;;  %v13123_v15 = vld [vmem:[#allocation174_spill] sm:$0xff] }
 0x3ee   :  { %6157 = vst.msk [vmem:[%s12760_s6 + $0xf8] sm:$0xff] %vm6125_vm3, %v7871_v26  ;;  %v5017_v54 = vpop.f32.mrf.mxu0  ;;  %7445 = vmatmul.mubr.msk.bf16.gmra.mxu0 %vm3699_vm2, %v4584_v29  ;;  %7256 = vmatprep.mubr.msk.bf16.mxu1 %vm8412_vm0, %v12801_v2  ;;  %v4204_v44 = vadd.f32 %v11890_v39, %v4203_v13  ;;  %v2273_v7 = vpop.permute.xlu0 %2272  ;;  %v1760_v26 = vadd.f32 %v13123_v15, %v1078_v40 }
 0x3ef   :  { %7878 = vrcp.f32 %v5783_v14  ;;  %v3323_v17 = vadd.f32 %v3198_v11, %v2568_v8  ;;  %v5018_v3 = vadd.f32 %v11963_v41, %v5017_v54  ;;  %v7190_v34 = vpop.f32.mrf.mxu1  ;;  %7448 = vmatprep.mubr.msk.bf16.mxu0 %vm8412_vm0, %v12801_v2  ;;  %v3455_v12 = vadd.f32 %v11813_v45, %v3325_v16  ;;  %v13127_v16 = vld [vmem:[#allocation179_spill] sm:$0xff] }
 0x3f0   :  { %v3012_v55 = vpop.permute.xlu1 %3011  ;;  %v7382_v27 = vpop.f32.mrf.mxu0  ;;  %v4495_v49 = vmax.f32 %v4204_v44, 0.0  ;;  %v1080_v40 = vmul.f32 %v11759_v4, %v13126_v37 }
 0x3f1   :  { %v6496_v0 = vmul.f32 -1.442695, %v5018_v3  ;;  %v3199_v63 = vmul.f32 %v11739_v53, %v3012_v55  ;;  %v4206_v30 = vpop.f32.mrf.mxu1  ;;  %v3453_v48 = vadd.f32 %v11813_v45, %v3323_v17  ;;  %v3580_v62 = vmax.f32 %v3455_v12, 0.0 }
 0x3f2   :  { %v7873_v19 = vpop.eup %7872  ;;  %v4207_v36 = vadd.f32 %v11890_v39, %v4206_v30  ;;  %v5020_v31 = vpop.f32.mrf.mxu0 }
 0x3f3   :  { %v5784_v58 = vadd.f32 1.0, %v7873_v19  ;;  %7880 = vpow2.f32 %v6496_v0  ;;  %v3324_v28 = vadd.f32 %v3199_v63, %v2569_v59  ;;  %v7191_v24 = vpop.f32.mrf.mxu1  ;;  %v5021_v51 = vadd.f32 %v11963_v41, %v5020_v31  ;;  %v2277_v17 = vpop.permute.xlu0 %2276  ;;  %v13124_v19 = vld [vmem:[#allocation141_spill] sm:$0xff] }
 0x3f4   :  { %v4496_v57 = vmax.f32 %v4207_v36, 0.0  ;;  %v7383_v61 = vpop.f32.mrf.mxu0  ;;  %v3578_v42 = vmax.f32 %v3453_v48, 0.0  ;;  %v1079_v25 = vmul.f32 %v11759_v4, %v13124_v19 }
 0x3f5   :  { %7882 = vrcp.f32 %v5784_v58  ;;  %v3454_v56 = vadd.f32 %v11813_v45, %v3324_v28  ;;  %v2265_v46 = vpop.permute.xlu1 %2264  ;;  %v6497_v60 = vmul.f32 -1.442695, %v5021_v51 }
 0x3f6   :  { %v7875_v32 = vpop.eup %7874  ;;  %v4585_v50 = vpack.c.bf16 %v4496_v57, %v4495_v49  ;;  %v2446_v33 = vmul.f32 %v11771_v20, %v2265_v46  ;;  %v13125_v49 = vld [vmem:[#allocation176_spill] sm:$0xff] }
 0x3f7   :  { %v5785_v23 = vadd.f32 1.0, %v7875_v32  ;;  %v3579_v21 = vmax.f32 %v3454_v56, 0.0  ;;  %7884 = vpow2.f32 %v6497_v60  ;;  %v1765_v57 = vadd.f32 %v13125_v49, %v1079_v25  ;;  %v12006_v51 = vpop.permute.xlu0 %2288 }
 0x3f8   :  { %v7877_v10 = vpop.eup %7876  ;;  %v5025_v29 = vpop.f32.mrf.mxu0  ;;  %7449 = vmatmul.mubr.msk.bf16.gmra.mxu0 %vm3699_vm2, %v4585_v50  ;;  %v2571_v11 = vadd.f32 %v2446_v33, %v1760_v26  ;;  %v2448_v50 = vmul.f32 %v11771_v20, %v2273_v7 }
 0x3f9   :  { %6158 = vst.msk [vmem:[%s12760_s6 + $0x100] sm:$0xff] %vm6125_vm3, %v7877_v10  ;;  %7886 = vrcp.f32 %v5785_v23  ;;  %v3651_v52 = vpack.c.bf16 %v3579_v21, %v3578_v42  ;;  %v5026_v38 = vadd.f32 %v11963_v41, %v5025_v29  ;;  %7452 = vmatprep.mubr.msk.bf16.mxu0 %vm8412_vm0, %v12801_v2  ;;  %v1768_v29 = vadd.f32 %v13127_v16, %v1080_v40  ;;  %v13131_v40 = vld [vmem:[#allocation182_spill] sm:$0xff] }
 0x3fa   :  { %v3020_v14 = vpop.permute.xlu1 %3019  ;;  %v7386_v8 = vpop.f32.mrf.mxu0 }
 0x3fb   :  { %v6498_v13 = vmul.f32 -1.442695, %v5026_v38  ;;  %v3201_v1 = vmul.f32 %v11739_v53, %v3020_v14  ;;  %v4211_v47 = vpop.f32.mrf.mxu1  ;;  %7257 = vmatmul.mubr.msk.bf16.gmra.mxu1 %vm3699_vm2, %v3651_v52  ;;  %v13128_v52 = vld [vmem:[#allocation145_spill] sm:$0xff] }
 0x3fc   :  { %v7879_v54 = vpop.eup %7878  ;;  %v5028_v22 = vpop.f32.mrf.mxu0  ;;  %7260 = vmatprep.mubr.msk.bf16.mxu1 %vm8412_vm0, %v12801_v2  ;;  %v4212_v44 = vadd.f32 %v11890_v39, %v4211_v47  ;;  %v1081_v38 = vmul.f32 %v11759_v4, %v13128_v52 }
 0x3fd   :  { %6159 = vst.msk [vmem:[%s12760_s6 + $0x108] sm:$0xff] %vm6125_vm3, %v7879_v54  ;;  %7888 = vpow2.f32 %v6498_v13  ;;  %v3326_v3 = vadd.f32 %v3201_v1, %v2571_v11  ;;  %v5029_v34 = vadd.f32 %v11963_v41, %v5028_v22  ;;  %v7194_v9 = vpop.f32.mrf.mxu1  ;;  %v2573_v13 = vadd.f32 %v2448_v50, %v1768_v29  ;;  %v3032_v1 = vpop.permute.xlu0 %3031 }
 0x3fe   :  { %v7387_v55 = vpop.f32.mrf.mxu0  ;;  %v4497_v24 = vmax.f32 %v4212_v44, 0.0  ;;  %v2449_v9 = vmul.f32 %v11771_v20, %v2277_v17 }
 0x3ff   :  { %v3456_v27 = vadd.f32 %v11813_v45, %v3326_v3  ;;  %v6499_v59 = vmul.f32 -1.442695, %v5029_v34  ;;  %v2269_v0 = vpop.permute.xlu1 %2268  ;;  %v4214_v63 = vpop.f32.mrf.mxu1  ;;  %v13129_v3 = vld [vmem:[#allocation181_spill] sm:$0xff] }
 0x400   :  { %v7881_v30 = vpop.eup %7880  ;;  %v4215_v5 = vadd.f32 %v11890_v39, %v4214_v63  ;;  %v2447_v58 = vmul.f32 %v11771_v20, %v2269_v0  ;;  %v1773_v34 = vadd.f32 %v13129_v3, %v1081_v38  ;;  %v13132_v3 = vld [vmem:[#allocation149_spill] sm:$0xff] }
 0x401   :  { %v5786_v36 = vadd.f32 1.0, %v7881_v30  ;;  %v3581_v31 = vmax.f32 %v3456_v27, 0.0  ;;  %7890 = vpow2.f32 %v6499_v59  ;;  %v7195_v48 = vpop.f32.mrf.mxu1  ;;  %v3204_v30 = vmul.f32 %v11739_v53, %v3032_v1 }
 0x402   :  { %v7883_v28 = vpop.eup %7882  ;;  %v4498_v35 = vmax.f32 %v4215_v5, 0.0  ;;  %v2572_v60 = vadd.f32 %v2447_v58, %v1765_v57  ;;  %v13130_v58 = vld [vmem:[#allocation144_spill] sm:$0xff] }
 0x403   :  { %6160 = vst.msk [vmem:[%s12760_s6 + $0x110] sm:$0xff] %vm6125_vm3, %v7883_v28  ;;  %7892 = vrcp.f32 %v5786_v36  ;;  %v3652_v61 = vpack.c.bf16 %v3581_v31, %v3580_v62  ;;  %v1082_v48 = vmul.f32 %v11759_v4, %v13130_v58  ;;  %v2574_v28 = vadd.f32 %v2449_v9, %v1773_v34  ;;  %v13134_v58 = vld [vmem:[#allocation148_spill] sm:$0xff] }
 0x404   :  { %v4586_v56 = vpack.c.bf16 %v4498_v35, %v4497_v24  ;;  %v3024_v46 = vpop.permute.xlu1 %3023  ;;  %v7885_v32 = vpop.eup %7884  ;;  %v1083_v34 = vmul.f32 %v11759_v4, %v13132_v3 }
 0x405   :  { %v3202_v23 = vmul.f32 %v11739_v53, %v3024_v46  ;;  %v4219_v42 = vpop.f32.mrf.mxu1  ;;  %7261 = vmatmul.mubr.msk.bf16.gmra.mxu1 %vm3699_vm2, %v3652_v61  ;;  %v5787_v33 = vadd.f32 1.0, %v7885_v32  ;;  %v3329_v32 = vadd.f32 %v3204_v30, %v2574_v28  ;;  %v1776_v50 = vadd.f32 %v13131_v40, %v1082_v48 }
 0x406   :  { %v7887_v21 = vpop.eup %7886  ;;  %v5033_v10 = vpop.f32.mrf.mxu0  ;;  %7453 = vmatmul.mubr.msk.bf16.gmra.mxu0 %vm3699_vm2, %v4586_v56  ;;  %7264 = vmatprep.mubr.msk.bf16.mxu1 %vm8412_vm0, %v12801_v2  ;;  %v4220_v14 = vadd.f32 %v11890_v39, %v4219_v42  ;;  %v1084_v48 = vmul.f32 %v11759_v4, %v13134_v58  ;;  %v2452_v28 = vmul.f32 %v11771_v20, %v12006_v51  ;;  %v13139_v58 = vld [vmem:[#allocation186_spill] sm:$0xff] }
 0x407   :  { %6161 = vst.msk [vmem:[%s12760_s6 + $0x118] sm:$0xff] %vm6125_vm3, %v7887_v21  ;;  %v3327_v7 = vadd.f32 %v3202_v23, %v2572_v60  ;;  %v5034_v15 = vadd.f32 %v11963_v41, %v5033_v10  ;;  %v7198_v26 = vpop.f32.mrf.mxu1  ;;  %7456 = vmatprep.mubr.msk.bf16.mxu0 %vm8412_vm0, %v12801_v2  ;;  %7894 = vrcp.f32 %v5787_v33 }
 0x408   :  { %v3028_v8 = vpop.permute.xlu1 %3027  ;;  %v7390_v11 = vpop.f32.mrf.mxu0  ;;  %v4499_v19 = vmax.f32 %v4220_v14, 0.0 }
 0x409   :  { %v6500_v47 = vmul.f32 -1.442695, %v5034_v15  ;;  %v3203_v54 = vmul.f32 %v11739_v53, %v3028_v8  ;;  %v4222_v12 = vpop.f32.mrf.mxu1  ;;  %v3457_v59 = vadd.f32 %v11813_v45, %v3327_v7  ;;  %v3459_v7 = vadd.f32 %v11813_v45, %v3329_v32  ;;  %v3048_v8 = vpop.permute.xlu0 %3047  ;;  %v13135_v32 = vld [vmem:[#allocation184_spill] sm:$0xff] }
 0x40a   :  { %v7889_v22 = vpop.eup %7888  ;;  %v4223_v44 = vadd.f32 %v11890_v39, %v4222_v12  ;;  %v5036_v55 = vpop.f32.mrf.mxu0 }
 0x40b   :  { %v5788_v27 = vadd.f32 1.0, %v7889_v22  ;;  %7896 = vpow2.f32 %v6500_v47  ;;  %v3328_v0 = vadd.f32 %v3203_v54, %v2573_v13  ;;  %v7199_v63 = vpop.f32.mrf.mxu1  ;;  %v5037_v62 = vadd.f32 %v11963_v41, %v5036_v55 }
 0x40c   :  { %v4500_v25 = vmax.f32 %v4223_v44, 0.0  ;;  %v7391_v5 = vpop.f32.mrf.mxu0  ;;  %v3582_v57 = vmax.f32 %v3457_v59, 0.0  ;;  %v3584_v9 = vmax.f32 %v3459_v7, 0.0 }
 0x40d   :  { %7898 = vrcp.f32 %v5788_v27  ;;  %v3458_v36 = vadd.f32 %v11813_v45, %v3328_v0  ;;  %v2281_v17 = vpop.permute.xlu1 %2280  ;;  %v6501_v35 = vmul.f32 -1.442695, %v5037_v62 }
 0x40e   :  { %v7891_v31 = vpop.eup %7890  ;;  %v4587_v24 = vpack.c.bf16 %v4500_v25, %v4499_v19  ;;  %v2450_v56 = vmul.f32 %v11771_v20, %v2281_v17  ;;  %v13133_v25 = vld [vmem:[#allocation183_spill] sm:$0xff] }
 0x40f   :  { %v5789_v49 = vadd.f32 1.0, %v7891_v31  ;;  %v3583_v61 = vmax.f32 %v3458_v36, 0.0  ;;  %7900 = vpow2.f32 %v6501_v35  ;;  %v1781_v62 = vadd.f32 %v13133_v25, %v1083_v34 }
 0x410   :  { %v7893_v46 = vpop.eup %7892  ;;  %v5041_v37 = vpop.f32.mrf.mxu0  ;;  %7457 = vmatmul.mubr.msk.bf16.gmra.mxu0 %vm3699_vm2, %v4587_v24  ;;  %v2575_v33 = vadd.f32 %v2450_v56, %v1776_v50  ;;  %v13136_v50 = vld [vmem:[#allocation153_spill] sm:$0xff] }
 0x411   :  { %6162 = vst.msk [vmem:[%s12760_s6 + $0x120] sm:$0xff] %vm6125_vm3, %v7893_v46  ;;  %7902 = vrcp.f32 %v5789_v49  ;;  %v3653_v60 = vpack.c.bf16 %v3583_v61, %v3582_v57  ;;  %v5042_v23 = vadd.f32 %v11963_v41, %v5041_v37  ;;  %7460 = vmatprep.mubr.msk.bf16.mxu0 %vm8412_vm0, %v12801_v2  ;;  %v2293_v24 = vpop.permute.xlu0 %2292  ;;  %v1784_v37 = vadd.f32 %v13135_v32, %v1084_v48 }
 0x412   :  { %v3036_v42 = vpop.permute.xlu1 %3035  ;;  %v7394_v21 = vpop.f32.mrf.mxu0 }
 0x413   :  { %v6502_v10 = vmul.f32 -1.442695, %v5042_v23  ;;  %v3205_v16 = vmul.f32 %v11739_v53, %v3036_v42  ;;  %v4227_v29 = vpop.f32.mrf.mxu1  ;;  %7265 = vmatmul.mubr.msk.bf16.gmra.mxu1 %vm3699_vm2, %v3653_v60  ;;  %v1085_v60 = vmul.f32 %v11759_v4, %v13136_v50  ;;  %v2453_v23 = vmul.f32 %v11771_v20, %v2293_v24 }
 0x414   :  { %v5044_v15 = vpop.f32.mrf.mxu0  ;;  %7268 = vmatprep.mubr.msk.bf16.mxu1 %vm8412_vm0, %v12801_v2  ;;  %v7895_v26 = vpop.eup %7894  ;;  %v4228_v11 = vadd.f32 %v11890_v39, %v4227_v29  ;;  %v12096_v29 = vld [vmem:[%s12758_s5 + $0x2] ss:$0 sm:$0xff] }
 0x415   :  { %7904 = vpow2.f32 %v6502_v10  ;;  %v3330_v52 = vadd.f32 %v3205_v16, %v2575_v33  ;;  %v5045_v38 = vadd.f32 %v11963_v41, %v5044_v15  ;;  %v7202_v14 = vpop.f32.mrf.mxu1  ;;  %6163 = vst.msk [vmem:[%s12760_s6 + $0x128] sm:$0xff] %vm6125_vm3, %v7895_v26  ;;  %v2577_v10 = vadd.f32 %v2452_v28, %v1784_v37 }
 0x416   :  { %v7395_v13 = vpop.f32.mrf.mxu0  ;;  %v4501_v30 = vmax.f32 %v4228_v11, 0.0 }
 0x417   :  { %v3460_v1 = vadd.f32 %v11813_v45, %v3330_v52  ;;  %v6503_v47 = vmul.f32 -1.442695, %v5045_v38  ;;  %v2285_v54 = vpop.permute.xlu1 %2284  ;;  %v4230_v12 = vpop.f32.mrf.mxu1  ;;  %v13137_v52 = vld [vmem:[#allocation185_spill] sm:$0xff] }
 0x418   :  { %v7897_v22 = vpop.eup %7896  ;;  %v4231_v44 = vadd.f32 %v11890_v39, %v4230_v12  ;;  %v2451_v59 = vmul.f32 %v11771_v20, %v2285_v54  ;;  %v1789_v4 = vadd.f32 %v13137_v52, %v1085_v60  ;;  %v3208_v20 = vmul.f32 %v12096_v29, %v3048_v8 }
 0x419   :  { %v5790_v55 = vadd.f32 1.0, %v7897_v22  ;;  %v3585_v27 = vmax.f32 %v3460_v1, 0.0  ;;  %7906 = vpow2.f32 %v6503_v47  ;;  %v7203_v0 = vpop.f32.mrf.mxu1 }
 0x41a   :  { %v7899_v63 = vpop.eup %7898  ;;  %v4502_v19 = vmax.f32 %v4231_v44, 0.0  ;;  %v2576_v35 = vadd.f32 %v2451_v59, %v1781_v62  ;;  %v2578_v54 = vadd.f32 %v2453_v23, %v1789_v4  ;;  %v12115_v62 = vld [vmem:[%s12758_s5 + $0x1] ss:$0 sm:$0xff] }
 0x41b   :  { %6164 = vst.msk [vmem:[%s12760_s6 + $0x130] sm:$0xff] %vm6125_vm3, %v7899_v63  ;;  %7908 = vrcp.f32 %v5790_v55  ;;  %v3654_v5 = vpack.c.bf16 %v3585_v27, %v3584_v9  ;;  %v12108_v55 = vld [vmem:[%s12758_s5] ss:$0 sm:$0xff]  ;;  %v13138_v27 = vld [vmem:[#allocation152_spill] sm:$0xff] }
 0x41c   :  { %v4588_v36 = vpack.c.bf16 %v4502_v19, %v4501_v30  ;;  %v3040_v17 = vpop.permute.xlu1 %3039  ;;  %v7901_v31 = vpop.eup %7900  ;;  %v1086_v59 = vmul.f32 %v12108_v55, %v13138_v27 }
 0x41d   :  { %v3206_v49 = vmul.f32 %v11739_v53, %v3040_v17  ;;  %v4235_v57 = vpop.f32.mrf.mxu1  ;;  %7269 = vmatmul.mubr.msk.bf16.gmra.mxu1 %vm3699_vm2, %v3654_v5  ;;  %v5791_v56 = vadd.f32 1.0, %v7901_v31  ;;  %v3333_v17 = vadd.f32 %v3208_v20, %v2578_v54 }
 0x41e   :  { %v7903_v61 = vpop.eup %7902  ;;  %v5049_v46 = vpop.f32.mrf.mxu0  ;;  %7461 = vmatmul.mubr.msk.bf16.gmra.mxu0 %vm3699_vm2, %v4588_v36  ;;  %7272 = vmatprep.mubr.msk.bf16.mxu1 %vm8412_vm0, %v12801_v2  ;;  %v4236_v42 = vadd.f32 %v11890_v39, %v4235_v57  ;;  %v1792_v48 = vadd.f32 %v13139_v58, %v1086_v59  ;;  %v13143_v58 = vld [vmem:[#allocation161_spill] sm:$0xff] }
 0x41f   :  { %6165 = vst.msk [vmem:[%s12760_s6 + $0x138] sm:$0xff] %vm6125_vm3, %v7903_v61  ;;  %v3331_v51 = vadd.f32 %v3206_v49, %v2576_v35  ;;  %v5050_v53 = vadd.f32 %v11963_v41, %v5049_v46  ;;  %v7206_v40 = vpop.f32.mrf.mxu1  ;;  %7464 = vmatprep.mubr.msk.bf16.mxu0 %vm8412_vm0, %v12801_v2  ;;  %7910 = vrcp.f32 %v5791_v56  ;;  %v3463_v32 = vadd.f32 %v11813_v45, %v3333_v17 }
 0x420   :  { %v3044_v21 = vpop.permute.xlu1 %3043  ;;  %v7398_v33 = vpop.f32.mrf.mxu0  ;;  %v4503_v12 = vmax.f32 %v4236_v42, 0.0 }
 0x421   :  { %v6504_v16 = vmul.f32 -1.442695, %v5050_v53  ;;  %v3207_v7 = vmul.f32 %v12096_v29, %v3044_v21  ;;  %v4238_v15 = vpop.f32.mrf.mxu1  ;;  %v3461_v13 = vadd.f32 %v11813_v45, %v3331_v51  ;;  %v2305_v53 = vpop.permute.xlu0 %2304  ;;  %v3588_v52 = vmax.f32 %v3463_v32, 0.0 }
 0x422   :  { %v7905_v26 = vpop.eup %7904  ;;  %v4239_v38 = vadd.f32 %v11890_v39, %v4238_v15  ;;  %v5052_v14 = vpop.f32.mrf.mxu0  ;;  %v13140_v15 = vld [vmem:[#allocation157_spill] sm:$0xff]  ;;  %v2456_v27 = vmul.f32 %v12115_v62, %v2305_v53 }
 0x423   :  { %v5792_v11 = vadd.f32 1.0, %v7905_v26  ;;  %7912 = vpow2.f32 %v6504_v16  ;;  %v3332_v1 = vadd.f32 %v3207_v7, %v2577_v10  ;;  %v7207_v47 = vpop.f32.mrf.mxu1  ;;  %v5053_v3 = vadd.f32 %v11963_v41, %v5052_v14 }
 0x424   :  { %v4504_v22 = vmax.f32 %v4239_v38, 0.0  ;;  %v7399_v34 = vpop.f32.mrf.mxu0  ;;  %v3586_v19 = vmax.f32 %v3461_v13, 0.0  ;;  %v1087_v26 = vmul.f32 %v12108_v55, %v13140_v15 }
 0x425   :  { %7914 = vrcp.f32 %v5792_v11  ;;  %v3462_v9 = vadd.f32 %v11813_v45, %v3332_v1  ;;  %v2297_v44 = vpop.permute.xlu1 %2296  ;;  %v6505_v63 = vmul.f32 -1.442695, %v5053_v3 }
 0x426   :  { %v7907_v8 = vpop.eup %7906  ;;  %v4589_v0 = vpack.c.bf16 %v4504_v22, %v4503_v12  ;;  %v2454_v5 = vmul.f32 %v12115_v62, %v2297_v44  ;;  %v2309_v12 = vpop.permute.xlu0 %2308  ;;  %v13142_v44 = vld [vmem:[#allocation156_spill] sm:$0xff] }
 0x427   :  { %v5793_v30 = vadd.f32 1.0, %v7907_v8  ;;  %v3587_v25 = vmax.f32 %v3462_v9, 0.0  ;;  %7916 = vpow2.f32 %v6505_v63  ;;  %v1088_v8 = vmul.f32 %v12108_v55, %v13142_v44 }
 0x428   :  { %v7909_v36 = vpop.eup %7908  ;;  %v5057_v31 = vpop.f32.mrf.mxu0  ;;  %7465 = vmatmul.mubr.msk.bf16.gmra.mxu0 %vm3699_vm2, %v4589_v0  ;;  %v2579_v57 = vadd.f32 %v2454_v5, %v1792_v48  ;;  %v1089_v48 = vmul.f32 %v12108_v55, %v13143_v58 }
 0x429   :  { %6166 = vst.msk [vmem:[%s12760_s6 + $0x140] sm:$0xff] %vm6125_vm3, %v7909_v36  ;;  %7918 = vrcp.f32 %v5793_v30  ;;  %v3655_v28 = vpack.c.bf16 %v3587_v25, %v3586_v19  ;;  %v5058_v24 = vadd.f32 %v11963_v41, %v5057_v31  ;;  %7468 = vmatprep.mubr.msk.bf16.mxu0 %vm8412_vm0, %v12801_v2  ;;  %v1800_v5 = vadd.f32 %v10154_v6, %v1088_v8 }
 0x42a   :  { %v3052_v35 = vpop.permute.xlu1 %3051  ;;  %v7402_v49 = vpop.f32.mrf.mxu0  ;;  %v1805_v32 = vadd.f32 %v10170_v43, %v1089_v48 }
 0x42b   :  { %v6506_v61 = vmul.f32 -1.442695, %v5058_v24  ;;  %v3209_v56 = vmul.f32 %v12096_v29, %v3052_v35  ;;  %v4243_v46 = vpop.f32.mrf.mxu1  ;;  %7273 = vmatmul.mubr.msk.bf16.gmra.mxu1 %vm3699_vm2, %v3655_v28  ;;  %v2581_v35 = vadd.f32 %v2456_v27, %v1800_v5  ;;  %v3064_v49 = vpop.permute.xlu0 %3063 }
 0x42c   :  { %v5060_v37 = vpop.f32.mrf.mxu0  ;;  %7276 = vmatprep.mubr.msk.bf16.mxu1 %vm8412_vm0, %v12801_v2  ;;  %v7911_v51 = vpop.eup %7910  ;;  %v4244_v23 = vadd.f32 %v11890_v39, %v4243_v46 }
 0x42d   :  { %7920 = vpow2.f32 %v6506_v61  ;;  %v3334_v40 = vadd.f32 %v3209_v56, %v2579_v57  ;;  %v5061_v50 = vadd.f32 %v11963_v41, %v5060_v37  ;;  %v7210_v60 = vpop.f32.mrf.mxu1  ;;  %6167 = vst.msk [vmem:[%s12760_s6 + $0x148] sm:$0xff] %vm6125_vm3, %v7911_v51  ;;  %v2457_v37 = vmul.f32 %v12115_v62, %v2309_v12 }
 0x42e   :  { %v7403_v42 = vpop.f32.mrf.mxu0  ;;  %v4505_v1 = vmax.f32 %v4244_v23, 0.0 }
 0x42f   :  { %v3464_v21 = vadd.f32 %v11813_v45, %v3334_v40  ;;  %v6507_v33 = vmul.f32 -1.442695, %v5061_v50  ;;  %v2301_v10 = vpop.permute.xlu1 %2300  ;;  %v4246_v16 = vpop.f32.mrf.mxu1  ;;  %v13141_v45 = vld [vmem:[#allocation188_spill] sm:$0xff]  ;;  %v12174_v50 = vld [vmem:[%s12758_s5 + $0x3] ss:$0 sm:$0xff] }
 0x430   :  { %v7913_v7 = vpop.eup %7912  ;;  %v4247_v4 = vadd.f32 %v11890_v39, %v4246_v16  ;;  %v2455_v14 = vmul.f32 %v12115_v62, %v2301_v10  ;;  %v1797_v54 = vadd.f32 %v13141_v45, %v1087_v26 }
 0x431   :  { %v5794_v20 = vadd.f32 1.0, %v7913_v7  ;;  %v3589_v38 = vmax.f32 %v3464_v21, 0.0  ;;  %7922 = vpow2.f32 %v6507_v33  ;;  %v7211_v11 = vpop.f32.mrf.mxu1  ;;  %v3212_v21 = vmul.f32 %v12096_v29, %v3064_v49 }
 0x432   :  { %v7915_v13 = vpop.eup %7914  ;;  %v4506_v47 = vmax.f32 %v4247_v4, 0.0  ;;  %v2580_v59 = vadd.f32 %v2455_v14, %v1797_v54 }
 0x433   :  { %6168 = vst.msk [vmem:[%s12760_s6 + $0x150] sm:$0xff] %vm6125_vm3, %v7915_v13  ;;  %7924 = vrcp.f32 %v5794_v20  ;;  %v3656_v22 = vpack.c.bf16 %v3589_v38, %v3588_v52  ;;  %v13144_v52 = vld [vmem:[#allocation160_spill] sm:$0xff]  ;;  %v2582_v20 = vadd.f32 %v2457_v37, %v1805_v32 }
 0x434   :  { %v4590_v3 = vpack.c.bf16 %v4506_v47, %v4505_v1  ;;  %v3056_v34 = vpop.permute.xlu1 %3055  ;;  %v7917_v9 = vpop.eup %7916  ;;  %v1090_v4 = vmul.f32 %v12108_v55, %v13144_v52 }
 0x435   :  { %v3210_v0 = vmul.f32 %v12096_v29, %v3056_v34  ;;  %v4251_v63 = vpop.f32.mrf.mxu1  ;;  %7277 = vmatmul.mubr.msk.bf16.gmra.mxu1 %vm3699_vm2, %v3656_v22  ;;  %v5795_v19 = vadd.f32 1.0, %v7917_v9  ;;  %v3337_v54 = vadd.f32 %v3212_v21, %v2582_v20  ;;  %v13145_v22 = vld [vmem:[#allocation189_spill] sm:$0xff] }
 0x436   :  { %v7919_v30 = vpop.eup %7918  ;;  %v5065_v25 = vpop.f32.mrf.mxu0  ;;  %7469 = vmatmul.mubr.msk.bf16.gmra.mxu0 %vm3699_vm2, %v4590_v3  ;;  %7280 = vmatprep.mubr.msk.bf16.mxu1 %vm8412_vm0, %v12801_v2  ;;  %v4252_v28 = vadd.f32 %v11890_v39, %v4251_v63  ;;  %v1808_v3 = vadd.f32 %v13145_v22, %v1090_v4 }
 0x437   :  { %6169 = vst.msk [vmem:[%s12760_s6 + $0x158] sm:$0xff] %vm6125_vm3, %v7919_v30  ;;  %v3335_v36 = vadd.f32 %v3210_v0, %v2580_v59  ;;  %v5066_v17 = vadd.f32 %v11963_v41, %v5065_v25  ;;  %v7214_v31 = vpop.f32.mrf.mxu1  ;;  %7472 = vmatprep.mubr.msk.bf16.mxu0 %vm8412_vm0, %v12801_v2  ;;  %7926 = vrcp.f32 %v5795_v19  ;;  %v3467_v30 = vadd.f32 %v12174_v50, %v3337_v54 }
 0x438   :  { %v3060_v24 = vpop.permute.xlu1 %3059  ;;  %v7406_v6 = vpop.f32.mrf.mxu0  ;;  %v4507_v33 = vmax.f32 %v4252_v28, 0.0 }
 0x439   :  { %v6508_v57 = vmul.f32 -1.442695, %v5066_v17  ;;  %v3211_v61 = vmul.f32 %v12096_v29, %v3060_v24  ;;  %v4254_v56 = vpop.f32.mrf.mxu1  ;;  %v3465_v60 = vadd.f32 %v12174_v50, %v3335_v36  ;;  %v2321_v31 = vpop.permute.xlu0 %2320 }
 0x43a   :  { %v7921_v46 = vpop.eup %7920  ;;  %v4255_v51 = vadd.f32 %v11890_v39, %v4254_v56  ;;  %v5068_v53 = vpop.f32.mrf.mxu0  ;;  %v3592_v56 = vmax.f32 %v3467_v30, 0.0 }
 0x43b   :  { %v5796_v40 = vadd.f32 1.0, %v7921_v46  ;;  %7928 = vpow2.f32 %v6508_v57  ;;  %v3336_v23 = vadd.f32 %v3211_v61, %v2581_v35  ;;  %v7215_v42 = vpop.f32.mrf.mxu1  ;;  %v5069_v10 = vadd.f32 %v11963_v41, %v5068_v53  ;;  %v13146_v57 = vld [vmem:[#allocation165_spill] sm:$0xff] }
 0x43c   :  { %v4508_v43 = vmax.f32 %v4255_v51, 0.0  ;;  %v7407_v16 = vpop.f32.mrf.mxu0  ;;  %v3590_v13 = vmax.f32 %v3465_v60, 0.0  ;;  %v1091_v61 = vmul.f32 %v12108_v55, %v13146_v57  ;;  %v13147_v42 = vld [vmem:[#allocation190_spill] sm:$0xff] }
 0x43d   :  { %7930 = vrcp.f32 %v5796_v40  ;;  %v3466_v7 = vadd.f32 %v12174_v50, %v3336_v23  ;;  %v2313_v15 = vpop.permute.xlu1 %2312  ;;  %v6509_v14 = vmul.f32 -1.442695, %v5069_v10 }
 0x43e   :  { %v7923_v26 = vpop.eup %7922  ;;  %v4591_v38 = vpack.c.bf16 %v4508_v43, %v4507_v33  ;;  %v2458_v47 = vmul.f32 %v12115_v62, %v2313_v15  ;;  %v1813_v21 = vadd.f32 %v13147_v42, %v1091_v61  ;;  %v2325_v43 = vpop.permute.xlu0 %2324 }
 0x43f   :  { %v5797_v11 = vadd.f32 1.0, %v7923_v26  ;;  %v3591_v1 = vmax.f32 %v3466_v7, 0.0  ;;  %7932 = vpow2.f32 %v6509_v14  ;;  %v13148_v7 = vld [vmem:[#allocation164_spill] sm:$0xff]  ;;  %v2460_v26 = vmul.f32 %v12115_v62, %v2321_v31 }
 0x440   :  { %v7925_v45 = vpop.eup %7924  ;;  %v5073_v12 = vpop.f32.mrf.mxu0  ;;  %7473 = vmatmul.mubr.msk.bf16.gmra.mxu0 %vm3699_vm2, %v4591_v38  ;;  %v2583_v27 = vadd.f32 %v2458_v47, %v1808_v3  ;;  %v1092_v15 = vmul.f32 %v12108_v55, %v13148_v7  ;;  %v2461_v30 = vmul.f32 %v12115_v62, %v2325_v43 }
 0x441   :  { %6170 = vst.msk [vmem:[%s12760_s6 + $0x160] sm:$0xff] %vm6125_vm3, %v7925_v45  ;;  %7934 = vrcp.f32 %v5797_v11  ;;  %v3657_v34 = vpack.c.bf16 %v3591_v1, %v3590_v13  ;;  %v5074_v9 = vadd.f32 %v11963_v41, %v5073_v12  ;;  %7476 = vmatprep.mubr.msk.bf16.mxu0 %vm8412_vm0, %v12801_v2  ;;  %v13149_v13 = vld [vmem:[#allocation191_spill] sm:$0xff]  ;;  %v12232_v12 = vld [vmem:[%s12758_s5 + $0x4] ss:$0 sm:$0xff] }
 0x442   :  { %v3068_v44 = vpop.permute.xlu1 %3067  ;;  %v7410_v8 = vpop.f32.mrf.mxu0  ;;  %v1816_v1 = vadd.f32 %v13149_v13, %v1092_v15 }
 0x443   :  { %v6510_v59 = vmul.f32 -1.442695, %v5074_v9  ;;  %v3213_v0 = vmul.f32 %v12096_v29, %v3068_v44  ;;  %v4259_v63 = vpop.f32.mrf.mxu1  ;;  %7281 = vmatmul.mubr.msk.bf16.gmra.mxu1 %vm3699_vm2, %v3657_v34 }
 0x444   :  { %v5076_v19 = vpop.f32.mrf.mxu0  ;;  %7284 = vmatprep.mubr.msk.bf16.mxu1 %vm8412_vm0, %v12801_v2  ;;  %v7927_v25 = vpop.eup %7926  ;;  %v4260_v58 = vadd.f32 %v11890_v39, %v4259_v63  ;;  %v2585_v9 = vadd.f32 %v2460_v26, %v1816_v1 }
 0x445   :  { %7936 = vpow2.f32 %v6510_v59  ;;  %v3338_v5 = vadd.f32 %v3213_v0, %v2583_v27  ;;  %v5077_v36 = vadd.f32 %v11963_v41, %v5076_v19  ;;  %v7218_v17 = vpop.f32.mrf.mxu1  ;;  %6171 = vst.msk [vmem:[%s12760_s6 + $0x168] sm:$0xff] %vm6125_vm3, %v7927_v25  ;;  %v13150_v0 = vld [vmem:[#allocation169_spill] sm:$0xff]  ;;  %v3080_v19 = vpop.permute.xlu0 %3079 }
 0x446   :  { %v7411_v48 = vpop.f32.mrf.mxu0  ;;  %v4509_v60 = vmax.f32 %v4260_v58, 0.0  ;;  %v1093_v63 = vmul.f32 %v12108_v55, %v13150_v0  ;;  %v3216_v57 = vmul.f32 %v12096_v29, %v3080_v19 }
 0x447   :  { %v3468_v28 = vadd.f32 %v12174_v50, %v3338_v5  ;;  %v6511_v24 = vmul.f32 -1.442695, %v5077_v36  ;;  %v2317_v6 = vpop.permute.xlu1 %2316  ;;  %v4262_v35 = vpop.f32.mrf.mxu1  ;;  %v13151_v48 = vld [vmem:[#allocation192_spill] sm:$0xff] }
 0x448   :  { %v7929_v49 = vpop.eup %7928  ;;  %v4263_v46 = vadd.f32 %v11890_v39, %v4262_v35  ;;  %v2459_v51 = vmul.f32 %v12115_v62, %v2317_v6 }
 0x449   :  { %v5798_v32 = vadd.f32 1.0, %v7929_v49  ;;  %v3593_v37 = vmax.f32 %v3468_v28, 0.0  ;;  %7938 = vpow2.f32 %v6511_v24  ;;  %v7219_v53 = vpop.f32.mrf.mxu1  ;;  %v1821_v28 = vadd.f32 %v13151_v48, %v1093_v63 }
 0x44a   :  { %v7931_v40 = vpop.eup %7930  ;;  %v4510_v23 = vmax.f32 %v4263_v46, 0.0  ;;  %v2584_v52 = vadd.f32 %v2459_v51, %v1813_v21 }
 0x44b   :  { %6172 = vst.msk [vmem:[%s12760_s6 + $0x170] sm:$0xff] %vm6125_vm3, %v7931_v40  ;;  %7940 = vrcp.f32 %v5798_v32  ;;  %v3658_v33 = vpack.c.bf16 %v3593_v37, %v3592_v56  ;;  %v13152_v32 = vld [vmem:[#allocation168_spill] sm:$0xff]  ;;  %v2586_v51 = vadd.f32 %v2461_v30, %v1821_v28 }
 0x44c   :  { %v4592_v39 = vpack.c.bf16 %v4510_v23, %v4509_v60  ;;  %v3072_v10 = vpop.permute.xlu1 %3071  ;;  %v7933_v16 = vpop.eup %7932  ;;  %v1094_v37 = vmul.f32 %v12108_v55, %v13152_v32 }
 0x44d   :  { %v3214_v4 = vmul.f32 %v12096_v29, %v3072_v10  ;;  %v4267_v20 = vpop.f32.mrf.mxu1  ;;  %7285 = vmatmul.mubr.msk.bf16.gmra.mxu1 %vm3699_vm2, %v3658_v33  ;;  %v5799_v14 = vadd.f32 1.0, %v7933_v16  ;;  %v3341_v10 = vadd.f32 %v3216_v57, %v2586_v51 }
 0x44e   :  { %v7935_v38 = vpop.eup %7934  ;;  %v5081_v11 = vpop.f32.mrf.mxu0  ;;  %7477 = vmatmul.mubr.msk.bf16.gmra.mxu0 %vm3699_vm2, %v4592_v39  ;;  %7288 = vmatprep.mubr.msk.bf16.mxu1 %vm8412_vm0, %v12801_v2  ;;  %v4268_v22 = vadd.f32 %v12232_v12, %v4267_v20  ;;  %v1824_v43 = vadd.f32 %v10240_v18, %v1094_v37 }
 0x44f   :  { %6173 = vst.msk [vmem:[%s12760_s6 + $0x178] sm:$0xff] %vm6125_vm3, %v7935_v38  ;;  %v3339_v47 = vadd.f32 %v3214_v4, %v2584_v52  ;;  %v5082_v45 = vadd.f32 %v11963_v41, %v5081_v11  ;;  %v7222_v54 = vpop.f32.mrf.mxu1  ;;  %7480 = vmatprep.mubr.msk.bf16.mxu0 %vm8412_vm0, %v12801_v2  ;;  %7942 = vrcp.f32 %v5799_v14  ;;  %v3471_v11 = vadd.f32 %v12174_v50, %v3341_v10 }
 0x450   :  { %v3076_v3 = vpop.permute.xlu1 %3075  ;;  %v7414_v34 = vpop.f32.mrf.mxu0  ;;  %v4511_v24 = vmax.f32 %v4268_v22, 0.0 }
 0x451   :  { %v6512_v44 = vmul.f32 -1.442695, %v5082_v45  ;;  %v3215_v8 = vmul.f32 %v12096_v29, %v3076_v3  ;;  %v4270_v27 = vpop.f32.mrf.mxu1  ;;  %v3469_v17 = vadd.f32 %v12174_v50, %v3339_v47  ;;  %v13153_v45 = vld [vmem:[#allocation172_spill] sm:$0xff]  ;;  %v3088_v22 = vpop.permute.xlu0 %3087  ;;  %v3596_v30 = vmax.f32 %v3471_v11, 0.0 }
 0x452   :  { %v7937_v59 = vpop.eup %7936  ;;  %v4271_v25 = vadd.f32 %v12232_v12, %v4270_v27  ;;  %v5084_v5 = vpop.f32.mrf.mxu0  ;;  %v1095_v54 = vmul.f32 %v12108_v55, %v13153_v45 }
 0x453   :  { %v5800_v36 = vadd.f32 1.0, %v7937_v59  ;;  %7944 = vpow2.f32 %v6512_v44  ;;  %v3340_v31 = vadd.f32 %v3215_v8, %v2585_v9  ;;  %v7223_v58 = vpop.f32.mrf.mxu1  ;;  %v5085_v35 = vadd.f32 %v11963_v41, %v5084_v5 }
 0x454   :  { %v4512_v6 = vmax.f32 %v4271_v25, 0.0  ;;  %v7415_v49 = vpop.f32.mrf.mxu0  ;;  %v3594_v23 = vmax.f32 %v3469_v17, 0.0  ;;  %v3218_v17 = vmul.f32 %v12096_v29, %v3088_v22 }
 0x455   :  { %7946 = vrcp.f32 %v5800_v36  ;;  %v3470_v61 = vadd.f32 %v12174_v50, %v3340_v31  ;;  %v2329_v56 = vpop.permute.xlu1 %2328  ;;  %v6513_v40 = vmul.f32 -1.442695, %v5085_v35 }
 0x456   :  { %v7939_v46 = vpop.eup %7938  ;;  %v4593_v53 = vpack.c.bf16 %v4512_v6, %v4511_v24  ;;  %v2462_v21 = vmul.f32 %v12115_v62, %v2329_v56  ;;  %v12291_v56 = vld [vmem:[%s12758_s5 + $0x5] ss:$0 sm:$0xff] }
 0x457   :  { %v5801_v60 = vadd.f32 1.0, %v7939_v46  ;;  %v3595_v42 = vmax.f32 %v3470_v61, 0.0  ;;  %7948 = vpow2.f32 %v6513_v40 }
 0x458   :  { %v7941_v33 = vpop.eup %7940  ;;  %v5089_v39 = vpop.f32.mrf.mxu0  ;;  %7481 = vmatmul.mubr.msk.bf16.gmra.mxu0 %vm3699_vm2, %v4593_v53  ;;  %v2587_v18 = vadd.f32 %v2462_v21, %v1824_v43 }
 0x459   :  { %6174 = vst.msk [vmem:[%s12760_s6 + $0x180] sm:$0xff] %vm6125_vm3, %v7941_v33  ;;  %7950 = vrcp.f32 %v5801_v60  ;;  %v3659_v16 = vpack.c.bf16 %v3595_v42, %v3594_v23  ;;  %v5090_v7 = vadd.f32 %v11963_v41, %v5089_v39  ;;  %7484 = vmatprep.mubr.msk.bf16.mxu0 %vm8412_vm0, %v12801_v2 }
 0x45a   :  { %v3084_v15 = vpop.permute.xlu1 %3083  ;;  %v7418_v26 = vpop.f32.mrf.mxu0 }
 0x45b   :  { %v6514_v52 = vmul.f32 -1.442695, %v5090_v7  ;;  %v3217_v4 = vmul.f32 %v12096_v29, %v3084_v15  ;;  %v4275_v20 = vpop.f32.mrf.mxu1  ;;  %7289 = vmatmul.mubr.msk.bf16.gmra.mxu1 %vm3699_vm2, %v3659_v16 }
 0x45c   :  { %v5092_v38 = vpop.f32.mrf.mxu0  ;;  %7292 = vmatprep.mubr.msk.bf16.mxu1 %vm8412_vm0, %v12801_v2  ;;  %v7943_v14 = vpop.eup %7942  ;;  %v4276_v3 = vadd.f32 %v12232_v12, %v4275_v20 }
 0x45d   :  { %7952 = vpow2.f32 %v6514_v52  ;;  %v3342_v13 = vadd.f32 %v3217_v4, %v2587_v18  ;;  %v5093_v1 = vadd.f32 %v11963_v41, %v5092_v38  ;;  %v7226_v47 = vpop.f32.mrf.mxu1  ;;  %6175 = vst.msk [vmem:[%s12760_s6 + $0x188] sm:$0xff] %vm6125_vm3, %v7943_v14  ;;  %v13154_v41 = vld [vmem:[#allocation193_spill] sm:$0xff] }
 0x45e   :  { %v7419_v34 = vpop.f32.mrf.mxu0  ;;  %v1829_v0 = vadd.f32 %v13154_v41, %v1095_v54  ;;  %v4513_v31 = vmax.f32 %v4276_v3, 0.0 }
 0x45f   :  { %v3472_v9 = vadd.f32 %v12174_v50, %v3342_v13  ;;  %v6515_v44 = vmul.f32 -1.442695, %v5093_v1  ;;  %v2333_v8 = vpop.permute.xlu1 %2332  ;;  %v4278_v27 = vpop.f32.mrf.mxu1 }
 0x460   :  { %v7945_v59 = vpop.eup %7944  ;;  %v2463_v63 = vmul.f32 %v12115_v62, %v2333_v8  ;;  %v4279_v55 = vadd.f32 %v12232_v12, %v4278_v27 }
 0x461   :  { %v5802_v19 = vadd.f32 1.0, %v7945_v59  ;;  %v3597_v25 = vmax.f32 %v3472_v9, 0.0  ;;  %7954 = vpow2.f32 %v6515_v44  ;;  %v7227_v5 = vpop.f32.mrf.mxu1 }
 0x462   :  { %v7947_v36 = vpop.eup %7946  ;;  %v2588_v58 = vadd.f32 %v2463_v63, %v1829_v0  ;;  %v4514_v48 = vmax.f32 %v4279_v55, 0.0 }
 0x463   :  { %6176 = vst.msk [vmem:[%s12760_s6 + $0x190] sm:$0xff] %vm6125_vm3, %v7947_v36  ;;  %7956 = vrcp.f32 %v5802_v19  ;;  %v3660_v62 = vpack.c.bf16 %v3597_v25, %v3596_v30 }
 0x464   :  { %v3343_v28 = vadd.f32 %v3218_v17, %v2588_v58  ;;  %v4594_v24 = vpack.c.bf16 %v4514_v48, %v4513_v31  ;;  %v7949_v6 = vpop.eup %7948 }
 0x465   :  { %v4283_v35 = vpop.f32.mrf.mxu1  ;;  %7293 = vmatmul.mubr.msk.bf16.gmra.mxu1 %vm3699_vm2, %v3660_v62  ;;  %v5803_v57 = vadd.f32 1.0, %v7949_v6 }
 0x466   :  { %v7951_v49 = vpop.eup %7950  ;;  %v3473_v29 = vadd.f32 %v12174_v50, %v3343_v28  ;;  %v5097_v61 = vpop.f32.mrf.mxu0  ;;  %7485 = vmatmul.mubr.msk.bf16.gmra.mxu0 %vm3699_vm2, %v4594_v24  ;;  %7296 = vmatprep.mubr.msk.bf16.mxu1 %vm8412_vm0, %v12801_v2  ;;  %v4284_v37 = vadd.f32 %v12232_v12, %v4283_v35 }
 0x467   :  { %6177 = vst.msk [vmem:[%s12760_s6 + $0x198] sm:$0xff] %vm6125_vm3, %v7951_v49  ;;  %v5098_v46 = vadd.f32 %v12291_v56, %v5097_v61  ;;  %v7230_v32 = vpop.f32.mrf.mxu1  ;;  %7488 = vmatprep.mubr.msk.bf16.mxu0 %vm8412_vm0, %v12801_v2  ;;  %7958 = vrcp.f32 %v5803_v57 }
 0x468   :  { %v3598_v50 = vmax.f32 %v3473_v29, 0.0  ;;  %v7422_v51 = vpop.f32.mrf.mxu0  ;;  %v4515_v10 = vmax.f32 %v4284_v37, 0.0 }
 0x469   :  { %v6516_v53 = vmul.f32 -1.442695, %v5098_v46  ;;  %v4286_v40 = vpop.f32.mrf.mxu1 }
 0x46a   :  { %v7953_v60 = vpop.eup %7952  ;;  %v3661_v23 = vpack.c.bf16 %v3598_v50, %v3598_v50  ;;  %v4287_v42 = vadd.f32 %v12232_v12, %v4286_v40  ;;  %v5100_v21 = vpop.f32.mrf.mxu0 }
 0x46b   :  { %v5804_v33 = vadd.f32 1.0, %v7953_v60  ;;  %7960 = vpow2.f32 %v6516_v53  ;;  %v5101_v43 = vadd.f32 %v12291_v56, %v5100_v21  ;;  %v7231_v39 = vpop.f32.mrf.mxu1 }
 0x46c   :  { %v4516_v16 = vmax.f32 %v4287_v42, 0.0  ;;  %v7423_v7 = vpop.f32.mrf.mxu0 }
 0x46d   :  { %7962 = vrcp.f32 %v5804_v33  ;;  %v6517_v15 = vmul.f32 -1.442695, %v5101_v43  ;;  %7297 = vmatmul.mubr.msk.bf16.gmra.mxu1 %vm3699_vm2, %v3661_v23 }
 0x46e   :  { %v7955_v26 = vpop.eup %7954  ;;  %v4595_v18 = vpack.c.bf16 %v4516_v16, %v4515_v10 }
 0x46f   :  { %v5805_v52 = vadd.f32 1.0, %v7955_v26  ;;  %7964 = vpow2.f32 %v6517_v15 }
 0x470   :  { %v7957_v4 = vpop.eup %7956  ;;  %v5105_v20 = vpop.f32.mrf.mxu0  ;;  %7489 = vmatmul.mubr.msk.bf16.gmra.mxu0 %vm3699_vm2, %v4595_v18 }
 0x471   :  { %6178 = vst.msk [vmem:[%s12760_s6 + $0x1a0] sm:$0xff] %vm6125_vm3, %v7957_v4  ;;  %7966 = vrcp.f32 %v5805_v52  ;;  %v5106_v38 = vadd.f32 %v12291_v56, %v5105_v20  ;;  %7492 = vmatprep.mubr.msk.bf16.mxu0 %vm8412_vm0, %v12801_v2 }
 0x472   :  { %v7426_v14 = vpop.f32.mrf.mxu0 }
 0x473   :  { %v6518_v11 = vmul.f32 -1.442695, %v5106_v38  ;;  %v4291_v13 = vpop.f32.mrf.mxu1 }
 0x474   :  { %v5108_v1 = vpop.f32.mrf.mxu0  ;;  %v7959_v47 = vpop.eup %7958  ;;  %v4292_v22 = vadd.f32 %v12232_v12, %v4291_v13 }
 0x475   :  { %7968 = vpow2.f32 %v6518_v11  ;;  %v5109_v45 = vadd.f32 %v12291_v56, %v5108_v1  ;;  %v7234_v54 = vpop.f32.mrf.mxu1  ;;  %6179 = vst.msk [vmem:[%s12760_s6 + $0x1a8] sm:$0xff] %vm6125_vm3, %v7959_v47 }
 0x476   :  { %v7427_v3 = vpop.f32.mrf.mxu0  ;;  %v4517_v0 = vmax.f32 %v4292_v22, 0.0 }
 0x477   :  { %v6519_v34 = vmul.f32 -1.442695, %v5109_v45  ;;  %v4294_v9 = vpop.f32.mrf.mxu1 }
 0x478   :  { %v7961_v44 = vpop.eup %7960  ;;  %v4295_v8 = vadd.f32 %v12232_v12, %v4294_v9 }
 0x479   :  { %v5806_v27 = vadd.f32 1.0, %v7961_v44  ;;  %7970 = vpow2.f32 %v6519_v34  ;;  %v7235_v59 = vpop.f32.mrf.mxu1 }
 0x47a   :  { %v7963_v41 = vpop.eup %7962  ;;  %v4518_v63 = vmax.f32 %v4295_v8, 0.0 }
 0x47b   :  { %6180 = vst.msk [vmem:[%s12760_s6 + $0x1b0] sm:$0xff] %vm6125_vm3, %v7963_v41  ;;  %7972 = vrcp.f32 %v5806_v27 }
 0x47c   :  { %v7965_v55 = vpop.eup %7964  ;;  %v4596_v30 = vpack.c.bf16 %v4518_v63, %v4517_v0 }
 0x47d   :  { %v5807_v19 = vadd.f32 1.0, %v7965_v55  ;;  %v4299_v25 = vpop.f32.mrf.mxu1 }
 0x47e   :  { %v7967_v5 = vpop.eup %7966  ;;  %v5113_v36 = vpop.f32.mrf.mxu0  ;;  %7493 = vmatmul.mubr.msk.bf16.gmra.mxu0 %vm3699_vm2, %v4596_v30  ;;  %v4300_v58 = vadd.f32 %v12232_v12, %v4299_v25 }
 0x47f   :  { %6181 = vst.msk [vmem:[%s12760_s6 + $0x1b8] sm:$0xff] %vm6125_vm3, %v7967_v5  ;;  %7974 = vrcp.f32 %v5807_v19  ;;  %v5114_v17 = vadd.f32 %v12291_v56, %v5113_v36  ;;  %v7238_v31 = vpop.f32.mrf.mxu1  ;;  %7496 = vmatprep.mubr.msk.bf16.mxu0 %vm8412_vm0, %v12801_v2 }
 0x480   :  { %v7430_v48 = vpop.f32.mrf.mxu0  ;;  %v4519_v61 = vmax.f32 %v4300_v58, 0.0 }
 0x481   :  { %v6520_v62 = vmul.f32 -1.442695, %v5114_v17  ;;  %v4302_v28 = vpop.f32.mrf.mxu1 }
 0x482   :  { %v7969_v24 = vpop.eup %7968  ;;  %v4303_v6 = vadd.f32 %v12232_v12, %v4302_v28  ;;  %v5116_v35 = vpop.f32.mrf.mxu0 }
 0x483   :  { %v5808_v49 = vadd.f32 1.0, %v7969_v24  ;;  %7976 = vpow2.f32 %v6520_v62  ;;  %v5117_v57 = vadd.f32 %v12291_v56, %v5116_v35  ;;  %v7239_v29 = vpop.f32.mrf.mxu1 }
 0x484   :  { %v4520_v46 = vmax.f32 %v4303_v6, 0.0  ;;  %v7431_v32 = vpop.f32.mrf.mxu0 }
 0x485   :  { %7978 = vrcp.f32 %v5808_v49  ;;  %v6521_v50 = vmul.f32 -1.442695, %v5117_v57 }
 0x486   :  { %v7971_v37 = vpop.eup %7970  ;;  %v4597_v51 = vpack.c.bf16 %v4520_v46, %v4519_v61 }
 0x487   :  { %v5809_v53 = vadd.f32 1.0, %v7971_v37  ;;  %7980 = vpow2.f32 %v6521_v50 }
 0x488   :  { %v7973_v40 = vpop.eup %7972  ;;  %v5121_v60 = vpop.f32.mrf.mxu0  ;;  %7497 = vmatmul.mubr.msk.bf16.gmra.mxu0 %vm3699_vm2, %v4597_v51 }
 0x489   :  { %6182 = vst.msk [vmem:[%s12760_s6 + $0x1c0] sm:$0xff] %vm6125_vm3, %v7973_v40  ;;  %7982 = vrcp.f32 %v5809_v53  ;;  %v5122_v23 = vadd.f32 %v12291_v56, %v5121_v60  ;;  %7500 = vmatprep.mubr.msk.bf16.mxu0 %vm8412_vm0, %v12801_v2 }
 0x48a   :  { %v7434_v42 = vpop.f32.mrf.mxu0 }
 0x48b   :  { %v6522_v21 = vmul.f32 -1.442695, %v5122_v23  ;;  %v4307_v33 = vpop.f32.mrf.mxu1 }
 0x48c   :  { %v7975_v43 = vpop.eup %7974  ;;  %v5124_v39 = vpop.f32.mrf.mxu0  ;;  %v4308_v7 = vadd.f32 %v12232_v12, %v4307_v33 }
 0x48d   :  { %6183 = vst.msk [vmem:[%s12760_s6 + $0x1c8] sm:$0xff] %vm6125_vm3, %v7975_v43  ;;  %7984 = vpow2.f32 %v6522_v21  ;;  %v5125_v10 = vadd.f32 %v12291_v56, %v5124_v39  ;;  %v7242_v16 = vpop.f32.mrf.mxu1 }
 0x48e   :  { %v7435_v15 = vpop.f32.mrf.mxu0  ;;  %v4521_v11 = vmax.f32 %v4308_v7, 0.0 }
 0x48f   :  { %v6523_v26 = vmul.f32 -1.442695, %v5125_v10  ;;  %v4310_v18 = vpop.f32.mrf.mxu1 }
 0x490   :  { %v7977_v52 = vpop.eup %7976  ;;  %v4311_v4 = vadd.f32 %v12232_v12, %v4310_v18 }
 0x491   :  { %v5810_v20 = vadd.f32 1.0, %v7977_v52  ;;  %7986 = vpow2.f32 %v6523_v26  ;;  %v7243_v38 = vpop.f32.mrf.mxu1 }
 0x492   :  { %v7979_v14 = vpop.eup %7978  ;;  %v4522_v13 = vmax.f32 %v4311_v4, 0.0 }
 0x493   :  { %6184 = vst.msk [vmem:[%s12760_s6 + $0x1d0] sm:$0xff] %vm6125_vm3, %v7979_v14  ;;  %7988 = vrcp.f32 %v5810_v20 }
 0x494   :  { %v7981_v1 = vpop.eup %7980  ;;  %v4598_v47 = vpack.c.bf16 %v4522_v13, %v4521_v11 }
 0x495   :  { %v5811_v45 = vadd.f32 1.0, %v7981_v1  ;;  %v4315_v54 = vpop.f32.mrf.mxu1 }
 0x496   :  { %v7983_v22 = vpop.eup %7982  ;;  %v5129_v3 = vpop.f32.mrf.mxu0  ;;  %7501 = vmatmul.mubr.msk.bf16.gmra.mxu0 %vm3699_vm2, %v4598_v47  ;;  %v4316_v44 = vadd.f32 %v12232_v12, %v4315_v54 }
 0x497   :  { %6185 = vst.msk [vmem:[%s12760_s6 + $0x1d8] sm:$0xff] %vm6125_vm3, %v7983_v22  ;;  %7990 = vrcp.f32 %v5811_v45  ;;  %v5130_v34 = vadd.f32 %v12291_v56, %v5129_v3  ;;  %v7246_v9 = vpop.f32.mrf.mxu1  ;;  %7504 = vmatprep.mubr.msk.bf16.mxu0 %vm8412_vm0, %v12801_v2 }
 0x498   :  { %v7438_v8 = vpop.f32.mrf.mxu0  ;;  %v4523_v25 = vmax.f32 %v4316_v44, 0.0 }
 0x499   :  { %v6524_v27 = vmul.f32 -1.442695, %v5130_v34  ;;  %v4318_v59 = vpop.f32.mrf.mxu1 }
 0x49a   :  { %v7985_v41 = vpop.eup %7984  ;;  %v4319_v0 = vadd.f32 %v12232_v12, %v4318_v59  ;;  %v5132_v63 = vpop.f32.mrf.mxu0 }
 0x49b   :  { %v5812_v55 = vadd.f32 1.0, %v7985_v41  ;;  %7992 = vpow2.f32 %v6524_v27  ;;  %v5133_v30 = vadd.f32 %v12291_v56, %v5132_v63  ;;  %v7247_v19 = vpop.f32.mrf.mxu1 }
 0x49c   :  { %v4524_v5 = vmax.f32 %v4319_v0, 0.0  ;;  %v7439_v36 = vpop.f32.mrf.mxu0 }
 0x49d   :  { %7994 = vrcp.f32 %v5812_v55  ;;  %v6525_v17 = vmul.f32 -1.442695, %v5133_v30 }
 0x49e   :  { %v7987_v31 = vpop.eup %7986  ;;  %v4599_v58 = vpack.c.bf16 %v4524_v5, %v4523_v25 }
 0x49f   :  { %v5813_v48 = vadd.f32 1.0, %v7987_v31  ;;  %7996 = vpow2.f32 %v6525_v17 }
 0x4a0   :  { %v7989_v62 = vpop.eup %7988  ;;  %v5137_v28 = vpop.f32.mrf.mxu0  ;;  %7505 = vmatmul.mubr.msk.bf16.gmra.mxu0 %vm3699_vm2, %v4599_v58 }
 0x4a1   :  { %6186 = vst.msk [vmem:[%s12760_s6 + $0x1e0] sm:$0xff] %vm6125_vm3, %v7989_v62  ;;  %7998 = vrcp.f32 %v5813_v48  ;;  %v5138_v24 = vadd.f32 %v12291_v56, %v5137_v28  ;;  %7508 = vmatprep.mubr.msk.bf16.mxu0 %vm8412_vm0, %v12801_v2 }
 0x4a2   :  { %v7442_v6 = vpop.f32.mrf.mxu0 }
 0x4a3   :  { %v6526_v35 = vmul.f32 -1.442695, %v5138_v24  ;;  %v4323_v49 = vpop.f32.mrf.mxu1 }
 0x4a4   :  { %v7991_v57 = vpop.eup %7990  ;;  %v5140_v29 = vpop.f32.mrf.mxu0  ;;  %v4324_v32 = vadd.f32 %v12232_v12, %v4323_v49 }
 0x4a5   :  { %6187 = vst.msk [vmem:[%s12760_s6 + $0x1e8] sm:$0xff] %vm6125_vm3, %v7991_v57  ;;  %8000 = vpow2.f32 %v6526_v35  ;;  %v5141_v61 = vadd.f32 %v12291_v56, %v5140_v29  ;;  %v7250_v46 = vpop.f32.mrf.mxu1 }
 0x4a6   :  { %v7443_v50 = vpop.f32.mrf.mxu0  ;;  %v4525_v21 = vmax.f32 %v4324_v32, 0.0 }
 0x4a7   :  { %v6527_v37 = vmul.f32 -1.442695, %v5141_v61  ;;  %v4326_v51 = vpop.f32.mrf.mxu1 }
 0x4a8   :  { %v7993_v53 = vpop.eup %7992  ;;  %v4327_v40 = vadd.f32 %v12232_v12, %v4326_v51 }
 0x4a9   :  { %v5814_v60 = vadd.f32 1.0, %v7993_v53  ;;  %8002 = vpow2.f32 %v6527_v37  ;;  %v7251_v23 = vpop.f32.mrf.mxu1 }
 0x4aa   :  { %v7995_v42 = vpop.eup %7994  ;;  %v4526_v33 = vmax.f32 %v4327_v40, 0.0 }
 0x4ab   :  { %6188 = vst.msk [vmem:[%s12760_s6 + $0x1f0] sm:$0xff] %vm6125_vm3, %v7995_v42  ;;  %8004 = vrcp.f32 %v5814_v60 }
 0x4ac   :  { %v7997_v43 = vpop.eup %7996  ;;  %v4600_v39 = vpack.c.bf16 %v4526_v33, %v4525_v21 }
 0x4ad   :  { %v5815_v10 = vadd.f32 1.0, %v7997_v43  ;;  %v4331_v16 = vpop.f32.mrf.mxu1 }
 0x4ae   :  { %v7999_v7 = vpop.eup %7998  ;;  %v5145_v15 = vpop.f32.mrf.mxu0  ;;  %7509 = vmatmul.mubr.msk.bf16.gmra.mxu0 %vm3699_vm2, %v4600_v39  ;;  %v4332_v52 = vadd.f32 %v12232_v12, %v4331_v16 }
 0x4af   :  { %6189 = vst.msk [vmem:[%s12760_s6 + $0x1f8] sm:$0xff] %vm6125_vm3, %v7999_v7  ;;  %8006 = vrcp.f32 %v5815_v10  ;;  %v5146_v26 = vadd.f32 %v12291_v56, %v5145_v15  ;;  %v7254_v18 = vpop.f32.mrf.mxu1  ;;  %7512 = vmatprep.mubr.msk.bf16.mxu0 %vm8412_vm0, %v12801_v2 }
 0x4b0   :  { %v7446_v4 = vpop.f32.mrf.mxu0  ;;  %v4527_v54 = vmax.f32 %v4332_v52, 0.0 }
 0x4b1   :  { %v6528_v20 = vmul.f32 -1.442695, %v5146_v26  ;;  %v4334_v38 = vpop.f32.mrf.mxu1 }
 0x4b2   :  { %v8001_v14 = vpop.eup %8000  ;;  %v4335_v11 = vadd.f32 %v12232_v12, %v4334_v38  ;;  %v5148_v13 = vpop.f32.mrf.mxu0 }
 0x4b3   :  { %v5816_v1 = vadd.f32 1.0, %v8001_v14  ;;  %8008 = vpow2.f32 %v6528_v20  ;;  %v5149_v47 = vadd.f32 %v12291_v56, %v5148_v13  ;;  %v7255_v45 = vpop.f32.mrf.mxu1 }
 0x4b4   :  { %v4528_v22 = vmax.f32 %v4335_v11, 0.0  ;;  %v7447_v3 = vpop.f32.mrf.mxu0 }
 0x4b5   :  { %8010 = vrcp.f32 %v5816_v1  ;;  %v6529_v34 = vmul.f32 -1.442695, %v5149_v47 }
 0x4b6   :  { %v8003_v9 = vpop.eup %8002  ;;  %v4601_v44 = vpack.c.bf16 %v4528_v22, %v4527_v54 }
 0x4b7   :  { %v5817_v8 = vadd.f32 1.0, %v8003_v9  ;;  %8012 = vpow2.f32 %v6529_v34 }
 0x4b8   :  { %v8005_v27 = vpop.eup %8004  ;;  %v5153_v59 = vpop.f32.mrf.mxu0  ;;  %7513 = vmatmul.mubr.msk.bf16.gmra.mxu0 %vm3699_vm2, %v4601_v44 }
 0x4b9   :  { %6190 = vst.msk [vmem:[%s12760_s6 + $0x200] sm:$0xff] %vm6125_vm3, %v8005_v27  ;;  %8014 = vrcp.f32 %v5817_v8  ;;  %v5154_v41 = vadd.f32 %v12291_v56, %v5153_v59  ;;  %7516 = vmatprep.mubr.msk.bf16.mxu0 %vm8412_vm0, %v12801_v2 }
 0x4ba   :  { %v7450_v0 = vpop.f32.mrf.mxu0 }
 0x4bb   :  { %v6530_v63 = vmul.f32 -1.442695, %v5154_v41  ;;  %v4339_v55 = vpop.f32.mrf.mxu1 }
 0x4bc   :  { %v8007_v30 = vpop.eup %8006  ;;  %v5156_v19 = vpop.f32.mrf.mxu0  ;;  %v4340_v36 = vadd.f32 %v12232_v12, %v4339_v55 }
 0x4bd   :  { %6191 = vst.msk [vmem:[%s12760_s6 + $0x208] sm:$0xff] %vm6125_vm3, %v8007_v30  ;;  %8016 = vpow2.f32 %v6530_v63  ;;  %v5157_v25 = vadd.f32 %v12291_v56, %v5156_v19  ;;  %v7258_v5 = vpop.f32.mrf.mxu1 }
 0x4be   :  { %v7451_v17 = vpop.f32.mrf.mxu0  ;;  %v4529_v35 = vmax.f32 %v4340_v36, 0.0 }
 0x4bf   :  { %v6531_v31 = vmul.f32 -1.442695, %v5157_v25  ;;  %v4342_v58 = vpop.f32.mrf.mxu1 }
 0x4c0   :  { %v8009_v48 = vpop.eup %8008  ;;  %v4343_v62 = vadd.f32 %v12232_v12, %v4342_v58 }
 0x4c1   :  { %v5818_v28 = vadd.f32 1.0, %v8009_v48  ;;  %8018 = vpow2.f32 %v6531_v31  ;;  %v7259_v24 = vpop.f32.mrf.mxu1 }
 0x4c2   :  { %v8011_v6 = vpop.eup %8010  ;;  %v4530_v49 = vmax.f32 %v4343_v62, 0.0 }
 0x4c3   :  { %6192 = vst.msk [vmem:[%s12760_s6 + $0x210] sm:$0xff] %vm6125_vm3, %v8011_v6  ;;  %8020 = vrcp.f32 %v5818_v28 }
 0x4c4   :  { %v8013_v57 = vpop.eup %8012  ;;  %v4602_v29 = vpack.c.bf16 %v4530_v49, %v4529_v35 }
 0x4c5   :  { %v5819_v61 = vadd.f32 1.0, %v8013_v57  ;;  %v4347_v46 = vpop.f32.mrf.mxu1 }
 0x4c6   :  { %v8015_v32 = vpop.eup %8014  ;;  %v5161_v50 = vpop.f32.mrf.mxu0  ;;  %7517 = vmatmul.mubr.msk.bf16.gmra.mxu0 %vm3699_vm2, %v4602_v29  ;;  %v4348_v53 = vadd.f32 %v12232_v12, %v4347_v46 }
 0x4c7   :  { %6193 = vst.msk [vmem:[%s12760_s6 + $0x218] sm:$0xff] %vm6125_vm3, %v8015_v32  ;;  %8022 = vrcp.f32 %v5819_v61  ;;  %v5162_v37 = vadd.f32 %v12291_v56, %v5161_v50  ;;  %v7262_v51 = vpop.f32.mrf.mxu1  ;;  %7520 = vmatprep.mubr.msk.bf16.mxu0 %vm8412_vm0, %v12801_v2 }
 0x4c8   :  { %v7454_v40 = vpop.f32.mrf.mxu0  ;;  %v4531_v16 = vmax.f32 %v4348_v53, 0.0 }
 0x4c9   :  { %v6532_v60 = vmul.f32 -1.442695, %v5162_v37  ;;  %v4350_v23 = vpop.f32.mrf.mxu1 }
 0x4ca   :  { %v8017_v42 = vpop.eup %8016  ;;  %v4351_v21 = vadd.f32 %v12232_v12, %v4350_v23  ;;  %v5164_v33 = vpop.f32.mrf.mxu0 }
 0x4cb   :  { %v5820_v43 = vadd.f32 1.0, %v8017_v42  ;;  %8024 = vpow2.f32 %v6532_v60  ;;  %v5165_v39 = vadd.f32 %v12291_v56, %v5164_v33  ;;  %v7263_v10 = vpop.f32.mrf.mxu1 }
 0x4cc   :  { %v4532_v7 = vmax.f32 %v4351_v21, 0.0  ;;  %v7455_v15 = vpop.f32.mrf.mxu0 }
 0x4cd   :  { %8026 = vrcp.f32 %v5820_v43  ;;  %v6533_v26 = vmul.f32 -1.442695, %v5165_v39 }
 0x4ce   :  { %v8019_v18 = vpop.eup %8018  ;;  %v4603_v52 = vpack.c.bf16 %v4532_v7, %v4531_v16 }
 0x4cf   :  { %v5821_v4 = vadd.f32 1.0, %v8019_v18  ;;  %8028 = vpow2.f32 %v6533_v26 }
 0x4d0   :  { %v8021_v20 = vpop.eup %8020  ;;  %v5169_v38 = vpop.f32.mrf.mxu0  ;;  %7521 = vmatmul.mubr.msk.bf16.gmra.mxu0 %vm3699_vm2, %v4603_v52 }
 0x4d1   :  { %6194 = vst.msk [vmem:[%s12760_s6 + $0x220] sm:$0xff] %vm6125_vm3, %v8021_v20  ;;  %8030 = vrcp.f32 %v5821_v4  ;;  %v5170_v14 = vadd.f32 %v12291_v56, %v5169_v38  ;;  %7524 = vmatprep.mubr.msk.bf16.mxu0 %vm8412_vm0, %v12801_v2 }
 0x4d2   :  { %v7458_v11 = vpop.f32.mrf.mxu0 }
 0x4d3   :  { %v6534_v13 = vmul.f32 -1.442695, %v5170_v14  ;;  %v4355_v1 = vpop.f32.mrf.mxu1 }
 0x4d4   :  { %v8023_v47 = vpop.eup %8022  ;;  %v5172_v45 = vpop.f32.mrf.mxu0  ;;  %v4356_v3 = vadd.f32 %v12232_v12, %v4355_v1 }
 0x4d5   :  { %6195 = vst.msk [vmem:[%s12760_s6 + $0x228] sm:$0xff] %vm6125_vm3, %v8023_v47  ;;  %8032 = vpow2.f32 %v6534_v13  ;;  %v5173_v54 = vadd.f32 %v12291_v56, %v5172_v45  ;;  %v7266_v22 = vpop.f32.mrf.mxu1 }
 0x4d6   :  { %v7459_v34 = vpop.f32.mrf.mxu0  ;;  %v4533_v63 = vmax.f32 %v4356_v3, 0.0 }
 0x4d7   :  { %v6535_v9 = vmul.f32 -1.442695, %v5173_v54  ;;  %v4358_v44 = vpop.f32.mrf.mxu1 }
 0x4d8   :  { %v8025_v8 = vpop.eup %8024  ;;  %v4359_v27 = vadd.f32 %v12232_v12, %v4358_v44 }
 0x4d9   :  { %v5822_v59 = vadd.f32 1.0, %v8025_v8  ;;  %8034 = vpow2.f32 %v6535_v9  ;;  %v7267_v41 = vpop.f32.mrf.mxu1 }
 0x4da   :  { %v8027_v0 = vpop.eup %8026  ;;  %v4534_v55 = vmax.f32 %v4359_v27, 0.0 }
 0x4db   :  { %6196 = vst.msk [vmem:[%s12760_s6 + $0x230] sm:$0xff] %vm6125_vm3, %v8027_v0  ;;  %8036 = vrcp.f32 %v5822_v59 }
 0x4dc   :  { %v8029_v30 = vpop.eup %8028  ;;  %v4604_v19 = vpack.c.bf16 %v4534_v55, %v4533_v63 }
 0x4dd   :  { %v5823_v25 = vadd.f32 1.0, %v8029_v30  ;;  %v4363_v5 = vpop.f32.mrf.mxu1 }
 0x4de   :  { %v8031_v36 = vpop.eup %8030  ;;  %v5177_v17 = vpop.f32.mrf.mxu0  ;;  %7525 = vmatmul.mubr.msk.bf16.gmra.mxu0 %vm3699_vm2, %v4604_v19  ;;  %v4364_v48 = vadd.f32 %v12232_v12, %v4363_v5 }
 0x4df   :  { %6197 = vst.msk [vmem:[%s12760_s6 + $0x238] sm:$0xff] %vm6125_vm3, %v8031_v36  ;;  %8038 = vrcp.f32 %v5823_v25  ;;  %v5178_v31 = vadd.f32 %v12291_v56, %v5177_v17  ;;  %v7270_v58 = vpop.f32.mrf.mxu1  ;;  %7528 = vmatprep.mubr.msk.bf16.mxu0 %vm8412_vm0, %v12801_v2 }
 0x4e0   :  { %v7462_v62 = vpop.f32.mrf.mxu0  ;;  %v4535_v46 = vmax.f32 %v4364_v48, 0.0 }
 0x4e1   :  { %v6536_v28 = vmul.f32 -1.442695, %v5178_v31  ;;  %v4366_v24 = vpop.f32.mrf.mxu1 }
 0x4e2   :  { %v8033_v6 = vpop.eup %8032  ;;  %v4367_v35 = vadd.f32 %v12232_v12, %v4366_v24  ;;  %v5180_v49 = vpop.f32.mrf.mxu0 }
 0x4e3   :  { %v5824_v57 = vadd.f32 1.0, %v8033_v6  ;;  %8040 = vpow2.f32 %v6536_v28  ;;  %v5181_v29 = vadd.f32 %v12291_v56, %v5180_v49  ;;  %v7271_v61 = vpop.f32.mrf.mxu1 }
 0x4e4   :  { %v4536_v32 = vmax.f32 %v4367_v35, 0.0  ;;  %v7463_v50 = vpop.f32.mrf.mxu0 }
 0x4e5   :  { %8042 = vrcp.f32 %v5824_v57  ;;  %v6537_v37 = vmul.f32 -1.442695, %v5181_v29 }
 0x4e6   :  { %v8035_v51 = vpop.eup %8034  ;;  %v4605_v53 = vpack.c.bf16 %v4536_v32, %v4535_v46  ;;  %v12496_v32 = vld [vmem:[%s12758_s5 + $0x4] ss:$0 sm:$0xff] }
 0x4e7   :  { %v5825_v40 = vadd.f32 1.0, %v8035_v51  ;;  %8044 = vpow2.f32 %v6537_v37 }
 0x4e8   :  { %v8037_v60 = vpop.eup %8036  ;;  %v5185_v23 = vpop.f32.mrf.mxu0  ;;  %7529 = vmatmul.mubr.msk.bf16.gmra.mxu0 %vm3699_vm2, %v4605_v53 }
 0x4e9   :  { %6198 = vst.msk [vmem:[%s12760_s6 + $0x240] sm:$0xff] %vm6125_vm3, %v8037_v60  ;;  %8046 = vrcp.f32 %v5825_v40  ;;  %v5186_v42 = vadd.f32 %v12291_v56, %v5185_v23  ;;  %7532 = vmatprep.mubr.msk.bf16.mxu0 %vm8412_vm0, %v12801_v2 }
 0x4ea   :  { %v7466_v21 = vpop.f32.mrf.mxu0 }
 0x4eb   :  { %v6538_v33 = vmul.f32 -1.442695, %v5186_v42  ;;  %v4371_v43 = vpop.f32.mrf.mxu1 }
 0x4ec   :  { %v8039_v39 = vpop.eup %8038  ;;  %v5188_v10 = vpop.f32.mrf.mxu0  ;;  %v4372_v15 = vadd.f32 %v12232_v12, %v4371_v43 }
 0x4ed   :  { %6199 = vst.msk [vmem:[%s12760_s6 + $0x248] sm:$0xff] %vm6125_vm3, %v8039_v39  ;;  %8048 = vpow2.f32 %v6538_v33  ;;  %v5189_v16 = vadd.f32 %v12291_v56, %v5188_v10  ;;  %v7274_v7 = vpop.f32.mrf.mxu1 }
 0x4ee   :  { %v7467_v26 = vpop.f32.mrf.mxu0  ;;  %v4537_v13 = vmax.f32 %v4372_v15, 0.0 }
 0x4ef   :  { %v6539_v18 = vmul.f32 -1.442695, %v5189_v16  ;;  %v4374_v52 = vpop.f32.mrf.mxu1 }
 0x4f0   :  { %v8041_v4 = vpop.eup %8040  ;;  %v4375_v20 = vadd.f32 %v12232_v12, %v4374_v52 }
 0x4f1   :  { %v5826_v38 = vadd.f32 1.0, %v8041_v4  ;;  %8050 = vpow2.f32 %v6539_v18  ;;  %v7275_v14 = vpop.f32.mrf.mxu1 }
 0x4f2   :  { %v8043_v11 = vpop.eup %8042  ;;  %v4538_v1 = vmax.f32 %v4375_v20, 0.0 }
 0x4f3   :  { %6200 = vst.msk [vmem:[%s12760_s6 + $0x250] sm:$0xff] %vm6125_vm3, %v8043_v11  ;;  %8052 = vrcp.f32 %v5826_v38 }
 0x4f4   :  { %v8045_v47 = vpop.eup %8044  ;;  %v4606_v45 = vpack.c.bf16 %v4538_v1, %v4537_v13 }
 0x4f5   :  { %v5827_v54 = vadd.f32 1.0, %v8045_v47  ;;  %v4379_v22 = vpop.f32.mrf.mxu1 }
 0x4f6   :  { %v8047_v3 = vpop.eup %8046  ;;  %v5193_v34 = vpop.f32.mrf.mxu0  ;;  %7533 = vmatmul.mubr.msk.bf16.gmra.mxu0 %vm3699_vm2, %v4606_v45  ;;  %v4380_v8 = vadd.f32 %v12232_v12, %v4379_v22 }
 0x4f7   :  { %6201 = vst.msk [vmem:[%s12760_s6 + $0x258] sm:$0xff] %vm6125_vm3, %v8047_v3  ;;  %8054 = vrcp.f32 %v5827_v54  ;;  %v5194_v9 = vadd.f32 %v12291_v56, %v5193_v34  ;;  %v7278_v44 = vpop.f32.mrf.mxu1  ;;  %7536 = vmatprep.mubr.msk.bf16.mxu0 %vm8412_vm0, %v12801_v2 }
 0x4f8   :  { %v7470_v27 = vpop.f32.mrf.mxu0  ;;  %v4539_v5 = vmax.f32 %v4380_v8, 0.0 }
 0x4f9   :  { %v6540_v59 = vmul.f32 -1.442695, %v5194_v9  ;;  %v4382_v41 = vpop.f32.mrf.mxu1 }
 0x4fa   :  { %v8049_v0 = vpop.eup %8048  ;;  %v4383_v63 = vadd.f32 %v12232_v12, %v4382_v41  ;;  %v5196_v55 = vpop.f32.mrf.mxu0 }
 0x4fb   :  { %v5828_v30 = vadd.f32 1.0, %v8049_v0  ;;  %8056 = vpow2.f32 %v6540_v59  ;;  %v5197_v19 = vadd.f32 %v12291_v56, %v5196_v55  ;;  %v7279_v25 = vpop.f32.mrf.mxu1 }
 0x4fc   :  { %v4540_v36 = vmax.f32 %v4383_v63, 0.0  ;;  %v7471_v17 = vpop.f32.mrf.mxu0 }
 0x4fd   :  { %8058 = vrcp.f32 %v5828_v30  ;;  %v6541_v31 = vmul.f32 -1.442695, %v5197_v19 }
 0x4fe   :  { %v8051_v58 = vpop.eup %8050  ;;  %v4607_v48 = vpack.c.bf16 %v4540_v36, %v4539_v5 }
 0x4ff   :  { %v5829_v62 = vadd.f32 1.0, %v8051_v58  ;;  %8060 = vpow2.f32 %v6541_v31 }
 0x500   :  { %v8053_v28 = vpop.eup %8052  ;;  %v5201_v24 = vpop.f32.mrf.mxu0  ;;  %7537 = vmatmul.mubr.msk.bf16.gmra.mxu0 %vm3699_vm2, %v4607_v48 }
 0x501   :  { %6202 = vst.msk [vmem:[%s12760_s6 + $0x260] sm:$0xff] %vm6125_vm3, %v8053_v28  ;;  %8062 = vrcp.f32 %v5829_v62  ;;  %v5202_v12 = vadd.f32 %v12291_v56, %v5201_v24  ;;  %7540 = vmatprep.mubr.msk.bf16.mxu0 %vm8412_vm0, %v12801_v2 }
 0x502   :  { %v7474_v6 = vpop.f32.mrf.mxu0 }
 0x503   :  { %v6542_v35 = vmul.f32 -1.442695, %v5202_v12  ;;  %v4387_v49 = vpop.f32.mrf.mxu1 }
 0x504   :  { %v8055_v57 = vpop.eup %8054  ;;  %v5204_v29 = vpop.f32.mrf.mxu0  ;;  %v4388_v50 = vadd.f32 %v12496_v32, %v4387_v49 }
 0x505   :  { %6203 = vst.msk [vmem:[%s12760_s6 + $0x268] sm:$0xff] %vm6125_vm3, %v8055_v57  ;;  %8064 = vpow2.f32 %v6542_v35  ;;  %v5205_v61 = vadd.f32 %v12291_v56, %v5204_v29  ;;  %v7282_v46 = vpop.f32.mrf.mxu1 }
 0x506   :  { %v7475_v37 = vpop.f32.mrf.mxu0  ;;  %v4541_v33 = vmax.f32 %v4388_v50, 0.0 }
 0x507   :  { %v6543_v51 = vmul.f32 -1.442695, %v5205_v61  ;;  %v4390_v53 = vpop.f32.mrf.mxu1 }
 0x508   :  { %v8057_v40 = vpop.eup %8056  ;;  %v4391_v60 = vadd.f32 %v12496_v32, %v4390_v53 }
 0x509   :  { %v5830_v23 = vadd.f32 1.0, %v8057_v40  ;;  %8066 = vpow2.f32 %v6543_v51  ;;  %v7283_v42 = vpop.f32.mrf.mxu1 }
 0x50a   :  { %v8059_v21 = vpop.eup %8058  ;;  %v4542_v43 = vmax.f32 %v4391_v60, 0.0 }
 0x50b   :  { %6204 = vst.msk [vmem:[%s12760_s6 + $0x270] sm:$0xff] %vm6125_vm3, %v8059_v21  ;;  %8068 = vrcp.f32 %v5830_v23 }
 0x50c   :  { %v8061_v39 = vpop.eup %8060  ;;  %v4608_v10 = vpack.c.bf16 %v4542_v43, %v4541_v33 }
 0x50d   :  { %v5831_v16 = vadd.f32 1.0, %v8061_v39  ;;  %v4395_v7 = vpop.f32.mrf.mxu1 }
 0x50e   :  { %v8063_v15 = vpop.eup %8062  ;;  %v5209_v26 = vpop.f32.mrf.mxu0  ;;  %7541 = vmatmul.mubr.msk.bf16.gmra.mxu0 %vm3699_vm2, %v4608_v10  ;;  %v4396_v4 = vadd.f32 %v12496_v32, %v4395_v7  ;;  %v12547_v10 = vld [vmem:[%s12758_s5 + $0x5] ss:$0 sm:$0xff] }
 0x50f   :  { %6205 = vst.msk [vmem:[%s12760_s6 + $0x278] sm:$0xff] %vm6125_vm3, %v8063_v15  ;;  %8070 = vrcp.f32 %v5831_v16  ;;  %v5210_v18 = vadd.f32 %v12291_v56, %v5209_v26  ;;  %v7286_v52 = vpop.f32.mrf.mxu1  ;;  %7544 = vmatprep.mubr.msk.bf16.mxu0 %vm8412_vm0, %v12801_v2 }
 0x510   :  { %v7478_v20 = vpop.f32.mrf.mxu0  ;;  %v4543_v22 = vmax.f32 %v4396_v4, 0.0 }
 0x511   :  { %v6544_v38 = vmul.f32 -1.442695, %v5210_v18  ;;  %v4398_v14 = vpop.f32.mrf.mxu1 }
 0x512   :  { %v8065_v11 = vpop.eup %8064  ;;  %v4399_v13 = vadd.f32 %v12496_v32, %v4398_v14  ;;  %v5212_v1 = vpop.f32.mrf.mxu0 }
 0x513   :  { %v5832_v47 = vadd.f32 1.0, %v8065_v11  ;;  %8072 = vpow2.f32 %v6544_v38  ;;  %v5213_v45 = vadd.f32 %v12291_v56, %v5212_v1  ;;  %v7287_v54 = vpop.f32.mrf.mxu1 }
 0x514   :  { %v4544_v3 = vmax.f32 %v4399_v13, 0.0  ;;  %v7479_v34 = vpop.f32.mrf.mxu0 }
 0x515   :  { %8074 = vrcp.f32 %v5832_v47  ;;  %v6545_v9 = vmul.f32 -1.442695, %v5213_v45 }
 0x516   :  { %v8067_v44 = vpop.eup %8066  ;;  %v4609_v8 = vpack.c.bf16 %v4544_v3, %v4543_v22 }
 0x517   :  { %v5833_v27 = vadd.f32 1.0, %v8067_v44  ;;  %8076 = vpow2.f32 %v6545_v9 }
 0x518   :  { %v8069_v59 = vpop.eup %8068  ;;  %v5217_v41 = vpop.f32.mrf.mxu0  ;;  %7545 = vmatmul.mubr.msk.bf16.gmra.mxu0 %vm3699_vm2, %v4609_v8 }
 0x519   :  { %6206 = vst.msk [vmem:[%s12760_s6 + $0x280] sm:$0xff] %vm6125_vm3, %v8069_v59  ;;  %8078 = vrcp.f32 %v5833_v27  ;;  %v5218_v0 = vadd.f32 %v12291_v56, %v5217_v41  ;;  %7548 = vmatprep.mubr.msk.bf16.mxu0 %vm8412_vm0, %v12801_v2 }
 0x51a   :  { %v7482_v63 = vpop.f32.mrf.mxu0 }
 0x51b   :  { %v6546_v55 = vmul.f32 -1.442695, %v5218_v0  ;;  %v4403_v30 = vpop.f32.mrf.mxu1 }
 0x51c   :  { %v8071_v19 = vpop.eup %8070  ;;  %v5220_v25 = vpop.f32.mrf.mxu0  ;;  %v4404_v17 = vadd.f32 %v12496_v32, %v4403_v30 }
 0x51d   :  { %6207 = vst.msk [vmem:[%s12760_s6 + $0x288] sm:$0xff] %vm6125_vm3, %v8071_v19  ;;  %8080 = vpow2.f32 %v6546_v55  ;;  %v5221_v5 = vadd.f32 %v12291_v56, %v5220_v25  ;;  %v7290_v36 = vpop.f32.mrf.mxu1 }
 0x51e   :  { %v7483_v31 = vpop.f32.mrf.mxu0  ;;  %v4545_v35 = vmax.f32 %v4404_v17, 0.0 }
 0x51f   :  { %v6547_v58 = vmul.f32 -1.442695, %v5221_v5  ;;  %v4406_v48 = vpop.f32.mrf.mxu1 }
 0x520   :  { %v8073_v62 = vpop.eup %8072  ;;  %v4407_v28 = vadd.f32 %v12496_v32, %v4406_v48 }
 0x521   :  { %v5834_v24 = vadd.f32 1.0, %v8073_v62  ;;  %8082 = vpow2.f32 %v6547_v58  ;;  %v7291_v12 = vpop.f32.mrf.mxu1 }
 0x522   :  { %v8075_v6 = vpop.eup %8074  ;;  %v4546_v49 = vmax.f32 %v4407_v28, 0.0 }
 0x523   :  { %6208 = vst.msk [vmem:[%s12760_s6 + $0x290] sm:$0xff] %vm6125_vm3, %v8075_v6  ;;  %8084 = vrcp.f32 %v5834_v24 }
 0x524   :  { %v8077_v57 = vpop.eup %8076  ;;  %v4610_v29 = vpack.c.bf16 %v4546_v49, %v4545_v35 }
 0x525   :  { %v5835_v61 = vadd.f32 1.0, %v8077_v57  ;;  %v4411_v46 = vpop.f32.mrf.mxu1 }
 0x526   :  { %v8079_v50 = vpop.eup %8078  ;;  %v5225_v37 = vpop.f32.mrf.mxu0  ;;  %7549 = vmatmul.mubr.msk.bf16.gmra.mxu0 %vm3699_vm2, %v4610_v29  ;;  %v4412_v40 = vadd.f32 %v12496_v32, %v4411_v46 }
 0x527   :  { %6209 = vst.msk [vmem:[%s12760_s6 + $0x298] sm:$0xff] %vm6125_vm3, %v8079_v50  ;;  %8086 = vrcp.f32 %v5835_v61  ;;  %v5226_v51 = vadd.f32 %v12291_v56, %v5225_v37  ;;  %v7294_v53 = vpop.f32.mrf.mxu1  ;;  %7552 = vmatprep.mubr.msk.bf16.mxu0 %vm8412_vm0, %v12801_v2 }
 0x528   :  { %v7486_v60 = vpop.f32.mrf.mxu0  ;;  %v4547_v7 = vmax.f32 %v4412_v40, 0.0 }
 0x529   :  { %v6548_v23 = vmul.f32 -1.442695, %v5226_v51  ;;  %v4414_v42 = vpop.f32.mrf.mxu1 }
 0x52a   :  { %v8081_v21 = vpop.eup %8080  ;;  %v4415_v33 = vadd.f32 %v12496_v32, %v4414_v42  ;;  %v5228_v43 = vpop.f32.mrf.mxu0 }
 0x52b   :  { %v5836_v39 = vadd.f32 1.0, %v8081_v21  ;;  %8088 = vpow2.f32 %v6548_v23  ;;  %v5229_v56 = vadd.f32 %v12547_v10, %v5228_v43  ;;  %v7295_v16 = vpop.f32.mrf.mxu1 }
 0x52c   :  { %v4548_v15 = vmax.f32 %v4415_v33, 0.0  ;;  %v7487_v26 = vpop.f32.mrf.mxu0 }
 0x52d   :  { %8090 = vrcp.f32 %v5836_v39  ;;  %v6549_v18 = vmul.f32 -1.442695, %v5229_v56  ;;  %v4419_v52 = vpop.f32.mrf.mxu1 }
 0x52e   :  { %v8083_v4 = vpop.eup %8082  ;;  %v4611_v20 = vpack.c.bf16 %v4548_v15, %v4547_v7  ;;  %v4420_v38 = vadd.f32 %v12496_v32, %v4419_v52 }
 0x52f   :  { %v5837_v14 = vadd.f32 1.0, %v8083_v4  ;;  %8092 = vpow2.f32 %v6549_v18  ;;  %v7298_v11 = vpop.f32.mrf.mxu1 }
 0x530   :  { %v8085_v13 = vpop.eup %8084  ;;  %v5233_v1 = vpop.f32.mrf.mxu0  ;;  %7553 = vmatmul.mubr.msk.bf16.gmra.mxu0 %vm3699_vm2, %v4611_v20  ;;  %v4549_v32 = vmax.f32 %v4420_v38, 0.0 }
 0x531   :  { %6210 = vst.msk [vmem:[%s12760_s6 + $0x2a0] sm:$0xff] %vm6125_vm3, %v8085_v13  ;;  %8094 = vrcp.f32 %v5837_v14  ;;  %v5234_v47 = vadd.f32 %v12547_v10, %v5233_v1  ;;  %v4422_v45 = vpop.f32.mrf.mxu1  ;;  %7556 = vmatprep.mubr.msk.bf16.mxu0 %vm8412_vm0, %v12801_v2 }
 0x532   :  { %v7490_v54 = vpop.f32.mrf.mxu0  ;;  %v4612_v8 = vpack.c.bf16 %v4549_v32, %v4549_v32 }
 0x533   :  { %v6550_v22 = vmul.f32 -1.442695, %v5234_v47  ;;  %v7299_v3 = vpop.f32.mrf.mxu1 }
 0x534   :  { %v8087_v34 = vpop.eup %8086  ;;  %v5236_v9 = vpop.f32.mrf.mxu0 }
 0x535   :  { %6211 = vst.msk [vmem:[%s12760_s6 + $0x2a8] sm:$0xff] %vm6125_vm3, %v8087_v34  ;;  %8096 = vpow2.f32 %v6550_v22  ;;  %v5237_v44 = vadd.f32 %v12547_v10, %v5236_v9 }
 0x536   :  { %v7491_v27 = vpop.f32.mrf.mxu0 }
 0x537   :  { %v6551_v59 = vmul.f32 -1.442695, %v5237_v44 }
 0x538   :  { %v8089_v41 = vpop.eup %8088  ;;  %7557 = vmatmul.mubr.msk.bf16.gmra.mxu0 %vm3699_vm2, %v4612_v8 }
 0x539   :  { %v5838_v2 = vadd.f32 1.0, %v8089_v41  ;;  %8098 = vpow2.f32 %v6551_v59 }
 0x53a   :  { %v8091_v0 = vpop.eup %8090 }
 0x53b   :  { %6212 = vst.msk [vmem:[%s12760_s6 + $0x2b0] sm:$0xff] %vm6125_vm3, %v8091_v0  ;;  %8100 = vrcp.f32 %v5838_v2 }
 0x53c   :  { %v8093_v63 = vpop.eup %8092 }
 0x53d   :  { %v5839_v55 = vadd.f32 1.0, %v8093_v63 }
 0x53e   :  { %v8095_v30 = vpop.eup %8094  ;;  %v5241_v19 = vpop.f32.mrf.mxu0 }
 0x53f   :  { %6213 = vst.msk [vmem:[%s12760_s6 + $0x2b8] sm:$0xff] %vm6125_vm3, %v8095_v30  ;;  %8102 = vrcp.f32 %v5839_v55  ;;  %v5242_v25 = vadd.f32 %v12547_v10, %v5241_v19 }
 0x540   :  { %v7494_v5 = vpop.f32.mrf.mxu0 }
 0x541   :  { %v6552_v36 = vmul.f32 -1.442695, %v5242_v25 }
 0x542   :  { %v8097_v17 = vpop.eup %8096  ;;  %v5244_v31 = vpop.f32.mrf.mxu0 }
 0x543   :  { %v5840_v58 = vadd.f32 1.0, %v8097_v17  ;;  %8104 = vpow2.f32 %v6552_v36  ;;  %v5245_v48 = vadd.f32 %v12547_v10, %v5244_v31 }
 0x544   :  { %v7495_v62 = vpop.f32.mrf.mxu0 }
 0x545   :  { %8106 = vrcp.f32 %v5840_v58  ;;  %v6553_v28 = vmul.f32 -1.442695, %v5245_v48 }
 0x546   :  { %v8099_v24 = vpop.eup %8098 }
 0x547   :  { %v5841_v12 = vadd.f32 1.0, %v8099_v24  ;;  %8108 = vpow2.f32 %v6553_v28 }
 0x548   :  { %v8101_v6 = vpop.eup %8100  ;;  %v5249_v35 = vpop.f32.mrf.mxu0 }
 0x549   :  { %6214 = vst.msk [vmem:[%s12760_s6 + $0x2c0] sm:$0xff] %vm6125_vm3, %v8101_v6  ;;  %8110 = vrcp.f32 %v5841_v12  ;;  %v5250_v49 = vadd.f32 %v12547_v10, %v5249_v35 }
 0x54a   :  { %v7498_v57 = vpop.f32.mrf.mxu0 }
 0x54b   :  { %v6554_v29 = vmul.f32 -1.442695, %v5250_v49 }
 0x54c   :  { %v8103_v61 = vpop.eup %8102  ;;  %v5252_v46 = vpop.f32.mrf.mxu0 }
 0x54d   :  { %6215 = vst.msk [vmem:[%s12760_s6 + $0x2c8] sm:$0xff] %vm6125_vm3, %v8103_v61  ;;  %8112 = vpow2.f32 %v6554_v29  ;;  %v5253_v50 = vadd.f32 %v12547_v10, %v5252_v46 }
 0x54e   :  { %v7499_v37 = vpop.f32.mrf.mxu0 }
 0x54f   :  { %v6555_v51 = vmul.f32 -1.442695, %v5253_v50 }
 0x550   :  { %v8105_v53 = vpop.eup %8104 }
 0x551   :  { %v5842_v40 = vadd.f32 1.0, %v8105_v53  ;;  %8114 = vpow2.f32 %v6555_v51 }
 0x552   :  { %v8107_v60 = vpop.eup %8106 }
 0x553   :  { %6216 = vst.msk [vmem:[%s12760_s6 + $0x2d0] sm:$0xff] %vm6125_vm3, %v8107_v60  ;;  %8116 = vrcp.f32 %v5842_v40 }
 0x554   :  { %v8109_v23 = vpop.eup %8108 }
 0x555   :  { %v5843_v42 = vadd.f32 1.0, %v8109_v23 }
 0x556   :  { %v8111_v21 = vpop.eup %8110  ;;  %v5257_v33 = vpop.f32.mrf.mxu0 }
 0x557   :  { %6217 = vst.msk [vmem:[%s12760_s6 + $0x2d8] sm:$0xff] %vm6125_vm3, %v8111_v21  ;;  %8118 = vrcp.f32 %v5843_v42  ;;  %v5258_v43 = vadd.f32 %v12547_v10, %v5257_v33 }
 0x558   :  { %v7502_v39 = vpop.f32.mrf.mxu0 }
 0x559   :  { %v6556_v56 = vmul.f32 -1.442695, %v5258_v43 }
 0x55a   :  { %v8113_v16 = vpop.eup %8112  ;;  %v5260_v7 = vpop.f32.mrf.mxu0 }
 0x55b   :  { %v5844_v15 = vadd.f32 1.0, %v8113_v16  ;;  %8120 = vpow2.f32 %v6556_v56  ;;  %v5261_v26 = vadd.f32 %v12547_v10, %v5260_v7 }
 0x55c   :  { %v7503_v18 = vpop.f32.mrf.mxu0 }
 0x55d   :  { %8122 = vrcp.f32 %v5844_v15  ;;  %v6557_v52 = vmul.f32 -1.442695, %v5261_v26 }
 0x55e   :  { %v8115_v4 = vpop.eup %8114 }
 0x55f   :  { %v5845_v20 = vadd.f32 1.0, %v8115_v4  ;;  %8124 = vpow2.f32 %v6557_v52 }
 0x560   :  { %v8117_v38 = vpop.eup %8116  ;;  %v5265_v14 = vpop.f32.mrf.mxu0 }
 0x561   :  { %6218 = vst.msk [vmem:[%s12760_s6 + $0x2e0] sm:$0xff] %vm6125_vm3, %v8117_v38  ;;  %8126 = vrcp.f32 %v5845_v20  ;;  %v5266_v11 = vadd.f32 %v12547_v10, %v5265_v14 }
 0x562   :  { %v7506_v13 = vpop.f32.mrf.mxu0 }
 0x563   :  { %v6558_v1 = vmul.f32 -1.442695, %v5266_v11 }
 0x564   :  { %v8119_v47 = vpop.eup %8118  ;;  %v5268_v45 = vpop.f32.mrf.mxu0 }
 0x565   :  { %6219 = vst.msk [vmem:[%s12760_s6 + $0x2e8] sm:$0xff] %vm6125_vm3, %v8119_v47  ;;  %8128 = vpow2.f32 %v6558_v1  ;;  %v5269_v32 = vadd.f32 %v12547_v10, %v5268_v45 }
 0x566   :  { %v7507_v54 = vpop.f32.mrf.mxu0 }
 0x567   :  { %v6559_v22 = vmul.f32 -1.442695, %v5269_v32 }
 0x568   :  { %v8121_v3 = vpop.eup %8120 }
 0x569   :  { %v5846_v34 = vadd.f32 1.0, %v8121_v3  ;;  %8130 = vpow2.f32 %v6559_v22 }
 0x56a   :  { %v8123_v9 = vpop.eup %8122 }
 0x56b   :  { %6220 = vst.msk [vmem:[%s12760_s6 + $0x2f0] sm:$0xff] %vm6125_vm3, %v8123_v9  ;;  %8132 = vrcp.f32 %v5846_v34 }
 0x56c   :  { %v8125_v44 = vpop.eup %8124 }
 0x56d   :  { %v5847_v8 = vadd.f32 1.0, %v8125_v44 }
 0x56e   :  { %v8127_v27 = vpop.eup %8126  ;;  %v5273_v59 = vpop.f32.mrf.mxu0 }
 0x56f   :  { %6221 = vst.msk [vmem:[%s12760_s6 + $0x2f8] sm:$0xff] %vm6125_vm3, %v8127_v27  ;;  %8134 = vrcp.f32 %v5847_v8  ;;  %v5274_v41 = vadd.f32 %v12547_v10, %v5273_v59 }
 0x570   :  { %v7510_v2 = vpop.f32.mrf.mxu0 }
 0x571   :  { %v6560_v0 = vmul.f32 -1.442695, %v5274_v41 }
 0x572   :  { %v8129_v63 = vpop.eup %8128  ;;  %v5276_v55 = vpop.f32.mrf.mxu0 }
 0x573   :  { %v5848_v30 = vadd.f32 1.0, %v8129_v63  ;;  %8136 = vpow2.f32 %v6560_v0  ;;  %v5277_v19 = vadd.f32 %v12547_v10, %v5276_v55 }
 0x574   :  { %v7511_v25 = vpop.f32.mrf.mxu0 }
 0x575   :  { %8138 = vrcp.f32 %v5848_v30  ;;  %v6561_v5 = vmul.f32 -1.442695, %v5277_v19 }
 0x576   :  { %v8131_v36 = vpop.eup %8130 }
 0x577   :  { %v5849_v17 = vadd.f32 1.0, %v8131_v36  ;;  %8140 = vpow2.f32 %v6561_v5 }
 0x578   :  { %v8133_v31 = vpop.eup %8132  ;;  %v5281_v58 = vpop.f32.mrf.mxu0 }
 0x579   :  { %6222 = vst.msk [vmem:[%s12760_s6 + $0x300] sm:$0xff] %vm6125_vm3, %v8133_v31  ;;  %8142 = vrcp.f32 %v5849_v17  ;;  %v5282_v48 = vadd.f32 %v12547_v10, %v5281_v58 }
 0x57a   :  { %v7514_v62 = vpop.f32.mrf.mxu0 }
 0x57b   :  { %v6562_v28 = vmul.f32 -1.442695, %v5282_v48 }
 0x57c   :  { %v8135_v24 = vpop.eup %8134  ;;  %v5284_v12 = vpop.f32.mrf.mxu0 }
 0x57d   :  { %6223 = vst.msk [vmem:[%s12760_s6 + $0x308] sm:$0xff] %vm6125_vm3, %v8135_v24  ;;  %8144 = vpow2.f32 %v6562_v28  ;;  %v5285_v6 = vadd.f32 %v12547_v10, %v5284_v12 }
 0x57e   :  { %v7515_v35 = vpop.f32.mrf.mxu0 }
 0x57f   :  { %v6563_v49 = vmul.f32 -1.442695, %v5285_v6 }
 0x580   :  { %v8137_v57 = vpop.eup %8136 }
 0x581   :  { %v5850_v29 = vadd.f32 1.0, %v8137_v57  ;;  %8146 = vpow2.f32 %v6563_v49 }
 0x582   :  { %v8139_v61 = vpop.eup %8138 }
 0x583   :  { %6224 = vst.msk [vmem:[%s12760_s6 + $0x310] sm:$0xff] %vm6125_vm3, %v8139_v61  ;;  %8148 = vrcp.f32 %v5850_v29 }
 0x584   :  { %v8141_v46 = vpop.eup %8140 }
 0x585   :  { %v5851_v50 = vadd.f32 1.0, %v8141_v46 }
 0x586   :  { %v8143_v37 = vpop.eup %8142  ;;  %v5289_v51 = vpop.f32.mrf.mxu0 }
 0x587   :  { %6225 = vst.msk [vmem:[%s12760_s6 + $0x318] sm:$0xff] %vm6125_vm3, %v8143_v37  ;;  %8150 = vrcp.f32 %v5851_v50  ;;  %v5290_v53 = vadd.f32 %v12547_v10, %v5289_v51 }
 0x588   :  { %v7518_v40 = vpop.f32.mrf.mxu0 }
 0x589   :  { %v6564_v60 = vmul.f32 -1.442695, %v5290_v53 }
 0x58a   :  { %v8145_v23 = vpop.eup %8144  ;;  %v5292_v42 = vpop.f32.mrf.mxu0 }
 0x58b   :  { %v5852_v21 = vadd.f32 1.0, %v8145_v23  ;;  %8152 = vpow2.f32 %v6564_v60  ;;  %v5293_v33 = vadd.f32 %v12547_v10, %v5292_v42 }
 0x58c   :  { %v7519_v43 = vpop.f32.mrf.mxu0 }
 0x58d   :  { %8154 = vrcp.f32 %v5852_v21  ;;  %v6565_v39 = vmul.f32 -1.442695, %v5293_v33 }
 0x58e   :  { %v8147_v56 = vpop.eup %8146 }
 0x58f   :  { %v5853_v16 = vadd.f32 1.0, %v8147_v56  ;;  %8156 = vpow2.f32 %v6565_v39 }
 0x590   :  { %v8149_v7 = vpop.eup %8148  ;;  %v5297_v15 = vpop.f32.mrf.mxu0 }
 0x591   :  { %6226 = vst.msk [vmem:[%s12760_s6 + $0x320] sm:$0xff] %vm6125_vm3, %v8149_v7  ;;  %8158 = vrcp.f32 %v5853_v16  ;;  %v5298_v26 = vadd.f32 %v12547_v10, %v5297_v15 }
 0x592   :  { %v7522_v18 = vpop.f32.mrf.mxu0 }
 0x593   :  { %v6566_v52 = vmul.f32 -1.442695, %v5298_v26 }
 0x594   :  { %v8151_v4 = vpop.eup %8150  ;;  %v5300_v20 = vpop.f32.mrf.mxu0 }
 0x595   :  { %6227 = vst.msk [vmem:[%s12760_s6 + $0x328] sm:$0xff] %vm6125_vm3, %v8151_v4  ;;  %8160 = vpow2.f32 %v6566_v52  ;;  %v5301_v38 = vadd.f32 %v12547_v10, %v5300_v20 }
 0x596   :  { %v7523_v14 = vpop.f32.mrf.mxu0 }
 0x597   :  { %v6567_v11 = vmul.f32 -1.442695, %v5301_v38 }
 0x598   :  { %v8153_v13 = vpop.eup %8152 }
 0x599   :  { %v5854_v1 = vadd.f32 1.0, %v8153_v13  ;;  %8162 = vpow2.f32 %v6567_v11 }
 0x59a   :  { %v8155_v47 = vpop.eup %8154 }
 0x59b   :  { %6228 = vst.msk [vmem:[%s12760_s6 + $0x330] sm:$0xff] %vm6125_vm3, %v8155_v47  ;;  %8164 = vrcp.f32 %v5854_v1 }
 0x59c   :  { %v8157_v45 = vpop.eup %8156 }
 0x59d   :  { %v5855_v32 = vadd.f32 1.0, %v8157_v45 }
 0x59e   :  { %v8159_v54 = vpop.eup %8158  ;;  %v5305_v22 = vpop.f32.mrf.mxu0 }
 0x59f   :  { %6229 = vst.msk [vmem:[%s12760_s6 + $0x338] sm:$0xff] %vm6125_vm3, %v8159_v54  ;;  %8166 = vrcp.f32 %v5855_v32  ;;  %v5306_v3 = vadd.f32 %v12547_v10, %v5305_v22 }
 0x5a0   :  { %v7526_v34 = vpop.f32.mrf.mxu0 }
 0x5a1   :  { %v6568_v9 = vmul.f32 -1.442695, %v5306_v3 }
 0x5a2   :  { %v8161_v44 = vpop.eup %8160  ;;  %v5308_v8 = vpop.f32.mrf.mxu0 }
 0x5a3   :  { %v5856_v27 = vadd.f32 1.0, %v8161_v44  ;;  %8168 = vpow2.f32 %v6568_v9  ;;  %v5309_v59 = vadd.f32 %v12547_v10, %v5308_v8 }
 0x5a4   :  { %v7527_v41 = vpop.f32.mrf.mxu0 }
 0x5a5   :  { %8170 = vrcp.f32 %v5856_v27  ;;  %v6569_v2 = vmul.f32 -1.442695, %v5309_v59 }
 0x5a6   :  { %v8163_v0 = vpop.eup %8162 }
 0x5a7   :  { %v5857_v63 = vadd.f32 1.0, %v8163_v0  ;;  %8172 = vpow2.f32 %v6569_v2 }
 0x5a8   :  { %v8165_v55 = vpop.eup %8164  ;;  %v5313_v30 = vpop.f32.mrf.mxu0 }
 0x5a9   :  { %6230 = vst.msk [vmem:[%s12760_s6 + $0x340] sm:$0xff] %vm6125_vm3, %v8165_v55  ;;  %8174 = vrcp.f32 %v5857_v63  ;;  %v5314_v19 = vadd.f32 %v12547_v10, %v5313_v30 }
 0x5aa   :  { %v7530_v25 = vpop.f32.mrf.mxu0 }
 0x5ab   :  { %v6570_v5 = vmul.f32 -1.442695, %v5314_v19 }
 0x5ac   :  { %v8167_v36 = vpop.eup %8166  ;;  %v5316_v17 = vpop.f32.mrf.mxu0 }
 0x5ad   :  { %6231 = vst.msk [vmem:[%s12760_s6 + $0x348] sm:$0xff] %vm6125_vm3, %v8167_v36  ;;  %8176 = vpow2.f32 %v6570_v5  ;;  %v5317_v31 = vadd.f32 %v12547_v10, %v5316_v17 }
 0x5ae   :  { %v7531_v58 = vpop.f32.mrf.mxu0 }
 0x5af   :  { %v6571_v48 = vmul.f32 -1.442695, %v5317_v31 }
 0x5b0   :  { %v8169_v62 = vpop.eup %8168 }
 0x5b1   :  { %v5858_v28 = vadd.f32 1.0, %v8169_v62  ;;  %8178 = vpow2.f32 %v6571_v48 }
 0x5b2   :  { %v8171_v24 = vpop.eup %8170 }
 0x5b3   :  { %6232 = vst.msk [vmem:[%s12760_s6 + $0x350] sm:$0xff] %vm6125_vm3, %v8171_v24  ;;  %8180 = vrcp.f32 %v5858_v28 }
 0x5b4   :  { %v8173_v12 = vpop.eup %8172 }
 0x5b5   :  { %v5859_v6 = vadd.f32 1.0, %v8173_v12 }
 0x5b6   :  { %v8175_v35 = vpop.eup %8174  ;;  %v5321_v49 = vpop.f32.mrf.mxu0 }
 0x5b7   :  { %6233 = vst.msk [vmem:[%s12760_s6 + $0x358] sm:$0xff] %vm6125_vm3, %v8175_v35  ;;  %8182 = vrcp.f32 %v5859_v6  ;;  %v5322_v57 = vadd.f32 %v12547_v10, %v5321_v49 }
 0x5b8   :  { %v7534_v29 = vpop.f32.mrf.mxu0 }
 0x5b9   :  { %v6572_v61 = vmul.f32 -1.442695, %v5322_v57 }
 0x5ba   :  { %v8177_v46 = vpop.eup %8176  ;;  %v5324_v50 = vpop.f32.mrf.mxu0 }
 0x5bb   :  { %v5860_v37 = vadd.f32 1.0, %v8177_v46  ;;  %8184 = vpow2.f32 %v6572_v61  ;;  %v5325_v51 = vadd.f32 %v12547_v10, %v5324_v50 }
 0x5bc   :  { %v7535_v53 = vpop.f32.mrf.mxu0 }
 0x5bd   :  { %8186 = vrcp.f32 %v5860_v37  ;;  %v6573_v40 = vmul.f32 -1.442695, %v5325_v51 }
 0x5be   :  { %v8179_v60 = vpop.eup %8178 }
 0x5bf   :  { %v5861_v23 = vadd.f32 1.0, %v8179_v60  ;;  %8188 = vpow2.f32 %v6573_v40 }
 0x5c0   :  { %v8181_v42 = vpop.eup %8180  ;;  %v5329_v21 = vpop.f32.mrf.mxu0 }
 0x5c1   :  { %6234 = vst.msk [vmem:[%s12760_s6 + $0x360] sm:$0xff] %vm6125_vm3, %v8181_v42  ;;  %8190 = vrcp.f32 %v5861_v23  ;;  %v5330_v33 = vadd.f32 %v12547_v10, %v5329_v21 }
 0x5c2   :  { %v7538_v43 = vpop.f32.mrf.mxu0 }
 0x5c3   :  { %v6574_v39 = vmul.f32 -1.442695, %v5330_v33 }
 0x5c4   :  { %v8183_v56 = vpop.eup %8182  ;;  %v5332_v16 = vpop.f32.mrf.mxu0 }
 0x5c5   :  { %6235 = vst.msk [vmem:[%s12760_s6 + $0x368] sm:$0xff] %vm6125_vm3, %v8183_v56  ;;  %8192 = vpow2.f32 %v6574_v39  ;;  %v5333_v7 = vadd.f32 %v12547_v10, %v5332_v16 }
 0x5c6   :  { %v7539_v15 = vpop.f32.mrf.mxu0 }
 0x5c7   :  { %v6575_v26 = vmul.f32 -1.442695, %v5333_v7 }
 0x5c8   :  { %v8185_v18 = vpop.eup %8184 }
 0x5c9   :  { %v5862_v52 = vadd.f32 1.0, %v8185_v18  ;;  %8194 = vpow2.f32 %v6575_v26 }
 0x5ca   :  { %v8187_v4 = vpop.eup %8186 }
 0x5cb   :  { %6236 = vst.msk [vmem:[%s12760_s6 + $0x370] sm:$0xff] %vm6125_vm3, %v8187_v4  ;;  %8196 = vrcp.f32 %v5862_v52 }
 0x5cc   :  { %v8189_v20 = vpop.eup %8188 }
 0x5cd   :  { %v5863_v38 = vadd.f32 1.0, %v8189_v20 }
 0x5ce   :  { %v8191_v14 = vpop.eup %8190  ;;  %v5337_v11 = vpop.f32.mrf.mxu0 }
 0x5cf   :  { %6237 = vst.msk [vmem:[%s12760_s6 + $0x378] sm:$0xff] %vm6125_vm3, %v8191_v14  ;;  %8198 = vrcp.f32 %v5863_v38  ;;  %v5338_v13 = vadd.f32 %v12547_v10, %v5337_v11 }
 0x5d0   :  { %v7542_v1 = vpop.f32.mrf.mxu0 }
 0x5d1   :  { %v6576_v47 = vmul.f32 -1.442695, %v5338_v13 }
 0x5d2   :  { %v8193_v45 = vpop.eup %8192  ;;  %v5340_v32 = vpop.f32.mrf.mxu0 }
 0x5d3   :  { %v5864_v54 = vadd.f32 1.0, %v8193_v45  ;;  %8200 = vpow2.f32 %v6576_v47  ;;  %v5341_v22 = vadd.f32 %v12547_v10, %v5340_v32 }
 0x5d4   :  { %v7543_v3 = vpop.f32.mrf.mxu0 }
 0x5d5   :  { %8202 = vrcp.f32 %v5864_v54  ;;  %v6577_v34 = vmul.f32 -1.442695, %v5341_v22 }
 0x5d6   :  { %v8195_v9 = vpop.eup %8194 }
 0x5d7   :  { %v5865_v44 = vadd.f32 1.0, %v8195_v9  ;;  %8204 = vpow2.f32 %v6577_v34 }
 0x5d8   :  { %v8197_v8 = vpop.eup %8196  ;;  %v5345_v27 = vpop.f32.mrf.mxu0 }
 0x5d9   :  { %6238 = vst.msk [vmem:[%s12760_s6 + $0x380] sm:$0xff] %vm6125_vm3, %v8197_v8  ;;  %8206 = vrcp.f32 %v5865_v44  ;;  %v5346_v59 = vadd.f32 %v12547_v10, %v5345_v27 }
 0x5da   :  { %v7546_v41 = vpop.f32.mrf.mxu0 }
 0x5db   :  { %v6578_v2 = vmul.f32 -1.442695, %v5346_v59 }
 0x5dc   :  { %v8199_v0 = vpop.eup %8198  ;;  %v5348_v63 = vpop.f32.mrf.mxu0 }
 0x5dd   :  { %6239 = vst.msk [vmem:[%s12760_s6 + $0x388] sm:$0xff] %vm6125_vm3, %v8199_v0  ;;  %8208 = vpow2.f32 %v6578_v2  ;;  %v5349_v55 = vadd.f32 %v12547_v10, %v5348_v63 }
 0x5de   :  { %v7547_v30 = vpop.f32.mrf.mxu0 }
 0x5df   :  { %v6579_v19 = vmul.f32 -1.442695, %v5349_v55 }
 0x5e0   :  { %v8201_v25 = vpop.eup %8200 }
 0x5e1   :  { %v5866_v5 = vadd.f32 1.0, %v8201_v25  ;;  %8210 = vpow2.f32 %v6579_v19 }
 0x5e2   :  { %v8203_v36 = vpop.eup %8202 }
 0x5e3   :  { %6240 = vst.msk [vmem:[%s12760_s6 + $0x390] sm:$0xff] %vm6125_vm3, %v8203_v36  ;;  %8212 = vrcp.f32 %v5866_v5 }
 0x5e4   :  { %v8205_v17 = vpop.eup %8204 }
 0x5e5   :  { %v5867_v31 = vadd.f32 1.0, %v8205_v17 }
 0x5e6   :  { %v8207_v58 = vpop.eup %8206  ;;  %v5353_v48 = vpop.f32.mrf.mxu0 }
 0x5e7   :  { %6241 = vst.msk [vmem:[%s12760_s6 + $0x398] sm:$0xff] %vm6125_vm3, %v8207_v58  ;;  %8214 = vrcp.f32 %v5867_v31  ;;  %v5354_v62 = vadd.f32 %v12547_v10, %v5353_v48 }
 0x5e8   :  { %v7550_v28 = vpop.f32.mrf.mxu0 }
 0x5e9   :  { %v6580_v24 = vmul.f32 -1.442695, %v5354_v62 }
 0x5ea   :  { %v8209_v12 = vpop.eup %8208  ;;  %v5356_v6 = vpop.f32.mrf.mxu0 }
 0x5eb   :  { %v5868_v35 = vadd.f32 1.0, %v8209_v12  ;;  %8216 = vpow2.f32 %v6580_v24  ;;  %v5357_v49 = vadd.f32 %v12547_v10, %v5356_v6 }
 0x5ec   :  { %v7551_v57 = vpop.f32.mrf.mxu0 }
 0x5ed   :  { %8218 = vrcp.f32 %v5868_v35  ;;  %v6581_v29 = vmul.f32 -1.442695, %v5357_v49 }
 0x5ee   :  { %v8211_v61 = vpop.eup %8210 }
 0x5ef   :  { %v5869_v46 = vadd.f32 1.0, %v8211_v61  ;;  %8220 = vpow2.f32 %v6581_v29 }
 0x5f0   :  { %v8213_v50 = vpop.eup %8212  ;;  %v5361_v37 = vpop.f32.mrf.mxu0 }
 0x5f1   :  { %6242 = vst.msk [vmem:[%s12760_s6 + $0x3a0] sm:$0xff] %vm6125_vm3, %v8213_v50  ;;  %8222 = vrcp.f32 %v5869_v46  ;;  %v5362_v51 = vadd.f32 %v12547_v10, %v5361_v37 }
 0x5f2   :  { %v7554_v53 = vpop.f32.mrf.mxu0 }
 0x5f3   :  { %v6582_v40 = vmul.f32 -1.442695, %v5362_v51 }
 0x5f4   :  { %v8215_v60 = vpop.eup %8214  ;;  %v5364_v23 = vpop.f32.mrf.mxu0 }
 0x5f5   :  { %6243 = vst.msk [vmem:[%s12760_s6 + $0x3a8] sm:$0xff] %vm6125_vm3, %v8215_v60  ;;  %8224 = vpow2.f32 %v6582_v40  ;;  %v5365_v42 = vadd.f32 %v12547_v10, %v5364_v23 }
 0x5f6   :  { %v7555_v21 = vpop.f32.mrf.mxu0 }
 0x5f7   :  { %v6583_v33 = vmul.f32 -1.442695, %v5365_v42 }
 0x5f8   :  { %v8217_v43 = vpop.eup %8216  ;;  %v5369_v39 = vpop.f32.mrf.mxu0 }
 0x5f9   :  { %v5870_v56 = vadd.f32 1.0, %v8217_v43  ;;  %8226 = vpow2.f32 %v6583_v33  ;;  %v5370_v16 = vadd.f32 %v12547_v10, %v5369_v39 }
 0x5fa   :  { %v8219_v7 = vpop.eup %8218  ;;  %v7558_v15 = vpop.f32.mrf.mxu0 }
 0x5fb   :  { %6244 = vst.msk [vmem:[%s12760_s6 + $0x3b0] sm:$0xff] %vm6125_vm3, %v8219_v7  ;;  %8228 = vrcp.f32 %v5870_v56  ;;  %v6584_v26 = vmul.f32 -1.442695, %v5370_v16 }
 0x5fc   :  { %v8221_v18 = vpop.eup %8220  ;;  %v5372_v52 = vpop.f32.mrf.mxu0 }
 0x5fd   :  { %v5871_v4 = vadd.f32 1.0, %v8221_v18  ;;  %8230 = vpow2.f32 %v6584_v26 }
 0x5fe   :  { %v8223_v20 = vpop.eup %8222  ;;  %v7559_v38 = vpop.f32.mrf.mxu0 }
 0x5ff   :  { %6245 = vst.msk [vmem:[%s12760_s6 + $0x3b8] sm:$0xff] %vm6125_vm3, %v8223_v20  ;;  %8232 = vrcp.f32 %v5871_v4 }
 0x602   :  { %v8225_v10 = vpop.eup %8224 }
 0x603   :  { %v5872_v14 = vadd.f32 1.0, %v8225_v10 }
 0x605   :  { %8234 = vrcp.f32 %v5872_v14 }
 0x606   :  { %v8227_v11 = vpop.eup %8226 }
 0x607   :  { %v5873_v13 = vadd.f32 1.0, %v8227_v11 }
 0x608   :  { %v8229_v1 = vpop.eup %8228 }
 0x609   :  { %6246 = vst.msk [vmem:[%s12760_s6 + $0x3c0] sm:$0xff] %vm6125_vm3, %v8229_v1  ;;  %8236 = vrcp.f32 %v5873_v13 }
 0x60a   :  { %v8231_v47 = vpop.eup %8230 }
 0x60b   :  { %v5874_v45 = vadd.f32 1.0, %v8231_v47 }
 0x60c   :  { %v8233_v32 = vpop.eup %8232 }
 0x60d   :  { %6247 = vst.msk [vmem:[%s12760_s6 + $0x3c8] sm:$0xff] %vm6125_vm3, %v8233_v32  ;;  %8238 = vrcp.f32 %v5874_v45 }
 0x612   :  { %v8235_v54 = vpop.eup %8234 }
 0x613   :  { %6248 = vst.msk [vmem:[%s12760_s6 + $0x3d0] sm:$0xff] %vm6125_vm3, %v8235_v54 }
 0x616   :  { %v8237_v22 = vpop.eup %8236 }
 0x617   :  { %6249 = vst.msk [vmem:[%s12760_s6 + $0x3d8] sm:$0xff] %vm6125_vm3, %v8237_v22 }
 0x61a   :  { %v8239_v3 = vpop.eup %8238 }
 0x61b   :  { %6250 = vst.msk [vmem:[%s12760_s6 + $0x3e0] sm:$0xff] %vm6125_vm3, %v8239_v3 }

</bundles_post_ra>
